<compile_context>
chip_gen: v5e
topology: v5e:2x2
jax: 0.10.0
libtpu: 0.0.40
codegen_flags: <defaults>
</compile_context>

<pallas_src>
import jax
import jax.numpy as jnp
from jax import lax
from jax.experimental import pallas as pl
from jax.experimental.pallas import tpu as pltpu

KERNEL_SIZES = (3, 5, 5, 7, 7, 9, 9, 15)   # the 8 residual Conv1d layers
FC1_OUT = 128                              # hardcoded in the PyTorch module
_MAX_K = max(KERNEL_SIZES)


def _elu(z):
    # ELU with alpha=1; clamp the exp argument so the unselected branch stays finite.
    return jnp.where(z > 0, z, jnp.exp(jnp.minimum(z, 0.0)) - 1.0)


def _tpu_generation():
    """Best-effort chip detection -> (tensorcores_per_chip, mxu_contraction_depth)."""
    kind = ""
    try:
        dev = jax.devices()[0]
        if dev.platform == "tpu":
            kind = dev.device_kind.lower()
    except Exception:
        pass
    if "v7" in kind:
        return 2, 256            # 2 TensorCores / chip, 2x256x256 MXU
    if "v6" in kind:
        return 1, 256            # 1 TC, 2x256x256 MXU
    if "v5p" in kind or "v4" in kind:
        return 2, 128            # megacore generations
    return 1, 128                # v5e / unknown: conservative default


def _chunk_sizes(ksize, width, mxu_depth):
    """Split `ksize` taps into balanced chunks of at most mxu_depth // width taps,
    so each fused-tap matmul has a contraction depth of ~mxu_depth."""
    tpc = max(1, mxu_depth // width)
    n_chunks = -(-ksize // tpc)            # ceil division
    base, rem = divmod(ksize, n_chunks)
    return [base + (1 if i < rem else 0) for i in range(n_chunks)]


def _block_vmem_bytes(bt, nx, width, cin, tf, mxu_depth):
    """Rough per-grid-step live-bytes estimate used to cap the batch tile."""
    m = bt * nx
    tpc = max(1, mxu_depth // width)
    act = m * width * (4 + 2 + 4)            # h (f32) + bf16 copy + conv acc (f32)
    chunk = 2 * m * tpc * width * 2          # rolled copies + their lane-concat (bf16)
    fc = m * (FC1_OUT + cin + tf) * 4        # fc1 activation + misc
    io = 2 * m * (cin + tf) * 4              # double-buffered input/output blocks
    return act + chunk + fc + io


def _choose_batch_tile(B, nx, width, cin, tf, mxu_depth, n_cores,
                       vmem_budget=12 * 1024 * 1024):
    """Bt = B (single grid step) on 1-TensorCore chips; on 2-TC chips the largest
    divisor of B giving >= 2 blocks whose temporaries fit the VMEM budget and whose
    Bt*nx stays 128-lane aligned (needed for the lane-dense output block)."""
    def ok(bt):
        aligned = (bt == B) or ((bt * nx) % 128 == 0)
        return aligned and _block_vmem_bytes(bt, nx, width, cin, tf, mxu_depth) <= vmem_budget

    divs = [d for d in range(B, 0, -1) if B % d == 0]
    if n_cores >= 2:
        for bt in divs:                      # both cores busy with decent M
            if B // bt >= 2 and ok(bt):
                return bt
    for bt in divs:                          # single core (or no valid split): biggest block
        if ok(bt):
            return bt
    return B


def _make_cnn_kernel(bt, nx, width, tf, chunk_plans):
    """Build the fused kernel for a fixed (Bt, nx, width, tf) configuration."""
    m = bt * nx
    bf = jnp.bfloat16

    def _croll(x, shift):
        # circular shift along the spatial axis; skip the no-op center tap
        return x if shift % nx == 0 else jnp.roll(x, shift, axis=1)

    def kernel(xin_ref, w0_ref, b0_ref, wc_ref, bc_ref,
               w1_ref, b1_ref, w2t_ref, b2t_ref, out_ref):
        # fc0: lift to hidden width (bf16 MXU inputs, f32 accumulation).
        h = jnp.dot(xin_ref[...].astype(bf), w0_ref[...],
                    preferred_element_type=jnp.float32) + b0_ref[...]   # (m, width) f32

        # 8 residual circular-conv layers: h = elu(h + conv(h)), tap-fused matmuls.
        row_off = 0
        for l, ksize in enumerate(KERNEL_SIZES):
            pad = ksize // 2
            h3 = h.reshape(bt, nx, width)
            acc = None
            t0 = 0
            for clen in chunk_plans[l]:
                # Only this chunk's shifted copies are generated (<= clen live at a
                # time) and each is cast to bf16 right after the roll, so the
                # lane-concat and the MXU input are bf16.
                shifted = [_croll(h3, pad - (t0 + j)).astype(bf) for j in range(clen)]
                cat = shifted[0] if clen == 1 else jnp.concatenate(shifted, axis=-1)
                cat2 = cat.reshape(m, clen * width)
                # tap-major weight rows for taps [t0, t0+clen) of layer l
                w_chunk = wc_ref[row_off + t0 * width:
                                 row_off + (t0 + clen) * width, :]   # (clen*width, width)
                d = jnp.dot(cat2, w_chunk, preferred_element_type=jnp.float32)
                acc = d if acc is None else acc + d
                t0 += clen
            h = _elu(h + acc + bc_ref[l:l + 1, :])                   # all f32 elementwise
            row_off += ksize * width

        # fc1 + ELU
        y = _elu(jnp.dot(h.astype(bf), w1_ref[...],
                         preferred_element_type=jnp.float32) + b1_ref[...])
        # fc2 emitted transposed: out_t = w2^T . y^T  ->  (tf, m), so the output
        # block's last dim is Bt*nx (lane-dense stores) instead of tf=4.
        out_t = lax.dot_general(
            w2t_ref[...], y.astype(bf),
            dimension_numbers=(((1,), (1,)), ((), ())),   # A . B^T (contract width-128)
            preferred_element_type=jnp.float32) + b2t_ref[...]
        out_ref[...] = out_t.astype(out_ref.dtype)

    return kernel


def cnn_forward(u, dx, dt, params):
    """u: [B, nx, time_history], dx: [B], dt: [B] -> [B, nx, time_future]."""
    B, nx, th = u.shape
    cin = th + 2
    width = params["w0"].shape[1]
    tf = params["w2"].shape[1]
    n_conv = len(KERNEL_SIZES)
    bf = jnp.bfloat16
    assert nx >= _MAX_K, "circular-roll conv assumes nx >= largest kernel size (15)"

    n_cores, mxu_depth = _tpu_generation()
    Bt = _choose_batch_tile(B, nx, width, cin, tf, mxu_depth, n_cores)
    chunk_plans = [_chunk_sizes(k, width, mxu_depth) for k in KERNEL_SIZES]

    # glue: append dx, dt as two extra "time" channels (same as torch.cat in forward),
    # then flatten to a (B*nx, cin) slab so the kernel needs no input reshape.
    xin = jnp.concatenate(
        [u,
         jnp.broadcast_to(dx[:, None, None], (B, nx, 1)).astype(u.dtype),
         jnp.broadcast_to(dt[:, None, None], (B, nx, 1)).astype(u.dtype)],
        axis=-1).reshape(B * nx, cin)

    # matmul weights as bf16 (f32 accumulation in-kernel); biases stay f32.
    w0 = params["w0"].astype(bf)
    w1 = params["w1"].astype(bf)
    w2t = params["w2"].T.astype(bf)                       # (tf, FC1_OUT), lhs of A.B^T
    b2t = params["b2"].T                                  # (tf, 1) f32
    # stacked conv weights: per-layer (K, c_in, c_out) -> tap-major (K*c_in, c_out)
    wc = jnp.concatenate(
        [params[f"wc{l}"].reshape(KERNEL_SIZES[l] * width, width)
         for l in range(n_conv)], axis=0).astype(bf)      # (sum(K)*width, width)
    bc = jnp.concatenate([params[f"bc{l}"] for l in range(n_conv)],
                         axis=0)                          # (n_conv, width) f32

    consts = [w0, params["b0"], wc, bc, w1, params["b1"], w2t, b2t]

    def const_spec(a):
        nd = a.ndim
        # TODO(synk): pipeline_mode=pl.Buffered(1) would drop the second pipeline
        # buffer for these grid-invariant blocks (~150 KiB); omitted for lowering
        # safety across toolchains.
        return pl.BlockSpec(a.shape, lambda b: (0,) * nd)

    in_specs = [pl.BlockSpec((Bt * nx, cin), lambda b: (b, 0))]
    in_specs += [const_spec(a) for a in consts]
    out_spec = pl.BlockSpec((tf, Bt * nx), lambda b: (0, b))

    out_t = pl.pallas_call(
        _make_cnn_kernel(Bt, nx, width, tf, chunk_plans),
        out_shape=jax.ShapeDtypeStruct((tf, B * nx), jnp.float32),
        grid_spec=pltpu.PrefetchScalarGridSpec(
            num_scalar_prefetch=0,
            grid=(B // Bt,),
            in_specs=in_specs,
            out_specs=out_spec,
        ),
        compiler_params=pltpu.CompilerParams(
            dimension_semantics=("parallel",)),
    )(xin, *consts)

    # wrapper-side layout plumbing: (tf, B*nx) -> (B, nx, tf)
    return out_t.reshape(tf, B, nx).transpose(1, 2, 0)


def init_params(key, time_history, time_future, width):
    """Deterministic synthetic parameters (shapes follow the PyTorch __init__)."""
    cin = time_history + 2
    keys = jax.random.split(key, 2 * len(KERNEL_SIZES) + 6)
    ki = iter(range(len(keys)))

    def linear(fin, fout):
        lim = 1.0 / jnp.sqrt(jnp.float32(fin))
        w = jax.random.uniform(keys[next(ki)], (fin, fout), jnp.float32, -lim, lim)
        b = jax.random.uniform(keys[next(ki)], (1, fout), jnp.float32, -lim, lim)
        return w, b

    params = {}
    params["w0"], params["b0"] = linear(cin, width)             # fc0
    for l, ksize in enumerate(KERNEL_SIZES):
        fan = width * ksize
        lim_w = jnp.sqrt(6.0 / jnp.float32(fan + fan))          # xavier_uniform
        # stored as [tap, c_in, c_out] (== torch weight[co, ci, k] transposed)
        params[f"wc{l}"] = jax.random.uniform(
            keys[next(ki)], (ksize, width, width), jnp.float32, -lim_w, lim_w)
        lim_b = 1.0 / jnp.sqrt(jnp.float32(fan))
        params[f"bc{l}"] = jax.random.uniform(
            keys[next(ki)], (1, width), jnp.float32, -lim_b, lim_b)
    params["w1"], params["b1"] = linear(width, FC1_OUT)         # fc1
    params["w2"], params["b2"] = linear(FC1_OUT, time_future)   # fc2
    return params


def cnn_reference(u, dx, dt, params):
    """Pure-JAX reference mirroring the kernel's numerics:
    bf16 matmul inputs, f32 accumulation, all elementwise math in f32."""
    B, nx, _ = u.shape
    bf = jnp.bfloat16
    x = jnp.concatenate(
        [u,
         jnp.broadcast_to(dx[:, None, None], (B, nx, 1)).astype(u.dtype),
         jnp.broadcast_to(dt[:, None, None], (B, nx, 1)).astype(u.dtype)],
        axis=-1)
    h = jnp.dot(x.astype(bf), params["w0"].astype(bf),
                preferred_element_type=jnp.float32) + params["b0"]
    for l, ksize in enumerate(KERNEL_SIZES):
        pad = ksize // 2
        hb = h.astype(bf)
        wl = params[f"wc{l}"].astype(bf)
        acc = jnp.zeros_like(h)
        for k in range(ksize):
            acc = acc + jnp.dot(jnp.roll(hb, shift=pad - k, axis=1), wl[k],
                                preferred_element_type=jnp.float32)
        h = _elu(h + acc + params[f"bc{l}"])
    y = _elu(jnp.dot(h.astype(bf), params["w1"].astype(bf),
                     preferred_element_type=jnp.float32) + params["b1"])
    return jnp.dot(y.astype(bf), params["w2"].astype(bf),
                   preferred_element_type=jnp.float32) + params["b2"]


if __name__ == "__main__":
    # small shapes consistent with the module: nx must be >= largest kernel size (15)
    B, nx = 2, 64
    time_history, time_future, width = 4, 4, 32

    key = jax.random.PRNGKey(0)
    ku, kdx, kdt, kp = jax.random.split(key, 4)
    u = jax.random.normal(ku, (B, nx, time_history), jnp.float32)
    dx = jax.random.uniform(kdx, (B,), jnp.float32, 0.01, 0.1)
    dt = jax.random.uniform(kdt, (B,), jnp.float32, 0.01, 0.1)
    params = init_params(kp, time_history, time_future, width)

    out = jax.block_until_ready(cnn_forward(u, dx, dt, params))
    assert out.shape == (B, nx, time_future), out.shape

    ref = cnn_reference(u, dx, dt, params)
    scale = float(jnp.max(jnp.abs(ref))) + 1e-6
    err = float(jnp.max(jnp.abs(out - ref)))
    assert err < 1e-2 * max(1.0, scale), \
        f"kernel/reference mismatch, max abs err = {err} (ref scale {scale})"

    print("KERNEL_OK")
</pallas_src>

<mosaic_0001>
module attributes {stable_mosaic.version = 11 : i64} {
  func.func @kernel(%arg0: i32, %arg1: memref<128x6xf32, #tpu.memory_space<vmem>>, %arg2: memref<6x32xbf16, #tpu.memory_space<vmem>>, %arg3: memref<1x32xf32, #tpu.memory_space<vmem>>, %arg4: memref<1920x32xbf16, #tpu.memory_space<vmem>>, %arg5: memref<8x32xf32, #tpu.memory_space<vmem>>, %arg6: memref<32x128xbf16, #tpu.memory_space<vmem>>, %arg7: memref<1x128xf32, #tpu.memory_space<vmem>>, %arg8: memref<4x128xbf16, #tpu.memory_space<vmem>>, %arg9: memref<4x1xf32, #tpu.memory_space<vmem>>, %arg10: memref<4x128xf32, #tpu.memory_space<vmem>>) attributes {dimension_semantics = [#tpu.dimension_semantics<parallel>], iteration_bounds = array<i64: 1>, scalar_prefetch = 0 : i64, scratch_operands = 0 : i64, tpu.core_type = #tpu.core_type<tc>, window_params = [{transform_indices = @transform_0, window_bounds = array<i64: 128, 6>}, {pipeline_mode = #tpu.pipeline_mode<synchronous>, transform_indices = @transform_1, window_bounds = array<i64: 6, 32>}, {pipeline_mode = #tpu.pipeline_mode<synchronous>, transform_indices = @transform_2, window_bounds = array<i64: 1, 32>}, {pipeline_mode = #tpu.pipeline_mode<synchronous>, transform_indices = @transform_3, window_bounds = array<i64: 1920, 32>}, {pipeline_mode = #tpu.pipeline_mode<synchronous>, transform_indices = @transform_4, window_bounds = array<i64: 8, 32>}, {pipeline_mode = #tpu.pipeline_mode<synchronous>, transform_indices = @transform_5, window_bounds = array<i64: 32, 128>}, {pipeline_mode = #tpu.pipeline_mode<synchronous>, transform_indices = @transform_6, window_bounds = array<i64: 1, 128>}, {pipeline_mode = #tpu.pipeline_mode<synchronous>, transform_indices = @transform_7, window_bounds = array<i64: 4, 128>}, {pipeline_mode = #tpu.pipeline_mode<synchronous>, transform_indices = @transform_8, window_bounds = array<i64: 4, 1>}, {transform_indices = @transform_9, window_bounds = array<i64: 4, 128>}]} {
    %c0 = arith.constant 0 : index
    %c0_0 = arith.constant 0 : index
    %0 = vector.load %arg1[%c0, %c0_0] : memref<128x6xf32, #tpu.memory_space<vmem>>, vector<128x6xf32>
    %1 = arith.truncf %0 : vector<128x6xf32> to vector<128x6xbf16>
    %c0_1 = arith.constant 0 : index
    %c0_2 = arith.constant 0 : index
    %2 = vector.load %arg2[%c0_1, %c0_2] : memref<6x32xbf16, #tpu.memory_space<vmem>>, vector<6x32xbf16>
    %cst = arith.constant dense<0.000000e+00> : vector<128x32xf32>
    %3 = tpu.matmul %1, %2, %cst {dimension_numbers = #tpu.dot_dimension_numbers<[1], [0], [0], [1], [0, 0, 1, 1], [], []>} : vector<128x6xbf16>, vector<6x32xbf16>, vector<128x32xf32> -> vector<128x32xf32>
    %c0_3 = arith.constant 0 : index
    %c0_4 = arith.constant 0 : index
    %4 = vector.load %arg3[%c0_3, %c0_4] : memref<1x32xf32, #tpu.memory_space<vmem>>, vector<1x32xf32>
    %5 = vector.broadcast %4 : vector<1x32xf32> to vector<128x32xf32>
    %6 = arith.addf %3, %5 : vector<128x32xf32>
    %7 = vector.shape_cast %6 : vector<128x32xf32> to vector<2x64x32xf32>
    %8 = vector.extract_strided_slice %7 {offsets = [0, 63, 0], sizes = [2, 1, 32], strides = [1, 1, 1]} : vector<2x64x32xf32> to vector<2x1x32xf32>
    %9 = vector.extract_strided_slice %7 {offsets = [0, 0, 0], sizes = [2, 63, 32], strides = [1, 1, 1]} : vector<2x64x32xf32> to vector<2x63x32xf32>
    %10 = tpu.concatenate %8, %9 in 1 : vector<2x1x32xf32>, vector<2x63x32xf32> -> vector<2x64x32xf32>
    %11 = arith.truncf %10 : vector<2x64x32xf32> to vector<2x64x32xbf16>
    %12 = arith.truncf %7 : vector<2x64x32xf32> to vector<2x64x32xbf16>
    %13 = vector.extract_strided_slice %7 {offsets = [0, 1, 0], sizes = [2, 63, 32], strides = [1, 1, 1]} : vector<2x64x32xf32> to vector<2x63x32xf32>
    %14 = vector.extract_strided_slice %7 {offsets = [0, 0, 0], sizes = [2, 1, 32], strides = [1, 1, 1]} : vector<2x64x32xf32> to vector<2x1x32xf32>
    %15 = tpu.concatenate %13, %14 in 1 : vector<2x63x32xf32>, vector<2x1x32xf32> -> vector<2x64x32xf32>
    %16 = arith.truncf %15 : vector<2x64x32xf32> to vector<2x64x32xbf16>
    %17 = tpu.concatenate %11, %12, %16 in 2 : vector<2x64x32xbf16>, vector<2x64x32xbf16>, vector<2x64x32xbf16> -> vector<2x64x96xbf16>
    %18 = vector.shape_cast %17 : vector<2x64x96xbf16> to vector<128x96xbf16>
    %c0_5 = arith.constant 0 : index
    %c0_6 = arith.constant 0 : index
    %19 = vector.load %arg4[%c0_5, %c0_6] : memref<1920x32xbf16, #tpu.memory_space<vmem>>, vector<96x32xbf16>
    %cst_7 = arith.constant dense<0.000000e+00> : vector<128x32xf32>
    %20 = tpu.matmul %18, %19, %cst_7 {dimension_numbers = #tpu.dot_dimension_numbers<[1], [0], [0], [1], [0, 0, 1, 1], [], []>} : vector<128x96xbf16>, vector<96x32xbf16>, vector<128x32xf32> -> vector<128x32xf32>
    %21 = arith.addf %6, %20 : vector<128x32xf32>
    %c0_8 = arith.constant 0 : index
    %c0_9 = arith.constant 0 : index
    %22 = vector.load %arg5[%c0_8, %c0_9] : memref<8x32xf32, #tpu.memory_space<vmem>>, vector<1x32xf32>
    %23 = vector.broadcast %22 : vector<1x32xf32> to vector<128x32xf32>
    %24 = arith.addf %21, %23 : vector<128x32xf32>
    %cst_10 = arith.constant 0.000000e+00 : f32
    %25 = vector.broadcast %cst_10 : f32 to vector<128x32xf32>
    %26 = arith.cmpf ogt, %24, %25 : vector<128x32xf32>
    %cst_11 = arith.constant 0.000000e+00 : f32
    %27 = vector.broadcast %cst_11 : f32 to vector<128x32xf32>
    %28 = arith.minimumf %24, %27 : vector<128x32xf32>
    %29 = math.exp %28 : vector<128x32xf32>
    %cst_12 = arith.constant 1.000000e+00 : f32
    %30 = vector.broadcast %cst_12 : f32 to vector<128x32xf32>
    %31 = arith.subf %29, %30 : vector<128x32xf32>
    %32 = arith.select %26, %24, %31 : vector<128x32xi1>, vector<128x32xf32>
    %33 = vector.shape_cast %32 : vector<128x32xf32> to vector<2x64x32xf32>
    %34 = vector.extract_strided_slice %33 {offsets = [0, 62, 0], sizes = [2, 2, 32], strides = [1, 1, 1]} : vector<2x64x32xf32> to vector<2x2x32xf32>
    %35 = vector.extract_strided_slice %33 {offsets = [0, 0, 0], sizes = [2, 62, 32], strides = [1, 1, 1]} : vector<2x64x32xf32> to vector<2x62x32xf32>
    %36 = tpu.concatenate %34, %35 in 1 : vector<2x2x32xf32>, vector<2x62x32xf32> -> vector<2x64x32xf32>
    %37 = arith.truncf %36 : vector<2x64x32xf32> to vector<2x64x32xbf16>
    %38 = vector.extract_strided_slice %33 {offsets = [0, 63, 0], sizes = [2, 1, 32], strides = [1, 1, 1]} : vector<2x64x32xf32> to vector<2x1x32xf32>
    %39 = vector.extract_strided_slice %33 {offsets = [0, 0, 0], sizes = [2, 63, 32], strides = [1, 1, 1]} : vector<2x64x32xf32> to vector<2x63x32xf32>
    %40 = tpu.concatenate %38, %39 in 1 : vector<2x1x32xf32>, vector<2x63x32xf32> -> vector<2x64x32xf32>
    %41 = arith.truncf %40 : vector<2x64x32xf32> to vector<2x64x32xbf16>
    %42 = arith.truncf %33 : vector<2x64x32xf32> to vector<2x64x32xbf16>
    %43 = tpu.concatenate %37, %41, %42 in 2 : vector<2x64x32xbf16>, vector<2x64x32xbf16>, vector<2x64x32xbf16> -> vector<2x64x96xbf16>
    %44 = vector.shape_cast %43 : vector<2x64x96xbf16> to vector<128x96xbf16>
    %c96 = arith.constant 96 : index
    %c0_13 = arith.constant 0 : index
    %45 = vector.load %arg4[%c96, %c0_13] : memref<1920x32xbf16, #tpu.memory_space<vmem>>, vector<96x32xbf16>
    %cst_14 = arith.constant dense<0.000000e+00> : vector<128x32xf32>
    %46 = tpu.matmul %44, %45, %cst_14 {dimension_numbers = #tpu.dot_dimension_numbers<[1], [0], [0], [1], [0, 0, 1, 1], [], []>} : vector<128x96xbf16>, vector<96x32xbf16>, vector<128x32xf32> -> vector<128x32xf32>
    %47 = vector.extract_strided_slice %33 {offsets = [0, 1, 0], sizes = [2, 63, 32], strides = [1, 1, 1]} : vector<2x64x32xf32> to vector<2x63x32xf32>
    %48 = vector.extract_strided_slice %33 {offsets = [0, 0, 0], sizes = [2, 1, 32], strides = [1, 1, 1]} : vector<2x64x32xf32> to vector<2x1x32xf32>
    %49 = tpu.concatenate %47, %48 in 1 : vector<2x63x32xf32>, vector<2x1x32xf32> -> vector<2x64x32xf32>
    %50 = arith.truncf %49 : vector<2x64x32xf32> to vector<2x64x32xbf16>
    %51 = vector.extract_strided_slice %33 {offsets = [0, 2, 0], sizes = [2, 62, 32], strides = [1, 1, 1]} : vector<2x64x32xf32> to vector<2x62x32xf32>
    %52 = vector.extract_strided_slice %33 {offsets = [0, 0, 0], sizes = [2, 2, 32], strides = [1, 1, 1]} : vector<2x64x32xf32> to vector<2x2x32xf32>
    %53 = tpu.concatenate %51, %52 in 1 : vector<2x62x32xf32>, vector<2x2x32xf32> -> vector<2x64x32xf32>
    %54 = arith.truncf %53 : vector<2x64x32xf32> to vector<2x64x32xbf16>
    %55 = tpu.concatenate %50, %54 in 2 : vector<2x64x32xbf16>, vector<2x64x32xbf16> -> vector<2x64x64xbf16>
    %56 = vector.shape_cast %55 : vector<2x64x64xbf16> to vector<128x64xbf16>
    %c192 = arith.constant 192 : index
    %c0_15 = arith.constant 0 : index
    %57 = vector.load %arg4[%c192, %c0_15] : memref<1920x32xbf16, #tpu.memory_space<vmem>>, vector<64x32xbf16>
    %cst_16 = arith.constant dense<0.000000e+00> : vector<128x32xf32>
    %58 = tpu.matmul %56, %57, %cst_16 {dimension_numbers = #tpu.dot_dimension_numbers<[1], [0], [0], [1], [0, 0, 1, 1], [], []>} : vector<128x64xbf16>, vector<64x32xbf16>, vector<128x32xf32> -> vector<128x32xf32>
    %59 = arith.addf %46, %58 : vector<128x32xf32>
    %60 = arith.addf %32, %59 : vector<128x32xf32>
    %c1 = arith.constant 1 : index
    %c0_17 = arith.constant 0 : index
    %61 = vector.load %arg5[%c1, %c0_17] : memref<8x32xf32, #tpu.memory_space<vmem>>, vector<1x32xf32>
    %62 = vector.broadcast %61 : vector<1x32xf32> to vector<128x32xf32>
    %63 = arith.addf %60, %62 : vector<128x32xf32>
    %cst_18 = arith.constant 0.000000e+00 : f32
    %64 = vector.broadcast %cst_18 : f32 to vector<128x32xf32>
    %65 = arith.cmpf ogt, %63, %64 : vector<128x32xf32>
    %cst_19 = arith.constant 0.000000e+00 : f32
    %66 = vector.broadcast %cst_19 : f32 to vector<128x32xf32>
    %67 = arith.minimumf %63, %66 : vector<128x32xf32>
    %68 = math.exp %67 : vector<128x32xf32>
    %cst_20 = arith.constant 1.000000e+00 : f32
    %69 = vector.broadcast %cst_20 : f32 to vector<128x32xf32>
    %70 = arith.subf %68, %69 : vector<128x32xf32>
    %71 = arith.select %65, %63, %70 : vector<128x32xi1>, vector<128x32xf32>
    %72 = vector.shape_cast %71 : vector<128x32xf32> to vector<2x64x32xf32>
    %73 = vector.extract_strided_slice %72 {offsets = [0, 62, 0], sizes = [2, 2, 32], strides = [1, 1, 1]} : vector<2x64x32xf32> to vector<2x2x32xf32>
    %74 = vector.extract_strided_slice %72 {offsets = [0, 0, 0], sizes = [2, 62, 32], strides = [1, 1, 1]} : vector<2x64x32xf32> to vector<2x62x32xf32>
    %75 = tpu.concatenate %73, %74 in 1 : vector<2x2x32xf32>, vector<2x62x32xf32> -> vector<2x64x32xf32>
    %76 = arith.truncf %75 : vector<2x64x32xf32> to vector<2x64x32xbf16>
    %77 = vector.extract_strided_slice %72 {offsets = [0, 63, 0], sizes = [2, 1, 32], strides = [1, 1, 1]} : vector<2x64x32xf32> to vector<2x1x32xf32>
    %78 = vector.extract_strided_slice %72 {offsets = [0, 0, 0], sizes = [2, 63, 32], strides = [1, 1, 1]} : vector<2x64x32xf32> to vector<2x63x32xf32>
    %79 = tpu.concatenate %77, %78 in 1 : vector<2x1x32xf32>, vector<2x63x32xf32> -> vector<2x64x32xf32>
    %80 = arith.truncf %79 : vector<2x64x32xf32> to vector<2x64x32xbf16>
    %81 = arith.truncf %72 : vector<2x64x32xf32> to vector<2x64x32xbf16>
    %82 = tpu.concatenate %76, %80, %81 in 2 : vector<2x64x32xbf16>, vector<2x64x32xbf16>, vector<2x64x32xbf16> -> vector<2x64x96xbf16>
    %83 = vector.shape_cast %82 : vector<2x64x96xbf16> to vector<128x96xbf16>
    %c256 = arith.constant 256 : index
    %c0_21 = arith.constant 0 : index
    %84 = vector.load %arg4[%c256, %c0_21] : memref<1920x32xbf16, #tpu.memory_space<vmem>>, vector<96x32xbf16>
    %cst_22 = arith.constant dense<0.000000e+00> : vector<128x32xf32>
    %85 = tpu.matmul %83, %84, %cst_22 {dimension_numbers = #tpu.dot_dimension_numbers<[1], [0], [0], [1], [0, 0, 1, 1], [], []>} : vector<128x96xbf16>, vector<96x32xbf16>, vector<128x32xf32> -> vector<128x32xf32>
    %86 = vector.extract_strided_slice %72 {offsets = [0, 1, 0], sizes = [2, 63, 32], strides = [1, 1, 1]} : vector<2x64x32xf32> to vector<2x63x32xf32>
    %87 = vector.extract_strided_slice %72 {offsets = [0, 0, 0], sizes = [2, 1, 32], strides = [1, 1, 1]} : vector<2x64x32xf32> to vector<2x1x32xf32>
    %88 = tpu.concatenate %86, %87 in 1 : vector<2x63x32xf32>, vector<2x1x32xf32> -> vector<2x64x32xf32>
    %89 = arith.truncf %88 : vector<2x64x32xf32> to vector<2x64x32xbf16>
    %90 = vector.extract_strided_slice %72 {offsets = [0, 2, 0], sizes = [2, 62, 32], strides = [1, 1, 1]} : vector<2x64x32xf32> to vector<2x62x32xf32>
    %91 = vector.extract_strided_slice %72 {offsets = [0, 0, 0], sizes = [2, 2, 32], strides = [1, 1, 1]} : vector<2x64x32xf32> to vector<2x2x32xf32>
    %92 = tpu.concatenate %90, %91 in 1 : vector<2x62x32xf32>, vector<2x2x32xf32> -> vector<2x64x32xf32>
    %93 = arith.truncf %92 : vector<2x64x32xf32> to vector<2x64x32xbf16>
    %94 = tpu.concatenate %89, %93 in 2 : vector<2x64x32xbf16>, vector<2x64x32xbf16> -> vector<2x64x64xbf16>
    %95 = vector.shape_cast %94 : vector<2x64x64xbf16> to vector<128x64xbf16>
    %c352 = arith.constant 352 : index
    %c0_23 = arith.constant 0 : index
    %96 = vector.load %arg4[%c352, %c0_23] : memref<1920x32xbf16, #tpu.memory_space<vmem>>, vector<64x32xbf16>
    %cst_24 = arith.constant dense<0.000000e+00> : vector<128x32xf32>
    %97 = tpu.matmul %95, %96, %cst_24 {dimension_numbers = #tpu.dot_dimension_numbers<[1], [0], [0], [1], [0, 0, 1, 1], [], []>} : vector<128x64xbf16>, vector<64x32xbf16>, vector<128x32xf32> -> vector<128x32xf32>
    %98 = arith.addf %85, %97 : vector<128x32xf32>
    %99 = arith.addf %71, %98 : vector<128x32xf32>
    %c2 = arith.constant 2 : index
    %c0_25 = arith.constant 0 : index
    %100 = vector.load %arg5[%c2, %c0_25] : memref<8x32xf32, #tpu.memory_space<vmem>>, vector<1x32xf32>
    %101 = vector.broadcast %100 : vector<1x32xf32> to vector<128x32xf32>
    %102 = arith.addf %99, %101 : vector<128x32xf32>
    %cst_26 = arith.constant 0.000000e+00 : f32
    %103 = vector.broadcast %cst_26 : f32 to vector<128x32xf32>
    %104 = arith.cmpf ogt, %102, %103 : vector<128x32xf32>
    %cst_27 = arith.constant 0.000000e+00 : f32
    %105 = vector.broadcast %cst_27 : f32 to vector<128x32xf32>
    %106 = arith.minimumf %102, %105 : vector<128x32xf32>
    %107 = math.exp %106 : vector<128x32xf32>
    %cst_28 = arith.constant 1.000000e+00 : f32
    %108 = vector.broadcast %cst_28 : f32 to vector<128x32xf32>
    %109 = arith.subf %107, %108 : vector<128x32xf32>
    %110 = arith.select %104, %102, %109 : vector<128x32xi1>, vector<128x32xf32>
    %111 = vector.shape_cast %110 : vector<128x32xf32> to vector<2x64x32xf32>
    %112 = vector.extract_strided_slice %111 {offsets = [0, 61, 0], sizes = [2, 3, 32], strides = [1, 1, 1]} : vector<2x64x32xf32> to vector<2x3x32xf32>
    %113 = vector.extract_strided_slice %111 {offsets = [0, 0, 0], sizes = [2, 61, 32], strides = [1, 1, 1]} : vector<2x64x32xf32> to vector<2x61x32xf32>
    %114 = tpu.concatenate %112, %113 in 1 : vector<2x3x32xf32>, vector<2x61x32xf32> -> vector<2x64x32xf32>
    %115 = arith.truncf %114 : vector<2x64x32xf32> to vector<2x64x32xbf16>
    %116 = vector.extract_strided_slice %111 {offsets = [0, 62, 0], sizes = [2, 2, 32], strides = [1, 1, 1]} : vector<2x64x32xf32> to vector<2x2x32xf32>
    %117 = vector.extract_strided_slice %111 {offsets = [0, 0, 0], sizes = [2, 62, 32], strides = [1, 1, 1]} : vector<2x64x32xf32> to vector<2x62x32xf32>
    %118 = tpu.concatenate %116, %117 in 1 : vector<2x2x32xf32>, vector<2x62x32xf32> -> vector<2x64x32xf32>
    %119 = arith.truncf %118 : vector<2x64x32xf32> to vector<2x64x32xbf16>
    %120 = vector.extract_strided_slice %111 {offsets = [0, 63, 0], sizes = [2, 1, 32], strides = [1, 1, 1]} : vector<2x64x32xf32> to vector<2x1x32xf32>
    %121 = vector.extract_strided_slice %111 {offsets = [0, 0, 0], sizes = [2, 63, 32], strides = [1, 1, 1]} : vector<2x64x32xf32> to vector<2x63x32xf32>
    %122 = tpu.concatenate %120, %121 in 1 : vector<2x1x32xf32>, vector<2x63x32xf32> -> vector<2x64x32xf32>
    %123 = arith.truncf %122 : vector<2x64x32xf32> to vector<2x64x32xbf16>
    %124 = arith.truncf %111 : vector<2x64x32xf32> to vector<2x64x32xbf16>
    %125 = tpu.concatenate %115, %119, %123, %124 in 2 : vector<2x64x32xbf16>, vector<2x64x32xbf16>, vector<2x64x32xbf16>, vector<2x64x32xbf16> -> vector<2x64x128xbf16>
    %126 = vector.shape_cast %125 : vector<2x64x128xbf16> to vector<128x128xbf16>
    %c416 = arith.constant 416 : index
    %c0_29 = arith.constant 0 : index
    %127 = vector.load %arg4[%c416, %c0_29] : memref<1920x32xbf16, #tpu.memory_space<vmem>>, vector<128x32xbf16>
    %cst_30 = arith.constant dense<0.000000e+00> : vector<128x32xf32>
    %128 = tpu.matmul %126, %127, %cst_30 {dimension_numbers = #tpu.dot_dimension_numbers<[1], [0], [0], [1], [0, 0, 1, 1], [], []>} : vector<128x128xbf16>, vector<128x32xbf16>, vector<128x32xf32> -> vector<128x32xf32>
    %129 = vector.extract_strided_slice %111 {offsets = [0, 1, 0], sizes = [2, 63, 32], strides = [1, 1, 1]} : vector<2x64x32xf32> to vector<2x63x32xf32>
    %130 = vector.extract_strided_slice %111 {offsets = [0, 0, 0], sizes = [2, 1, 32], strides = [1, 1, 1]} : vector<2x64x32xf32> to vector<2x1x32xf32>
    %131 = tpu.concatenate %129, %130 in 1 : vector<2x63x32xf32>, vector<2x1x32xf32> -> vector<2x64x32xf32>
    %132 = arith.truncf %131 : vector<2x64x32xf32> to vector<2x64x32xbf16>
    %133 = vector.extract_strided_slice %111 {offsets = [0, 2, 0], sizes = [2, 62, 32], strides = [1, 1, 1]} : vector<2x64x32xf32> to vector<2x62x32xf32>
    %134 = vector.extract_strided_slice %111 {offsets = [0, 0, 0], sizes = [2, 2, 32], strides = [1, 1, 1]} : vector<2x64x32xf32> to vector<2x2x32xf32>
    %135 = tpu.concatenate %133, %134 in 1 : vector<2x62x32xf32>, vector<2x2x32xf32> -> vector<2x64x32xf32>
    %136 = arith.truncf %135 : vector<2x64x32xf32> to vector<2x64x32xbf16>
    %137 = vector.extract_strided_slice %111 {offsets = [0, 3, 0], sizes = [2, 61, 32], strides = [1, 1, 1]} : vector<2x64x32xf32> to vector<2x61x32xf32>
    %138 = vector.extract_strided_slice %111 {offsets = [0, 0, 0], sizes = [2, 3, 32], strides = [1, 1, 1]} : vector<2x64x32xf32> to vector<2x3x32xf32>
    %139 = tpu.concatenate %137, %138 in 1 : vector<2x61x32xf32>, vector<2x3x32xf32> -> vector<2x64x32xf32>
    %140 = arith.truncf %139 : vector<2x64x32xf32> to vector<2x64x32xbf16>
    %141 = tpu.concatenate %132, %136, %140 in 2 : vector<2x64x32xbf16>, vector<2x64x32xbf16>, vector<2x64x32xbf16> -> vector<2x64x96xbf16>
    %142 = vector.shape_cast %141 : vector<2x64x96xbf16> to vector<128x96xbf16>
    %c544 = arith.constant 544 : index
    %c0_31 = arith.constant 0 : index
    %143 = vector.load %arg4[%c544, %c0_31] : memref<1920x32xbf16, #tpu.memory_space<vmem>>, vector<96x32xbf16>
    %cst_32 = arith.constant dense<0.000000e+00> : vector<128x32xf32>
    %144 = tpu.matmul %142, %143, %cst_32 {dimension_numbers = #tpu.dot_dimension_numbers<[1], [0], [0], [1], [0, 0, 1, 1], [], []>} : vector<128x96xbf16>, vector<96x32xbf16>, vector<128x32xf32> -> vector<128x32xf32>
    %145 = arith.addf %128, %144 : vector<128x32xf32>
    %146 = arith.addf %110, %145 : vector<128x32xf32>
    %c3 = arith.constant 3 : index
    %c0_33 = arith.constant 0 : index
    %147 = vector.load %arg5[%c3, %c0_33] : memref<8x32xf32, #tpu.memory_space<vmem>>, vector<1x32xf32>
    %148 = vector.broadcast %147 : vector<1x32xf32> to vector<128x32xf32>
    %149 = arith.addf %146, %148 : vector<128x32xf32>
    %cst_34 = arith.constant 0.000000e+00 : f32
    %150 = vector.broadcast %cst_34 : f32 to vector<128x32xf32>
    %151 = arith.cmpf ogt, %149, %150 : vector<128x32xf32>
    %cst_35 = arith.constant 0.000000e+00 : f32
    %152 = vector.broadcast %cst_35 : f32 to vector<128x32xf32>
    %153 = arith.minimumf %149, %152 : vector<128x32xf32>
    %154 = math.exp %153 : vector<128x32xf32>
    %cst_36 = arith.constant 1.000000e+00 : f32
    %155 = vector.broadcast %cst_36 : f32 to vector<128x32xf32>
    %156 = arith.subf %154, %155 : vector<128x32xf32>
    %157 = arith.select %151, %149, %156 : vector<128x32xi1>, vector<128x32xf32>
    %158 = vector.shape_cast %157 : vector<128x32xf32> to vector<2x64x32xf32>
    %159 = vector.extract_strided_slice %158 {offsets = [0, 61, 0], sizes = [2, 3, 32], strides = [1, 1, 1]} : vector<2x64x32xf32> to vector<2x3x32xf32>
    %160 = vector.extract_strided_slice %158 {offsets = [0, 0, 0], sizes = [2, 61, 32], strides = [1, 1, 1]} : vector<2x64x32xf32> to vector<2x61x32xf32>
    %161 = tpu.concatenate %159, %160 in 1 : vector<2x3x32xf32>, vector<2x61x32xf32> -> vector<2x64x32xf32>
    %162 = arith.truncf %161 : vector<2x64x32xf32> to vector<2x64x32xbf16>
    %163 = vector.extract_strided_slice %158 {offsets = [0, 62, 0], sizes = [2, 2, 32], strides = [1, 1, 1]} : vector<2x64x32xf32> to vector<2x2x32xf32>
    %164 = vector.extract_strided_slice %158 {offsets = [0, 0, 0], sizes = [2, 62, 32], strides = [1, 1, 1]} : vector<2x64x32xf32> to vector<2x62x32xf32>
    %165 = tpu.concatenate %163, %164 in 1 : vector<2x2x32xf32>, vector<2x62x32xf32> -> vector<2x64x32xf32>
    %166 = arith.truncf %165 : vector<2x64x32xf32> to vector<2x64x32xbf16>
    %167 = vector.extract_strided_slice %158 {offsets = [0, 63, 0], sizes = [2, 1, 32], strides = [1, 1, 1]} : vector<2x64x32xf32> to vector<2x1x32xf32>
    %168 = vector.extract_strided_slice %158 {offsets = [0, 0, 0], sizes = [2, 63, 32], strides = [1, 1, 1]} : vector<2x64x32xf32> to vector<2x63x32xf32>
    %169 = tpu.concatenate %167, %168 in 1 : vector<2x1x32xf32>, vector<2x63x32xf32> -> vector<2x64x32xf32>
    %170 = arith.truncf %169 : vector<2x64x32xf32> to vector<2x64x32xbf16>
    %171 = arith.truncf %158 : vector<2x64x32xf32> to vector<2x64x32xbf16>
    %172 = tpu.concatenate %162, %166, %170, %171 in 2 : vector<2x64x32xbf16>, vector<2x64x32xbf16>, vector<2x64x32xbf16>, vector<2x64x32xbf16> -> vector<2x64x128xbf16>
    %173 = vector.shape_cast %172 : vector<2x64x128xbf16> to vector<128x128xbf16>
    %c640 = arith.constant 640 : index
    %c0_37 = arith.constant 0 : index
    %174 = vector.load %arg4[%c640, %c0_37] : memref<1920x32xbf16, #tpu.memory_space<vmem>>, vector<128x32xbf16>
    %cst_38 = arith.constant dense<0.000000e+00> : vector<128x32xf32>
    %175 = tpu.matmul %173, %174, %cst_38 {dimension_numbers = #tpu.dot_dimension_numbers<[1], [0], [0], [1], [0, 0, 1, 1], [], []>} : vector<128x128xbf16>, vector<128x32xbf16>, vector<128x32xf32> -> vector<128x32xf32>
    %176 = vector.extract_strided_slice %158 {offsets = [0, 1, 0], sizes = [2, 63, 32], strides = [1, 1, 1]} : vector<2x64x32xf32> to vector<2x63x32xf32>
    %177 = vector.extract_strided_slice %158 {offsets = [0, 0, 0], sizes = [2, 1, 32], strides = [1, 1, 1]} : vector<2x64x32xf32> to vector<2x1x32xf32>
    %178 = tpu.concatenate %176, %177 in 1 : vector<2x63x32xf32>, vector<2x1x32xf32> -> vector<2x64x32xf32>
    %179 = arith.truncf %178 : vector<2x64x32xf32> to vector<2x64x32xbf16>
    %180 = vector.extract_strided_slice %158 {offsets = [0, 2, 0], sizes = [2, 62, 32], strides = [1, 1, 1]} : vector<2x64x32xf32> to vector<2x62x32xf32>
    %181 = vector.extract_strided_slice %158 {offsets = [0, 0, 0], sizes = [2, 2, 32], strides = [1, 1, 1]} : vector<2x64x32xf32> to vector<2x2x32xf32>
    %182 = tpu.concatenate %180, %181 in 1 : vector<2x62x32xf32>, vector<2x2x32xf32> -> vector<2x64x32xf32>
    %183 = arith.truncf %182 : vector<2x64x32xf32> to vector<2x64x32xbf16>
    %184 = vector.extract_strided_slice %158 {offsets = [0, 3, 0], sizes = [2, 61, 32], strides = [1, 1, 1]} : vector<2x64x32xf32> to vector<2x61x32xf32>
    %185 = vector.extract_strided_slice %158 {offsets = [0, 0, 0], sizes = [2, 3, 32], strides = [1, 1, 1]} : vector<2x64x32xf32> to vector<2x3x32xf32>
    %186 = tpu.concatenate %184, %185 in 1 : vector<2x61x32xf32>, vector<2x3x32xf32> -> vector<2x64x32xf32>
    %187 = arith.truncf %186 : vector<2x64x32xf32> to vector<2x64x32xbf16>
    %188 = tpu.concatenate %179, %183, %187 in 2 : vector<2x64x32xbf16>, vector<2x64x32xbf16>, vector<2x64x32xbf16> -> vector<2x64x96xbf16>
    %189 = vector.shape_cast %188 : vector<2x64x96xbf16> to vector<128x96xbf16>
    %c768 = arith.constant 768 : index
    %c0_39 = arith.constant 0 : index
    %190 = vector.load %arg4[%c768, %c0_39] : memref<1920x32xbf16, #tpu.memory_space<vmem>>, vector<96x32xbf16>
    %cst_40 = arith.constant dense<0.000000e+00> : vector<128x32xf32>
    %191 = tpu.matmul %189, %190, %cst_40 {dimension_numbers = #tpu.dot_dimension_numbers<[1], [0], [0], [1], [0, 0, 1, 1], [], []>} : vector<128x96xbf16>, vector<96x32xbf16>, vector<128x32xf32> -> vector<128x32xf32>
    %192 = arith.addf %175, %191 : vector<128x32xf32>
    %193 = arith.addf %157, %192 : vector<128x32xf32>
    %c4 = arith.constant 4 : index
    %c0_41 = arith.constant 0 : index
    %194 = vector.load %arg5[%c4, %c0_41] : memref<8x32xf32, #tpu.memory_space<vmem>>, vector<1x32xf32>
    %195 = vector.broadcast %194 : vector<1x32xf32> to vector<128x32xf32>
    %196 = arith.addf %193, %195 : vector<128x32xf32>
    %cst_42 = arith.constant 0.000000e+00 : f32
    %197 = vector.broadcast %cst_42 : f32 to vector<128x32xf32>
    %198 = arith.cmpf ogt, %196, %197 : vector<128x32xf32>
    %cst_43 = arith.constant 0.000000e+00 : f32
    %199 = vector.broadcast %cst_43 : f32 to vector<128x32xf32>
    %200 = arith.minimumf %196, %199 : vector<128x32xf32>
    %201 = math.exp %200 : vector<128x32xf32>
    %cst_44 = arith.constant 1.000000e+00 : f32
    %202 = vector.broadcast %cst_44 : f32 to vector<128x32xf32>
    %203 = arith.subf %201, %202 : vector<128x32xf32>
    %204 = arith.select %198, %196, %203 : vector<128x32xi1>, vector<128x32xf32>
    %205 = vector.shape_cast %204 : vector<128x32xf32> to vector<2x64x32xf32>
    %206 = vector.extract_strided_slice %205 {offsets = [0, 60, 0], sizes = [2, 4, 32], strides = [1, 1, 1]} : vector<2x64x32xf32> to vector<2x4x32xf32>
    %207 = vector.extract_strided_slice %205 {offsets = [0, 0, 0], sizes = [2, 60, 32], strides = [1, 1, 1]} : vector<2x64x32xf32> to vector<2x60x32xf32>
    %208 = tpu.concatenate %206, %207 in 1 : vector<2x4x32xf32>, vector<2x60x32xf32> -> vector<2x64x32xf32>
    %209 = arith.truncf %208 : vector<2x64x32xf32> to vector<2x64x32xbf16>
    %210 = vector.extract_strided_slice %205 {offsets = [0, 61, 0], sizes = [2, 3, 32], strides = [1, 1, 1]} : vector<2x64x32xf32> to vector<2x3x32xf32>
    %211 = vector.extract_strided_slice %205 {offsets = [0, 0, 0], sizes = [2, 61, 32], strides = [1, 1, 1]} : vector<2x64x32xf32> to vector<2x61x32xf32>
    %212 = tpu.concatenate %210, %211 in 1 : vector<2x3x32xf32>, vector<2x61x32xf32> -> vector<2x64x32xf32>
    %213 = arith.truncf %212 : vector<2x64x32xf32> to vector<2x64x32xbf16>
    %214 = vector.extract_strided_slice %205 {offsets = [0, 62, 0], sizes = [2, 2, 32], strides = [1, 1, 1]} : vector<2x64x32xf32> to vector<2x2x32xf32>
    %215 = vector.extract_strided_slice %205 {offsets = [0, 0, 0], sizes = [2, 62, 32], strides = [1, 1, 1]} : vector<2x64x32xf32> to vector<2x62x32xf32>
    %216 = tpu.concatenate %214, %215 in 1 : vector<2x2x32xf32>, vector<2x62x32xf32> -> vector<2x64x32xf32>
    %217 = arith.truncf %216 : vector<2x64x32xf32> to vector<2x64x32xbf16>
    %218 = tpu.concatenate %209, %213, %217 in 2 : vector<2x64x32xbf16>, vector<2x64x32xbf16>, vector<2x64x32xbf16> -> vector<2x64x96xbf16>
    %219 = vector.shape_cast %218 : vector<2x64x96xbf16> to vector<128x96xbf16>
    %c864 = arith.constant 864 : index
    %c0_45 = arith.constant 0 : index
    %220 = vector.load %arg4[%c864, %c0_45] : memref<1920x32xbf16, #tpu.memory_space<vmem>>, vector<96x32xbf16>
    %cst_46 = arith.constant dense<0.000000e+00> : vector<128x32xf32>
    %221 = tpu.matmul %219, %220, %cst_46 {dimension_numbers = #tpu.dot_dimension_numbers<[1], [0], [0], [1], [0, 0, 1, 1], [], []>} : vector<128x96xbf16>, vector<96x32xbf16>, vector<128x32xf32> -> vector<128x32xf32>
    %222 = vector.extract_strided_slice %205 {offsets = [0, 63, 0], sizes = [2, 1, 32], strides = [1, 1, 1]} : vector<2x64x32xf32> to vector<2x1x32xf32>
    %223 = vector.extract_strided_slice %205 {offsets = [0, 0, 0], sizes = [2, 63, 32], strides = [1, 1, 1]} : vector<2x64x32xf32> to vector<2x63x32xf32>
    %224 = tpu.concatenate %222, %223 in 1 : vector<2x1x32xf32>, vector<2x63x32xf32> -> vector<2x64x32xf32>
    %225 = arith.truncf %224 : vector<2x64x32xf32> to vector<2x64x32xbf16>
    %226 = arith.truncf %205 : vector<2x64x32xf32> to vector<2x64x32xbf16>
    %227 = vector.extract_strided_slice %205 {offsets = [0, 1, 0], sizes = [2, 63, 32], strides = [1, 1, 1]} : vector<2x64x32xf32> to vector<2x63x32xf32>
    %228 = vector.extract_strided_slice %205 {offsets = [0, 0, 0], sizes = [2, 1, 32], strides = [1, 1, 1]} : vector<2x64x32xf32> to vector<2x1x32xf32>
    %229 = tpu.concatenate %227, %228 in 1 : vector<2x63x32xf32>, vector<2x1x32xf32> -> vector<2x64x32xf32>
    %230 = arith.truncf %229 : vector<2x64x32xf32> to vector<2x64x32xbf16>
    %231 = tpu.concatenate %225, %226, %230 in 2 : vector<2x64x32xbf16>, vector<2x64x32xbf16>, vector<2x64x32xbf16> -> vector<2x64x96xbf16>
    %232 = vector.shape_cast %231 : vector<2x64x96xbf16> to vector<128x96xbf16>
    %c960 = arith.constant 960 : index
    %c0_47 = arith.constant 0 : index
    %233 = vector.load %arg4[%c960, %c0_47] : memref<1920x32xbf16, #tpu.memory_space<vmem>>, vector<96x32xbf16>
    %cst_48 = arith.constant dense<0.000000e+00> : vector<128x32xf32>
    %234 = tpu.matmul %232, %233, %cst_48 {dimension_numbers = #tpu.dot_dimension_numbers<[1], [0], [0], [1], [0, 0, 1, 1], [], []>} : vector<128x96xbf16>, vector<96x32xbf16>, vector<128x32xf32> -> vector<128x32xf32>
    %235 = arith.addf %221, %234 : vector<128x32xf32>
    %236 = vector.extract_strided_slice %205 {offsets = [0, 2, 0], sizes = [2, 62, 32], strides = [1, 1, 1]} : vector<2x64x32xf32> to vector<2x62x32xf32>
    %237 = vector.extract_strided_slice %205 {offsets = [0, 0, 0], sizes = [2, 2, 32], strides = [1, 1, 1]} : vector<2x64x32xf32> to vector<2x2x32xf32>
    %238 = tpu.concatenate %236, %237 in 1 : vector<2x62x32xf32>, vector<2x2x32xf32> -> vector<2x64x32xf32>
    %239 = arith.truncf %238 : vector<2x64x32xf32> to vector<2x64x32xbf16>
    %240 = vector.extract_strided_slice %205 {offsets = [0, 3, 0], sizes = [2, 61, 32], strides = [1, 1, 1]} : vector<2x64x32xf32> to vector<2x61x32xf32>
    %241 = vector.extract_strided_slice %205 {offsets = [0, 0, 0], sizes = [2, 3, 32], strides = [1, 1, 1]} : vector<2x64x32xf32> to vector<2x3x32xf32>
    %242 = tpu.concatenate %240, %241 in 1 : vector<2x61x32xf32>, vector<2x3x32xf32> -> vector<2x64x32xf32>
    %243 = arith.truncf %242 : vector<2x64x32xf32> to vector<2x64x32xbf16>
    %244 = vector.extract_strided_slice %205 {offsets = [0, 4, 0], sizes = [2, 60, 32], strides = [1, 1, 1]} : vector<2x64x32xf32> to vector<2x60x32xf32>
    %245 = vector.extract_strided_slice %205 {offsets = [0, 0, 0], sizes = [2, 4, 32], strides = [1, 1, 1]} : vector<2x64x32xf32> to vector<2x4x32xf32>
    %246 = tpu.concatenate %244, %245 in 1 : vector<2x60x32xf32>, vector<2x4x32xf32> -> vector<2x64x32xf32>
    %247 = arith.truncf %246 : vector<2x64x32xf32> to vector<2x64x32xbf16>
    %248 = tpu.concatenate %239, %243, %247 in 2 : vector<2x64x32xbf16>, vector<2x64x32xbf16>, vector<2x64x32xbf16> -> vector<2x64x96xbf16>
    %249 = vector.shape_cast %248 : vector<2x64x96xbf16> to vector<128x96xbf16>
    %c1056 = arith.constant 1056 : index
    %c0_49 = arith.constant 0 : index
    %250 = vector.load %arg4[%c1056, %c0_49] : memref<1920x32xbf16, #tpu.memory_space<vmem>>, vector<96x32xbf16>
    %cst_50 = arith.constant dense<0.000000e+00> : vector<128x32xf32>
    %251 = tpu.matmul %249, %250, %cst_50 {dimension_numbers = #tpu.dot_dimension_numbers<[1], [0], [0], [1], [0, 0, 1, 1], [], []>} : vector<128x96xbf16>, vector<96x32xbf16>, vector<128x32xf32> -> vector<128x32xf32>
    %252 = arith.addf %235, %251 : vector<128x32xf32>
    %253 = arith.addf %204, %252 : vector<128x32xf32>
    %c5 = arith.constant 5 : index
    %c0_51 = arith.constant 0 : index
    %254 = vector.load %arg5[%c5, %c0_51] : memref<8x32xf32, #tpu.memory_space<vmem>>, vector<1x32xf32>
    %255 = vector.broadcast %254 : vector<1x32xf32> to vector<128x32xf32>
    %256 = arith.addf %253, %255 : vector<128x32xf32>
    %cst_52 = arith.constant 0.000000e+00 : f32
    %257 = vector.broadcast %cst_52 : f32 to vector<128x32xf32>
    %258 = arith.cmpf ogt, %256, %257 : vector<128x32xf32>
    %cst_53 = arith.constant 0.000000e+00 : f32
    %259 = vector.broadcast %cst_53 : f32 to vector<128x32xf32>
    %260 = arith.minimumf %256, %259 : vector<128x32xf32>
    %261 = math.exp %260 : vector<128x32xf32>
    %cst_54 = arith.constant 1.000000e+00 : f32
    %262 = vector.broadcast %cst_54 : f32 to vector<128x32xf32>
    %263 = arith.subf %261, %262 : vector<128x32xf32>
    %264 = arith.select %258, %256, %263 : vector<128x32xi1>, vector<128x32xf32>
    %265 = vector.shape_cast %264 : vector<128x32xf32> to vector<2x64x32xf32>
    %266 = vector.extract_strided_slice %265 {offsets = [0, 60, 0], sizes = [2, 4, 32], strides = [1, 1, 1]} : vector<2x64x32xf32> to vector<2x4x32xf32>
    %267 = vector.extract_strided_slice %265 {offsets = [0, 0, 0], sizes = [2, 60, 32], strides = [1, 1, 1]} : vector<2x64x32xf32> to vector<2x60x32xf32>
    %268 = tpu.concatenate %266, %267 in 1 : vector<2x4x32xf32>, vector<2x60x32xf32> -> vector<2x64x32xf32>
    %269 = arith.truncf %268 : vector<2x64x32xf32> to vector<2x64x32xbf16>
    %270 = vector.extract_strided_slice %265 {offsets = [0, 61, 0], sizes = [2, 3, 32], strides = [1, 1, 1]} : vector<2x64x32xf32> to vector<2x3x32xf32>
    %271 = vector.extract_strided_slice %265 {offsets = [0, 0, 0], sizes = [2, 61, 32], strides = [1, 1, 1]} : vector<2x64x32xf32> to vector<2x61x32xf32>
    %272 = tpu.concatenate %270, %271 in 1 : vector<2x3x32xf32>, vector<2x61x32xf32> -> vector<2x64x32xf32>
    %273 = arith.truncf %272 : vector<2x64x32xf32> to vector<2x64x32xbf16>
    %274 = vector.extract_strided_slice %265 {offsets = [0, 62, 0], sizes = [2, 2, 32], strides = [1, 1, 1]} : vector<2x64x32xf32> to vector<2x2x32xf32>
    %275 = vector.extract_strided_slice %265 {offsets = [0, 0, 0], sizes = [2, 62, 32], strides = [1, 1, 1]} : vector<2x64x32xf32> to vector<2x62x32xf32>
    %276 = tpu.concatenate %274, %275 in 1 : vector<2x2x32xf32>, vector<2x62x32xf32> -> vector<2x64x32xf32>
    %277 = arith.truncf %276 : vector<2x64x32xf32> to vector<2x64x32xbf16>
    %278 = tpu.concatenate %269, %273, %277 in 2 : vector<2x64x32xbf16>, vector<2x64x32xbf16>, vector<2x64x32xbf16> -> vector<2x64x96xbf16>
    %279 = vector.shape_cast %278 : vector<2x64x96xbf16> to vector<128x96xbf16>
    %c1152 = arith.constant 1152 : index
    %c0_55 = arith.constant 0 : index
    %280 = vector.load %arg4[%c1152, %c0_55] : memref<1920x32xbf16, #tpu.memory_space<vmem>>, vector<96x32xbf16>
    %cst_56 = arith.constant dense<0.000000e+00> : vector<128x32xf32>
    %281 = tpu.matmul %279, %280, %cst_56 {dimension_numbers = #tpu.dot_dimension_numbers<[1], [0], [0], [1], [0, 0, 1, 1], [], []>} : vector<128x96xbf16>, vector<96x32xbf16>, vector<128x32xf32> -> vector<128x32xf32>
    %282 = vector.extract_strided_slice %265 {offsets = [0, 63, 0], sizes = [2, 1, 32], strides = [1, 1, 1]} : vector<2x64x32xf32> to vector<2x1x32xf32>
    %283 = vector.extract_strided_slice %265 {offsets = [0, 0, 0], sizes = [2, 63, 32], strides = [1, 1, 1]} : vector<2x64x32xf32> to vector<2x63x32xf32>
    %284 = tpu.concatenate %282, %283 in 1 : vector<2x1x32xf32>, vector<2x63x32xf32> -> vector<2x64x32xf32>
    %285 = arith.truncf %284 : vector<2x64x32xf32> to vector<2x64x32xbf16>
    %286 = arith.truncf %265 : vector<2x64x32xf32> to vector<2x64x32xbf16>
    %287 = vector.extract_strided_slice %265 {offsets = [0, 1, 0], sizes = [2, 63, 32], strides = [1, 1, 1]} : vector<2x64x32xf32> to vector<2x63x32xf32>
    %288 = vector.extract_strided_slice %265 {offsets = [0, 0, 0], sizes = [2, 1, 32], strides = [1, 1, 1]} : vector<2x64x32xf32> to vector<2x1x32xf32>
    %289 = tpu.concatenate %287, %288 in 1 : vector<2x63x32xf32>, vector<2x1x32xf32> -> vector<2x64x32xf32>
    %290 = arith.truncf %289 : vector<2x64x32xf32> to vector<2x64x32xbf16>
    %291 = tpu.concatenate %285, %286, %290 in 2 : vector<2x64x32xbf16>, vector<2x64x32xbf16>, vector<2x64x32xbf16> -> vector<2x64x96xbf16>
    %292 = vector.shape_cast %291 : vector<2x64x96xbf16> to vector<128x96xbf16>
    %c1248 = arith.constant 1248 : index
    %c0_57 = arith.constant 0 : index
    %293 = vector.load %arg4[%c1248, %c0_57] : memref<1920x32xbf16, #tpu.memory_space<vmem>>, vector<96x32xbf16>
    %cst_58 = arith.constant dense<0.000000e+00> : vector<128x32xf32>
    %294 = tpu.matmul %292, %293, %cst_58 {dimension_numbers = #tpu.dot_dimension_numbers<[1], [0], [0], [1], [0, 0, 1, 1], [], []>} : vector<128x96xbf16>, vector<96x32xbf16>, vector<128x32xf32> -> vector<128x32xf32>
    %295 = arith.addf %281, %294 : vector<128x32xf32>
    %296 = vector.extract_strided_slice %265 {offsets = [0, 2, 0], sizes = [2, 62, 32], strides = [1, 1, 1]} : vector<2x64x32xf32> to vector<2x62x32xf32>
    %297 = vector.extract_strided_slice %265 {offsets = [0, 0, 0], sizes = [2, 2, 32], strides = [1, 1, 1]} : vector<2x64x32xf32> to vector<2x2x32xf32>
    %298 = tpu.concatenate %296, %297 in 1 : vector<2x62x32xf32>, vector<2x2x32xf32> -> vector<2x64x32xf32>
    %299 = arith.truncf %298 : vector<2x64x32xf32> to vector<2x64x32xbf16>
    %300 = vector.extract_strided_slice %265 {offsets = [0, 3, 0], sizes = [2, 61, 32], strides = [1, 1, 1]} : vector<2x64x32xf32> to vector<2x61x32xf32>
    %301 = vector.extract_strided_slice %265 {offsets = [0, 0, 0], sizes = [2, 3, 32], strides = [1, 1, 1]} : vector<2x64x32xf32> to vector<2x3x32xf32>
    %302 = tpu.concatenate %300, %301 in 1 : vector<2x61x32xf32>, vector<2x3x32xf32> -> vector<2x64x32xf32>
    %303 = arith.truncf %302 : vector<2x64x32xf32> to vector<2x64x32xbf16>
    %304 = vector.extract_strided_slice %265 {offsets = [0, 4, 0], sizes = [2, 60, 32], strides = [1, 1, 1]} : vector<2x64x32xf32> to vector<2x60x32xf32>
    %305 = vector.extract_strided_slice %265 {offsets = [0, 0, 0], sizes = [2, 4, 32], strides = [1, 1, 1]} : vector<2x64x32xf32> to vector<2x4x32xf32>
    %306 = tpu.concatenate %304, %305 in 1 : vector<2x60x32xf32>, vector<2x4x32xf32> -> vector<2x64x32xf32>
    %307 = arith.truncf %306 : vector<2x64x32xf32> to vector<2x64x32xbf16>
    %308 = tpu.concatenate %299, %303, %307 in 2 : vector<2x64x32xbf16>, vector<2x64x32xbf16>, vector<2x64x32xbf16> -> vector<2x64x96xbf16>
    %309 = vector.shape_cast %308 : vector<2x64x96xbf16> to vector<128x96xbf16>
    %c1344 = arith.constant 1344 : index
    %c0_59 = arith.constant 0 : index
    %310 = vector.load %arg4[%c1344, %c0_59] : memref<1920x32xbf16, #tpu.memory_space<vmem>>, vector<96x32xbf16>
    %cst_60 = arith.constant dense<0.000000e+00> : vector<128x32xf32>
    %311 = tpu.matmul %309, %310, %cst_60 {dimension_numbers = #tpu.dot_dimension_numbers<[1], [0], [0], [1], [0, 0, 1, 1], [], []>} : vector<128x96xbf16>, vector<96x32xbf16>, vector<128x32xf32> -> vector<128x32xf32>
    %312 = arith.addf %295, %311 : vector<128x32xf32>
    %313 = arith.addf %264, %312 : vector<128x32xf32>
    %c6 = arith.constant 6 : index
    %c0_61 = arith.constant 0 : index
    %314 = vector.load %arg5[%c6, %c0_61] : memref<8x32xf32, #tpu.memory_space<vmem>>, vector<1x32xf32>
    %315 = vector.broadcast %314 : vector<1x32xf32> to vector<128x32xf32>
    %316 = arith.addf %313, %315 : vector<128x32xf32>
    %cst_62 = arith.constant 0.000000e+00 : f32
    %317 = vector.broadcast %cst_62 : f32 to vector<128x32xf32>
    %318 = arith.cmpf ogt, %316, %317 : vector<128x32xf32>
    %cst_63 = arith.constant 0.000000e+00 : f32
    %319 = vector.broadcast %cst_63 : f32 to vector<128x32xf32>
    %320 = arith.minimumf %316, %319 : vector<128x32xf32>
    %321 = math.exp %320 : vector<128x32xf32>
    %cst_64 = arith.constant 1.000000e+00 : f32
    %322 = vector.broadcast %cst_64 : f32 to vector<128x32xf32>
    %323 = arith.subf %321, %322 : vector<128x32xf32>
    %324 = arith.select %318, %316, %323 : vector<128x32xi1>, vector<128x32xf32>
    %325 = vector.shape_cast %324 : vector<128x32xf32> to vector<2x64x32xf32>
    %326 = vector.extract_strided_slice %325 {offsets = [0, 57, 0], sizes = [2, 7, 32], strides = [1, 1, 1]} : vector<2x64x32xf32> to vector<2x7x32xf32>
    %327 = vector.extract_strided_slice %325 {offsets = [0, 0, 0], sizes = [2, 57, 32], strides = [1, 1, 1]} : vector<2x64x32xf32> to vector<2x57x32xf32>
    %328 = tpu.concatenate %326, %327 in 1 : vector<2x7x32xf32>, vector<2x57x32xf32> -> vector<2x64x32xf32>
    %329 = arith.truncf %328 : vector<2x64x32xf32> to vector<2x64x32xbf16>
    %330 = vector.extract_strided_slice %325 {offsets = [0, 58, 0], sizes = [2, 6, 32], strides = [1, 1, 1]} : vector<2x64x32xf32> to vector<2x6x32xf32>
    %331 = vector.extract_strided_slice %325 {offsets = [0, 0, 0], sizes = [2, 58, 32], strides = [1, 1, 1]} : vector<2x64x32xf32> to vector<2x58x32xf32>
    %332 = tpu.concatenate %330, %331 in 1 : vector<2x6x32xf32>, vector<2x58x32xf32> -> vector<2x64x32xf32>
    %333 = arith.truncf %332 : vector<2x64x32xf32> to vector<2x64x32xbf16>
    %334 = vector.extract_strided_slice %325 {offsets = [0, 59, 0], sizes = [2, 5, 32], strides = [1, 1, 1]} : vector<2x64x32xf32> to vector<2x5x32xf32>
    %335 = vector.extract_strided_slice %325 {offsets = [0, 0, 0], sizes = [2, 59, 32], strides = [1, 1, 1]} : vector<2x64x32xf32> to vector<2x59x32xf32>
    %336 = tpu.concatenate %334, %335 in 1 : vector<2x5x32xf32>, vector<2x59x32xf32> -> vector<2x64x32xf32>
    %337 = arith.truncf %336 : vector<2x64x32xf32> to vector<2x64x32xbf16>
    %338 = vector.extract_strided_slice %325 {offsets = [0, 60, 0], sizes = [2, 4, 32], strides = [1, 1, 1]} : vector<2x64x32xf32> to vector<2x4x32xf32>
    %339 = vector.extract_strided_slice %325 {offsets = [0, 0, 0], sizes = [2, 60, 32], strides = [1, 1, 1]} : vector<2x64x32xf32> to vector<2x60x32xf32>
    %340 = tpu.concatenate %338, %339 in 1 : vector<2x4x32xf32>, vector<2x60x32xf32> -> vector<2x64x32xf32>
    %341 = arith.truncf %340 : vector<2x64x32xf32> to vector<2x64x32xbf16>
    %342 = tpu.concatenate %329, %333, %337, %341 in 2 : vector<2x64x32xbf16>, vector<2x64x32xbf16>, vector<2x64x32xbf16>, vector<2x64x32xbf16> -> vector<2x64x128xbf16>
    %343 = vector.shape_cast %342 : vector<2x64x128xbf16> to vector<128x128xbf16>
    %c1440 = arith.constant 1440 : index
    %c0_65 = arith.constant 0 : index
    %344 = vector.load %arg4[%c1440, %c0_65] : memref<1920x32xbf16, #tpu.memory_space<vmem>>, vector<128x32xbf16>
    %cst_66 = arith.constant dense<0.000000e+00> : vector<128x32xf32>
    %345 = tpu.matmul %343, %344, %cst_66 {dimension_numbers = #tpu.dot_dimension_numbers<[1], [0], [0], [1], [0, 0, 1, 1], [], []>} : vector<128x128xbf16>, vector<128x32xbf16>, vector<128x32xf32> -> vector<128x32xf32>
    %346 = vector.extract_strided_slice %325 {offsets = [0, 61, 0], sizes = [2, 3, 32], strides = [1, 1, 1]} : vector<2x64x32xf32> to vector<2x3x32xf32>
    %347 = vector.extract_strided_slice %325 {offsets = [0, 0, 0], sizes = [2, 61, 32], strides = [1, 1, 1]} : vector<2x64x32xf32> to vector<2x61x32xf32>
    %348 = tpu.concatenate %346, %347 in 1 : vector<2x3x32xf32>, vector<2x61x32xf32> -> vector<2x64x32xf32>
    %349 = arith.truncf %348 : vector<2x64x32xf32> to vector<2x64x32xbf16>
    %350 = vector.extract_strided_slice %325 {offsets = [0, 62, 0], sizes = [2, 2, 32], strides = [1, 1, 1]} : vector<2x64x32xf32> to vector<2x2x32xf32>
    %351 = vector.extract_strided_slice %325 {offsets = [0, 0, 0], sizes = [2, 62, 32], strides = [1, 1, 1]} : vector<2x64x32xf32> to vector<2x62x32xf32>
    %352 = tpu.concatenate %350, %351 in 1 : vector<2x2x32xf32>, vector<2x62x32xf32> -> vector<2x64x32xf32>
    %353 = arith.truncf %352 : vector<2x64x32xf32> to vector<2x64x32xbf16>
    %354 = vector.extract_strided_slice %325 {offsets = [0, 63, 0], sizes = [2, 1, 32], strides = [1, 1, 1]} : vector<2x64x32xf32> to vector<2x1x32xf32>
    %355 = vector.extract_strided_slice %325 {offsets = [0, 0, 0], sizes = [2, 63, 32], strides = [1, 1, 1]} : vector<2x64x32xf32> to vector<2x63x32xf32>
    %356 = tpu.concatenate %354, %355 in 1 : vector<2x1x32xf32>, vector<2x63x32xf32> -> vector<2x64x32xf32>
    %357 = arith.truncf %356 : vector<2x64x32xf32> to vector<2x64x32xbf16>
    %358 = arith.truncf %325 : vector<2x64x32xf32> to vector<2x64x32xbf16>
    %359 = tpu.concatenate %349, %353, %357, %358 in 2 : vector<2x64x32xbf16>, vector<2x64x32xbf16>, vector<2x64x32xbf16>, vector<2x64x32xbf16> -> vector<2x64x128xbf16>
    %360 = vector.shape_cast %359 : vector<2x64x128xbf16> to vector<128x128xbf16>
    %c1568 = arith.constant 1568 : index
    %c0_67 = arith.constant 0 : index
    %361 = vector.load %arg4[%c1568, %c0_67] : memref<1920x32xbf16, #tpu.memory_space<vmem>>, vector<128x32xbf16>
    %cst_68 = arith.constant dense<0.000000e+00> : vector<128x32xf32>
    %362 = tpu.matmul %360, %361, %cst_68 {dimension_numbers = #tpu.dot_dimension_numbers<[1], [0], [0], [1], [0, 0, 1, 1], [], []>} : vector<128x128xbf16>, vector<128x32xbf16>, vector<128x32xf32> -> vector<128x32xf32>
    %363 = arith.addf %345, %362 : vector<128x32xf32>
    %364 = vector.extract_strided_slice %325 {offsets = [0, 1, 0], sizes = [2, 63, 32], strides = [1, 1, 1]} : vector<2x64x32xf32> to vector<2x63x32xf32>
    %365 = vector.extract_strided_slice %325 {offsets = [0, 0, 0], sizes = [2, 1, 32], strides = [1, 1, 1]} : vector<2x64x32xf32> to vector<2x1x32xf32>
    %366 = tpu.concatenate %364, %365 in 1 : vector<2x63x32xf32>, vector<2x1x32xf32> -> vector<2x64x32xf32>
    %367 = arith.truncf %366 : vector<2x64x32xf32> to vector<2x64x32xbf16>
    %368 = vector.extract_strided_slice %325 {offsets = [0, 2, 0], sizes = [2, 62, 32], strides = [1, 1, 1]} : vector<2x64x32xf32> to vector<2x62x32xf32>
    %369 = vector.extract_strided_slice %325 {offsets = [0, 0, 0], sizes = [2, 2, 32], strides = [1, 1, 1]} : vector<2x64x32xf32> to vector<2x2x32xf32>
    %370 = tpu.concatenate %368, %369 in 1 : vector<2x62x32xf32>, vector<2x2x32xf32> -> vector<2x64x32xf32>
    %371 = arith.truncf %370 : vector<2x64x32xf32> to vector<2x64x32xbf16>
    %372 = vector.extract_strided_slice %325 {offsets = [0, 3, 0], sizes = [2, 61, 32], strides = [1, 1, 1]} : vector<2x64x32xf32> to vector<2x61x32xf32>
    %373 = vector.extract_strided_slice %325 {offsets = [0, 0, 0], sizes = [2, 3, 32], strides = [1, 1, 1]} : vector<2x64x32xf32> to vector<2x3x32xf32>
    %374 = tpu.concatenate %372, %373 in 1 : vector<2x61x32xf32>, vector<2x3x32xf32> -> vector<2x64x32xf32>
    %375 = arith.truncf %374 : vector<2x64x32xf32> to vector<2x64x32xbf16>
    %376 = vector.extract_strided_slice %325 {offsets = [0, 4, 0], sizes = [2, 60, 32], strides = [1, 1, 1]} : vector<2x64x32xf32> to vector<2x60x32xf32>
    %377 = vector.extract_strided_slice %325 {offsets = [0, 0, 0], sizes = [2, 4, 32], strides = [1, 1, 1]} : vector<2x64x32xf32> to vector<2x4x32xf32>
    %378 = tpu.concatenate %376, %377 in 1 : vector<2x60x32xf32>, vector<2x4x32xf32> -> vector<2x64x32xf32>
    %379 = arith.truncf %378 : vector<2x64x32xf32> to vector<2x64x32xbf16>
    %380 = tpu.concatenate %367, %371, %375, %379 in 2 : vector<2x64x32xbf16>, vector<2x64x32xbf16>, vector<2x64x32xbf16>, vector<2x64x32xbf16> -> vector<2x64x128xbf16>
    %381 = vector.shape_cast %380 : vector<2x64x128xbf16> to vector<128x128xbf16>
    %c1696 = arith.constant 1696 : index
    %c0_69 = arith.constant 0 : index
    %382 = vector.load %arg4[%c1696, %c0_69] : memref<1920x32xbf16, #tpu.memory_space<vmem>>, vector<128x32xbf16>
    %cst_70 = arith.constant dense<0.000000e+00> : vector<128x32xf32>
    %383 = tpu.matmul %381, %382, %cst_70 {dimension_numbers = #tpu.dot_dimension_numbers<[1], [0], [0], [1], [0, 0, 1, 1], [], []>} : vector<128x128xbf16>, vector<128x32xbf16>, vector<128x32xf32> -> vector<128x32xf32>
    %384 = arith.addf %363, %383 : vector<128x32xf32>
    %385 = vector.extract_strided_slice %325 {offsets = [0, 5, 0], sizes = [2, 59, 32], strides = [1, 1, 1]} : vector<2x64x32xf32> to vector<2x59x32xf32>
    %386 = vector.extract_strided_slice %325 {offsets = [0, 0, 0], sizes = [2, 5, 32], strides = [1, 1, 1]} : vector<2x64x32xf32> to vector<2x5x32xf32>
    %387 = tpu.concatenate %385, %386 in 1 : vector<2x59x32xf32>, vector<2x5x32xf32> -> vector<2x64x32xf32>
    %388 = arith.truncf %387 : vector<2x64x32xf32> to vector<2x64x32xbf16>
    %389 = vector.extract_strided_slice %325 {offsets = [0, 6, 0], sizes = [2, 58, 32], strides = [1, 1, 1]} : vector<2x64x32xf32> to vector<2x58x32xf32>
    %390 = vector.extract_strided_slice %325 {offsets = [0, 0, 0], sizes = [2, 6, 32], strides = [1, 1, 1]} : vector<2x64x32xf32> to vector<2x6x32xf32>
    %391 = tpu.concatenate %389, %390 in 1 : vector<2x58x32xf32>, vector<2x6x32xf32> -> vector<2x64x32xf32>
    %392 = arith.truncf %391 : vector<2x64x32xf32> to vector<2x64x32xbf16>
    %393 = vector.extract_strided_slice %325 {offsets = [0, 7, 0], sizes = [2, 57, 32], strides = [1, 1, 1]} : vector<2x64x32xf32> to vector<2x57x32xf32>
    %394 = vector.extract_strided_slice %325 {offsets = [0, 0, 0], sizes = [2, 7, 32], strides = [1, 1, 1]} : vector<2x64x32xf32> to vector<2x7x32xf32>
    %395 = tpu.concatenate %393, %394 in 1 : vector<2x57x32xf32>, vector<2x7x32xf32> -> vector<2x64x32xf32>
    %396 = arith.truncf %395 : vector<2x64x32xf32> to vector<2x64x32xbf16>
    %397 = tpu.concatenate %388, %392, %396 in 2 : vector<2x64x32xbf16>, vector<2x64x32xbf16>, vector<2x64x32xbf16> -> vector<2x64x96xbf16>
    %398 = vector.shape_cast %397 : vector<2x64x96xbf16> to vector<128x96xbf16>
    %c1824 = arith.constant 1824 : index
    %c0_71 = arith.constant 0 : index
    %399 = vector.load %arg4[%c1824, %c0_71] : memref<1920x32xbf16, #tpu.memory_space<vmem>>, vector<96x32xbf16>
    %cst_72 = arith.constant dense<0.000000e+00> : vector<128x32xf32>
    %400 = tpu.matmul %398, %399, %cst_72 {dimension_numbers = #tpu.dot_dimension_numbers<[1], [0], [0], [1], [0, 0, 1, 1], [], []>} : vector<128x96xbf16>, vector<96x32xbf16>, vector<128x32xf32> -> vector<128x32xf32>
    %401 = arith.addf %384, %400 : vector<128x32xf32>
    %402 = arith.addf %324, %401 : vector<128x32xf32>
    %c7 = arith.constant 7 : index
    %c0_73 = arith.constant 0 : index
    %403 = vector.load %arg5[%c7, %c0_73] : memref<8x32xf32, #tpu.memory_space<vmem>>, vector<1x32xf32>
    %404 = vector.broadcast %403 : vector<1x32xf32> to vector<128x32xf32>
    %405 = arith.addf %402, %404 : vector<128x32xf32>
    %cst_74 = arith.constant 0.000000e+00 : f32
    %406 = vector.broadcast %cst_74 : f32 to vector<128x32xf32>
    %407 = arith.cmpf ogt, %405, %406 : vector<128x32xf32>
    %cst_75 = arith.constant 0.000000e+00 : f32
    %408 = vector.broadcast %cst_75 : f32 to vector<128x32xf32>
    %409 = arith.minimumf %405, %408 : vector<128x32xf32>
    %410 = math.exp %409 : vector<128x32xf32>
    %cst_76 = arith.constant 1.000000e+00 : f32
    %411 = vector.broadcast %cst_76 : f32 to vector<128x32xf32>
    %412 = arith.subf %410, %411 : vector<128x32xf32>
    %413 = arith.select %407, %405, %412 : vector<128x32xi1>, vector<128x32xf32>
    %414 = arith.truncf %413 : vector<128x32xf32> to vector<128x32xbf16>
    %c0_77 = arith.constant 0 : index
    %c0_78 = arith.constant 0 : index
    %415 = vector.load %arg6[%c0_77, %c0_78] : memref<32x128xbf16, #tpu.memory_space<vmem>>, vector<32x128xbf16>
    %cst_79 = arith.constant dense<0.000000e+00> : vector<128x128xf32>
    %416 = tpu.matmul %414, %415, %cst_79 {dimension_numbers = #tpu.dot_dimension_numbers<[1], [0], [0], [1], [0, 0, 1, 1], [], []>} : vector<128x32xbf16>, vector<32x128xbf16>, vector<128x128xf32> -> vector<128x128xf32>
    %c0_80 = arith.constant 0 : index
    %c0_81 = arith.constant 0 : index
    %417 = vector.load %arg7[%c0_80, %c0_81] : memref<1x128xf32, #tpu.memory_space<vmem>>, vector<1x128xf32>
    %418 = vector.broadcast %417 : vector<1x128xf32> to vector<128x128xf32>
    %419 = arith.addf %416, %418 : vector<128x128xf32>
    %cst_82 = arith.constant 0.000000e+00 : f32
    %420 = vector.broadcast %cst_82 : f32 to vector<128x128xf32>
    %421 = arith.cmpf ogt, %419, %420 : vector<128x128xf32>
    %cst_83 = arith.constant 0.000000e+00 : f32
    %422 = vector.broadcast %cst_83 : f32 to vector<128x128xf32>
    %423 = arith.minimumf %419, %422 : vector<128x128xf32>
    %424 = math.exp %423 : vector<128x128xf32>
    %cst_84 = arith.constant 1.000000e+00 : f32
    %425 = vector.broadcast %cst_84 : f32 to vector<128x128xf32>
    %426 = arith.subf %424, %425 : vector<128x128xf32>
    %427 = arith.select %421, %419, %426 : vector<128x128xi1>, vector<128x128xf32>
    %c0_85 = arith.constant 0 : index
    %c0_86 = arith.constant 0 : index
    %428 = vector.load %arg8[%c0_85, %c0_86] : memref<4x128xbf16, #tpu.memory_space<vmem>>, vector<4x128xbf16>
    %429 = arith.truncf %427 : vector<128x128xf32> to vector<128x128xbf16>
    %cst_87 = arith.constant dense<0.000000e+00> : vector<4x128xf32>
    %430 = tpu.matmul %428, %429, %cst_87 {dimension_numbers = #tpu.dot_dimension_numbers<[1], [1], [0], [0], [0, 0, 1, 0], [], []>} : vector<4x128xbf16>, vector<128x128xbf16>, vector<4x128xf32> -> vector<4x128xf32>
    %c0_88 = arith.constant 0 : index
    %c0_89 = arith.constant 0 : index
    %431 = vector.load %arg9[%c0_88, %c0_89] : memref<4x1xf32, #tpu.memory_space<vmem>>, vector<4x1xf32>
    %432 = vector.broadcast %431 : vector<4x1xf32> to vector<4x128xf32>
    %433 = arith.addf %430, %432 : vector<4x128xf32>
    %c0_90 = arith.constant 0 : index
    %c0_91 = arith.constant 0 : index
    %434 = vector.load %arg10[%c0_90, %c0_91] : memref<4x128xf32, #tpu.memory_space<vmem>>, vector<4x128xf32>
    tpu.vector_store %arg10[%c0_90, %c0_91], %433 {strides = array<i32>} : memref<4x128xf32, #tpu.memory_space<vmem>>, vector<4x128xf32>,
    return
  }
  func.func @transform_0(%arg0: i32) -> (i32, i32) {
    %c0_i32 = arith.constant 0 : i32
    %c0_i32_0 = arith.constant 0 : i32
    return %arg0, %c0_i32 : i32, i32
  }
  func.func @transform_1(%arg0: i32) -> (i32, i32) {
    %c0_i32 = arith.constant 0 : i32
    %c0_i32_0 = arith.constant 0 : i32
    %c0_i32_1 = arith.constant 0 : i32
    return %c0_i32, %c0_i32_0 : i32, i32
  }
  func.func @transform_2(%arg0: i32) -> (i32, i32) {
    %c0_i32 = arith.constant 0 : i32
    %c0_i32_0 = arith.constant 0 : i32
    %c0_i32_1 = arith.constant 0 : i32
    return %c0_i32, %c0_i32_0 : i32, i32
  }
  func.func @transform_3(%arg0: i32) -> (i32, i32) {
    %c0_i32 = arith.constant 0 : i32
    %c0_i32_0 = arith.constant 0 : i32
    %c0_i32_1 = arith.constant 0 : i32
    return %c0_i32, %c0_i32_0 : i32, i32
  }
  func.func @transform_4(%arg0: i32) -> (i32, i32) {
    %c0_i32 = arith.constant 0 : i32
    %c0_i32_0 = arith.constant 0 : i32
    %c0_i32_1 = arith.constant 0 : i32
    return %c0_i32, %c0_i32_0 : i32, i32
  }
  func.func @transform_5(%arg0: i32) -> (i32, i32) {
    %c0_i32 = arith.constant 0 : i32
    %c0_i32_0 = arith.constant 0 : i32
    %c0_i32_1 = arith.constant 0 : i32
    return %c0_i32, %c0_i32_0 : i32, i32
  }
  func.func @transform_6(%arg0: i32) -> (i32, i32) {
    %c0_i32 = arith.constant 0 : i32
    %c0_i32_0 = arith.constant 0 : i32
    %c0_i32_1 = arith.constant 0 : i32
    return %c0_i32, %c0_i32_0 : i32, i32
  }
  func.func @transform_7(%arg0: i32) -> (i32, i32) {
    %c0_i32 = arith.constant 0 : i32
    %c0_i32_0 = arith.constant 0 : i32
    %c0_i32_1 = arith.constant 0 : i32
    return %c0_i32, %c0_i32_0 : i32, i32
  }
  func.func @transform_8(%arg0: i32) -> (i32, i32) {
    %c0_i32 = arith.constant 0 : i32
    %c0_i32_0 = arith.constant 0 : i32
    %c0_i32_1 = arith.constant 0 : i32
    return %c0_i32, %c0_i32_0 : i32, i32
  }
  func.func @transform_9(%arg0: i32) -> (i32, i32) {
    %c0_i32 = arith.constant 0 : i32
    %c0_i32_0 = arith.constant 0 : i32
    return %c0_i32, %arg0 : i32, i32
  }
}

</mosaic_0001>

<bundles_post_ra>
// kernel: tpu_custom_call.1
= control target key start
LH: loop header
LB: loop body
LE: loop exit
PB: predicated region body
PF: predicated region fallthrough
CT: control target
= control target key end

     0   :  { %vm88_vm0 = vcmask 1042432   ;;  %vm63_vm1 = vcmask 48128   ;;  %s16957_s0 = inlined_call_operand.vmem [shape: f32[128,6], index: 0, kind: input, shape index: {}]   ;;  %s16958_s1 = inlined_call_operand.vmem [shape: bf16[6,32], index: 1, kind: input, shape index: {}]   ;;  %s16959_s2 = inlined_call_operand.vmem [shape: f32[1,32], index: 2, kind: input, shape index: {}]   ;;  %s16960_s3 = inlined_call_operand.vmem [shape: bf16[1920,32], index: 3, kind: input, shape index: {}]   ;;  %s16961_s4 = inlined_call_operand.vmem [shape: f32[8,32], index: 4, kind: input, shape index: {}]   ;;  %s16962_s5 = inlined_call_operand.vmem [shape: bf16[32,128], index: 5, kind: input, shape index: {}]   ;;  %s16963_s6 = inlined_call_operand.vmem [shape: f32[1,128], index: 6, kind: input, shape index: {}]   ;;  %s16964_s7 = inlined_call_operand.vmem [shape: bf16[4,128], index: 7, kind: input, shape index: {}]   ;;  %s16965_s8 = inlined_call_operand.vmem [shape: f32[4,1], index: 8, kind: input, shape index: {}]   ;;  %s16966_s9 = inlined_call_operand.hbm [shape: f32[4,128], index: 9, kind: output, shape index: {}]  }
   0x1   :  { %v58_v0 = vld [vmem:[%s16958_s1] sm:$0x7]  ;;  %v35_v2 = vld [vmem:[%s16957_s0 + $0x8] sm:$0xff]  ;;  %v40_v5 = vld [vmem:[%s16957_s0 + $0x30] sm:$0xff] }
   0x2   :  { %v34_v1 = vld [vmem:[%s16957_s0] sm:$0xff]  ;;  %v90_v3 = vsel %vm88_vm0, %v58_v0, 0  ;;  %v41_v6 = vld [vmem:[%s16957_s0 + $0x38] sm:$0xff]  ;;  %v44_v7 = vld [vmem:[%s16957_s0 + $0x50] sm:$0xff] }
   0x3   :  { %v50_v4 = vpack.c.bf16 %v35_v2, %v34_v1  ;;  %99 = vmatpush.bf16.msra.mxu0 %v90_v3  ;;  %11203 = vmatpush.bf16.msra.mxu1 %v90_v3  ;;  %v53_v8 = vpack.c.bf16 %v41_v6, %v40_v5  ;;  %v45_v9 = vld [vmem:[%s16957_s0 + $0x58] sm:$0xff] }
   0x4   :  { %11204 = vmatpush.bf16.msra.mxu3 %v90_v3  ;;  %v55_v10 = vpack.c.bf16 %v45_v9, %v44_v7 }
   0x6   :  { %10321 = vmatmul.msk.bf16.vlgmr.msra.gmra.mxu0 %vm63_vm1, %v50_v4  ;;  %10324 = vmatmul.msk.bf16.vlgmr.msra.gmra.mxu1 %vm63_vm1, %v53_v8 }
   0x7   :  { %10326 = vmatmul.msk.bf16.vlgmr.msra.gmra.mxu3 %vm63_vm1, %v55_v10 }
   0x8   :  { %14 = vsyncpa [#allocation3], 0  ;;  %v36_v11 = vld [vmem:[%s16957_s0 + $0x10] sm:$0xff]  ;;  %v37_v12 = vld [vmem:[%s16957_s0 + $0x18] sm:$0xff]  ;;  %vm240_vm2 = vcmask 1046528   ;;  %vm161_vm3 = vcmask 1040384  }
   0x9   :  { %v42_v13 = vld [vmem:[%s16957_s0 + $0x40] sm:$0xff]  ;;  %v43_v14 = vld [vmem:[%s16957_s0 + $0x48] sm:$0xff]  ;;  %v51_v17 = vpack.c.bf16 %v37_v12, %v36_v11  ;;  %v48_v22 = vld [vmem:[%s16957_s0 + $0x70] sm:$0xff]  ;;  %vm459_vm4 = vcmask 261120   ;;  %vm484_vm5 = vcmask 523264   ;;  %vm549_vm6 = vcmask 785408  }
   0xa   :  { %v46_v15 = vld [vmem:[%s16957_s0 + $0x60] sm:$0xff]  ;;  %v47_v16 = vld [vmem:[%s16957_s0 + $0x68] sm:$0xff]  ;;  %v54_v18 = vpack.c.bf16 %v43_v14, %v42_v13  ;;  %v49_v23 = vld [vmem:[%s16957_s0 + $0x78] sm:$0xff]  ;;  %vm1180_vm9 = vcmask 1045504   ;;  %s11539_s15 = smov 96   ;;  %s10312_s11 = sshll.u32 %s16966_s9, 4  ;;  %s10313_s11 = int_to_ptr.hbm [resolvable:$true] %s10312_s11 }
   0xb   :  { %v56_v19 = vpack.c.bf16 %v47_v16, %v46_v15  ;;  %v38_v20 = vld [vmem:[%s16957_s0 + $0x20] sm:$0xff]  ;;  %v39_v21 = vld [vmem:[%s16957_s0 + $0x28] sm:$0xff]  ;;  %v57_v25 = vpack.c.bf16 %v49_v23, %v48_v22  ;;  %s11537_s0 = smov 32  }
   0xc   :  { %v52_v24 = vpack.c.bf16 %v39_v21, %v38_v20  ;;  %v11655_v28 = vld [vmem:[%s16959_s2] ss:$0 sm:$0xff]  ;;  %s11538_s2 = smov 64  }
  0x16   :  { %10322 = vmatmul.msk.bf16.gmra.mxu0 %vm63_vm1, %v51_v17  ;;  %10325 = vmatmul.msk.bf16.gmra.mxu1 %vm63_vm1, %v54_v18 }
  0x17   :  { %10327 = vmatmul.msk.bf16.gmra.mxu3 %vm63_vm1, %v56_v19 }
  0x26   :  { %10323 = vmatmul.msk.bf16.gmra.mxu0 %vm63_vm1, %v52_v24 }
  0x27   :  { %10328 = vmatmul.msk.bf16.gmra.mxu3 %vm63_vm1, %v57_v25 }
  0x83   :  { %v101_v26 = vpop.f32.mrf.mxu0  ;;  %v116_v27 = vpop.f32.mrf.mxu1 }
  0x84   :  { %v11658_v29 = vadd.f32 %v11655_v28, %v101_v26  ;;  %v11687_v51 = vadd.f32 %v11655_v28, %v116_v27 }
  0x86   :  { %v224_v34 = vpack.c.bf16 %v11658_v29, %v11658_v29  ;;  %v241_v39 = vrot.slane %v11658_v29, 1  ;;  %v230_v59 = vpack.c.bf16 %v11687_v51, %v11687_v51  ;;  %v252_v20 = vrot.slane %v11687_v51, 1 }
  0x88   :  { %v363_v37 = vunpack.c.l.b16 %v224_v34  ;;  %v369_v5 = vunpack.c.l.b16 %v230_v59 }
  0x8a   :  { %v126_v30 = vpop.f32.mrf.mxu3 }
  0x8b   :  { %v103_v31 = vpop.f32.mrf.mxu0  ;;  %v118_v32 = vpop.f32.mrf.mxu1  ;;  %v11680_v48 = vadd.f32 %v11655_v28, %v126_v30 }
  0x8c   :  { %v11661_v33 = vadd.f32 %v11655_v28, %v103_v31  ;;  %v11690_v52 = vadd.f32 %v11655_v28, %v118_v32 }
  0x8d   :  { %v259_v61 = vrot.slane %v11680_v48, 1 }
  0x8e   :  { %v225_v35 = vpack.c.bf16 %v11661_v33, %v11661_v33  ;;  %v242_v36 = vrot.slane %v11661_v33, 1  ;;  %v231_v60 = vpack.c.bf16 %v11690_v52, %v11690_v52  ;;  %v254_v21 = vrot.slane %v11690_v52, 1 }
  0x90   :  { %v364_v38 = vunpack.c.l.b16 %v225_v35  ;;  %v243_v45 = vsel %vm240_vm2, %v241_v39, %v242_v36  ;;  %v370_v6 = vunpack.c.l.b16 %v231_v60  ;;  %v255_v34 = vsel %vm240_vm2, %v252_v20, %v254_v21 }
  0x91   :  { %v291_v47 = vpack.c.bf16 %v243_v45, %v243_v45  ;;  %v289_v35 = vsel %vm240_vm2, %v254_v21, %v241_v39 }
  0x92   :  { %v11669_v40 = vpop.f32.mrf.mxu3  ;;  %v379_v42 = vpack.c.b16 %v364_v38, %v363_v37  ;;  %v382_v15 = vpack.c.b16 %v370_v6, %v369_v5 }
  0x93   :  { %v106_v41 = vpop.f32.mrf.mxu0  ;;  %v121_v43 = vpop.f32.mrf.mxu1  ;;  %v419_v56 = vunpack.c.l.b16 %v291_v47 }
  0x94   :  { %v11672_v44 = vadd.f32 %v11655_v28, %v106_v41  ;;  %387 = vrot.lane.b32.xlu0 %v379_v42, %s11537_s0  ;;  %v11683_v49 = vadd.f32 %v11655_v28, %v121_v43 }
  0x96   :  { %v244_v46 = vrot.slane %v11672_v44, 1  ;;  %v256_v63 = vrot.slane %v11683_v49, 1  ;;  %v226_v2 = vpack.c.bf16 %v11672_v44, %v11672_v44  ;;  %v232_v21 = vpack.c.bf16 %v11683_v49, %v11683_v49 }
  0x98   :  { %v245_v50 = vsel %vm240_vm2, %v242_v36, %v244_v46  ;;  %v365_v10 = vunpack.c.l.b16 %v226_v2 }
  0x99   :  { %v292_v53 = vpack.c.bf16 %v245_v50, %v245_v50  ;;  %v297_v50 = vpack.c.bf16 %v255_v34, %v255_v34 }
  0x9a   :  { %v131_v54 = vpop.f32.mrf.mxu3 }
  0x9b   :  { %v108_v55 = vpop.f32.mrf.mxu0  ;;  %v420_v57 = vunpack.c.l.b16 %v292_v53  ;;  %v123_v58 = vpop.f32.mrf.mxu1  ;;  %v11725_v22 = vadd.f32 %v11655_v28, %v131_v54  ;;  %v298_v53 = vpack.c.bf16 %v289_v35, %v289_v35 }
  0x9c   :  { %v11698_v62 = vadd.f32 %v11655_v28, %v108_v55  ;;  %v11702_v0 = vadd.f32 %v11655_v28, %v123_v58  ;;  %v11751_v55 = vadd.f32 %v11655_v28, %v11669_v40 }
  0x9d   :  { %v435_v1 = vpack.c.b16 %v420_v57, %v419_v56  ;;  %v236_v36 = vpack.c.bf16 %v11725_v22, %v11725_v22 }
  0x9e   :  { %v257_v3 = vrot.slane %v11702_v0, 1  ;;  %v227_v4 = vpack.c.bf16 %v11698_v62, %v11698_v62  ;;  %v246_v7 = vrot.slane %v11698_v62, 1 }
  0x9f   :  { %443 = vrot.lane.b32.xlu0 %v435_v1, %s11538_s2  ;;  %v375_v57 = vunpack.c.l.b16 %v236_v36  ;;  %v261_v36 = vrot.slane %v11751_v55, 1 }
  0xa0   :  { %v258_v8 = vsel %vm240_vm2, %v256_v63, %v257_v3  ;;  %v260_v9 = vsel %vm240_vm2, %v257_v3, %v259_v61  ;;  %v366_v11 = vunpack.c.l.b16 %v227_v4  ;;  %v247_v19 = vsel %vm240_vm2, %v244_v46, %v246_v7 }
  0xa1   :  { %v299_v16 = vpack.c.bf16 %v258_v8, %v258_v8  ;;  %v300_v17 = vpack.c.bf16 %v260_v9, %v260_v9  ;;  %v293_v25 = vpack.c.bf16 %v247_v19, %v247_v19  ;;  %v425_v3 = vunpack.c.l.b16 %v297_v50 }
  0xa2   :  { %v133_v12 = vpop.f32.mrf.mxu3  ;;  %v380_v14 = vpack.c.b16 %v366_v11, %v365_v10  ;;  %v426_v4 = vunpack.c.l.b16 %v298_v53  ;;  %v234_v8 = vpack.c.bf16 %v11680_v48, %v11680_v48  ;;  %v371_v50 = vunpack.c.l.b16 %v232_v21 }
  0xa3   :  { %v111_v13 = vpop.f32.mrf.mxu0  ;;  %v11729_v24 = vadd.f32 %v11655_v28, %v133_v12  ;;  %v427_v26 = vunpack.c.l.b16 %v299_v16  ;;  %v428_v27 = vunpack.c.l.b16 %v300_v17  ;;  %v421_v38 = vunpack.c.l.b16 %v293_v25 }
  0xa4   :  { %v11718_v18 = vadd.f32 %v11655_v28, %v111_v13  ;;  %389 = vrot.lane.b32.xlu1 %v380_v14, %s11537_s0  ;;  %v235_v12 = vpack.c.bf16 %v11751_v55, %v11751_v55  ;;  %v263_v13 = vrot.slane %v11725_v22, 1  ;;  %v438_v17 = vpack.c.b16 %v426_v4, %v425_v3 }
  0xa5   :  { %v439_v42 = vpack.c.b16 %v428_v27, %v427_v26  ;;  %v237_v43 = vpack.c.bf16 %v11729_v24, %v11729_v24  ;;  %v265_v14 = vrot.slane %v11729_v24, 1 }
  0xa6   :  { %v248_v23 = vrot.slane %v11718_v18, 1  ;;  %v228_v46 = vpack.c.bf16 %v11718_v18, %v11718_v18  ;;  %v374_v25 = vunpack.c.l.b16 %v235_v12  ;;  %v11081_v12 = vld [vmem:[%s16960_s3] sm:$0xff] }
  0xa7   :  { %393 = vrot.lane.b32.xlu0 %v382_v15, %s11537_s0  ;;  %v376_v58 = vunpack.c.l.b16 %v237_v43  ;;  %v11086_v15 = vld [vmem:[%s16960_s3 + $0x28] sm:$0xff]  ;;  %v266_v34 = vsel %vm240_vm2, %v263_v13, %v265_v14 }
  0xa8   :  { %v249_v30 = vsel %vm240_vm2, %v246_v7, %v248_v23  ;;  %v367_v59 = vunpack.c.l.b16 %v228_v46  ;;  %568 = vmatpush.bf16.msrb.mxu1 %v11086_v15  ;;  %v303_v43 = vpack.c.bf16 %v266_v34, %v266_v34  ;;  %v162_v15 = vrot.slane %v11658_v29, 7 }
  0xa9   :  { %v294_v31 = vpack.c.bf16 %v249_v30, %v249_v30  ;;  %v385_v11 = vpack.c.b16 %v376_v58, %v375_v57  ;;  %v233_v30 = vpack.c.bf16 %v11702_v0, %v11702_v0 }
  0xaa   :  { %v136_v32 = vpop.f32.mrf.mxu3  ;;  %v431_v57 = vunpack.c.l.b16 %v303_v43 }
  0xab   :  { %v113_v37 = vpop.f32.mrf.mxu0  ;;  %v422_v41 = vunpack.c.l.b16 %v294_v31  ;;  %v11754_v56 = vadd.f32 %v11655_v28, %v136_v32  ;;  %v372_v53 = vunpack.c.l.b16 %v233_v30 }
  0xac   :  { %v11742_v45 = vadd.f32 %v11655_v28, %v113_v37 }
  0xad   :  { %v436_v47 = vpack.c.b16 %v422_v41, %v421_v38  ;;  %v267_v9 = vrot.slane %v11754_v56, 1 }
  0xae   :  { %v250_v39 = vrot.slane %v11742_v45, 1  ;;  %v229_v54 = vpack.c.bf16 %v11742_v45, %v11742_v45  ;;  %v171_v43 = vrot.slane %v11742_v45, 7 }
  0xaf   :  { %445 = vrot.lane.b32.xlu1 %v436_v47, %s11538_s2  ;;  %451 = vrot.lane.b32.xlu0 %v439_v42, %s11538_s2  ;;  %v268_v35 = vsel %vm240_vm2, %v265_v14, %v267_v9  ;;  %v11084_v42 = vld [vmem:[%s16960_s3 + $0x18] sm:$0xff]  ;;  %v143_v14 = vrot.slane %v11690_v52, 7 }
  0xb0   :  { %v368_v60 = vunpack.c.l.b16 %v229_v54  ;;  %v251_v1 = vsel %vm240_vm2, %v248_v23, %v250_v39  ;;  %v253_v2 = vsel %vm240_vm2, %v250_v39, %v252_v20  ;;  %v373_v20 = vunpack.c.l.b16 %v234_v8  ;;  %v11085_v23 = vld [vmem:[%s16960_s3 + $0x20] sm:$0xff] }
  0xb1   :  { %v295_v6 = vpack.c.bf16 %v251_v1, %v251_v1  ;;  %v296_v7 = vpack.c.bf16 %v253_v2, %v253_v2  ;;  %569 = vmatpush.bf16.msrb.mxu1 %v11085_v23  ;;  %v304_v46 = vpack.c.bf16 %v268_v35, %v268_v35  ;;  %v262_v39 = vsel %vm240_vm2, %v259_v61, %v261_v36 }
  0xb2   :  { %v138_v5 = vpop.f32.mrf.mxu3  ;;  %v381_v40 = vpack.c.b16 %v368_v60, %v367_v59  ;;  %v264_v54 = vsel %vm240_vm2, %v261_v36, %v263_v13  ;;  %v383_v59 = vpack.c.b16 %v372_v53, %v371_v50  ;;  %v301_v60 = vpack.c.bf16 %v262_v39, %v262_v39 }
  0xb3   :  { %v11764_v10 = vadd.f32 %v11655_v28, %v138_v5  ;;  %v423_v19 = vunpack.c.l.b16 %v295_v6  ;;  %v424_v28 = vunpack.c.l.b16 %v296_v7  ;;  %v432_v58 = vunpack.c.l.b16 %v304_v46 }
  0xb4   :  { %391 = vrot.lane.b32.xlu2 %v381_v40, %s11537_s0  ;;  %v302_v1 = vpack.c.bf16 %v264_v54, %v264_v54  ;;  %v429_v3 = vunpack.c.l.b16 %v301_v60  ;;  %v238_v5 = vpack.c.bf16 %v11754_v56, %v11754_v56  ;;  %v163_v13 = vrot.slane %v11661_v33, 7 }
  0xb5   :  { %v269_v16 = vrot.slane %v11764_v10, 1  ;;  %v437_v37 = vpack.c.b16 %v424_v28, %v423_v19  ;;  %570 = vmatpush.bf16.msrb.mxu1 %v11084_v42  ;;  %v441_v2 = vpack.c.b16 %v432_v58, %v431_v57  ;;  %v239_v40 = vpack.c.bf16 %v11764_v10, %v11764_v10 }
  0xb6   :  { %v430_v4 = vunpack.c.l.b16 %v302_v1  ;;  %v377_v6 = vunpack.c.l.b16 %v238_v5  ;;  %v169_v50 = vrot.slane %v11718_v18, 7 }
  0xb7   :  { %449 = vrot.lane.b32.xlu1 %v438_v17, %s11538_s2  ;;  %399 = vrot.lane.b32.xlu0 %v385_v11, %s11537_s0  ;;  %v270_v26 = vsel %vm240_vm2, %v267_v9, %v269_v16  ;;  %v290_v27 = vsel %vm240_vm2, %v269_v16, %v256_v63  ;;  %v384_v63 = vpack.c.b16 %v374_v25, %v373_v20  ;;  %v378_v7 = vunpack.c.l.b16 %v239_v40  ;;  %v11083_v9 = vld [vmem:[%s16960_s3 + $0x10] sm:$0xff]  ;;  %v11082_v11 = vld [vmem:[%s16960_s3 + $0x8] sm:$0xff] }
  0xb8   :  { %v305_v31 = vpack.c.bf16 %v270_v26, %v270_v26  ;;  %v306_v32 = vpack.c.bf16 %v290_v27, %v290_v27  ;;  %v440_v61 = vpack.c.b16 %v430_v4, %v429_v3  ;;  %v164_v16 = vsel %vm161_vm3, %v162_v15, %v163_v13 }
  0xb9   :  { %v386_v8 = vpack.c.b16 %v378_v7, %v377_v6  ;;  %571 = vmatpush.bf16.msrb.mxu1 %v11083_v9  ;;  %v206_v17 = vsel %vm161_vm3, %v143_v14, %v162_v15  ;;  %v209_v28 = vpack.c.bf16 %v164_v16, %v164_v16  ;;  %v167_v26 = vrot.slane %v11698_v62, 7 }
  0xba   :  { %v433_v38 = vunpack.c.l.b16 %v305_v31  ;;  %v434_v41 = vunpack.c.l.b16 %v306_v32  ;;  %v208_v19 = vpack.c.bf16 %v206_v17, %v206_v17  ;;  %v165_v31 = vrot.slane %v11672_v44, 7 }
  0xbb   :  { %v324_v23 = vunpack.c.l.b16 %v209_v28  ;;  %v172_v39 = vsel %vm161_vm3, %v169_v50, %v171_v43  ;;  %v170_v57 = vsel %vm161_vm3, %v167_v26, %v169_v50  ;;  %v173_v4 = vrot.slane %v11687_v51, 7 }
  0xbc   :  { %447 = vrot.lane.b32.xlu2 %v437_v37, %s11538_s2  ;;  %v442_v47 = vpack.c.b16 %v434_v41, %v433_v38  ;;  %v323_v21 = vunpack.c.l.b16 %v208_v19  ;;  %v168_v34 = vsel %vm161_vm3, %v165_v31, %v167_v26  ;;  %v166_v35 = vsel %vm161_vm3, %v163_v13, %v165_v31 }
  0xbd   :  { %572 = vmatpush.bf16.msrb.mxu1 %v11082_v11  ;;  %v211_v36 = vpack.c.bf16 %v168_v34, %v168_v34  ;;  %v210_v38 = vpack.c.bf16 %v166_v35, %v166_v35  ;;  %v213_v58 = vpack.c.bf16 %v172_v39, %v172_v39  ;;  %v174_v40 = vsel %vm161_vm3, %v171_v43, %v173_v4 }
  0xbe   :  { %v339_v25 = vpack.c.b16 %v324_v23, %v323_v21  ;;  %v175_v6 = vsel %vm161_vm3, %v173_v4, %v143_v14  ;;  %v214_v7 = vpack.c.bf16 %v174_v40, %v174_v40  ;;  %v176_v16 = vrot.slane %v11683_v49, 7 }
  0xbf   :  { %397 = vrot.lane.b32.xlu1 %v384_v63, %s11537_s0  ;;  %457 = vrot.lane.b32.xlu0 %v442_v47, %s11538_s2  ;;  %v326_v41 = vunpack.c.l.b16 %v211_v36  ;;  %v325_v42 = vunpack.c.l.b16 %v210_v38  ;;  %v328_v60 = vunpack.c.l.b16 %v213_v58  ;;  %v177_v17 = vrot.slane %v11702_v0, 7 }
  0xc0   :  { %v329_v9 = vunpack.c.l.b16 %v214_v7  ;;  %v144_v19 = vrot.slane %v11764_v10, 7  ;;  %v181_v31 = vrot.slane %v11751_v55, 7  ;;  %v183_v39 = vrot.slane %v11725_v22, 7 }
  0xc1   :  { %573 = vmatpush.bf16.msrb.mxu1 %v11081_v12  ;;  %v340_v63 = vpack.c.b16 %v326_v41, %v325_v42  ;;  %v178_v14 = vsel %vm161_vm3, %v176_v16, %v177_v17 }
  0xc2   :  { %v207_v21 = vsel %vm161_vm3, %v144_v19, %v176_v16 }
  0xc3   :  { %v216_v23 = vpack.c.bf16 %v207_v21, %v207_v21 }
  0xc4   :  { %395 = vrot.lane.b32.xlu2 %v383_v59, %s11537_s0  ;;  %v212_v59 = vpack.c.bf16 %v170_v57, %v170_v57 }
  0xc5   :  { %v331_v26 = vunpack.c.l.b16 %v216_v23  ;;  %v11877_v23 = vld [vmem:[%s16961_s4] ss:$0 sm:$0xff] }
  0xc6   :  { %v327_v1 = vunpack.c.l.b16 %v212_v59  ;;  %v184_v59 = vsel %vm161_vm3, %v181_v31, %v183_v39 }
  0xc7   :  { %455 = vrot.lane.b32.xlu1 %v441_v2, %s11538_s2 }
  0xc8   :  { %v341_v2 = vpack.c.b16 %v328_v60, %v327_v1  ;;  %v220_v1 = vpack.c.bf16 %v184_v59, %v184_v59 }
  0xcc   :  { %453 = vrot.lane.b32.xlu2 %v440_v61, %s11538_s2 }
  0xd4   :  { %401 = vrot.lane.b32.xlu2 %v386_v8, %s11537_s0  ;;  %v215_v8 = vpack.c.bf16 %v175_v6, %v175_v6  ;;  %v187_v6 = vrot.slane %v11754_v56, 7 }
  0xd6   :  { %v330_v11 = vunpack.c.l.b16 %v215_v8 }
  0xd8   :  { %v342_v13 = vpack.c.b16 %v330_v11, %v329_v9  ;;  %v189_v11 = vsel %vm161_vm3, %v187_v6, %v144_v19 }
 0x106   :  { %v388_v20 = vpop.permute.xlu0 %387 }
 0x107   :  { %v462_v27 = vsel %vm459_vm4, %v339_v25, %v388_v20  ;;  %v217_v25 = vpack.c.bf16 %v178_v14, %v178_v14 }
 0x10e   :  { %v392_v54 = vpop.permute.xlu2 %391 }
 0x10f   :  { %v468_v61 = vsel %vm459_vm4, %v341_v2, %v392_v54  ;;  %v185_v54 = vrot.slane %v11729_v24, 7 }
 0x111   :  { %v444_v30 = vpop.permute.xlu0 %443  ;;  %v186_v60 = vsel %vm161_vm3, %v183_v39, %v185_v54  ;;  %v188_v9 = vsel %vm161_vm3, %v185_v54, %v187_v6 }
 0x112   :  { %v486_v32 = vsel %vm484_vm5, %v462_v27, %v444_v30  ;;  %v332_v27 = vunpack.c.l.b16 %v217_v25  ;;  %v179_v30 = vrot.slane %v11680_v48, 7  ;;  %v221_v2 = vpack.c.bf16 %v186_v60, %v186_v60 }
 0x113   :  { %10353 = vmatmul.msk.bf16.vlgmr.msrb.gmra.mxu1 %vm549_vm6, %v486_v32 }
 0x114   :  { %v343_v34 = vpack.c.b16 %v332_v27, %v331_v26  ;;  %v182_v38 = vsel %vm161_vm3, %v179_v30, %v181_v31  ;;  %v336_v4 = vunpack.c.l.b16 %v221_v2 }
 0x116   :  { %v390_v37 = vpop.permute.xlu1 %389  ;;  %v448_v3 = vpop.permute.xlu2 %447 }
 0x117   :  { %v465_v46 = vsel %vm459_vm4, %v340_v63, %v390_v37  ;;  %v490_v5 = vsel %vm484_vm5, %v468_v61, %v448_v3  ;;  %v180_v37 = vsel %vm161_vm3, %v177_v17, %v179_v30  ;;  %v219_v63 = vpack.c.bf16 %v182_v38, %v182_v38 }
 0x118   :  { %v218_v42 = vpack.c.bf16 %v180_v37, %v180_v37  ;;  %v335_v3 = vunpack.c.l.b16 %v220_v1 }
 0x119   :  { %v394_v12 = vpop.permute.xlu0 %393 }
 0x11a   :  { %v471_v28 = vsel %vm459_vm4, %v342_v13, %v394_v12  ;;  %v333_v43 = vunpack.c.l.b16 %v218_v42  ;;  %v222_v12 = vpack.c.bf16 %v188_v9, %v188_v9  ;;  %v223_v13 = vpack.c.bf16 %v189_v11, %v189_v11 }
 0x11c   :  { %v338_v16 = vunpack.c.l.b16 %v223_v13 }
 0x11e   :  { %v396_v32 = vpop.permute.xlu2 %395 }
 0x11f   :  { %v474_v36 = vsel %vm459_vm4, %v343_v34, %v396_v32 }
 0x121   :  { %v446_v47 = vpop.permute.xlu1 %445  ;;  %v452_v35 = vpop.permute.xlu0 %451 }
 0x122   :  { %v488_v53 = vsel %vm484_vm5, %v465_v46, %v446_v47  ;;  %v494_v41 = vsel %vm484_vm5, %v474_v36, %v452_v35  ;;  %v334_v46 = vunpack.c.l.b16 %v219_v63 }
 0x123   :  { %10354 = vmatmul.msk.bf16.gmra.mxu1 %vm549_vm6, %v488_v53 }
 0x124   :  { %v344_v50 = vpack.c.b16 %v334_v46, %v333_v43 }
 0x126   :  { %v454_v57 = vpop.permute.xlu2 %453 }
 0x129   :  { %v450_v15 = vpop.permute.xlu1 %449  ;;  %v400_v61 = vpop.permute.xlu0 %399 }
 0x12a   :  { %v492_v20 = vsel %vm484_vm5, %v471_v28, %v450_v15  ;;  %v337_v15 = vunpack.c.l.b16 %v222_v12 }
 0x12c   :  { %v346_v28 = vpack.c.b16 %v338_v16, %v337_v15 }
 0x12e   :  { %v402_v17 = vpop.permute.xlu2 %401 }
 0x12f   :  { %v483_v14 = vsel %vm459_vm4, %v346_v28, %v402_v17 }
 0x131   :  { %v398_v47 = vpop.permute.xlu1 %397 }
 0x132   :  { %v477_v53 = vsel %vm459_vm4, %v344_v50, %v398_v47 }
 0x133   :  { %10355 = vmatmul.msk.bf16.gmra.mxu1 %vm549_vm6, %v490_v5  ;;  %v496_v58 = vsel %vm484_vm5, %v477_v53, %v454_v57  ;;  %v345_v5 = vpack.c.b16 %v336_v4, %v335_v3 }
 0x135   :  { %v480_v7 = vsel %vm459_vm4, %v345_v5, %v400_v61 }
 0x139   :  { %v456_v40 = vpop.permute.xlu1 %455 }
 0x13a   :  { %v498_v8 = vsel %vm484_vm5, %v480_v7, %v456_v40 }
 0x143   :  { %10356 = vmatmul.msk.bf16.gmra.mxu1 %vm549_vm6, %v492_v20  ;;  %v458_v20 = vpop.permute.xlu0 %457 }
 0x144   :  { %v500_v21 = vsel %vm484_vm5, %v483_v14, %v458_v20 }
 0x153   :  { %10357 = vmatmul.msk.bf16.gmra.mxu1 %vm549_vm6, %v494_v41 }
 0x163   :  { %10358 = vmatmul.msk.bf16.gmra.mxu1 %vm549_vm6, %v496_v58 }
 0x173   :  { %10359 = vmatmul.msk.bf16.gmra.mxu1 %vm549_vm6, %v498_v8 }
 0x183   :  { %10360 = vmatmul.msk.bf16.gmra.mxu1 %vm549_vm6, %v500_v21 }
 0x190   :  { %v575_v25 = vpop.f32.mrf.mxu1 }
 0x191   :  { %v615_v19 = vadd.f32 %v575_v25, %v11658_v29 }
 0x193   :  { %v633_v26 = vadd.f32 %v11877_v23, %v615_v19 }
 0x195   :  { %v665_v27 = vmin.f32 %v633_v26, 0.0  ;;  %vm649_vm7 = vcmp.gt.f32.partialorder %v633_v26, 0.0 }
 0x197   :  { %v681_v30 = vmul.f32 1.442695, %v665_v27 }
 0x198   :  { %v577_v31 = vpop.f32.mrf.mxu1 }
 0x199   :  { %11222 = vpow2.f32 %v681_v30  ;;  %v616_v32 = vadd.f32 %v577_v31, %v11661_v33 }
 0x19b   :  { %v634_v34 = vadd.f32 %v11877_v23, %v616_v32 }
 0x19d   :  { %v666_v35 = vmin.f32 %v634_v34, 0.0  ;;  %vm650_vm8 = vcmp.gt.f32.partialorder %v634_v34, 0.0 }
 0x19f   :  { %v11223_v36 = vpop.eup %11222  ;;  %v683_v37 = vmul.f32 1.442695, %v666_v35 }
 0x1a0   :  { %v580_v38 = vpop.f32.mrf.mxu1  ;;  %v10361_v42 = vadd.f32 -1.0, %v11223_v36 }
 0x1a1   :  { %11224 = vpow2.f32 %v683_v37  ;;  %v617_v41 = vadd.f32 %v580_v38, %v11672_v44 }
 0x1a2   :  { %v11885_v43 = vsel %vm649_vm7, %v633_v26, %v10361_v42 }
 0x1a3   :  { %v635_v29 = vadd.f32 %v11877_v23, %v617_v41  ;;  %v894_v39 = vpack.c.bf16 %v11885_v43, %v11885_v43 }
 0x1a5   :  { %v667_v63 = vmin.f32 %v635_v29, 0.0  ;;  %v1022_v59 = vunpack.c.l.b16 %v894_v39  ;;  %vm651_vm10 = vcmp.gt.f32.partialorder %v635_v29, 0.0 }
 0x1a7   :  { %v11225_v46 = vpop.eup %11224  ;;  %v685_v47 = vmul.f32 1.442695, %v667_v63 }
 0x1a8   :  { %v10362_v50 = vadd.f32 -1.0, %v11225_v46  ;;  %v582_v33 = vpop.f32.mrf.mxu1 }
 0x1a9   :  { %11226 = vpow2.f32 %v685_v47  ;;  %v618_v53 = vadd.f32 %v582_v33, %v11698_v62  ;;  %v1181_v62 = vrot.slane %v11885_v43, 2 }
 0x1aa   :  { %v11890_v54 = vsel %vm650_vm8, %v634_v34, %v10362_v50 }
 0x1ab   :  { %v636_v44 = vadd.f32 %v11877_v23, %v618_v53  ;;  %v895_v57 = vpack.c.bf16 %v11890_v54, %v11890_v54  ;;  %v1182_v1 = vrot.slane %v11890_v54, 2 }
 0x1ad   :  { %v668_v58 = vmin.f32 %v636_v44, 0.0  ;;  %v1023_v60 = vunpack.c.l.b16 %v895_v57  ;;  %v1183_v6 = vsel %vm1180_vm9, %v1181_v62, %v1182_v1  ;;  %vm652_vm11 = vcmp.gt.f32.partialorder %v636_v44, 0.0 }
 0x1ae   :  { %v1231_v11 = vpack.c.bf16 %v1183_v6, %v1183_v6 }
 0x1af   :  { %v11227_v2 = vpop.eup %11226  ;;  %v687_v3 = vmul.f32 1.442695, %v668_v58  ;;  %v1038_v4 = vpack.c.b16 %v1023_v60, %v1022_v59 }
 0x1b0   :  { %v10363_v61 = vadd.f32 -1.0, %v11227_v2  ;;  %v585_v5 = vpop.f32.mrf.mxu1  ;;  %v1303_v20 = vunpack.c.l.b16 %v1231_v11 }
 0x1b1   :  { %11228 = vpow2.f32 %v687_v3  ;;  %v619_v40 = vadd.f32 %v585_v5, %v11718_v18  ;;  %1046 = vrot.lane.b32.xlu2 %v1038_v4, %s11538_s2 }
 0x1b2   :  { %v11902_v7 = vsel %vm651_vm10, %v635_v29, %v10363_v61 }
 0x1b3   :  { %v637_v8 = vadd.f32 %v11877_v23, %v619_v40  ;;  %v1184_v9 = vrot.slane %v11902_v7, 2  ;;  %v896_v25 = vpack.c.bf16 %v11902_v7, %v11902_v7 }
 0x1b5   :  { %v669_v12 = vmin.f32 %v637_v8, 0.0  ;;  %v1185_v13 = vsel %vm1180_vm9, %v1182_v1, %v1184_v9  ;;  %v1024_v32 = vunpack.c.l.b16 %v896_v25  ;;  %vm653_vm12 = vcmp.gt.f32.partialorder %v637_v8, 0.0 }
 0x1b6   :  { %v1232_v15 = vpack.c.bf16 %v1185_v13, %v1185_v13 }
 0x1b7   :  { %v11229_v16 = vpop.eup %11228  ;;  %v689_v17 = vmul.f32 1.442695, %v669_v12 }
 0x1b8   :  { %v10364_v18 = vadd.f32 -1.0, %v11229_v16  ;;  %v587_v28 = vpop.f32.mrf.mxu1  ;;  %v1304_v14 = vunpack.c.l.b16 %v1232_v15 }
 0x1b9   :  { %11230 = vpow2.f32 %v689_v17  ;;  %v620_v21 = vadd.f32 %v587_v28, %v11742_v45 }
 0x1ba   :  { %v11910_v19 = vsel %vm652_vm11, %v636_v44, %v10364_v18  ;;  %v1319_v26 = vpack.c.b16 %v1304_v14, %v1303_v20 }
 0x1bb   :  { %v638_v27 = vadd.f32 %v11877_v23, %v620_v21  ;;  %v897_v30 = vpack.c.bf16 %v11910_v19, %v11910_v19  ;;  %v1186_v35 = vrot.slane %v11910_v19, 2  ;;  %v833_v21 = vrot.slane %v11890_v54, 7 }
 0x1bc   :  { %1327 = vrot.lane.b32.xlu0 %v1319_v26, %s11537_s0 }
 0x1bd   :  { %v670_v31 = vmin.f32 %v638_v27, 0.0  ;;  %v1025_v34 = vunpack.c.l.b16 %v897_v30  ;;  %v1187_v29 = vsel %vm1180_vm9, %v1184_v9, %v1186_v35  ;;  %vm654_vm13 = vcmp.gt.f32.partialorder %v638_v27, 0.0 }
 0x1be   :  { %v1233_v50 = vpack.c.bf16 %v1187_v29, %v1187_v29 }
 0x1bf   :  { %v11231_v36 = vpop.eup %11230  ;;  %v691_v45 = vmul.f32 1.442695, %v670_v31  ;;  %v1039_v37 = vpack.c.b16 %v1025_v34, %v1024_v32 }
 0x1c0   :  { %v10365_v38 = vadd.f32 -1.0, %v11231_v36  ;;  %v590_v41 = vpop.f32.mrf.mxu1 }
 0x1c1   :  { %11232 = vpow2.f32 %v691_v45  ;;  %v621_v42 = vadd.f32 %v590_v41, %v11687_v51  ;;  %1048 = vrot.lane.b32.xlu2 %v1039_v37, %s11538_s2  ;;  %v1305_v51 = vunpack.c.l.b16 %v1233_v50 }
 0x1c2   :  { %v11920_v63 = vsel %vm653_vm12, %v637_v8, %v10365_v38 }
 0x1c3   :  { %v639_v46 = vadd.f32 %v11877_v23, %v621_v42  ;;  %v1188_v47 = vrot.slane %v11920_v63, 2  ;;  %v898_v2 = vpack.c.bf16 %v11920_v63, %v11920_v63 }
 0x1c5   :  { %v671_v33 = vmin.f32 %v639_v46, 0.0  ;;  %v1189_v53 = vsel %vm1180_vm9, %v1186_v35, %v1188_v47  ;;  %v1026_v6 = vunpack.c.l.b16 %v898_v2  ;;  %vm655_vm14 = vcmp.gt.f32.partialorder %v639_v46, 0.0 }
 0x1c6   :  { %v1234_v39 = vpack.c.bf16 %v1189_v53, %v1189_v53  ;;  %v837_v53 = vrot.slane %v11910_v19, 7 }
 0x1c7   :  { %v11233_v44 = vpop.eup %11232  ;;  %v693_v57 = vmul.f32 1.442695, %v671_v33 }
 0x1c8   :  { %v10366_v58 = vadd.f32 -1.0, %v11233_v44  ;;  %v592_v59 = vpop.f32.mrf.mxu1  ;;  %v1306_v60 = vunpack.c.l.b16 %v1234_v39 }
 0x1c9   :  { %11234 = vpow2.f32 %v693_v57  ;;  %v622_v1 = vadd.f32 %v592_v59, %v11690_v52 }
 0x1ca   :  { %v11928_v3 = vsel %vm654_vm13, %v638_v27, %v10366_v58  ;;  %v1320_v4 = vpack.c.b16 %v1306_v60, %v1305_v51 }
 0x1cb   :  { %v640_v61 = vadd.f32 %v11877_v23, %v622_v1  ;;  %v899_v5 = vpack.c.bf16 %v11928_v3, %v11928_v3  ;;  %v1190_v9 = vrot.slane %v11928_v3, 2 }
 0x1cc   :  { %1329 = vrot.lane.b32.xlu0 %v1320_v4, %s11537_s0 }
 0x1cd   :  { %v672_v40 = vmin.f32 %v640_v61, 0.0  ;;  %v1027_v8 = vunpack.c.l.b16 %v899_v5  ;;  %v1191_v17 = vsel %vm1180_vm9, %v1188_v47, %v1190_v9  ;;  %vm656_vm15 = vcmp.gt.f32.partialorder %v640_v61, 0.0 }
 0x1ce   :  { %v1235_v14 = vpack.c.bf16 %v1191_v17, %v1191_v17 }
 0x1cf   :  { %v11235_v11 = vpop.eup %11234  ;;  %v695_v52 = vmul.f32 1.442695, %v672_v40  ;;  %v1040_v12 = vpack.c.b16 %v1027_v8, %v1026_v6 }
 0x1d0   :  { %v10367_v13 = vadd.f32 -1.0, %v11235_v11  ;;  %v595_v15 = vpop.f32.mrf.mxu1  ;;  %v1307_v35 = vunpack.c.l.b16 %v1235_v14 }
 0x1d1   :  { %11236 = vpow2.f32 %v695_v52  ;;  %v623_v16 = vadd.f32 %v595_v15, %v11683_v49  ;;  %1050 = vrot.lane.b32.xlu2 %v1040_v12, %s11538_s2  ;;  %v832_v49 = vrot.slane %v11885_v43, 7 }
 0x1d2   :  { %v11938_v18 = vsel %vm655_vm14, %v639_v46, %v10367_v13 }
 0x1d3   :  { %v11941_v28 = vadd.f32 %v11877_v23, %v623_v16  ;;  %v1192_v20 = vrot.slane %v11938_v18, 2  ;;  %v834_v45 = vsel %vm161_vm3, %v832_v49, %v833_v21  ;;  %v900_v38 = vpack.c.bf16 %v11938_v18, %v11938_v18 }
 0x1d4   :  { %v879_v33 = vpack.c.bf16 %v834_v45, %v834_v45 }
 0x1d5   :  { %v673_v25 = vmin.f32 %v11941_v28, 0.0  ;;  %v1193_v26 = vsel %vm1180_vm9, %v1190_v9, %v1192_v20  ;;  %v1028_v44 = vunpack.c.l.b16 %v900_v38  ;;  %vm657_vm1 = vcmp.gt.f32.partialorder %v11941_v28, 0.0 }
 0x1d6   :  { %v1236_v27 = vpack.c.bf16 %v1193_v26, %v1193_v26  ;;  %v967_v8 = vunpack.c.l.b16 %v879_v33 }
 0x1d7   :  { %v11237_v30 = vpop.eup %11236  ;;  %v697_v31 = vmul.f32 1.442695, %v673_v25  ;;  %v839_v25 = vrot.slane %v11920_v63, 7 }
 0x1d8   :  { %v10368_v32 = vadd.f32 -1.0, %v11237_v30  ;;  %v597_v34 = vpop.f32.mrf.mxu1  ;;  %v1308_v36 = vunpack.c.l.b16 %v1236_v27 }
 0x1d9   :  { %11238 = vpow2.f32 %v697_v31  ;;  %v624_v37 = vadd.f32 %v597_v34, %v11702_v0  ;;  %v835_v0 = vrot.slane %v11902_v7, 7 }
 0x1da   :  { %v11952_v41 = vsel %vm656_vm15, %v640_v61, %v10368_v32  ;;  %v1321_v42 = vpack.c.b16 %v1308_v36, %v1307_v35  ;;  %v840_v35 = vsel %vm161_vm3, %v837_v53, %v839_v25  ;;  %vm765_vm15 = vcmask 1041408  }
 0x1db   :  { %v642_v29 = vadd.f32 %v11877_v23, %v624_v37  ;;  %v901_v46 = vpack.c.bf16 %v11952_v41, %v11952_v41  ;;  %v1194_v47 = vrot.slane %v11952_v41, 2  ;;  %v828_v50 = vrot.slane %v11952_v41, 7 }
 0x1dc   :  { %1331 = vrot.lane.b32.xlu0 %v1321_v42, %s11537_s0  ;;  %v836_v9 = vsel %vm161_vm3, %v833_v21, %v835_v0  ;;  %v838_v11 = vsel %vm161_vm3, %v835_v0, %v837_v53  ;;  %v841_v21 = vrot.slane %v11928_v3, 7  ;;  %v882_v33 = vpack.c.bf16 %v840_v35, %v840_v35 }
 0x1dd   :  { %v674_v39 = vmin.f32 %v642_v29, 0.0  ;;  %v1029_v57 = vunpack.c.l.b16 %v901_v46  ;;  %v1195_v58 = vsel %vm1180_vm9, %v1192_v20, %v1194_v47  ;;  %v1229_v59 = vsel %vm1180_vm9, %v1194_v47, %v1181_v62 }
 0x1de   :  { %v1237_v51 = vpack.c.bf16 %v1195_v58, %v1195_v58  ;;  %v876_v60 = vsel %vm161_vm3, %v828_v50, %v832_v49  ;;  %v1238_v61 = vpack.c.bf16 %v1229_v59, %v1229_v59  ;;  %v881_v20 = vpack.c.bf16 %v838_v11, %v838_v11 }
 0x1df   :  { %v11239_v1 = vpop.eup %11238  ;;  %v699_v2 = vmul.f32 1.442695, %v674_v39  ;;  %v1041_v4 = vpack.c.b16 %v1029_v57, %v1028_v44  ;;  %v878_v5 = vpack.c.bf16 %v876_v60, %v876_v60  ;;  %v880_v14 = vpack.c.bf16 %v836_v9, %v836_v9 }
 0x1e0   :  { %v600_v40 = vpop.f32.mrf.mxu1  ;;  %v1309_v6 = vunpack.c.l.b16 %v1237_v51  ;;  %v1310_v52 = vunpack.c.l.b16 %v1238_v61  ;;  %v10369_v13 = vadd.f32 -1.0, %v11239_v1  ;;  %v969_v30 = vunpack.c.l.b16 %v881_v20 }
 0x1e1   :  { %11240 = vpow2.f32 %v699_v2  ;;  %v625_v62 = vadd.f32 %v600_v40, %v11680_v48  ;;  %1052 = vrot.lane.b32.xlu2 %v1041_v4, %s11538_s2  ;;  %v966_v12 = vunpack.c.l.b16 %v878_v5  ;;  %v968_v34 = vunpack.c.l.b16 %v880_v14 }
 0x1e2   :  { %v1322_v16 = vpack.c.b16 %v1310_v52, %v1309_v6  ;;  %v11980_v48 = vsel %vm657_vm1, %v11941_v28, %v10369_v13  ;;  %v842_v36 = vsel %vm161_vm3, %v839_v25, %v841_v21  ;;  %vm658_vm7 = vcmp.gt.f32.partialorder %v642_v29, 0.0 }
 0x1e3   :  { %v643_v15 = vadd.f32 %v11877_v23, %v625_v62  ;;  %v982_v17 = vpack.c.b16 %v967_v8, %v966_v12  ;;  %v902_v37 = vpack.c.bf16 %v11980_v48, %v11980_v48  ;;  %v983_v42 = vpack.c.b16 %v969_v30, %v968_v34 }
 0x1e4   :  { %1333 = vrot.lane.b32.xlu0 %v1322_v16, %s11537_s0  ;;  %v883_v47 = vpack.c.bf16 %v842_v36, %v842_v36  ;;  %v843_v0 = vrot.slane %v11938_v18, 7  ;;  %v1196_v51 = vrot.slane %v11980_v48, 2  ;;  %v970_v2 = vunpack.c.l.b16 %v882_v33  ;;  %v11096_v36 = vld [vmem:[%s16960_s3 + $0x78] sm:$0xff] }
 0x1e5   :  { %v675_v26 = vmin.f32 %v643_v15, 0.0  ;;  %990 = vrot.lane.b32.xlu1 %v982_v17, %s11537_s0  ;;  %v1030_v39 = vunpack.c.l.b16 %v902_v37  ;;  %vm659_vm8 = vcmp.gt.f32.partialorder %v643_v15, 0.0  ;;  %1419 = vmatpush.bf16.msra.mxu2 %v11096_v36 }
 0x1e6   :  { %v971_v59 = vunpack.c.l.b16 %v883_v47  ;;  %v844_v4 = vsel %vm161_vm3, %v841_v21, %v843_v0  ;;  %v845_v61 = vsel %vm161_vm3, %v843_v0, %v828_v50 }
 0x1e7   :  { %v11241_v27 = vpop.eup %11240  ;;  %v701_v49 = vmul.f32 1.442695, %v675_v26  ;;  %v885_v11 = vpack.c.bf16 %v845_v61, %v845_v61  ;;  %v884_v52 = vpack.c.bf16 %v844_v4, %v844_v4 }
 0x1e8   :  { %v10370_v31 = vadd.f32 -1.0, %v11241_v27  ;;  %v602_v32 = vpop.f32.mrf.mxu1  ;;  %v984_v9 = vpack.c.b16 %v971_v59, %v970_v2 }
 0x1e9   :  { %11242 = vpow2.f32 %v701_v49  ;;  %v626_v45 = vadd.f32 %v602_v32, %v11751_v55  ;;  %v973_v20 = vunpack.c.l.b16 %v885_v11  ;;  %v972_v25 = vunpack.c.l.b16 %v884_v52 }
 0x1ea   :  { %v11987_v38 = vsel %vm658_vm7, %v642_v29, %v10370_v31 }
 0x1eb   :  { %v644_v28 = vadd.f32 %v11877_v23, %v626_v45  ;;  %v903_v46 = vpack.c.bf16 %v11987_v38, %v11987_v38  ;;  %v1197_v44 = vrot.slane %v11987_v38, 2  ;;  %v985_v34 = vpack.c.b16 %v973_v20, %v972_v25 }
 0x1ed   :  { %v676_v53 = vmin.f32 %v644_v28, 0.0  ;;  %992 = vrot.lane.b32.xlu1 %v983_v42, %s11537_s0  ;;  %v1031_v55 = vunpack.c.l.b16 %v903_v46  ;;  %v1198_v40 = vsel %vm1180_vm9, %v1196_v51, %v1197_v44  ;;  %vm660_vm10 = vcmp.gt.f32.partialorder %v644_v28, 0.0 }
 0x1ee   :  { %v1239_v50 = vpack.c.bf16 %v1198_v40, %v1198_v40 }
 0x1ef   :  { %v11243_v57 = vpop.eup %11242  ;;  %v703_v29 = vmul.f32 1.442695, %v676_v53  ;;  %v1042_v58 = vpack.c.b16 %v1031_v55, %v1030_v39 }
 0x1f0   :  { %v10371_v60 = vadd.f32 -1.0, %v11243_v57  ;;  %v605_v1 = vpop.f32.mrf.mxu1  ;;  %v1311_v21 = vunpack.c.l.b16 %v1239_v50 }
 0x1f1   :  { %11244 = vpow2.f32 %v703_v29  ;;  %v627_v5 = vadd.f32 %v605_v1, %v11725_v22  ;;  %1054 = vrot.lane.b32.xlu2 %v1042_v58, %s11538_s2  ;;  %v11095_v58 = vld [vmem:[%s16960_s3 + $0x70] sm:$0xff] }
 0x1f2   :  { %v12005_v6 = vsel %vm659_vm8, %v643_v15, %v10371_v60  ;;  %1420 = vmatpush.bf16.msra.mxu2 %v11095_v58 }
 0x1f3   :  { %v645_v8 = vadd.f32 %v11877_v23, %v627_v5  ;;  %v1199_v62 = vrot.slane %v12005_v6, 2  ;;  %v904_v49 = vpack.c.bf16 %v12005_v6, %v12005_v6 }
 0x1f5   :  { %v677_v12 = vmin.f32 %v645_v8, 0.0  ;;  %994 = vrot.lane.b32.xlu1 %v984_v9, %s11537_s0  ;;  %v1200_v22 = vsel %vm1180_vm9, %v1197_v44, %v1199_v62  ;;  %vm661_vm11 = vcmp.gt.f32.partialorder %v645_v8, 0.0 }
 0x1f6   :  { %v1240_v13 = vpack.c.bf16 %v1200_v22, %v1200_v22  ;;  %v11093_v22 = vld [vmem:[%s16960_s3 + $0x60] sm:$0xff] }
 0x1f7   :  { %v11245_v16 = vpop.eup %11244  ;;  %v705_v17 = vmul.f32 1.442695, %v677_v12 }
 0x1f8   :  { %v10372_v14 = vadd.f32 -1.0, %v11245_v16  ;;  %v607_v15 = vpop.f32.mrf.mxu1  ;;  %v1312_v26 = vunpack.c.l.b16 %v1240_v13 }
 0x1f9   :  { %11246 = vpow2.f32 %v705_v17  ;;  %v628_v27 = vadd.f32 %v607_v15, %v11729_v24  ;;  %v1032_v24 = vunpack.c.l.b16 %v904_v49 }
 0x1fa   :  { %v12014_v30 = vsel %vm660_vm10, %v644_v28, %v10372_v14  ;;  %v1323_v31 = vpack.c.b16 %v1312_v26, %v1311_v21 }
 0x1fb   :  { %v646_v32 = vadd.f32 %v11877_v23, %v628_v27  ;;  %v905_v35 = vpack.c.bf16 %v12014_v30, %v12014_v30  ;;  %v1201_v28 = vrot.slane %v12014_v30, 2 }
 0x1fc   :  { %1335 = vrot.lane.b32.xlu0 %v1323_v31, %s11537_s0  ;;  %v847_v31 = vrot.slane %v11987_v38, 7 }
 0x1fd   :  { %v678_v45 = vmin.f32 %v646_v32, 0.0  ;;  %996 = vrot.lane.b32.xlu1 %v985_v34, %s11537_s0  ;;  %v1033_v37 = vunpack.c.l.b16 %v905_v35  ;;  %v1202_v39 = vsel %vm1180_vm9, %v1199_v62, %v1201_v28  ;;  %vm662_vm12 = vcmp.gt.f32.partialorder %v646_v32, 0.0 }
 0x1fe   :  { %v1241_v29 = vpack.c.bf16 %v1202_v39, %v1202_v39  ;;  %v846_v35 = vrot.slane %v11980_v48, 7 }
 0x1ff   :  { %v11247_v42 = vpop.eup %11246  ;;  %v707_v46 = vmul.f32 1.442695, %v678_v45  ;;  %v1043_v47 = vpack.c.b16 %v1033_v37, %v1032_v24 }
 0x200   :  { %v10373_v33 = vadd.f32 -1.0, %v11247_v42  ;;  %v610_v0 = vpop.f32.mrf.mxu1  ;;  %v1313_v40 = vunpack.c.l.b16 %v1241_v29 }
 0x201   :  { %11248 = vpow2.f32 %v707_v46  ;;  %v629_v53 = vadd.f32 %v610_v0, %v11754_v56  ;;  %1056 = vrot.lane.b32.xlu2 %v1043_v47, %s11538_s2  ;;  %v11094_v56 = vld [vmem:[%s16960_s3 + $0x68] sm:$0xff] }
 0x202   :  { %v12028_v55 = vsel %vm661_vm11, %v645_v8, %v10373_v33  ;;  %1421 = vmatpush.bf16.msra.mxu2 %v11094_v56 }
 0x203   :  { %v647_v44 = vadd.f32 %v11877_v23, %v629_v53  ;;  %v1203_v57 = vrot.slane %v12028_v55, 2  ;;  %v906_v11 = vpack.c.bf16 %v12028_v55, %v12028_v55  ;;  %v851_v53 = vrot.slane %v12014_v30, 7 }
 0x205   :  { %v679_v59 = vmin.f32 %v647_v44, 0.0  ;;  %v1204_v60 = vsel %vm1180_vm9, %v1201_v28, %v1203_v57  ;;  %vm663_vm13 = vcmp.gt.f32.partialorder %v647_v44, 0.0  ;;  %v848_v28 = vsel %vm161_vm3, %v846_v35, %v847_v31 }
 0x206   :  { %v1242_v1 = vpack.c.bf16 %v1204_v60, %v1204_v60  ;;  %1422 = vmatpush.bf16.msra.mxu2 %v11093_v22 }
 0x207   :  { %v11249_v2 = vpop.eup %11248  ;;  %v709_v4 = vmul.f32 1.442695, %v679_v59 }
 0x208   :  { %v10374_v61 = vadd.f32 -1.0, %v11249_v2  ;;  %v612_v5 = vpop.f32.mrf.mxu1  ;;  %v1314_v8 = vunpack.c.l.b16 %v1242_v1 }
 0x209   :  { %11250 = vpow2.f32 %v709_v4  ;;  %v630_v9 = vadd.f32 %v612_v5, %v11764_v10  ;;  %v1034_v10 = vunpack.c.l.b16 %v906_v11  ;;  %v1117_v4 = vrot.slane %v11902_v7, 1 }
 0x20a   :  { %v12042_v62 = vsel %vm662_vm12, %v646_v32, %v10374_v61  ;;  %v1324_v52 = vpack.c.b16 %v1314_v8, %v1313_v40  ;;  %v1115_v40 = vrot.slane %v11890_v54, 1 }
 0x20b   :  { %v648_v50 = vadd.f32 %v11877_v23, %v630_v9  ;;  %v907_v12 = vpack.c.bf16 %v12042_v62, %v12042_v62  ;;  %v1205_v17 = vrot.slane %v12042_v62, 2 }
 0x20c   :  { %1337 = vrot.lane.b32.xlu0 %v1324_v52, %s11537_s0 }
 0x20d   :  { %v680_v13 = vmin.f32 %v648_v50, 0.0  ;;  %v1035_v16 = vunpack.c.l.b16 %v907_v12  ;;  %v1206_v23 = vsel %vm1180_vm9, %v1203_v57, %v1205_v17  ;;  %vm664_vm14 = vcmp.gt.f32.partialorder %v648_v50, 0.0 }
 0x20e   :  { %v1243_v27 = vpack.c.bf16 %v1206_v23, %v1206_v23  ;;  %v849_v57 = vrot.slane %v12005_v6, 7  ;;  %v1114_v12 = vrot.slane %v11885_v43, 1  ;;  %v853_v23 = vrot.slane %v12028_v55, 7 }
 0x20f   :  { %v11251_v20 = vpop.eup %11250  ;;  %v711_v14 = vmul.f32 1.442695, %v680_v13  ;;  %v1044_v15 = vpack.c.b16 %v1035_v16, %v1034_v10  ;;  %v1118_v16 = vsel %vm240_vm2, %v1115_v40, %v1117_v4 }
 0x210   :  { %v10375_v25 = vadd.f32 -1.0, %v11251_v20  ;;  %v1315_v45 = vunpack.c.l.b16 %v1243_v27  ;;  %v852_v5 = vsel %vm161_vm3, %v849_v57, %v851_v53  ;;  %v855_v20 = vrot.slane %v12042_v62, 7  ;;  %v11090_v27 = vld [vmem:[%s16960_s3 + $0x48] sm:$0xff] }
 0x211   :  { %11252 = vpow2.f32 %v711_v14  ;;  %1058 = vrot.lane.b32.xlu2 %v1044_v15, %s11538_s2  ;;  %v889_v10 = vpack.c.bf16 %v852_v5, %v852_v5  ;;  %v1116_v15 = vsel %vm240_vm2, %v1114_v12, %v1115_v40 }
 0x212   :  { %v12054_v21 = vsel %vm663_vm13, %v647_v44, %v10375_v25  ;;  %v887_v44 = vpack.c.bf16 %v848_v28, %v848_v28  ;;  %v1165_v25 = vpack.c.bf16 %v1118_v16, %v1118_v16 }
 0x213   :  { %v1207_v26 = vrot.slane %v12054_v21, 2  ;;  %v908_v37 = vpack.c.bf16 %v12054_v21, %v12054_v21 }
 0x214   :  { %v975_v52 = vunpack.c.l.b16 %v887_v44  ;;  %v1121_v44 = vrot.slane %v11920_v63, 1 }
 0x215   :  { %v1208_v49 = vsel %vm1180_vm9, %v1205_v17, %v1207_v26  ;;  %v1036_v39 = vunpack.c.l.b16 %v908_v37  ;;  %v11091_v17 = vld [vmem:[%s16960_s3 + $0x50] sm:$0xff]  ;;  %v11089_v37 = vld [vmem:[%s16960_s3 + $0x40] sm:$0xff] }
 0x216   :  { %v1244_v32 = vpack.c.bf16 %v1208_v49, %v1208_v49  ;;  %v1164_v49 = vpack.c.bf16 %v1116_v15, %v1116_v15 }
 0x217   :  { %v11253_v34 = vpop.eup %11252 }
 0x218   :  { %v10376_v36 = vadd.f32 -1.0, %v11253_v34  ;;  %v1316_v24 = vunpack.c.l.b16 %v1244_v32  ;;  %v1264_v34 = vunpack.c.l.b16 %v1165_v25  ;;  %v747_v25 = vrot.slane %v11952_v41, 6 }
 0x21a   :  { %v12063_v42 = vsel %vm664_vm14, %v648_v50, %v10376_v36  ;;  %v1325_v46 = vpack.c.b16 %v1316_v24, %v1315_v45  ;;  %v850_v50 = vsel %vm161_vm3, %v847_v31, %v849_v57  ;;  %v856_v31 = vsel %vm161_vm3, %v853_v23, %v855_v20 }
 0x21b   :  { %v909_v47 = vpack.c.bf16 %v12063_v42, %v12063_v42  ;;  %v1209_v33 = vrot.slane %v12063_v42, 2  ;;  %v829_v0 = vrot.slane %v12063_v42, 7  ;;  %v888_v14 = vpack.c.bf16 %v850_v50, %v850_v50 }
 0x21c   :  { %1339 = vrot.lane.b32.xlu0 %v1325_v46, %s11537_s0  ;;  %v891_v45 = vpack.c.bf16 %v856_v31, %v856_v31  ;;  %v1263_v24 = vunpack.c.l.b16 %v1164_v49 }
 0x21d   :  { %v1037_v29 = vunpack.c.l.b16 %v909_v47  ;;  %v1210_v58 = vsel %vm1180_vm9, %v1207_v26, %v1209_v33  ;;  %v1230_v59 = vsel %vm1180_vm9, %v1209_v33, %v1196_v51  ;;  %v877_v60 = vsel %vm161_vm3, %v829_v0, %v846_v35  ;;  %v11092_v51 = vld [vmem:[%s16960_s3 + $0x58] sm:$0xff] }
 0x21e   :  { %v1245_v1 = vpack.c.bf16 %v1210_v58, %v1210_v58  ;;  %v1246_v56 = vpack.c.bf16 %v1230_v59, %v1230_v59  ;;  %v886_v2 = vpack.c.bf16 %v877_v60, %v877_v60  ;;  %1518 = vmatpush.bf16.msrb.mxu3 %v11092_v51  ;;  %v977_v26 = vunpack.c.l.b16 %v889_v10  ;;  %v11088_v59 = vld [vmem:[%s16960_s3 + $0x38] sm:$0xff] }
 0x21f   :  { %v1045_v61 = vpack.c.b16 %v1037_v29, %v1036_v39  ;;  %v976_v32 = vunpack.c.l.b16 %v888_v14  ;;  %v854_v35 = vsel %vm161_vm3, %v851_v53, %v853_v23  ;;  %v1279_v46 = vpack.c.b16 %v1264_v34, %v1263_v24 }
 0x220   :  { %v1317_v8 = vunpack.c.l.b16 %v1245_v1  ;;  %v1318_v9 = vunpack.c.l.b16 %v1246_v56  ;;  %v974_v11 = vunpack.c.l.b16 %v886_v2  ;;  %v890_v28 = vpack.c.bf16 %v854_v35, %v854_v35 }
 0x221   :  { %1060 = vrot.lane.b32.xlu2 %v1045_v61, %s11538_s2  ;;  %v987_v36 = vpack.c.b16 %v977_v26, %v976_v32  ;;  %v857_v47 = vrot.slane %v12054_v21, 7  ;;  %v979_v39 = vunpack.c.l.b16 %v891_v45  ;;  %v1119_v58 = vrot.slane %v11910_v19, 1 }
 0x222   :  { %v1326_v22 = vpack.c.b16 %v1318_v9, %v1317_v8  ;;  %v986_v13 = vpack.c.b16 %v975_v52, %v974_v11  ;;  %1519 = vmatpush.bf16.msrb.mxu3 %v11091_v17  ;;  %v978_v29 = vunpack.c.l.b16 %v890_v28  ;;  %v1125_v10 = vrot.slane %v11938_v18, 1 }
 0x223   :  { %v859_v57 = vsel %vm161_vm3, %v857_v47, %v829_v0  ;;  %v858_v60 = vsel %vm161_vm3, %v855_v20, %v857_v47  ;;  %v1122_v2 = vsel %vm240_vm2, %v1119_v58, %v1121_v44  ;;  %v11087_v0 = vld [vmem:[%s16960_s3 + $0x30] sm:$0xff]  ;;  %v1120_v5 = vsel %vm240_vm2, %v1117_v4, %v1119_v58 }
 0x224   :  { %1341 = vrot.lane.b32.xlu0 %v1326_v22, %s11537_s0  ;;  %998 = vrot.lane.b32.xlu1 %v986_v13, %s11537_s0  ;;  %v988_v1 = vpack.c.b16 %v979_v39, %v978_v29  ;;  %v893_v56 = vpack.c.bf16 %v859_v57, %v859_v57  ;;  %v892_v61 = vpack.c.bf16 %v858_v60, %v858_v60  ;;  %v1123_v4 = vrot.slane %v11928_v3, 1 }
 0x225   :  { %v1167_v40 = vpack.c.bf16 %v1122_v2, %v1122_v2  ;;  %v1166_v9 = vpack.c.bf16 %v1120_v5, %v1120_v5  ;;  %v766_v26 = vrot.slane %v11885_v43, 6  ;;  %v1127_v45 = vrot.slane %v11952_v41, 1 }
 0x226   :  { %1520 = vmatpush.bf16.msrb.mxu3 %v11090_v27  ;;  %v981_v8 = vunpack.c.l.b16 %v893_v56  ;;  %v980_v11 = vunpack.c.l.b16 %v892_v61  ;;  %v1126_v17 = vsel %vm240_vm2, %v1123_v4, %v1125_v10  ;;  %v1124_v20 = vsel %vm240_vm2, %v1121_v44, %v1123_v4 }
 0x227   :  { %v1266_v52 = vunpack.c.l.b16 %v1167_v40  ;;  %v1265_v50 = vunpack.c.l.b16 %v1166_v9  ;;  %v1169_v14 = vpack.c.bf16 %v1126_v17, %v1126_v17  ;;  %v1168_v15 = vpack.c.bf16 %v1124_v20, %v1124_v20 }
 0x228   :  { %v989_v51 = vpack.c.b16 %v981_v8, %v980_v11  ;;  %v767_v27 = vrot.slane %v11890_v54, 6  ;;  %v810_v31 = vsel %vm765_vm15, %v747_v25, %v766_v26  ;;  %v1162_v47 = vsel %vm240_vm2, %v1127_v45, %v1114_v12 }
 0x229   :  { %v1280_v22 = vpack.c.b16 %v1266_v52, %v1265_v50  ;;  %v1268_v23 = vunpack.c.l.b16 %v1169_v14  ;;  %v1267_v49 = vunpack.c.l.b16 %v1168_v15  ;;  %v771_v39 = vrot.slane %v11910_v19, 6 }
 0x22a   :  { %1521 = vmatpush.bf16.msrb.mxu3 %v11089_v37  ;;  %v768_v34 = vsel %vm765_vm15, %v766_v26, %v767_v27  ;;  %v769_v58 = vrot.slane %v11902_v7, 6  ;;  %v1132_v9 = vrot.slane %v12005_v6, 1  ;;  %v775_v17 = vrot.slane %v11928_v3, 6 }
 0x22b   :  { %v1281_v32 = vpack.c.b16 %v1268_v23, %v1267_v49  ;;  %v813_v37 = vpack.c.bf16 %v768_v34, %v768_v34  ;;  %v773_v15 = vrot.slane %v11920_v63, 6 }
 0x22c   :  { %1000 = vrot.lane.b32.xlu1 %v987_v36, %s11537_s0  ;;  %v812_v36 = vpack.c.bf16 %v810_v31, %v810_v31  ;;  %v772_v56 = vsel %vm765_vm15, %v769_v58, %v771_v39  ;;  %v770_v12 = vsel %vm765_vm15, %v767_v27, %v769_v58 }
 0x22d   :  { %v815_v5 = vpack.c.bf16 %v772_v56, %v772_v56  ;;  %v814_v8 = vpack.c.bf16 %v770_v12, %v770_v12  ;;  %v776_v27 = vsel %vm765_vm15, %v773_v15, %v775_v17 }
 0x22e   :  { %v1328_v33 = vpop.permute.xlu0 %1327  ;;  %1522 = vmatpush.bf16.msrb.mxu3 %v11088_v59  ;;  %v926_v28 = vunpack.c.l.b16 %v812_v36  ;;  %v1047_v59 = vpop.permute.xlu2 %1046 }
 0x22f   :  { %v1345_v53 = vsel %vm459_vm4, %v1279_v46, %v1328_v33  ;;  %v1128_v46 = vsel %vm240_vm2, %v1125_v10, %v1127_v45  ;;  %v927_v33 = vunpack.c.l.b16 %v813_v37  ;;  %v929_v52 = vunpack.c.l.b16 %v815_v5 }
 0x230   :  { %10393 = vmatmul.msk.bf16.vlgmr.msra.gmra.mxu2 %vm484_vm5, %v1345_v53  ;;  %v1170_v44 = vpack.c.bf16 %v1128_v46, %v1128_v46  ;;  %v1171_v53 = vpack.c.bf16 %v1162_v47, %v1162_v47  ;;  %v928_v50 = vunpack.c.l.b16 %v814_v8  ;;  %v1136_v37 = vrot.slane %v12028_v55, 1 }
 0x231   :  { %v942_v57 = vpack.c.b16 %v927_v33, %v926_v28  ;;  %v1134_v47 = vrot.slane %v12014_v30, 1 }
 0x232   :  { %1523 = vmatpush.bf16.msrb.mxu3 %v11087_v0  ;;  %v1269_v2 = vunpack.c.l.b16 %v1170_v44  ;;  %v1270_v0 = vunpack.c.l.b16 %v1171_v53 }
 0x233   :  { %v1137_v44 = vsel %vm240_vm2, %v1134_v47, %v1136_v37 }
 0x234   :  { %1002 = vrot.lane.b32.xlu1 %v988_v1, %s11537_s0  ;;  %v1282_v40 = vpack.c.b16 %v1270_v0, %v1269_v2 }
 0x236   :  { %v1049_v26 = vpop.permute.xlu2 %1048 }
 0x23c   :  { %1004 = vrot.lane.b32.xlu1 %v989_v51, %s11537_s0  ;;  %v1130_v51 = vrot.slane %v11987_v38, 1 }
 0x23e   :  { %v1330_v13 = vpop.permute.xlu0 %1329 }
 0x23f   :  { %v1348_v16 = vsel %vm459_vm4, %v1280_v22, %v1330_v13  ;;  %v1129_v22 = vrot.slane %v11980_v48, 1  ;;  %v1133_v13 = vsel %vm240_vm2, %v1130_v51, %v1132_v9 }
 0x240   :  { %10394 = vmatmul.msk.bf16.gmra.mxu2 %vm484_vm5, %v1348_v16  ;;  %v943_v16 = vpack.c.b16 %v929_v52, %v928_v50  ;;  %v1173_v20 = vpack.c.bf16 %v1133_v13, %v1133_v13 }
 0x241   :  { %v1131_v4 = vsel %vm240_vm2, %v1129_v22, %v1130_v51 }
 0x242   :  { %v1172_v23 = vpack.c.bf16 %v1131_v4, %v1131_v4  ;;  %v1272_v31 = vunpack.c.l.b16 %v1173_v20 }
 0x244   :  { %v1271_v34 = vunpack.c.l.b16 %v1172_v23 }
 0x246   :  { %v1283_v36 = vpack.c.b16 %v1272_v31, %v1271_v34 }
 0x24e   :  { %v1332_v35 = vpop.permute.xlu0 %1331 }
 0x24f   :  { %v1351_v24 = vsel %vm459_vm4, %v1281_v32, %v1332_v35  ;;  %v774_v32 = vsel %vm765_vm15, %v771_v39, %v773_v15  ;;  %v817_v35 = vpack.c.bf16 %v776_v27, %v776_v27  ;;  %v1135_v39 = vsel %vm240_vm2, %v1132_v9, %v1134_v47 }
 0x250   :  { %10395 = vmatmul.msk.bf16.gmra.mxu2 %vm484_vm5, %v1351_v24  ;;  %v816_v45 = vpack.c.bf16 %v774_v32, %v774_v32  ;;  %v781_v27 = vrot.slane %v11987_v38, 6 }
 0x251   :  { %v931_v46 = vunpack.c.l.b16 %v817_v35 }
 0x252   :  { %v930_v33 = vunpack.c.l.b16 %v816_v45 }
 0x256   :  { %v1334_v61 = vpop.permute.xlu0 %1333 }
 0x257   :  { %v991_v29 = vpop.permute.xlu1 %990  ;;  %v1354_v11 = vsel %vm459_vm4, %v1282_v40, %v1334_v61 }
 0x258   :  { %v1064_v60 = vsel %vm459_vm4, %v942_v57, %v991_v29  ;;  %v944_v57 = vpack.c.b16 %v931_v46, %v930_v33  ;;  %v1175_v29 = vpack.c.bf16 %v1137_v44, %v1137_v44 }
 0x259   :  { %v1087_v1 = vsel %vm484_vm5, %v1064_v60, %v1047_v59  ;;  %v777_v59 = vrot.slane %v11938_v18, 6  ;;  %v1174_v60 = vpack.c.bf16 %v1135_v39, %v1135_v39  ;;  %v785_v39 = vrot.slane %v12014_v30, 6 }
 0x25a   :  { %10425 = vmatmul.msk.bf16.vlgmr.msrb.gmra.mxu3 %vm549_vm6, %v1087_v1  ;;  %v1051_v1 = vpop.permute.xlu2 %1050  ;;  %v1274_v0 = vunpack.c.l.b16 %v1175_v29 }
 0x25b   :  { %v779_v56 = vsel %vm765_vm15, %v777_v59, %v747_v25  ;;  %v778_v12 = vsel %vm765_vm15, %v775_v17, %v777_v59  ;;  %v1273_v61 = vunpack.c.l.b16 %v1174_v60  ;;  %v1138_v25 = vrot.slane %v12042_v62, 1 }
 0x25c   :  { %v819_v5 = vpack.c.bf16 %v779_v56, %v779_v56  ;;  %v818_v8 = vpack.c.bf16 %v778_v12, %v778_v12  ;;  %v783_v56 = vrot.slane %v12005_v6, 6 }
 0x25d   :  { %v1284_v40 = vpack.c.b16 %v1274_v0, %v1273_v61  ;;  %v1139_v4 = vsel %vm240_vm2, %v1136_v37, %v1138_v25  ;;  %v1142_v37 = vrot.slane %v12063_v42, 1 }
 0x25e   :  { %v933_v51 = vunpack.c.l.b16 %v819_v5  ;;  %v932_v50 = vunpack.c.l.b16 %v818_v8  ;;  %v1176_v15 = vpack.c.bf16 %v1139_v4, %v1139_v4  ;;  %v786_v0 = vsel %vm765_vm15, %v783_v56, %v785_v39 }
 0x25f   :  { %v993_v10 = vpop.permute.xlu1 %992  ;;  %v1163_v44 = vsel %vm240_vm2, %v1142_v37, %v1129_v22  ;;  %v784_v22 = vsel %vm765_vm15, %v781_v27, %v783_v56 }
 0x260   :  { %10396 = vmatmul.msk.bf16.gmra.mxu2 %vm484_vm5, %v1354_v11  ;;  %v1067_v14 = vsel %vm459_vm4, %v943_v16, %v993_v10  ;;  %v1140_v11 = vrot.slane %v12054_v21, 1  ;;  %v945_v16 = vpack.c.b16 %v933_v51, %v932_v50  ;;  %v1275_v34 = vunpack.c.l.b16 %v1176_v15 }
 0x261   :  { %v1089_v49 = vsel %vm484_vm5, %v1067_v14, %v1049_v26  ;;  %v748_v14 = vrot.slane %v12063_v42, 6  ;;  %v780_v26 = vrot.slane %v11980_v48, 6 }
 0x262   :  { %v1141_v13 = vsel %vm240_vm2, %v1138_v25, %v1140_v11  ;;  %v1053_v23 = vpop.permute.xlu2 %1052  ;;  %v1143_v33 = vsel %vm240_vm2, %v1140_v11, %v1142_v37 }
 0x263   :  { %v1177_v17 = vpack.c.bf16 %v1141_v13, %v1141_v13  ;;  %v811_v32 = vsel %vm765_vm15, %v748_v14, %v780_v26  ;;  %v782_v35 = vsel %vm765_vm15, %v780_v26, %v781_v27  ;;  %v1178_v29 = vpack.c.bf16 %v1143_v33, %v1143_v33 }
 0x264   :  { %v820_v45 = vpack.c.bf16 %v811_v32, %v811_v32  ;;  %v821_v46 = vpack.c.bf16 %v782_v35, %v782_v35  ;;  %v789_v13 = vrot.slane %v12042_v62, 6  ;;  %v791_v35 = vrot.slane %v12054_v21, 6 }
 0x265   :  { %v1276_v31 = vunpack.c.l.b16 %v1177_v17  ;;  %v1277_v12 = vunpack.c.l.b16 %v1178_v29 }
 0x266   :  { %v934_v47 = vunpack.c.l.b16 %v820_v45  ;;  %v793_v45 = vsel %vm765_vm15, %v791_v35, %v748_v14  ;;  %v792_v37 = vsel %vm765_vm15, %v789_v13, %v791_v35 }
 0x267   :  { %v995_v53 = vpop.permute.xlu1 %994 }
 0x268   :  { %v1070_v58 = vsel %vm459_vm4, %v944_v57, %v995_v53  ;;  %v935_v53 = vunpack.c.l.b16 %v821_v46  ;;  %v826_v46 = vpack.c.bf16 %v792_v37, %v792_v37 }
 0x269   :  { %v1091_v2 = vsel %vm484_vm5, %v1070_v58, %v1051_v1  ;;  %v1179_v58 = vpack.c.bf16 %v1163_v44, %v1163_v44 }
 0x26a   :  { %10426 = vmatmul.msk.bf16.gmra.mxu3 %vm549_vm6, %v1089_v49  ;;  %v946_v57 = vpack.c.b16 %v935_v53, %v934_v47  ;;  %v1055_v60 = vpop.permute.xlu2 %1054  ;;  %v940_v44 = vunpack.c.l.b16 %v826_v46 }
 0x26b   :  { %v1278_v61 = vunpack.c.l.b16 %v1179_v58 }
 0x26d   :  { %v1286_v8 = vpack.c.b16 %v1278_v61, %v1277_v12 }
 0x26e   :  { %v1336_v24 = vpop.permute.xlu0 %1335 }
 0x26f   :  { %v1357_v28 = vsel %vm459_vm4, %v1283_v36, %v1336_v24  ;;  %v997_v10 = vpop.permute.xlu1 %996  ;;  %v1285_v36 = vpack.c.b16 %v1276_v31, %v1275_v34 }
 0x270   :  { %10397 = vmatmul.msk.bf16.gmra.mxu2 %vm484_vm5, %v1357_v28  ;;  %v1073_v20 = vsel %vm459_vm4, %v945_v16, %v997_v10  ;;  %v787_v16 = vrot.slane %v12028_v55, 6 }
 0x271   :  { %v1093_v49 = vsel %vm484_vm5, %v1073_v20, %v1053_v23 }
 0x272   :  { %v1057_v4 = vpop.permute.xlu2 %1056  ;;  %v790_v17 = vsel %vm765_vm15, %v787_v16, %v789_v13  ;;  %v788_v15 = vsel %vm765_vm15, %v785_v39, %v787_v16 }
 0x273   :  { %v825_v23 = vpack.c.bf16 %v790_v17, %v790_v17  ;;  %v824_v26 = vpack.c.bf16 %v788_v15, %v788_v15 }
 0x275   :  { %v939_v27 = vunpack.c.l.b16 %v825_v23 }
 0x27a   :  { %10427 = vmatmul.msk.bf16.gmra.mxu3 %vm549_vm6, %v1091_v2 }
 0x27e   :  { %v1338_v9 = vpop.permute.xlu0 %1337 }
 0x27f   :  { %v1360_v52 = vsel %vm459_vm4, %v1284_v40, %v1338_v9  ;;  %v823_v40 = vpack.c.bf16 %v786_v0, %v786_v0  ;;  %v822_v9 = vpack.c.bf16 %v784_v22, %v784_v22 }
 0x280   :  { %10398 = vmatmul.msk.bf16.gmra.mxu2 %vm484_vm5, %v1360_v52 }
 0x281   :  { %v937_v52 = vunpack.c.l.b16 %v823_v40  ;;  %v936_v51 = vunpack.c.l.b16 %v822_v9 }
 0x283   :  { %v947_v50 = vpack.c.b16 %v937_v52, %v936_v51 }
 0x28a   :  { %10428 = vmatmul.msk.bf16.gmra.mxu3 %vm549_vm6, %v1093_v49  ;;  %v938_v49 = vunpack.c.l.b16 %v824_v26 }
 0x28c   :  { %v948_v32 = vpack.c.b16 %v939_v27, %v938_v49 }
 0x28e   :  { %v1340_v24 = vpop.permute.xlu0 %1339 }
 0x28f   :  { %v1363_v28 = vsel %vm459_vm4, %v1285_v36, %v1340_v24  ;;  %v1059_v36 = vpop.permute.xlu2 %1058 }
 0x290   :  { %10399 = vmatmul.msk.bf16.gmra.mxu2 %vm484_vm5, %v1363_v28  ;;  %v827_v28 = vpack.c.bf16 %v793_v45, %v793_v45 }
 0x292   :  { %v941_v33 = vunpack.c.l.b16 %v827_v28 }
 0x296   :  { %v999_v59 = vpop.permute.xlu1 %998  ;;  %v1342_v5 = vpop.permute.xlu0 %1341 }
 0x297   :  { %v1076_v1 = vsel %vm459_vm4, %v946_v57, %v999_v59  ;;  %v1366_v11 = vsel %vm459_vm4, %v1286_v8, %v1342_v5  ;;  %v949_v57 = vpack.c.b16 %v941_v33, %v940_v44  ;;  %v1061_v29 = vpop.permute.xlu2 %1060 }
 0x298   :  { %v1095_v2 = vsel %vm484_vm5, %v1076_v1, %v1055_v60 }
 0x29a   :  { %10429 = vmatmul.msk.bf16.gmra.mxu3 %vm549_vm6, %v1095_v2  ;;  %v12233_v2 = vld [vmem:[%s16961_s4 + $0x1] ss:$0 sm:$0xff] }
 0x29e   :  { %v1001_v25 = vpop.permute.xlu1 %1000 }
 0x29f   :  { %v1079_v10 = vsel %vm459_vm4, %v947_v50, %v1001_v25 }
 0x2a0   :  { %10400 = vmatmul.msk.bf16.gmra.mxu2 %vm484_vm5, %v1366_v11  ;;  %v1097_v20 = vsel %vm484_vm5, %v1079_v10, %v1057_v4 }
 0x2a6   :  { %v1003_v31 = vpop.permute.xlu1 %1002 }
 0x2a7   :  { %v1082_v34 = vsel %vm459_vm4, %v948_v32, %v1003_v31 }
 0x2a8   :  { %v1099_v24 = vsel %vm484_vm5, %v1082_v34, %v1059_v36 }
 0x2aa   :  { %10430 = vmatmul.msk.bf16.gmra.mxu3 %vm549_vm6, %v1097_v20 }
 0x2ae   :  { %v1005_v53 = vpop.permute.xlu1 %1004 }
 0x2af   :  { %v1085_v39 = vsel %vm459_vm4, %v949_v57, %v1005_v53 }
 0x2b0   :  { %v1101_v59 = vsel %vm484_vm5, %v1085_v39, %v1061_v29 }
 0x2b3   :  { %v1424_v47 = vpop.f32.mrf.mxu2 }
 0x2ba   :  { %10431 = vmatmul.msk.bf16.gmra.mxu3 %vm549_vm6, %v1099_v24 }
 0x2bb   :  { %v1426_v58 = vpop.f32.mrf.mxu2 }
 0x2c3   :  { %v1429_v14 = vpop.f32.mrf.mxu2 }
 0x2ca   :  { %10432 = vmatmul.msk.bf16.gmra.mxu3 %vm549_vm6, %v1101_v59 }
 0x2cb   :  { %v1431_v60 = vpop.f32.mrf.mxu2 }
 0x2d3   :  { %v1434_v8 = vpop.f32.mrf.mxu2 }
 0x2db   :  { %v1436_v10 = vpop.f32.mrf.mxu2 }
 0x2dd   :  { %v1525_v1 = vpop.f32.mrf.mxu3 }
 0x2de   :  { %v1526_v56 = vadd.f32 %v1525_v1, %v1424_v47 }
 0x2e0   :  { %v1565_v0 = vadd.f32 %v1526_v56, %v11885_v43 }
 0x2e2   :  { %v1583_v12 = vadd.f32 %v12233_v2, %v1565_v0 }
 0x2e3   :  { %v1439_v35 = vpop.f32.mrf.mxu2 }
 0x2e4   :  { %v1615_v61 = vmin.f32 %v1583_v12, 0.0  ;;  %vm1599_vm1 = vcmp.gt.f32.partialorder %v1583_v12, 0.0 }
 0x2e5   :  { %v1527_v22 = vpop.f32.mrf.mxu3 }
 0x2e6   :  { %v1631_v5 = vmul.f32 1.442695, %v1615_v61  ;;  %v1528_v40 = vadd.f32 %v1527_v22, %v1426_v58 }
 0x2e8   :  { %11254 = vpow2.f32 %v1631_v5  ;;  %v1566_v9 = vadd.f32 %v1528_v40, %v11890_v54 }
 0x2ea   :  { %v1584_v11 = vadd.f32 %v12233_v2, %v1566_v9 }
 0x2eb   :  { %v1441_v56 = vpop.f32.mrf.mxu2 }
 0x2ec   :  { %v1616_v52 = vmin.f32 %v1584_v11, 0.0  ;;  %vm1600_vm7 = vcmp.gt.f32.partialorder %v1584_v11, 0.0 }
 0x2ed   :  { %v1530_v51 = vpop.f32.mrf.mxu3 }
 0x2ee   :  { %v11255_v25 = vpop.eup %11254  ;;  %v1633_v50 = vmul.f32 1.442695, %v1616_v52  ;;  %v1531_v13 = vadd.f32 %v1530_v51, %v1429_v14 }
 0x2ef   :  { %v10433_v16 = vadd.f32 -1.0, %v11255_v25 }
 0x2f0   :  { %11256 = vpow2.f32 %v1633_v50  ;;  %v1567_v43 = vadd.f32 %v1531_v13, %v11902_v7 }
 0x2f1   :  { %v12241_v20 = vsel %vm1599_vm1, %v1583_v12, %v10433_v16 }
 0x2f2   :  { %v1585_v4 = vadd.f32 %v12233_v2, %v1567_v43  ;;  %v1843_v7 = vpack.c.bf16 %v12241_v20, %v12241_v20  ;;  %v2129_v44 = vrot.slane %v12241_v20, 2 }
 0x2f4   :  { %v1617_v17 = vmin.f32 %v1585_v4, 0.0  ;;  %v1971_v45 = vunpack.c.l.b16 %v1843_v7  ;;  %vm1601_vm8 = vcmp.gt.f32.partialorder %v1585_v4, 0.0 }
 0x2f5   :  { %v1532_v15 = vpop.f32.mrf.mxu3 }
 0x2f6   :  { %v11257_v54 = vpop.eup %11256  ;;  %v1635_v23 = vmul.f32 1.442695, %v1617_v17  ;;  %v1533_v26 = vadd.f32 %v1532_v15, %v1431_v60 }
 0x2f7   :  { %v10434_v27 = vadd.f32 -1.0, %v11257_v54 }
 0x2f8   :  { %11258 = vpow2.f32 %v1635_v23  ;;  %v1568_v49 = vadd.f32 %v1533_v26, %v11910_v19  ;;  %v1444_v23 = vpop.f32.mrf.mxu2 }
 0x2f9   :  { %v12246_v31 = vsel %vm1600_vm7, %v1584_v11, %v10434_v27 }
 0x2fa   :  { %v1586_v32 = vadd.f32 %v12233_v2, %v1568_v49  ;;  %v1844_v34 = vpack.c.bf16 %v12246_v31, %v12246_v31  ;;  %v2130_v37 = vrot.slane %v12246_v31, 2 }
 0x2fc   :  { %v1618_v36 = vmin.f32 %v1586_v32, 0.0  ;;  %v1972_v24 = vunpack.c.l.b16 %v1844_v34  ;;  %v2131_v39 = vsel %vm1180_vm9, %v2129_v44, %v2130_v37  ;;  %vm1602_vm10 = vcmp.gt.f32.partialorder %v1586_v32, 0.0 }
 0x2fd   :  { %v1535_v28 = vpop.f32.mrf.mxu3  ;;  %v2179_v14 = vpack.c.bf16 %v2131_v39, %v2131_v39 }
 0x2fe   :  { %v11259_v46 = vpop.eup %11258  ;;  %v1637_v47 = vmul.f32 1.442695, %v1618_v36  ;;  %v1536_v19 = vadd.f32 %v1535_v28, %v1434_v8  ;;  %v1987_v33 = vpack.c.b16 %v1972_v24, %v1971_v45 }
 0x2ff   :  { %v10435_v53 = vadd.f32 -1.0, %v11259_v46  ;;  %v2251_v40 = vunpack.c.l.b16 %v2179_v14 }
 0x300   :  { %11260 = vpow2.f32 %v1637_v47  ;;  %v1569_v57 = vadd.f32 %v1536_v19, %v11920_v63  ;;  %1995 = vrot.lane.b32.xlu2 %v1987_v33, %s11538_s2  ;;  %v1446_v39 = vpop.f32.mrf.mxu2 }
 0x301   :  { %v12258_v29 = vsel %vm1601_vm8, %v1585_v4, %v10435_v53 }
 0x302   :  { %v1587_v58 = vadd.f32 %v12233_v2, %v1569_v57  ;;  %v2132_v59 = vrot.slane %v12258_v29, 2  ;;  %v1845_v11 = vpack.c.bf16 %v12258_v29, %v12258_v29 }
 0x304   :  { %v1619_v60 = vmin.f32 %v1587_v58, 0.0  ;;  %v2133_v1 = vsel %vm1180_vm9, %v2130_v37, %v2132_v59  ;;  %v1973_v43 = vunpack.c.l.b16 %v1845_v11  ;;  %vm1603_vm11 = vcmp.gt.f32.partialorder %v1587_v58, 0.0 }
 0x305   :  { %v1537_v0 = vpop.f32.mrf.mxu3  ;;  %v2180_v12 = vpack.c.bf16 %v2133_v1, %v2133_v1 }
 0x306   :  { %v11261_v63 = vpop.eup %11260  ;;  %v1639_v61 = vmul.f32 1.442695, %v1619_v60  ;;  %v1538_v22 = vadd.f32 %v1537_v0, %v1436_v10 }
 0x307   :  { %v10436_v5 = vadd.f32 -1.0, %v11261_v63  ;;  %v2252_v8 = vunpack.c.l.b16 %v2180_v12 }
 0x308   :  { %11262 = vpow2.f32 %v1639_v61  ;;  %v1570_v9 = vadd.f32 %v1538_v22, %v11928_v3 }
 0x309   :  { %v12266_v52 = vsel %vm1602_vm10, %v1586_v32, %v10436_v5  ;;  %v2267_v51 = vpack.c.b16 %v2252_v8, %v2251_v40 }
 0x30a   :  { %v1588_v25 = vadd.f32 %v12233_v2, %v1570_v9  ;;  %v1846_v50 = vpack.c.bf16 %v12266_v52, %v12266_v52  ;;  %v2134_v16 = vrot.slane %v12266_v52, 2 }
 0x30b   :  { %2275 = vrot.lane.b32.xlu0 %v2267_v51, %s11537_s0 }
 0x30c   :  { %v1620_v13 = vmin.f32 %v1588_v25, 0.0  ;;  %v1974_v10 = vunpack.c.l.b16 %v1846_v50  ;;  %v2135_v49 = vsel %vm1180_vm9, %v2132_v59, %v2134_v16  ;;  %vm1604_vm12 = vcmp.gt.f32.partialorder %v1588_v25, 0.0  ;;  %v1449_v50 = vpop.f32.mrf.mxu2 }
 0x30d   :  { %v1540_v4 = vpop.f32.mrf.mxu3  ;;  %v2181_v36 = vpack.c.bf16 %v2135_v49, %v2135_v49 }
 0x30e   :  { %v11263_v3 = vpop.eup %11262  ;;  %v1641_v17 = vmul.f32 1.442695, %v1620_v13  ;;  %v1541_v15 = vadd.f32 %v1540_v4, %v1439_v35  ;;  %v1988_v54 = vpack.c.b16 %v1974_v10, %v1973_v43  ;;  %v1782_v43 = vrot.slane %v12246_v31, 7 }
 0x30f   :  { %v10437_v26 = vadd.f32 -1.0, %v11263_v3  ;;  %v2253_v19 = vunpack.c.l.b16 %v2181_v36  ;;  %v1781_v3 = vrot.slane %v12241_v20, 7 }
 0x310   :  { %11264 = vpow2.f32 %v1641_v17  ;;  %v1571_v27 = vadd.f32 %v1541_v15, %v11938_v18  ;;  %1997 = vrot.lane.b32.xlu2 %v1988_v54, %s11538_s2 }
 0x311   :  { %v12276_v7 = vsel %vm1603_vm11, %v1587_v58, %v10437_v26  ;;  %v1783_v49 = vsel %vm161_vm3, %v1781_v3, %v1782_v43 }
 0x312   :  { %v1589_v32 = vadd.f32 %v12233_v2, %v1571_v27  ;;  %v2136_v34 = vrot.slane %v12276_v7, 2  ;;  %v1847_v57 = vpack.c.bf16 %v12276_v7, %v12276_v7 }
 0x314   :  { %v1621_v45 = vmin.f32 %v1589_v32, 0.0  ;;  %v2137_v35 = vsel %vm1180_vm9, %v2134_v16, %v2136_v34  ;;  %vm1605_vm13 = vcmp.gt.f32.partialorder %v1589_v32, 0.0 }
 0x315   :  { %v1542_v24 = vpop.f32.mrf.mxu3  ;;  %v2182_v37 = vpack.c.bf16 %v2137_v35, %v2137_v35 }
 0x316   :  { %v11265_v28 = vpop.eup %11264  ;;  %v1643_v46 = vmul.f32 1.442695, %v1621_v45  ;;  %v1543_v47 = vadd.f32 %v1542_v24, %v1441_v56  ;;  %v1975_v56 = vunpack.c.l.b16 %v1847_v57 }
 0x317   :  { %v10438_v18 = vadd.f32 -1.0, %v11265_v28  ;;  %v2254_v33 = vunpack.c.l.b16 %v2182_v37 }
 0x318   :  { %11266 = vpow2.f32 %v1643_v46  ;;  %v1572_v53 = vadd.f32 %v1543_v47, %v11952_v41  ;;  %v1828_v46 = vpack.c.bf16 %v1783_v49, %v1783_v49 }
 0x319   :  { %v12284_v58 = vsel %vm1604_vm12, %v1588_v25, %v10438_v18  ;;  %v2268_v59 = vpack.c.b16 %v2254_v33, %v2253_v19 }
 0x31a   :  { %v1590_v14 = vadd.f32 %v12233_v2, %v1572_v53  ;;  %v1848_v60 = vpack.c.bf16 %v12284_v58, %v12284_v58  ;;  %v2138_v12 = vrot.slane %v12284_v58, 2  ;;  %v1451_v53 = vpop.f32.mrf.mxu2 }
 0x31b   :  { %2277 = vrot.lane.b32.xlu0 %v2268_v59, %s11537_s0 }
 0x31c   :  { %v1622_v1 = vmin.f32 %v1590_v14, 0.0  ;;  %v1976_v0 = vunpack.c.l.b16 %v1848_v60  ;;  %v2139_v9 = vsel %vm1180_vm9, %v2136_v34, %v2138_v12  ;;  %vm1606_vm14 = vcmp.gt.f32.partialorder %v1590_v14, 0.0 }
 0x31d   :  { %v1545_v41 = vpop.f32.mrf.mxu3  ;;  %v2183_v13 = vpack.c.bf16 %v2139_v9, %v2139_v9  ;;  %v1784_v60 = vrot.slane %v12258_v29, 7  ;;  %v1916_v9 = vunpack.c.l.b16 %v1828_v46 }
 0x31e   :  { %v11267_v63 = vpop.eup %11266  ;;  %v1645_v61 = vmul.f32 1.442695, %v1622_v1  ;;  %v1546_v22 = vadd.f32 %v1545_v41, %v1444_v23  ;;  %v1989_v5 = vpack.c.b16 %v1976_v0, %v1975_v56 }
 0x31f   :  { %v10439_v40 = vadd.f32 -1.0, %v11267_v63  ;;  %v2255_v26 = vunpack.c.l.b16 %v2183_v13 }
 0x320   :  { %11268 = vpow2.f32 %v1645_v61  ;;  %v1573_v8 = vadd.f32 %v1546_v22, %v11980_v48  ;;  %1999 = vrot.lane.b32.xlu2 %v1989_v5, %s11538_s2 }
 0x321   :  { %v12294_v11 = vsel %vm1605_vm13, %v1589_v32, %v10439_v40 }
 0x322   :  { %v12297_v51 = vadd.f32 %v12233_v2, %v1573_v8  ;;  %v2140_v25 = vrot.slane %v12294_v11, 2  ;;  %v1849_v34 = vpack.c.bf16 %v12294_v11, %v12294_v11 }
 0x324   :  { %v1623_v10 = vmin.f32 %v12297_v51, 0.0  ;;  %v2141_v16 = vsel %vm1180_vm9, %v2138_v12, %v2140_v25  ;;  %v1977_v18 = vunpack.c.l.b16 %v1849_v34  ;;  %vm1607_vm1 = vcmp.gt.f32.partialorder %v12297_v51, 0.0 }
 0x325   :  { %v1547_v48 = vpop.f32.mrf.mxu3  ;;  %v2184_v4 = vpack.c.bf16 %v2141_v16, %v2141_v16 }
 0x326   :  { %v11269_v17 = vpop.eup %11268  ;;  %v1647_v15 = vmul.f32 1.442695, %v1623_v10  ;;  %v1548_v54 = vadd.f32 %v1547_v48, %v1446_v39  ;;  %v1790_v48 = vrot.slane %v12284_v58, 7 }
 0x327   :  { %v10440_v23 = vadd.f32 -1.0, %v11269_v17  ;;  %v2256_v27 = vunpack.c.l.b16 %v2184_v4 }
 0x328   :  { %11270 = vpow2.f32 %v1647_v15  ;;  %v1574_v32 = vadd.f32 %v1548_v54, %v11987_v38  ;;  %v1786_v38 = vrot.slane %v12266_v52, 7  ;;  %v1788_v15 = vrot.slane %v12276_v7, 7 }
 0x329   :  { %v12308_v36 = vsel %vm1606_vm14, %v1590_v14, %v10440_v23  ;;  %v2269_v45 = vpack.c.b16 %v2256_v27, %v2255_v26  ;;  %v1454_v26 = vpop.f32.mrf.mxu2 }
 0x32a   :  { %v1592_v35 = vadd.f32 %v12233_v2, %v1574_v32  ;;  %v1850_v24 = vpack.c.bf16 %v12308_v36, %v12308_v36  ;;  %v2142_v37 = vrot.slane %v12308_v36, 2  ;;  %v1777_v28 = vrot.slane %v12308_v36, 7 }
 0x32b   :  { %2279 = vrot.lane.b32.xlu0 %v2269_v45, %s11537_s0  ;;  %v1787_v5 = vsel %vm161_vm3, %v1784_v60, %v1786_v38  ;;  %v1791_v32 = vsel %vm161_vm3, %v1788_v15, %v1790_v48 }
 0x32c   :  { %v1624_v47 = vmin.f32 %v1592_v35, 0.0  ;;  %v1978_v19 = vunpack.c.l.b16 %v1850_v24  ;;  %v2143_v33 = vsel %vm1180_vm9, %v2140_v25, %v2142_v37  ;;  %v2177_v39 = vsel %vm1180_vm9, %v2142_v37, %v2129_v44 }
 0x32d   :  { %v1550_v57 = vpop.f32.mrf.mxu3  ;;  %v2185_v59 = vpack.c.bf16 %v2143_v33, %v2143_v33  ;;  %v1825_v14 = vsel %vm161_vm3, %v1777_v28, %v1781_v3  ;;  %v2186_v41 = vpack.c.bf16 %v2177_v39, %v2177_v39  ;;  %v1830_v16 = vpack.c.bf16 %v1787_v5, %v1787_v5 }
 0x32e   :  { %v11271_v1 = vpop.eup %11270  ;;  %v1649_v56 = vmul.f32 1.442695, %v1624_v47  ;;  %v1551_v0 = vadd.f32 %v1550_v57, %v1449_v50  ;;  %v1990_v12 = vpack.c.b16 %v1978_v19, %v1977_v18  ;;  %v1827_v61 = vpack.c.bf16 %v1825_v14, %v1825_v14 }
 0x32f   :  { %v2257_v63 = vunpack.c.l.b16 %v2185_v59  ;;  %v2258_v44 = vunpack.c.l.b16 %v2186_v41  ;;  %v10441_v40 = vadd.f32 -1.0, %v11271_v1  ;;  %v1785_v50 = vsel %vm161_vm3, %v1782_v43, %v1784_v60 }
 0x330   :  { %11272 = vpow2.f32 %v1649_v56  ;;  %v1575_v22 = vadd.f32 %v1551_v0, %v12005_v6  ;;  %2001 = vrot.lane.b32.xlu2 %v1990_v12, %s11538_s2  ;;  %v1915_v8 = vunpack.c.l.b16 %v1827_v61  ;;  %v1829_v17 = vpack.c.bf16 %v1785_v50, %v1785_v50 }
 0x331   :  { %v2270_v13 = vpack.c.b16 %v2258_v44, %v2257_v63  ;;  %v12334_v4 = vsel %vm1607_vm1, %v12297_v51, %v10441_v40  ;;  %v1918_v49 = vunpack.c.l.b16 %v1830_v16  ;;  %vm1608_vm7 = vcmp.gt.f32.partialorder %v1592_v35, 0.0 }
 0x332   :  { %v1593_v25 = vadd.f32 %v12233_v2, %v1575_v22  ;;  %v1931_v10 = vpack.c.b16 %v1916_v9, %v1915_v8  ;;  %v1851_v51 = vpack.c.bf16 %v12334_v4, %v12334_v4  ;;  %v1917_v24 = vunpack.c.l.b16 %v1829_v17  ;;  %v1456_v22 = vpop.f32.mrf.mxu2 }
 0x333   :  { %2281 = vrot.lane.b32.xlu0 %v2270_v13, %s11537_s0  ;;  %v1789_v47 = vsel %vm161_vm3, %v1786_v38, %v1788_v15  ;;  %v1832_v19 = vpack.c.bf16 %v1791_v32, %v1791_v32  ;;  %v1792_v59 = vrot.slane %v12294_v11, 7  ;;  %v2144_v0 = vrot.slane %v12334_v4, 2 }
 0x334   :  { %v1625_v6 = vmin.f32 %v1593_v25, 0.0  ;;  %1939 = vrot.lane.b32.xlu1 %v1931_v10, %s11537_s0  ;;  %v1932_v18 = vpack.c.b16 %v1918_v49, %v1917_v24  ;;  %vm1609_vm8 = vcmp.gt.f32.partialorder %v1593_v25, 0.0 }
 0x335   :  { %v1552_v3 = vpop.f32.mrf.mxu3  ;;  %v1920_v12 = vunpack.c.l.b16 %v1832_v19  ;;  %v1794_v41 = vsel %vm161_vm3, %v1792_v59, %v1777_v28  ;;  %v1793_v8 = vsel %vm161_vm3, %v1790_v48, %v1792_v59 }
 0x336   :  { %v11273_v54 = vpop.eup %11272  ;;  %v1651_v43 = vmul.f32 1.442695, %v1625_v6  ;;  %v1553_v23 = vadd.f32 %v1552_v3, %v1451_v53  ;;  %v1979_v53 = vunpack.c.l.b16 %v1851_v51  ;;  %v1834_v13 = vpack.c.bf16 %v1794_v41, %v1794_v41  ;;  %v11102_v51 = vld [vmem:[%s16960_s3 + $0xa8] sm:$0xff] }
 0x337   :  { %v10442_v27 = vadd.f32 -1.0, %v11273_v54  ;;  %v1833_v6 = vpack.c.bf16 %v1793_v8, %v1793_v8  ;;  %2466 = vmatpush.bf16.msrb.mxu2 %v11102_v51 }
 0x338   :  { %11274 = vpow2.f32 %v1651_v43  ;;  %v1576_v34 = vadd.f32 %v1553_v23, %v12014_v30  ;;  %v1922_v43 = vunpack.c.l.b16 %v1834_v13 }
 0x339   :  { %v12342_v45 = vsel %vm1608_vm7, %v1592_v35, %v10442_v27  ;;  %v1831_v35 = vpack.c.bf16 %v1789_v47, %v1789_v47  ;;  %v1921_v32 = vunpack.c.l.b16 %v1833_v6 }
 0x33a   :  { %v1594_v37 = vadd.f32 %v12233_v2, %v1576_v34  ;;  %v1852_v46 = vpack.c.bf16 %v12342_v45, %v12342_v45  ;;  %v2145_v30 = vrot.slane %v12342_v45, 2  ;;  %v1459_v47 = vpop.f32.mrf.mxu2 }
 0x33b   :  { %v1919_v5 = vunpack.c.l.b16 %v1831_v35 }
 0x33c   :  { %v1626_v33 = vmin.f32 %v1594_v37, 0.0  ;;  %v1980_v57 = vunpack.c.l.b16 %v1852_v46  ;;  %1941 = vrot.lane.b32.xlu1 %v1932_v18, %s11537_s0  ;;  %v2146_v61 = vsel %vm1180_vm9, %v2144_v0, %v2145_v30  ;;  %vm1610_vm10 = vcmp.gt.f32.partialorder %v1594_v37, 0.0 }
 0x33d   :  { %v1555_v39 = vpop.f32.mrf.mxu3  ;;  %v1933_v9 = vpack.c.b16 %v1920_v12, %v1919_v5  ;;  %v2187_v50 = vpack.c.bf16 %v2146_v61, %v2146_v61  ;;  %v1934_v18 = vpack.c.b16 %v1922_v43, %v1921_v32 }
 0x33e   :  { %v11275_v14 = vpop.eup %11274  ;;  %v1653_v60 = vmul.f32 1.442695, %v1626_v33  ;;  %v1556_v1 = vadd.f32 %v1555_v39, %v1454_v26  ;;  %v1991_v56 = vpack.c.b16 %v1980_v57, %v1979_v53 }
 0x33f   :  { %v10443_v38 = vadd.f32 -1.0, %v11275_v14  ;;  %v2259_v23 = vunpack.c.l.b16 %v2187_v50 }
 0x340   :  { %11276 = vpow2.f32 %v1653_v60  ;;  %v1577_v63 = vadd.f32 %v1556_v1, %v12028_v55  ;;  %2003 = vrot.lane.b32.xlu2 %v1991_v56, %s11538_s2 }
 0x341   :  { %v12360_v44 = vsel %vm1609_vm8, %v1593_v25, %v10443_v38 }
 0x342   :  { %v1595_v40 = vadd.f32 %v12233_v2, %v1577_v63  ;;  %v2147_v28 = vrot.slane %v12360_v44, 2  ;;  %v1853_v27 = vpack.c.bf16 %v12360_v44, %v12360_v44  ;;  %v11105_v63 = vld [vmem:[%s16960_s3 + $0xc0] sm:$0xff]  ;;  %v1461_v5 = vpop.f32.mrf.mxu2 }
 0x344   :  { %v1627_v55 = vmin.f32 %v1595_v40, 0.0  ;;  %v2148_v10 = vsel %vm1180_vm9, %v2145_v30, %v2147_v28  ;;  %1943 = vrot.lane.b32.xlu1 %v1933_v9, %s11537_s0  ;;  %v1981_v19 = vunpack.c.l.b16 %v1853_v27  ;;  %vm1611_vm11 = vcmp.gt.f32.partialorder %v1595_v40, 0.0 }
 0x345   :  { %v1557_v16 = vpop.f32.mrf.mxu3  ;;  %v2188_v3 = vpack.c.bf16 %v2148_v10, %v2148_v10 }
 0x346   :  { %v11277_v25 = vpop.eup %11276  ;;  %v1655_v17 = vmul.f32 1.442695, %v1627_v55  ;;  %v1558_v15 = vadd.f32 %v1557_v16, %v1456_v22 }
 0x347   :  { %v10444_v54 = vadd.f32 -1.0, %v11277_v25  ;;  %v2260_v48 = vunpack.c.l.b16 %v2188_v3 }
 0x348   :  { %11278 = vpow2.f32 %v1655_v17  ;;  %v1578_v26 = vadd.f32 %v1558_v15, %v12042_v62  ;;  %v11106_v62 = vld [vmem:[%s16960_s3 + $0xc8] sm:$0xff] }
 0x349   :  { %v12370_v49 = vsel %vm1610_vm10, %v1594_v37, %v10444_v54  ;;  %v2271_v34 = vpack.c.b16 %v2260_v48, %v2259_v23  ;;  %2367 = vmatpush.bf16.msrb.mxu0 %v11106_v62  ;;  %v11103_v54 = vld [vmem:[%s16960_s3 + $0xb0] sm:$0xff]  ;;  %v1796_v62 = vrot.slane %v12342_v45, 7 }
 0x34a   :  { %v1596_v24 = vadd.f32 %v12233_v2, %v1578_v26  ;;  %v1854_v46 = vpack.c.bf16 %v12370_v49, %v12370_v49  ;;  %v2149_v53 = vrot.slane %v12370_v49, 2 }
 0x34b   :  { %2283 = vrot.lane.b32.xlu0 %v2271_v34, %s11537_s0 }
 0x34c   :  { %v1628_v37 = vmin.f32 %v1596_v24, 0.0  ;;  %v1982_v33 = vunpack.c.l.b16 %v1854_v46  ;;  %1945 = vrot.lane.b32.xlu1 %v1934_v18, %s11537_s0  ;;  %v2150_v1 = vsel %vm1180_vm9, %v2147_v28, %v2149_v53  ;;  %vm1612_vm12 = vcmp.gt.f32.partialorder %v1596_v24, 0.0 }
 0x34d   :  { %v1560_v57 = vpop.f32.mrf.mxu3  ;;  %v2189_v41 = vpack.c.bf16 %v2150_v1, %v2150_v1  ;;  %2368 = vmatpush.bf16.msrb.mxu0 %v11105_v63 }
 0x34e   :  { %v11279_v30 = vpop.eup %11278  ;;  %v1657_v39 = vmul.f32 1.442695, %v1628_v37  ;;  %v1561_v35 = vadd.f32 %v1560_v57, %v1459_v47  ;;  %v1992_v59 = vpack.c.b16 %v1982_v33, %v1981_v19  ;;  %v1795_v33 = vrot.slane %v12334_v4, 7 }
 0x34f   :  { %v10445_v14 = vadd.f32 -1.0, %v11279_v30  ;;  %v2261_v55 = vunpack.c.l.b16 %v2189_v41 }
 0x350   :  { %11280 = vpow2.f32 %v1657_v39  ;;  %v1579_v60 = vadd.f32 %v1561_v35, %v12054_v21  ;;  %2005 = vrot.lane.b32.xlu2 %v1992_v59, %s11538_s2  ;;  %v1797_v35 = vsel %vm161_vm3, %v1795_v33, %v1796_v62 }
 0x351   :  { %v12387_v56 = vsel %vm1611_vm11, %v1595_v40, %v10445_v14  ;;  %v11104_v40 = vld [vmem:[%s16960_s3 + $0xb8] sm:$0xff]  ;;  %v1836_v63 = vpack.c.bf16 %v1797_v35, %v1797_v35 }
 0x352   :  { %v1597_v38 = vadd.f32 %v12233_v2, %v1579_v60  ;;  %v2151_v12 = vrot.slane %v12387_v56, 2  ;;  %v1855_v6 = vpack.c.bf16 %v12387_v56, %v12387_v56  ;;  %2369 = vmatpush.bf16.msrb.mxu0 %v11104_v40 }
 0x354   :  { %v1629_v61 = vmin.f32 %v1597_v38, 0.0  ;;  %v2152_v22 = vsel %vm1180_vm9, %v2149_v53, %v2151_v12  ;;  %vm1613_vm13 = vcmp.gt.f32.partialorder %v1597_v38, 0.0 }
 0x355   :  { %v1562_v21 = vpop.f32.mrf.mxu3  ;;  %v2190_v8 = vpack.c.bf16 %v2152_v22, %v2152_v22 }
 0x356   :  { %v11281_v28 = vpop.eup %11280  ;;  %v1659_v9 = vmul.f32 1.442695, %v1629_v61  ;;  %v1563_v13 = vadd.f32 %v1562_v21, %v1461_v5  ;;  %2370 = vmatpush.bf16.msrb.mxu0 %v11103_v54  ;;  %v1798_v61 = vrot.slane %v12360_v44, 7  ;;  %v2063_v54 = vrot.slane %v12241_v20, 1 }
 0x357   :  { %v10446_v50 = vadd.f32 -1.0, %v11281_v28  ;;  %v2262_v10 = vunpack.c.l.b16 %v2190_v8 }
 0x358   :  { %11282 = vpow2.f32 %v1659_v9  ;;  %v1580_v16 = vadd.f32 %v1563_v13, %v12063_v42  ;;  %v1983_v42 = vunpack.c.l.b16 %v1855_v6  ;;  %v2066_v13 = vrot.slane %v12258_v29, 1 }
 0x359   :  { %v12401_v3 = vsel %vm1612_vm12, %v1596_v24, %v10446_v50  ;;  %v2272_v25 = vpack.c.b16 %v2262_v10, %v2261_v55  ;;  %v2064_v10 = vrot.slane %v12246_v31, 1  ;;  %v1924_v6 = vunpack.c.l.b16 %v1836_v63 }
 0x35a   :  { %v1598_v17 = vadd.f32 %v12233_v2, %v1580_v16  ;;  %v1856_v15 = vpack.c.bf16 %v12401_v3, %v12401_v3  ;;  %v2153_v48 = vrot.slane %v12401_v3, 2  ;;  %v11101_v2 = vld [vmem:[%s16960_s3 + $0xa0] sm:$0xff] }
 0x35b   :  { %2285 = vrot.lane.b32.xlu0 %v2272_v25, %s11537_s0  ;;  %2467 = vmatpush.bf16.msrb.mxu2 %v11101_v2  ;;  %v1802_v2 = vrot.slane %v12387_v56, 7 }
 0x35c   :  { %v1630_v43 = vmin.f32 %v1598_v17, 0.0  ;;  %v1984_v23 = vunpack.c.l.b16 %v1856_v15  ;;  %v2154_v51 = vsel %vm1180_vm9, %v2151_v12, %v2153_v48  ;;  %vm1614_vm14 = vcmp.gt.f32.partialorder %v1598_v17, 0.0  ;;  %v11100_v15 = vld [vmem:[%s16960_s3 + $0x98] sm:$0xff] }
 0x35d   :  { %v2191_v47 = vpack.c.bf16 %v2154_v51, %v2154_v51  ;;  %v1800_v12 = vrot.slane %v12370_v49, 7 }
 0x35e   :  { %v11283_v26 = vpop.eup %11282  ;;  %v1661_v27 = vmul.f32 1.442695, %v1630_v43  ;;  %v1993_v32 = vpack.c.b16 %v1984_v23, %v1983_v42 }
 0x35f   :  { %v10447_v34 = vadd.f32 -1.0, %v11283_v26  ;;  %v2263_v57 = vunpack.c.l.b16 %v2191_v47  ;;  %v1801_v55 = vsel %vm161_vm3, %v1798_v61, %v1800_v12  ;;  %2468 = vmatpush.bf16.msrb.mxu2 %v11100_v15  ;;  %v1804_v26 = vrot.slane %v12401_v3, 7 }
 0x360   :  { %11284 = vpow2.f32 %v1661_v27  ;;  %2007 = vrot.lane.b32.xlu2 %v1993_v32, %s11538_s2  ;;  %v1838_v23 = vpack.c.bf16 %v1801_v55, %v1801_v55  ;;  %v2065_v32 = vsel %vm240_vm2, %v2063_v54, %v2064_v10 }
 0x361   :  { %v12416_v24 = vsel %vm1613_vm13, %v1597_v38, %v10447_v34  ;;  %v1805_v47 = vsel %vm161_vm3, %v1802_v2, %v1804_v26  ;;  %vm3293_vm13 = vcmask 1044480  }
 0x362   :  { %v2155_v46 = vrot.slane %v12416_v24, 2  ;;  %v1857_v39 = vpack.c.bf16 %v12416_v24, %v12416_v24  ;;  %v1926_v51 = vunpack.c.l.b16 %v1838_v23  ;;  %v1806_v35 = vrot.slane %v12416_v24, 7 }
 0x364   :  { %v2156_v18 = vsel %vm1180_vm9, %v2153_v48, %v2155_v46  ;;  %v1985_v41 = vunpack.c.l.b16 %v1857_v39  ;;  %v2067_v48 = vsel %vm240_vm2, %v2064_v10, %v2066_v13 }
 0x365   :  { %v2192_v37 = vpack.c.bf16 %v2156_v18, %v2156_v18  ;;  %v2114_v34 = vpack.c.bf16 %v2067_v48, %v2067_v48 }
 0x366   :  { %v11285_v19 = vpop.eup %11284 }
 0x367   :  { %v10448_v53 = vadd.f32 -1.0, %v11285_v19  ;;  %v2264_v30 = vunpack.c.l.b16 %v2192_v37  ;;  %v1803_v37 = vsel %vm161_vm3, %v1800_v12, %v1802_v2  ;;  %v1715_v2 = vrot.slane %v12241_v20, 6 }
 0x369   :  { %v12425_v59 = vsel %vm1614_vm14, %v1598_v17, %v10448_v53  ;;  %v2273_v14 = vpack.c.b16 %v2264_v30, %v2263_v57  ;;  %v11099_v57 = vld [vmem:[%s16960_s3 + $0x90] sm:$0xff]  ;;  %v1839_v30 = vpack.c.bf16 %v1803_v37, %v1803_v37 }
 0x36a   :  { %v1858_v60 = vpack.c.bf16 %v12425_v59, %v12425_v59  ;;  %v1778_v1 = vrot.slane %v12425_v59, 7  ;;  %v2157_v38 = vrot.slane %v12425_v59, 2  ;;  %2469 = vmatpush.bf16.msrb.mxu2 %v11099_v57 }
 0x36b   :  { %2287 = vrot.lane.b32.xlu0 %v2273_v14, %s11537_s0  ;;  %v1927_v63 = vunpack.c.l.b16 %v1839_v30 }
 0x36c   :  { %v1986_v22 = vunpack.c.l.b16 %v1858_v60  ;;  %v1826_v5 = vsel %vm161_vm3, %v1778_v1, %v1795_v33  ;;  %v2158_v21 = vsel %vm1180_vm9, %v2155_v46, %v2157_v38  ;;  %v2178_v8 = vsel %vm1180_vm9, %v2157_v38, %v2144_v0 }
 0x36d   :  { %v1835_v40 = vpack.c.bf16 %v1826_v5, %v1826_v5  ;;  %v2193_v28 = vpack.c.bf16 %v2158_v21, %v2158_v21  ;;  %v2194_v9 = vpack.c.bf16 %v2178_v8, %v2178_v8  ;;  %v1799_v0 = vsel %vm161_vm3, %v1796_v62, %v1798_v61 }
 0x36e   :  { %v1994_v50 = vpack.c.b16 %v1986_v22, %v1985_v41  ;;  %v1837_v27 = vpack.c.bf16 %v1799_v0, %v1799_v0  ;;  %v2113_v46 = vpack.c.bf16 %v2065_v32, %v2065_v32  ;;  %v2212_v62 = vunpack.c.l.b16 %v2114_v34  ;;  %v11098_v22 = vld [vmem:[%s16960_s3 + $0x88] sm:$0xff] }
 0x36f   :  { %v1923_v16 = vunpack.c.l.b16 %v1835_v40  ;;  %v2265_v25 = vunpack.c.l.b16 %v2193_v28  ;;  %v2266_v17 = vunpack.c.l.b16 %v2194_v9  ;;  %v1840_v33 = vpack.c.bf16 %v1805_v47, %v1805_v47  ;;  %2470 = vmatpush.bf16.msrb.mxu2 %v11098_v22  ;;  %v1996_v22 = vpop.permute.xlu2 %1995 }
 0x370   :  { %2009 = vrot.lane.b32.xlu2 %v1994_v50, %s11538_s2  ;;  %v1925_v18 = vunpack.c.l.b16 %v1837_v27  ;;  %v2211_v53 = vunpack.c.l.b16 %v2113_v46  ;;  %v2070_v38 = vrot.slane %v12276_v7, 1  ;;  %v1808_v41 = vsel %vm161_vm3, %v1806_v35, %v1778_v1  ;;  %v11097_v1 = vld [vmem:[%s16960_s3 + $0x80] sm:$0xff] }
 0x371   :  { %v1935_v43 = vpack.c.b16 %v1924_v6, %v1923_v16  ;;  %v2274_v42 = vpack.c.b16 %v2266_v17, %v2265_v25  ;;  %v1928_v60 = vunpack.c.l.b16 %v1840_v33  ;;  %v2068_v61 = vrot.slane %v12266_v52, 1 }
 0x372   :  { %v1936_v19 = vpack.c.b16 %v1926_v51, %v1925_v18  ;;  %v2227_v39 = vpack.c.b16 %v2212_v62, %v2211_v53  ;;  %v1807_v5 = vsel %vm161_vm3, %v1804_v26, %v1806_v35  ;;  %v1842_v8 = vpack.c.bf16 %v1808_v41, %v1808_v41 }
 0x373   :  { %1947 = vrot.lane.b32.xlu1 %v1935_v43, %s11537_s0  ;;  %2289 = vrot.lane.b32.xlu0 %v2274_v42, %s11537_s0  ;;  %v1937_v21 = vpack.c.b16 %v1928_v60, %v1927_v63  ;;  %v2071_v40 = vsel %vm240_vm2, %v2068_v61, %v2070_v38  ;;  %v1841_v28 = vpack.c.bf16 %v1807_v5, %v1807_v5  ;;  %v2074_v43 = vrot.slane %v12294_v11, 1 }
 0x374   :  { %v2069_v9 = vsel %vm240_vm2, %v2066_v13, %v2068_v61  ;;  %v2116_v50 = vpack.c.bf16 %v2071_v40, %v2071_v40  ;;  %v1930_v55 = vunpack.c.l.b16 %v1842_v8  ;;  %2471 = vmatpush.bf16.msrb.mxu2 %v11097_v1  ;;  %v2072_v13 = vrot.slane %v12284_v58, 1 }
 0x375   :  { %v2115_v10 = vpack.c.bf16 %v2069_v9, %v2069_v9  ;;  %v1929_v16 = vunpack.c.l.b16 %v1841_v28  ;;  %v1697_v32 = vrot.slane %v12308_v36, 6  ;;  %v1716_v51 = vrot.slane %v12246_v31, 6 }
 0x376   :  { %v2214_v6 = vunpack.c.l.b16 %v2116_v50  ;;  %v2075_v23 = vsel %vm240_vm2, %v2072_v13, %v2074_v43  ;;  %v2073_v48 = vsel %vm240_vm2, %v2070_v38, %v2072_v13  ;;  %v1718_v61 = vrot.slane %v12258_v29, 6 }
 0x377   :  { %v1938_v25 = vpack.c.b16 %v1930_v55, %v1929_v16  ;;  %v2213_v17 = vunpack.c.l.b16 %v2115_v10  ;;  %v2118_v26 = vpack.c.bf16 %v2075_v23, %v2075_v23  ;;  %v2117_v27 = vpack.c.bf16 %v2073_v48, %v2073_v48 }
 0x378   :  { %v1759_v47 = vsel %vm765_vm15, %v1697_v32, %v1715_v2  ;;  %v1717_v37 = vsel %vm765_vm15, %v1715_v2, %v1716_v51  ;;  %v1719_v28 = vsel %vm765_vm15, %v1716_v51, %v1718_v61  ;;  %v2081_v55 = vrot.slane %v12360_v44, 1  ;;  %v1998_v2 = vpop.permute.xlu2 %1997 }
 0x379   :  { %v2228_v15 = vpack.c.b16 %v2214_v6, %v2213_v17  ;;  %v2216_v34 = vunpack.c.l.b16 %v2118_v26  ;;  %v2215_v46 = vunpack.c.l.b16 %v2117_v27  ;;  %v1761_v53 = vpack.c.bf16 %v1759_v47, %v1759_v47 }
 0x37a   :  { %v1762_v57 = vpack.c.bf16 %v1717_v37, %v1717_v37  ;;  %v1763_v10 = vpack.c.bf16 %v1719_v28, %v1719_v28  ;;  %v2079_v6 = vrot.slane %v12342_v45, 1  ;;  %v2078_v17 = vrot.slane %v12334_v4, 1 }
 0x37b   :  { %1949 = vrot.lane.b32.xlu1 %v1936_v19, %s11537_s0  ;;  %v2229_v18 = vpack.c.b16 %v2216_v34, %v2215_v46  ;;  %v2076_v19 = vrot.slane %v12308_v36, 1  ;;  %v1875_v35 = vunpack.c.l.b16 %v1761_v53  ;;  %v1724_v48 = vrot.slane %v12284_v58, 6 }
 0x37c   :  { %v1722_v34 = vrot.slane %v12276_v7, 6  ;;  %v2085_v53 = vrot.slane %v12387_v56, 1 }
 0x37d   :  { %v2276_v14 = vpop.permute.xlu0 %2275  ;;  %v2077_v30 = vsel %vm240_vm2, %v2074_v43, %v2076_v19 }
 0x37e   :  { %v2293_v12 = vsel %vm459_vm4, %v2227_v39, %v2276_v14  ;;  %v2111_v39 = vsel %vm240_vm2, %v2076_v19, %v2063_v54  ;;  %v1876_v14 = vunpack.c.l.b16 %v1762_v57  ;;  %v2119_v60 = vpack.c.bf16 %v2077_v30, %v2077_v30 }
 0x37f   :  { %10465 = vmatmul.msk.bf16.vlgmr.msrb.gmra.mxu0 %vm484_vm5, %v2293_v12  ;;  %v2120_v38 = vpack.c.bf16 %v2111_v39, %v2111_v39  ;;  %v1720_v12 = vrot.slane %v12266_v52, 6  ;;  %v1725_v46 = vsel %vm765_vm15, %v1722_v34, %v1724_v48  ;;  %v2083_v39 = vrot.slane %v12370_v49, 1 }
 0x380   :  { %v1891_v41 = vpack.c.b16 %v1876_v14, %v1875_v35  ;;  %v1766_v37 = vpack.c.bf16 %v1725_v46, %v1725_v46 }
 0x381   :  { %v2218_v8 = vunpack.c.l.b16 %v2120_v38  ;;  %v1721_v1 = vsel %vm765_vm15, %v1718_v61, %v1720_v12  ;;  %v2086_v14 = vsel %vm240_vm2, %v2083_v39, %v2085_v53 }
 0x382   :  { %v1764_v9 = vpack.c.bf16 %v1721_v1, %v1721_v1  ;;  %v1880_v35 = vunpack.c.l.b16 %v1766_v37 }
 0x383   :  { %1951 = vrot.lane.b32.xlu1 %v1937_v21, %s11537_s0  ;;  %v2217_v21 = vunpack.c.l.b16 %v2119_v60 }
 0x385   :  { %v2230_v50 = vpack.c.b16 %v2218_v8, %v2217_v21  ;;  %v2000_v21 = vpop.permute.xlu2 %1999 }
 0x38b   :  { %1953 = vrot.lane.b32.xlu1 %v1938_v25, %s11537_s0  ;;  %v1878_v25 = vunpack.c.l.b16 %v1764_v9 }
 0x38d   :  { %v2278_v0 = vpop.permute.xlu0 %2277 }
 0x38e   :  { %v2296_v42 = vsel %vm459_vm4, %v2228_v15, %v2278_v0  ;;  %v2082_v15 = vsel %vm240_vm2, %v2079_v6, %v2081_v55  ;;  %v1877_v0 = vunpack.c.l.b16 %v1763_v10  ;;  %v2089_v10 = vrot.slane %v12416_v24, 1 }
 0x38f   :  { %10466 = vmatmul.msk.bf16.gmra.mxu0 %vm484_vm5, %v2296_v42  ;;  %v2080_v42 = vsel %vm240_vm2, %v2078_v17, %v2079_v6  ;;  %v2122_v23 = vpack.c.bf16 %v2082_v15, %v2082_v15 }
 0x390   :  { %v1892_v13 = vpack.c.b16 %v1878_v25, %v1877_v0  ;;  %v2121_v27 = vpack.c.bf16 %v2080_v42, %v2080_v42  ;;  %v2087_v25 = vrot.slane %v12401_v3, 1 }
 0x391   :  { %v2220_v51 = vunpack.c.l.b16 %v2122_v23 }
 0x392   :  { %v2090_v15 = vsel %vm240_vm2, %v2087_v25, %v2089_v10  ;;  %v2088_v42 = vsel %vm240_vm2, %v2085_v53, %v2087_v25 }
 0x393   :  { %v2126_v23 = vpack.c.bf16 %v2090_v15, %v2090_v15 }
 0x395   :  { %v2224_v46 = vunpack.c.l.b16 %v2126_v23 }
 0x39d   :  { %v2280_v62 = vpop.permute.xlu0 %2279 }
 0x39e   :  { %v2299_v33 = vsel %vm459_vm4, %v2229_v18, %v2280_v62  ;;  %v2219_v18 = vunpack.c.l.b16 %v2121_v27  ;;  %v1723_v62 = vsel %vm765_vm15, %v1720_v12, %v1722_v34  ;;  %v2125_v27 = vpack.c.bf16 %v2088_v42, %v2088_v42 }
 0x39f   :  { %10467 = vmatmul.msk.bf16.gmra.mxu0 %vm484_vm5, %v2299_v33  ;;  %v1765_v57 = vpack.c.bf16 %v1723_v62, %v1723_v62  ;;  %v1729_v34 = vrot.slane %v12334_v4, 6  ;;  %v1736_v42 = vrot.slane %v12387_v56, 6 }
 0x3a0   :  { %v2231_v19 = vpack.c.b16 %v2220_v51, %v2219_v18  ;;  %v2002_v51 = vpop.permute.xlu2 %2001  ;;  %v2223_v62 = vunpack.c.l.b16 %v2125_v27 }
 0x3a1   :  { %v1879_v60 = vunpack.c.l.b16 %v1765_v57  ;;  %v2091_v57 = vrot.slane %v12425_v59, 1 }
 0x3a3   :  { %v1893_v12 = vpack.c.b16 %v1880_v35, %v1879_v60  ;;  %v2112_v60 = vsel %vm240_vm2, %v2091_v57, %v2078_v17 }
 0x3a5   :  { %v2282_v54 = vpop.permute.xlu0 %2281 }
 0x3a6   :  { %v1940_v63 = vpop.permute.xlu1 %1939  ;;  %v2302_v16 = vsel %vm459_vm4, %v2230_v50, %v2282_v54 }
 0x3a7   :  { %v2013_v5 = vsel %vm459_vm4, %v1891_v41, %v1940_v63  ;;  %v2084_v41 = vsel %vm240_vm2, %v2081_v55, %v2083_v39  ;;  %v2124_v63 = vpack.c.bf16 %v2086_v14, %v2086_v14  ;;  %v2092_v14 = vsel %vm240_vm2, %v2089_v10, %v2091_v57 }
 0x3a8   :  { %v2036_v40 = vsel %vm484_vm5, %v2013_v5, %v1996_v22  ;;  %v2123_v22 = vpack.c.bf16 %v2084_v41, %v2084_v41  ;;  %v1726_v5 = vrot.slane %v12294_v11, 6 }
 0x3a9   :  { %10497 = vmatmul.msk.bf16.vlgmr.msrb.gmra.mxu2 %vm549_vm6, %v2036_v40  ;;  %v2222_v8 = vunpack.c.l.b16 %v2124_v63  ;;  %v2128_v63 = vpack.c.bf16 %v2112_v60, %v2112_v60 }
 0x3aa   :  { %v1728_v40 = vsel %vm765_vm15, %v1726_v5, %v1697_v32  ;;  %v2221_v54 = vunpack.c.l.b16 %v2123_v22  ;;  %v1727_v28 = vsel %vm765_vm15, %v1724_v48, %v1726_v5  ;;  %v1698_v48 = vrot.slane %v12425_v59, 6  ;;  %v2004_v5 = vpop.permute.xlu2 %2003 }
 0x3ab   :  { %v1768_v9 = vpack.c.bf16 %v1728_v40, %v1728_v40  ;;  %v1734_v22 = vrot.slane %v12370_v49, 6  ;;  %v1732_v40 = vrot.slane %v12360_v44, 6 }
 0x3ac   :  { %v2232_v50 = vpack.c.b16 %v2222_v8, %v2221_v54  ;;  %v1760_v18 = vsel %vm765_vm15, %v1698_v48, %v1729_v34  ;;  %v2226_v54 = vunpack.c.l.b16 %v2128_v63 }
 0x3ad   :  { %v1882_v32 = vunpack.c.l.b16 %v1768_v9  ;;  %v1737_v27 = vsel %vm765_vm15, %v1734_v22, %v1736_v42 }
 0x3ae   :  { %v1942_v43 = vpop.permute.xlu1 %1941 }
 0x3af   :  { %10468 = vmatmul.msk.bf16.gmra.mxu0 %vm484_vm5, %v2302_v16  ;;  %v2016_v26 = vsel %vm459_vm4, %v1892_v13, %v1942_v43  ;;  %v1767_v16 = vpack.c.bf16 %v1727_v28, %v1727_v28  ;;  %v1735_v28 = vsel %vm765_vm15, %v1732_v40, %v1734_v22 }
 0x3b0   :  { %v2038_v47 = vsel %vm484_vm5, %v2016_v26, %v1998_v2  ;;  %v1730_v2 = vrot.slane %v12342_v45, 6 }
 0x3b1   :  { %v1881_v0 = vunpack.c.l.b16 %v1767_v16 }
 0x3b2   :  { %v1731_v37 = vsel %vm765_vm15, %v1729_v34, %v1730_v2  ;;  %v1733_v9 = vsel %vm765_vm15, %v1730_v2, %v1732_v40  ;;  %v1773_v2 = vpack.c.bf16 %v1737_v27, %v1737_v27  ;;  %v12589_v40 = vld [vmem:[%s16961_s4 + $0x2] ss:$0 sm:$0xff] }
 0x3b3   :  { %v1894_v13 = vpack.c.b16 %v1882_v32, %v1881_v0  ;;  %v1770_v39 = vpack.c.bf16 %v1731_v37, %v1731_v37  ;;  %v1771_v10 = vpack.c.bf16 %v1733_v9, %v1733_v9  ;;  %v1738_v0 = vrot.slane %v12401_v3, 6 }
 0x3b4   :  { %v1740_v37 = vrot.slane %v12416_v24, 6 }
 0x3b5   :  { %v1885_v25 = vunpack.c.l.b16 %v1771_v10  ;;  %v1739_v23 = vsel %vm765_vm15, %v1736_v42, %v1738_v0 }
 0x3b6   :  { %v1944_v38 = vpop.permute.xlu1 %1943  ;;  %v1774_v34 = vpack.c.bf16 %v1739_v23, %v1739_v23  ;;  %v1741_v57 = vsel %vm765_vm15, %v1738_v0, %v1740_v37 }
 0x3b7   :  { %v2019_v61 = vsel %vm459_vm4, %v1893_v12, %v1944_v38  ;;  %v1884_v38 = vunpack.c.l.b16 %v1770_v39  ;;  %v2127_v12 = vpack.c.bf16 %v2092_v14, %v2092_v14  ;;  %v1775_v39 = vpack.c.bf16 %v1741_v57, %v1741_v57 }
 0x3b8   :  { %v2040_v1 = vsel %vm484_vm5, %v2019_v61, %v2000_v21 }
 0x3b9   :  { %10498 = vmatmul.msk.bf16.gmra.mxu2 %vm549_vm6, %v2038_v47  ;;  %v1889_v60 = vunpack.c.l.b16 %v1775_v39 }
 0x3bd   :  { %v2284_v33 = vpop.permute.xlu0 %2283 }
 0x3be   :  { %v2305_v30 = vsel %vm459_vm4, %v2231_v19, %v2284_v33  ;;  %v1946_v43 = vpop.permute.xlu1 %1945  ;;  %v2233_v19 = vpack.c.b16 %v2224_v46, %v2223_v62  ;;  %v1769_v33 = vpack.c.bf16 %v1760_v18, %v1760_v18  ;;  %v1887_v46 = vunpack.c.l.b16 %v1773_v2 }
 0x3bf   :  { %10469 = vmatmul.msk.bf16.gmra.mxu0 %vm484_vm5, %v2305_v30  ;;  %v2022_v26 = vsel %vm459_vm4, %v1894_v13, %v1946_v43  ;;  %v2006_v13 = vpop.permute.xlu2 %2005 }
 0x3c0   :  { %v2042_v47 = vsel %vm484_vm5, %v2022_v26, %v2002_v51  ;;  %v1883_v35 = vunpack.c.l.b16 %v1769_v33  ;;  %v1888_v51 = vunpack.c.l.b16 %v1774_v34  ;;  %v1742_v33 = vsel %vm765_vm15, %v1740_v37, %v1698_v48 }
 0x3c2   :  { %v1895_v41 = vpack.c.b16 %v1884_v38, %v1883_v35  ;;  %v1897_v18 = vpack.c.b16 %v1888_v51, %v1887_v46 }
 0x3c9   :  { %10499 = vmatmul.msk.bf16.gmra.mxu2 %vm549_vm6, %v2040_v1  ;;  %v2225_v1 = vunpack.c.l.b16 %v2127_v12 }
 0x3cd   :  { %v2286_v55 = vpop.permute.xlu0 %2285 }
 0x3ce   :  { %v2308_v6 = vsel %vm459_vm4, %v2232_v50, %v2286_v55  ;;  %v1772_v50 = vpack.c.bf16 %v1735_v28, %v1735_v28  ;;  %v2234_v55 = vpack.c.b16 %v2226_v54, %v2225_v1 }
 0x3cf   :  { %10470 = vmatmul.msk.bf16.gmra.mxu0 %vm484_vm5, %v2308_v6 }
 0x3d0   :  { %v1886_v6 = vunpack.c.l.b16 %v1772_v50 }
 0x3d2   :  { %v1896_v15 = vpack.c.b16 %v1886_v6, %v1885_v25 }
 0x3d9   :  { %10500 = vmatmul.msk.bf16.gmra.mxu2 %vm549_vm6, %v2042_v47 }
 0x3dd   :  { %v2288_v53 = vpop.permute.xlu0 %2287 }
 0x3de   :  { %v2311_v30 = vsel %vm459_vm4, %v2233_v19, %v2288_v53  ;;  %v2008_v19 = vpop.permute.xlu2 %2007 }
 0x3df   :  { %10471 = vmatmul.msk.bf16.gmra.mxu0 %vm484_vm5, %v2311_v30  ;;  %v1776_v30 = vpack.c.bf16 %v1742_v33, %v1742_v33 }
 0x3e1   :  { %v1890_v14 = vunpack.c.l.b16 %v1776_v30 }
 0x3e5   :  { %v1948_v61 = vpop.permute.xlu1 %1947  ;;  %v2290_v17 = vpop.permute.xlu0 %2289 }
 0x3e6   :  { %v2025_v21 = vsel %vm459_vm4, %v1895_v41, %v1948_v61  ;;  %v2314_v16 = vsel %vm459_vm4, %v2234_v55, %v2290_v17  ;;  %v1898_v41 = vpack.c.b16 %v1890_v14, %v1889_v60  ;;  %v2010_v63 = vpop.permute.xlu2 %2009 }
 0x3e7   :  { %v2044_v8 = vsel %vm484_vm5, %v2025_v21, %v2004_v5 }
 0x3e9   :  { %10501 = vmatmul.msk.bf16.gmra.mxu2 %vm549_vm6, %v2044_v8 }
 0x3ed   :  { %v1950_v32 = vpop.permute.xlu1 %1949 }
 0x3ee   :  { %v2028_v43 = vsel %vm459_vm4, %v1896_v15, %v1950_v32 }
 0x3ef   :  { %10472 = vmatmul.msk.bf16.gmra.mxu0 %vm484_vm5, %v2314_v16  ;;  %v2046_v26 = vsel %vm484_vm5, %v2028_v43, %v2006_v13 }
 0x3f5   :  { %v1952_v47 = vpop.permute.xlu1 %1951 }
 0x3f6   :  { %v2031_v62 = vsel %vm459_vm4, %v1897_v18, %v1952_v47 }
 0x3f7   :  { %v2048_v53 = vsel %vm484_vm5, %v2031_v62, %v2008_v19 }
 0x3f9   :  { %10502 = vmatmul.msk.bf16.gmra.mxu2 %vm549_vm6, %v2046_v26 }
 0x3fc   :  { %v2372_v35 = vpop.f32.mrf.mxu0 }
 0x3fd   :  { %v1954_v38 = vpop.permute.xlu1 %1953 }
 0x3fe   :  { %v2034_v12 = vsel %vm459_vm4, %v1898_v41, %v1954_v38 }
 0x3ff   :  { %v2050_v22 = vsel %vm484_vm5, %v2034_v12, %v2010_v63 }
 0x404   :  { %v2374_v61 = vpop.f32.mrf.mxu0 }
 0x409   :  { %10503 = vmatmul.msk.bf16.gmra.mxu2 %vm549_vm6, %v2048_v53 }
 0x40c   :  { %v2377_v48 = vpop.f32.mrf.mxu0 }
 0x414   :  { %v2379_v5 = vpop.f32.mrf.mxu0 }
 0x419   :  { %10504 = vmatmul.msk.bf16.gmra.mxu2 %vm549_vm6, %v2050_v22 }
 0x41c   :  { %v2382_v55 = vpop.f32.mrf.mxu0 }
 0x424   :  { %v2384_v43 = vpop.f32.mrf.mxu0 }
 0x42c   :  { %v2473_v21 = vpop.f32.mrf.mxu2  ;;  %v2387_v37 = vpop.f32.mrf.mxu0 }
 0x42d   :  { %v2474_v8 = vadd.f32 %v2473_v21, %v2372_v35 }
 0x42f   :  { %v2513_v1 = vadd.f32 %v2474_v8, %v12241_v20 }
 0x431   :  { %v2531_v54 = vadd.f32 %v12589_v40, %v2513_v1 }
 0x433   :  { %v2563_v28 = vmin.f32 %v2531_v54, 0.0  ;;  %vm2547_vm1 = vcmp.gt.f32.partialorder %v2531_v54, 0.0 }
 0x434   :  { %v2475_v17 = vpop.f32.mrf.mxu2 }
 0x435   :  { %v2579_v9 = vmul.f32 1.442695, %v2563_v28  ;;  %v2476_v50 = vadd.f32 %v2475_v17, %v2374_v61  ;;  %v2389_v61 = vpop.f32.mrf.mxu0 }
 0x437   :  { %11286 = vpow2.f32 %v2579_v9  ;;  %v2514_v10 = vadd.f32 %v2476_v50, %v12246_v31 }
 0x439   :  { %v2532_v16 = vadd.f32 %v12589_v40, %v2514_v10 }
 0x43b   :  { %v2564_v6 = vmin.f32 %v2532_v16, 0.0  ;;  %vm2548_vm7 = vcmp.gt.f32.partialorder %v2532_v16, 0.0 }
 0x43c   :  { %v2478_v25 = vpop.f32.mrf.mxu2 }
 0x43d   :  { %v11287_v32 = vpop.eup %11286  ;;  %v2581_v15 = vmul.f32 1.442695, %v2564_v6  ;;  %v2479_v0 = vadd.f32 %v2478_v25, %v2377_v48 }
 0x43e   :  { %v10505_v42 = vadd.f32 -1.0, %v11287_v32 }
 0x43f   :  { %11288 = vpow2.f32 %v2581_v15  ;;  %v2515_v20 = vadd.f32 %v2479_v0, %v12258_v29 }
 0x440   :  { %v12597_v26 = vsel %vm2547_vm1, %v2531_v54, %v10505_v42 }
 0x441   :  { %v2533_v13 = vadd.f32 %v12589_v40, %v2515_v20  ;;  %v2857_v29 = vpack.c.bf16 %v12597_v26, %v12597_v26  ;;  %v12627_v20 = vpop.f32.mrf.mxu0 }
 0x443   :  { %v2565_v23 = vmin.f32 %v2533_v13, 0.0  ;;  %v3041_v33 = vunpack.c.l.b16 %v2857_v29  ;;  %vm2549_vm8 = vcmp.gt.f32.partialorder %v2533_v13, 0.0 }
 0x444   :  { %v2480_v27 = vpop.f32.mrf.mxu2 }
 0x445   :  { %v11289_v31 = vpop.eup %11288  ;;  %v2583_v34 = vmul.f32 1.442695, %v2565_v23  ;;  %v2481_v2 = vadd.f32 %v2480_v27, %v2379_v5 }
 0x446   :  { %v10506_v51 = vadd.f32 -1.0, %v11289_v31 }
 0x447   :  { %11290 = vpow2.f32 %v2583_v34  ;;  %v2516_v46 = vadd.f32 %v2481_v2, %v12266_v52 }
 0x448   :  { %v12602_v47 = vsel %vm2548_vm7, %v2532_v16, %v10506_v51 }
 0x449   :  { %v2534_v18 = vadd.f32 %v12589_v40, %v2516_v46  ;;  %v2858_v62 = vpack.c.bf16 %v12602_v47, %v12602_v47  ;;  %v2730_v8 = vrot.slane %v12602_v47, 6 }
 0x44b   :  { %v2566_v19 = vmin.f32 %v2534_v18, 0.0  ;;  %v3042_v53 = vunpack.c.l.b16 %v2858_v62  ;;  %vm2550_vm10 = vcmp.gt.f32.partialorder %v2534_v18, 0.0 }
 0x44c   :  { %v2483_v57 = vpop.f32.mrf.mxu2 }
 0x44d   :  { %v11291_v30 = vpop.eup %11290  ;;  %v2585_v39 = vmul.f32 1.442695, %v2566_v19  ;;  %v2484_v35 = vadd.f32 %v2483_v57, %v2382_v55  ;;  %v3057_v14 = vpack.c.b16 %v3042_v53, %v3041_v33 }
 0x44e   :  { %v10507_v52 = vadd.f32 -1.0, %v11291_v30 }
 0x44f   :  { %11292 = vpow2.f32 %v2585_v39  ;;  %v2517_v60 = vadd.f32 %v2484_v35, %v12276_v7  ;;  %3065 = vrot.lane.b32.xlu0 %v3057_v14, %s11539_s15 }
 0x450   :  { %v12609_v38 = vsel %vm2549_vm8, %v2533_v13, %v10507_v52 }
 0x451   :  { %v2535_v41 = vadd.f32 %v12589_v40, %v2517_v60  ;;  %v2732_v63 = vrot.slane %v12609_v38, 6  ;;  %v3230_v0 = vrot.slane %v12609_v38, 2  ;;  %v12647_v60 = vpop.f32.mrf.mxu0 }
 0x453   :  { %v2567_v12 = vmin.f32 %v2535_v41, 0.0  ;;  %v2733_v54 = vsel %vm765_vm15, %v2730_v8, %v2732_v63  ;;  %vm2551_vm11 = vcmp.gt.f32.partialorder %v2535_v41, 0.0 }
 0x454   :  { %v2485_v22 = vpop.f32.mrf.mxu2  ;;  %v2777_v50 = vpack.c.bf16 %v2733_v54, %v2733_v54 }
 0x455   :  { %v11293_v48 = vpop.eup %11292  ;;  %v2587_v5 = vmul.f32 1.442695, %v2567_v12  ;;  %v2486_v21 = vadd.f32 %v2485_v22, %v2384_v43 }
 0x456   :  { %v10508_v1 = vadd.f32 -1.0, %v11293_v48  ;;  %v2931_v42 = vunpack.c.l.b16 %v2777_v50 }
 0x457   :  { %11294 = vpow2.f32 %v2587_v5  ;;  %v2518_v7 = vadd.f32 %v2486_v21, %v12284_v58 }
 0x458   :  { %v12618_v28 = vsel %vm2550_vm10, %v2534_v18, %v10508_v1 }
 0x459   :  { %v2536_v17 = vadd.f32 %v12589_v40, %v2518_v7  ;;  %v2734_v9 = vrot.slane %v12618_v28, 6  ;;  %v3232_v16 = vrot.slane %v12618_v28, 2  ;;  %v2800_v57 = vrot.slane %v12618_v28, 7 }
 0x45b   :  { %v2568_v55 = vmin.f32 %v2536_v17, 0.0  ;;  %v2735_v10 = vsel %vm765_vm15, %v2732_v63, %v2734_v9  ;;  %v3233_v27 = vsel %vm1180_vm9, %v3230_v0, %v3232_v16  ;;  %vm2552_vm12 = vcmp.gt.f32.partialorder %v2536_v17, 0.0 }
 0x45c   :  { %v2488_v6 = vpop.f32.mrf.mxu2  ;;  %v2778_v58 = vpack.c.bf16 %v2735_v10, %v2735_v10  ;;  %v3279_v46 = vpack.c.bf16 %v3233_v27, %v3233_v27 }
 0x45d   :  { %v11295_v25 = vpop.eup %11294  ;;  %v2589_v32 = vmul.f32 1.442695, %v2568_v55  ;;  %v2489_v15 = vadd.f32 %v2488_v6, %v2387_v37 }
 0x45e   :  { %v10509_v43 = vadd.f32 -1.0, %v11295_v25  ;;  %v2932_v13 = vunpack.c.l.b16 %v2778_v58  ;;  %v3418_v39 = vunpack.c.l.b16 %v3279_v46 }
 0x45f   :  { %11296 = vpow2.f32 %v2589_v32  ;;  %v2519_v23 = vadd.f32 %v2489_v15, %v12294_v11  ;;  %v12667_v32 = vpop.f32.mrf.mxu0 }
 0x460   :  { %v12633_v31 = vsel %vm2551_vm11, %v2535_v41, %v10509_v43  ;;  %v2946_v34 = vpack.c.b16 %v2932_v13, %v2931_v42  ;;  %v2796_v42 = vrot.slane %v12602_v47, 7 }
 0x461   :  { %v2537_v2 = vadd.f32 %v12589_v40, %v2519_v23  ;;  %v3234_v51 = vrot.slane %v12633_v31, 2  ;;  %v2802_v11 = vrot.slane %v12633_v31, 7 }
 0x462   :  { %2955 = vrot.lane.b32.xlu0 %v2946_v34, %s11537_s0  ;;  %v2795_v34 = vrot.slane %v12597_v26, 7 }
 0x463   :  { %v2569_v29 = vmin.f32 %v2537_v2, 0.0  ;;  %v3235_v18 = vsel %vm1180_vm9, %v3232_v16, %v3234_v51  ;;  %v2803_v52 = vsel %vm161_vm3, %v2800_v57, %v2802_v11  ;;  %vm2553_vm14 = vcmp.gt.f32.partialorder %v2537_v2, 0.0 }
 0x464   :  { %v2490_v62 = vpop.f32.mrf.mxu2  ;;  %v3280_v37 = vpack.c.bf16 %v3235_v18, %v3235_v18  ;;  %v2845_v22 = vpack.c.bf16 %v2803_v52, %v2803_v52  ;;  %v2729_v18 = vrot.slane %v12597_v26, 6 }
 0x465   :  { %v11297_v19 = vpop.eup %11296  ;;  %v2591_v33 = vmul.f32 1.442695, %v2569_v29  ;;  %v2491_v53 = vadd.f32 %v2490_v62, %v2389_v61 }
 0x466   :  { %v10510_v30 = vadd.f32 -1.0, %v11297_v19  ;;  %v3419_v35 = vunpack.c.l.b16 %v3280_v37  ;;  %v2989_v55 = vunpack.c.l.b16 %v2845_v22  ;;  %v2731_v19 = vsel %vm765_vm15, %v2729_v18, %v2730_v8 }
 0x467   :  { %11298 = vpow2.f32 %v2591_v33  ;;  %v2520_v14 = vadd.f32 %v2491_v53, %v12308_v36  ;;  %v2776_v8 = vpack.c.bf16 %v2731_v19, %v2731_v19  ;;  %v2798_v19 = vrot.slane %v12609_v38, 7 }
 0x468   :  { %v12649_v41 = vsel %vm2552_vm12, %v2536_v17, %v10510_v30  ;;  %v3433_v12 = vpack.c.b16 %v3419_v35, %v3418_v39  ;;  %v3301_v17 = vrot.slane %v12633_v31, 3  ;;  %v3297_v39 = vrot.slane %v12609_v38, 3 }
 0x469   :  { %v2538_v63 = vadd.f32 %v12589_v40, %v2520_v14  ;;  %v2804_v61 = vrot.slane %v12649_v41, 7  ;;  %v3303_v5 = vrot.slane %v12649_v41, 3 }
 0x46a   :  { %3442 = vrot.lane.b32.xlu0 %v3433_v12, %s11537_s0  ;;  %v3295_v12 = vrot.slane %v12602_v47, 3 }
 0x46b   :  { %v2570_v48 = vmin.f32 %v2538_v63, 0.0  ;;  %v2805_v36 = vsel %vm161_vm3, %v2802_v11, %v2804_v61  ;;  %v3304_v16 = vsel %vm3293_vm13, %v3301_v17, %v3303_v5  ;;  %vm2554_vm1 = vcmp.gt.f32.partialorder %v2538_v63, 0.0 }
 0x46c   :  { %v12658_v21 = vpop.f32.mrf.mxu2  ;;  %v2846_v1 = vpack.c.bf16 %v2805_v36, %v2805_v36  ;;  %v3348_v15 = vpack.c.bf16 %v3304_v16, %v3304_v16  ;;  %v2797_v11 = vsel %vm161_vm3, %v2795_v34, %v2796_v42 }
 0x46d   :  { %v11299_v7 = vpop.eup %11298  ;;  %v2593_v54 = vmul.f32 1.442695, %v2570_v48  ;;  %v2842_v14 = vpack.c.bf16 %v2797_v11, %v2797_v11 }
 0x46e   :  { %v10511_v50 = vadd.f32 -1.0, %v11299_v7  ;;  %v2990_v10 = vunpack.c.l.b16 %v2846_v1  ;;  %v3476_v46 = vunpack.c.l.b16 %v3348_v15  ;;  %v3228_v1 = vrot.slane %v12602_v47, 2 }
 0x46f   :  { %11300 = vpow2.f32 %v2593_v54  ;;  %v3294_v54 = vrot.slane %v12597_v26, 3 }
 0x470   :  { %v12664_v6 = vsel %vm2553_vm14, %v2537_v2, %v10511_v50  ;;  %v3003_v58 = vpack.c.b16 %v2990_v10, %v2989_v55  ;;  %v3298_v50 = vsel %vm3293_vm13, %v3295_v12, %v3297_v39  ;;  %v3227_v55 = vrot.slane %v12597_v26, 2 }
 0x471   :  { %v3305_v25 = vrot.slane %v12664_v6, 3  ;;  %v2863_v35 = vpack.c.bf16 %v12664_v6, %v12664_v6  ;;  %v3231_v15 = vsel %vm1180_vm9, %v3228_v1, %v3230_v0 }
 0x472   :  { %3013 = vrot.lane.b32.xlu0 %v3003_v58, %s11538_s2  ;;  %v2986_v58 = vunpack.c.l.b16 %v2842_v14  ;;  %v3278_v11 = vpack.c.bf16 %v3231_v15, %v3231_v15 }
 0x473   :  { %v3306_v43 = vsel %vm3293_vm13, %v3303_v5, %v3305_v25  ;;  %v3047_v10 = vunpack.c.l.b16 %v2863_v35 }
 0x474   :  { %v12674_v13 = vpop.f32.mrf.mxu2  ;;  %v3349_v23 = vpack.c.bf16 %v3306_v43, %v3306_v43  ;;  %v3417_v14 = vunpack.c.l.b16 %v3278_v11 }
 0x475   :  { %v11301_v27 = vpop.eup %11300 }
 0x476   :  { %v10512_v2 = vadd.f32 -1.0, %v11301_v27  ;;  %v3477_v29 = vunpack.c.l.b16 %v3349_v23  ;;  %v2930_v23 = vunpack.c.l.b16 %v2776_v8  ;;  %v3296_v27 = vsel %vm3293_vm13, %v3294_v54, %v3295_v12 }
 0x477   :  { %v3344_v0 = vpack.c.bf16 %v3296_v27, %v3296_v27  ;;  %v2801_v12 = vsel %vm161_vm3, %v2798_v19, %v2800_v57 }
 0x478   :  { %v12679_v62 = vsel %vm2554_vm1, %v2538_v63, %v10512_v2  ;;  %v3490_v37 = vpack.c.b16 %v3477_v29, %v3476_v46  ;;  %v2399_v63 = vpop.f32.mrf.mxu0  ;;  %v3345_v46 = vpack.c.bf16 %v3298_v50, %v3298_v50  ;;  %v3229_v29 = vsel %vm1180_vm9, %v3227_v55, %v3228_v1 }
 0x479   :  { %v2864_v33 = vpack.c.bf16 %v12679_v62, %v12679_v62  ;;  %v2791_v53 = vrot.slane %v12679_v62, 7  ;;  %v2725_v30 = vrot.slane %v12679_v62, 6  ;;  %v3472_v8 = vunpack.c.l.b16 %v3344_v0 }
 0x47a   :  { %3500 = vrot.lane.b32.xlu0 %v3490_v37, %s11538_s2  ;;  %v3277_v37 = vpack.c.bf16 %v3229_v29, %v3229_v29  ;;  %v3473_v35 = vunpack.c.l.b16 %v3345_v46 }
 0x47b   :  { %v2839_v52 = vsel %vm161_vm3, %v2791_v53, %v2795_v34  ;;  %v3048_v48 = vunpack.c.l.b16 %v2864_v33  ;;  %v2773_v5 = vsel %vm765_vm15, %v2725_v30, %v2729_v18 }
 0x47c   :  { %v2498_v22 = vpop.f32.mrf.mxu2  ;;  %v2841_v36 = vpack.c.bf16 %v2839_v52, %v2839_v52  ;;  %v2775_v7 = vpack.c.bf16 %v2773_v5, %v2773_v5  ;;  %v2494_v5 = vadd.f32 %v12658_v21, %v12627_v20  ;;  %v3488_v1 = vpack.c.b16 %v3473_v35, %v3472_v8 }
 0x47d   :  { %v3060_v34 = vpack.c.b16 %v3048_v48, %v3047_v10  ;;  %v3416_v48 = vunpack.c.l.b16 %v3277_v37  ;;  %v2844_v10 = vpack.c.bf16 %v2801_v12, %v2801_v12  ;;  %v2736_v20 = vrot.slane %v12633_v31, 6 }
 0x47e   :  { %v2985_v16 = vunpack.c.l.b16 %v2841_v36  ;;  %v2929_v43 = vunpack.c.l.b16 %v2775_v7  ;;  %v2799_v36 = vsel %vm161_vm3, %v2796_v42, %v2798_v19  ;;  %v2860_v7 = vpack.c.bf16 %v12618_v28, %v12618_v28 }
 0x47f   :  { %v3432_v50 = vpack.c.b16 %v3417_v14, %v3416_v48  ;;  %v2843_v57 = vpack.c.bf16 %v2799_v36, %v2799_v36  ;;  %v2496_v42 = vadd.f32 %v12674_v13, %v12647_v60  ;;  %v3299_v21 = vrot.slane %v12618_v28, 3 }
 0x480   :  { %v3001_v2 = vpack.c.b16 %v2986_v58, %v2985_v16  ;;  %v2945_v18 = vpack.c.b16 %v2930_v23, %v2929_v43  ;;  %v2402_v52 = vpop.f32.mrf.mxu0  ;;  %v2738_v16 = vrot.slane %v12649_v41, 6  ;;  %v2859_v58 = vpack.c.bf16 %v12609_v38, %v12609_v38 }
 0x481   :  { %v2521_v15 = vadd.f32 %v2494_v5, %v12334_v4  ;;  %v3044_v23 = vunpack.c.l.b16 %v2860_v7  ;;  %v2987_v29 = vunpack.c.l.b16 %v2843_v57  ;;  %v3302_v60 = vsel %vm3293_vm13, %v3299_v21, %v3301_v17 }
 0x482   :  { %3071 = vrot.lane.b32.xlu0 %v3060_v34, %s11539_s15  ;;  %3009 = vrot.lane.b32.xlu2 %v3001_v2, %s11538_s2  ;;  %v2988_v34 = vunpack.c.l.b16 %v2844_v10  ;;  %v2739_v2 = vsel %vm765_vm15, %v2736_v20, %v2738_v16  ;;  %v3043_v46 = vunpack.c.l.b16 %v2859_v58  ;;  %v2522_v13 = vadd.f32 %v2496_v42, %v12342_v45 }
 0x483   :  { %2953 = vrot.lane.b32.xlu1 %v2945_v18, %s11537_s0  ;;  %v2499_v18 = vadd.f32 %v2498_v22, %v12667_v32  ;;  %v2737_v4 = vsel %vm765_vm15, %v2734_v9, %v2736_v20  ;;  %v12751_v0 = vadd.f32 %v12589_v40, %v2521_v15  ;;  %v2780_v19 = vpack.c.bf16 %v2739_v2, %v2739_v2  ;;  %v11114_v15 = vld [vmem:[%s16960_s3 + $0x108] sm:$0xff] }
 0x484   :  { %v2500_v33 = vpop.f32.mrf.mxu2  ;;  %v3058_v37 = vpack.c.b16 %v3044_v23, %v3043_v46  ;;  %v3347_v45 = vpack.c.bf16 %v3302_v60, %v3302_v60  ;;  %v3238_v32 = vrot.slane %v12664_v6, 2  ;;  %v2779_v22 = vpack.c.bf16 %v2737_v4, %v2737_v4  ;;  %3713 = vmatpush.bf16.msra.mxu3 %v11114_v15 }
 0x485   :  { %v2501_v27 = vadd.f32 %v2500_v33, %v2399_v63  ;;  %v3300_v63 = vsel %vm3293_vm13, %v3297_v39, %v3299_v21  ;;  %v3002_v33 = vpack.c.b16 %v2988_v34, %v2987_v29  ;;  %v12757_v35 = vadd.f32 %v12589_v40, %v2522_v13  ;;  %v11120_v29 = vld [vmem:[%s16960_s3 + $0x138] sm:$0xff] }
 0x486   :  { %v3346_v9 = vpack.c.bf16 %v3300_v63, %v3300_v63  ;;  %v2523_v39 = vadd.f32 %v2499_v18, %v12360_v44  ;;  %v3236_v14 = vrot.slane %v12649_v41, 2  ;;  %v2571_v8 = vmin.f32 %v12751_v0, 0.0  ;;  %3618 = vmatpush.bf16.msra.mxu1 %v11120_v29 }
 0x487   :  { %v2524_v17 = vadd.f32 %v2501_v27, %v12370_v49  ;;  %v2934_v12 = vunpack.c.l.b16 %v2780_v19  ;;  %v3475_v5 = vunpack.c.l.b16 %v3347_v45  ;;  %v2933_v7 = vunpack.c.l.b16 %v2779_v22 }
 0x488   :  { %v2404_v11 = vpop.f32.mrf.mxu0  ;;  %v2572_v44 = vmin.f32 %v12757_v35, 0.0  ;;  %v12771_v10 = vadd.f32 %v12589_v40, %v2523_v39  ;;  %v3237_v58 = vsel %vm1180_vm9, %v3234_v51, %v3236_v14  ;;  %v2806_v57 = vrot.slane %v12664_v6, 7 }
 0x489   :  { %v12764_v48 = vadd.f32 %v12589_v40, %v2524_v17  ;;  %v2595_v42 = vmul.f32 1.442695, %v2571_v8  ;;  %v2862_v21 = vpack.c.bf16 %v12649_v41, %v12649_v41  ;;  %v3281_v51 = vpack.c.bf16 %v3237_v58, %v3237_v58  ;;  %v11113_v58 = vld [vmem:[%s16960_s3 + $0x100] sm:$0xff] }
 0x48a   :  { %3496 = vrot.lane.b32.xlu2 %v3488_v1, %s11538_s2  ;;  %v3239_v1 = vsel %vm1180_vm9, %v3236_v14, %v3238_v32  ;;  %v2861_v2 = vpack.c.bf16 %v12633_v31, %v12633_v31  ;;  %v2740_v46 = vrot.slane %v12664_v6, 6  ;;  %v2597_v60 = vmul.f32 1.442695, %v2572_v44  ;;  %3714 = vmatpush.bf16.msra.mxu3 %v11113_v58 }
 0x48b   :  { %3440 = vrot.lane.b32.xlu1 %v3432_v50, %s11537_s0  ;;  %v3474_v50 = vunpack.c.l.b16 %v3346_v9  ;;  %v3282_v20 = vpack.c.bf16 %v3239_v1, %v3239_v1  ;;  %v2573_v13 = vmin.f32 %v12771_v10, 0.0  ;;  %11302 = vpow2.f32 %v2595_v42 }
 0x48c   :  { %v2503_v43 = vpop.f32.mrf.mxu2  ;;  %v3046_v63 = vunpack.c.l.b16 %v2862_v21  ;;  %v2742_v45 = vsel %vm765_vm15, %v2740_v46, %v2725_v30  ;;  %v3420_v22 = vunpack.c.l.b16 %v3281_v51  ;;  %v2741_v39 = vsel %vm765_vm15, %v2738_v16, %v2740_v46 }
 0x48d   :  { %v2504_v36 = vadd.f32 %v2503_v43, %v2402_v52  ;;  %v2947_v52 = vpack.c.b16 %v2934_v12, %v2933_v7  ;;  %v2574_v43 = vmin.f32 %v12764_v48, 0.0  ;;  %v3489_v27 = vpack.c.b16 %v3475_v5, %v3474_v50 }
 0x48e   :  { %v3421_v4 = vunpack.c.l.b16 %v3282_v20  ;;  %11304 = vpow2.f32 %v2597_v60  ;;  %v2599_v14 = vmul.f32 1.442695, %v2573_v13  ;;  %v3307_v8 = vrot.slane %v12679_v62, 3 }
 0x48f   :  { %v2525_v23 = vadd.f32 %v2504_v36, %v12387_v56  ;;  %v2807_v56 = vsel %vm161_vm3, %v2804_v61, %v2806_v57  ;;  %v2601_v19 = vmul.f32 1.442695, %v2574_v43  ;;  %v3045_v61 = vunpack.c.l.b16 %v2861_v2 }
 0x490   :  { %v2407_v34 = vpop.f32.mrf.mxu0  ;;  %v2847_v9 = vpack.c.bf16 %v2807_v56, %v2807_v56  ;;  %v3434_v12 = vpack.c.b16 %v3421_v4, %v3420_v22  ;;  %v2782_v36 = vpack.c.bf16 %v2742_v45, %v2742_v45  ;;  %v2781_v7 = vpack.c.bf16 %v2741_v39, %v2741_v39 }
 0x491   :  { %v12800_v17 = vadd.f32 %v12589_v40, %v2525_v23  ;;  %11306 = vpow2.f32 %v2601_v19  ;;  %v3059_v5 = vpack.c.b16 %v3046_v63, %v3045_v61  ;;  %v11303_v1 = vpop.eup %11302  ;;  %v3308_v44 = vsel %vm3293_vm13, %v3305_v25, %v3307_v8 }
 0x492   :  { %3067 = vrot.lane.b32.xlu2 %v3058_v37, %s11539_s15  ;;  %v2808_v37 = vsel %vm161_vm3, %v2806_v57, %v2791_v53  ;;  %11308 = vpow2.f32 %v2599_v14  ;;  %v2991_v16 = vunpack.c.l.b16 %v2847_v9  ;;  %v2936_v42 = vunpack.c.l.b16 %v2782_v36 }
 0x493   :  { %3011 = vrot.lane.b32.xlu1 %v3002_v33, %s11538_s2  ;;  %v2848_v53 = vpack.c.bf16 %v2808_v37, %v2808_v37  ;;  %v10513_v51 = vadd.f32 -1.0, %v11303_v1  ;;  %v2935_v2 = vunpack.c.l.b16 %v2781_v7  ;;  %v3350_v60 = vpack.c.bf16 %v3308_v44, %v3308_v44 }
 0x494   :  { %v2505_v49 = vpop.f32.mrf.mxu2  ;;  %v11305_v25 = vpop.eup %11304  ;;  %vm2555_vm7 = vcmp.gt.f32.partialorder %v12751_v0, 0.0  ;;  %vm2556_vm8 = vcmp.gt.f32.partialorder %v12757_v35, 0.0  ;;  %vm2558_vm10 = vcmp.gt.f32.partialorder %v12764_v48, 0.0  ;;  %vm2557_vm11 = vcmp.gt.f32.partialorder %v12771_v10, 0.0 }
 0x495   :  { %v2506_v33 = vadd.f32 %v2505_v49, %v2404_v11  ;;  %v3240_v11 = vrot.slane %v12679_v62, 2  ;;  %v2575_v49 = vmin.f32 %v12800_v17, 0.0  ;;  %v2992_v50 = vunpack.c.l.b16 %v2848_v53 }
 0x496   :  { %v10514_v13 = vadd.f32 -1.0, %v11305_v25  ;;  %v2948_v56 = vpack.c.b16 %v2936_v42, %v2935_v2  ;;  %v12840_v19 = vsel %vm2555_vm7, %v12751_v0, %v10513_v51  ;;  %v3478_v45 = vunpack.c.l.b16 %v3350_v60  ;;  %v11119_v25 = vld [vmem:[%s16960_s3 + $0x130] sm:$0xff] }
 0x497   :  { %v2526_v30 = vadd.f32 %v2506_v33, %v12401_v3  ;;  %v3241_v20 = vsel %vm1180_vm9, %v3238_v32, %v3240_v11  ;;  %v3275_v21 = vsel %vm1180_vm9, %v3240_v11, %v3227_v55  ;;  %v2603_v15 = vmul.f32 1.442695, %v2575_v49  ;;  %v11307_v46 = vpop.eup %11306  ;;  %3619 = vmatpush.bf16.msra.mxu1 %v11119_v25 }
 0x498   :  { %v2409_v57 = vpop.f32.mrf.mxu0  ;;  %v3004_v29 = vpack.c.b16 %v2992_v50, %v2991_v16  ;;  %v3283_v4 = vpack.c.bf16 %v3241_v20, %v3241_v20  ;;  %v3284_v55 = vpack.c.bf16 %v3275_v21, %v3275_v21  ;;  %v11309_v63 = vpop.eup %11308  ;;  %v12844_v61 = vsel %vm2556_vm8, %v12757_v35, %v10514_v13 }
 0x499   :  { %v12830_v43 = vadd.f32 %v12589_v40, %v2526_v30  ;;  %11310 = vpow2.f32 %v2603_v15  ;;  %v2865_v35 = vpack.c.bf16 %v12840_v19, %v12840_v19  ;;  %v2866_v36 = vpack.c.bf16 %v12844_v61, %v12844_v61  ;;  %v11112_v15 = vld [vmem:[%s16960_s3 + $0xf8] sm:$0xff] }
 0x49a   :  { %2957 = vrot.lane.b32.xlu2 %v2947_v52, %s11537_s0  ;;  %v3342_v52 = vsel %vm3293_vm13, %v3307_v8, %v3294_v54  ;;  %v3422_v9 = vunpack.c.l.b16 %v3283_v4  ;;  %v3423_v39 = vunpack.c.l.b16 %v3284_v55  ;;  %v2744_v11 = vrot.slane %v12844_v61, 6  ;;  %3715 = vmatpush.bf16.msra.mxu3 %v11112_v15 }
 0x49b   :  { %3498 = vrot.lane.b32.xlu1 %v3489_v27, %s11538_s2  ;;  %v3351_v32 = vpack.c.bf16 %v3342_v52, %v3342_v52  ;;  %v2576_v37 = vmin.f32 %v12830_v43, 0.0  ;;  %v2810_v30 = vrot.slane %v12844_v61, 7  ;;  %v2809_v50 = vrot.slane %v12840_v19, 7 }
 0x49c   :  { %v2508_v18 = vpop.f32.mrf.mxu2  ;;  %v3435_v1 = vpack.c.b16 %v3423_v39, %v3422_v9  ;;  %vm2559_vm12 = vcmp.gt.f32.partialorder %v12800_v17, 0.0  ;;  %v3309_v21 = vrot.slane %v12840_v19, 3  ;;  %v3242_v2 = vrot.slane %v12840_v19, 2 }
 0x49d   :  { %v2509_v23 = vadd.f32 %v2508_v18, %v2407_v34  ;;  %v3479_v22 = vunpack.c.l.b16 %v3351_v32  ;;  %v2605_v14 = vmul.f32 1.442695, %v2576_v37  ;;  %vm2560_vm1 = vcmp.gt.f32.partialorder %v12830_v43, 0.0 }
 0x49f   :  { %v2527_v34 = vadd.f32 %v2509_v23, %v12416_v24  ;;  %v10515_v24 = vadd.f32 -1.0, %v11309_v63 }
 0x4a1   :  { %v12848_v53 = vadd.f32 %v12589_v40, %v2527_v34  ;;  %v12860_v49 = vsel %vm2557_vm11, %v12771_v10, %v10515_v24  ;;  %v3050_v10 = vunpack.c.l.b16 %v2866_v36 }
 0x4a2   :  { %3444 = vrot.lane.b32.xlu2 %v3434_v12, %s11537_s0  ;;  %v11311_v12 = vpop.eup %11310  ;;  %v2746_v44 = vrot.slane %v12860_v49, 6 }
 0x4a3   :  { %3069 = vrot.lane.b32.xlu1 %v3059_v5, %s11539_s15  ;;  %v2743_v5 = vrot.slane %v12840_v19, 6  ;;  %v10517_v16 = vadd.f32 -1.0, %v11311_v12  ;;  %vm2561_vm7 = vcmp.gt.f32.partialorder %v12848_v53, 0.0 }
 0x4a4   :  { %v2510_v3 = vpop.f32.mrf.mxu2 }
 0x4a5   :  { %v2511_v27 = vadd.f32 %v2510_v3, %v2409_v57  ;;  %v2745_v58 = vsel %vm765_vm15, %v2743_v5, %v2744_v11  ;;  %v3049_v57 = vunpack.c.l.b16 %v2865_v35  ;;  %v2811_v3 = vsel %vm161_vm3, %v2809_v50, %v2810_v30 }
 0x4a6   :  { %v12886_v23 = vsel %vm2559_vm12, %v12800_v17, %v10517_v16  ;;  %v2784_v51 = vpack.c.bf16 %v2745_v58, %v2745_v58  ;;  %v2850_v60 = vpack.c.bf16 %v2811_v3, %v2811_v3  ;;  %v3312_v17 = vrot.slane %v12860_v49, 3 }
 0x4a7   :  { %v2528_v54 = vadd.f32 %v2511_v27, %v12425_v59  ;;  %v10516_v59 = vadd.f32 -1.0, %v11307_v46  ;;  %v3249_v63 = vrot.slane %v12886_v23, 2 }
 0x4a8   :  { %v2994_v12 = vunpack.c.l.b16 %v2850_v60 }
 0x4a9   :  { %v2546_v18 = vadd.f32 %v12589_v40, %v2528_v54  ;;  %v12852_v0 = vsel %vm2558_vm10, %v12764_v48, %v10516_v59  ;;  %v3491_v40 = vpack.c.b16 %v3479_v22, %v3478_v45  ;;  %v2577_v48 = vmin.f32 %v12848_v53, 0.0 }
 0x4aa   :  { %3015 = vrot.lane.b32.xlu2 %v3004_v29, %s11538_s2  ;;  %v2748_v7 = vrot.slane %v12852_v0, 6  ;;  %v3061_v54 = vpack.c.b16 %v3050_v10, %v3049_v57  ;;  %v2747_v29 = vsel %vm765_vm15, %v2744_v11, %v2746_v44  ;;  %v3310_v59 = vrot.slane %v12844_v61, 3 }
 0x4ab   :  { %v2578_v33 = vmin.f32 %v2546_v18, 0.0  ;;  %2959 = vrot.lane.b32.xlu1 %v2948_v56, %s11537_s0  ;;  %v2607_v52 = vmul.f32 1.442695, %v2577_v48  ;;  %vm2562_vm14 = vcmp.gt.f32.partialorder %v2546_v18, 0.0  ;;  %v3245_v56 = vrot.slane %v12860_v49, 2 }
 0x4ac   :  { %v2749_v20 = vsel %vm765_vm15, %v2746_v44, %v2748_v7  ;;  %v2785_v34 = vpack.c.bf16 %v2747_v29, %v2747_v29  ;;  %v2938_v22 = vunpack.c.l.b16 %v2784_v51  ;;  %v3247_v24 = vrot.slane %v12852_v0, 2 }
 0x4ad   :  { %v2609_v8 = vmul.f32 1.442695, %v2578_v33  ;;  %v2786_v13 = vpack.c.bf16 %v2749_v20, %v2749_v20 }
 0x4ae   :  { %v3250_v35 = vsel %vm1180_vm9, %v3247_v24, %v3249_v63  ;;  %v3248_v16 = vsel %vm1180_vm9, %v3245_v56, %v3247_v24 }
 0x4af   :  { %11312 = vpow2.f32 %v2609_v8  ;;  %v2940_v9 = vunpack.c.l.b16 %v2786_v13  ;;  %v3313_v8 = vsel %vm3293_vm13, %v3310_v59, %v3312_v17  ;;  %v3287_v25 = vpack.c.bf16 %v3248_v16, %v3248_v16  ;;  %v11111_v13 = vld [vmem:[%s16960_s3 + $0xf0] sm:$0xff] }
 0x4b0   :  { %11314 = vpow2.f32 %v2605_v14  ;;  %v3353_v10 = vpack.c.bf16 %v3313_v8, %v3313_v8  ;;  %3716 = vmatpush.bf16.msra.mxu3 %v11111_v13  ;;  %v2868_v8 = vpack.c.bf16 %v12852_v0, %v12852_v0  ;;  %v2750_v16 = vrot.slane %v12886_v23, 6 }
 0x4b1   :  { %11316 = vpow2.f32 %v2607_v52 }
 0x4b2   :  { %3502 = vrot.lane.b32.xlu2 %v3491_v40, %s11538_s2  ;;  %v2939_v40 = vunpack.c.l.b16 %v2785_v34  ;;  %v3481_v60 = vunpack.c.l.b16 %v3353_v10 }
 0x4b3   :  { %3446 = vrot.lane.b32.xlu1 %v3435_v1, %s11537_s0 }
 0x4b4   :  { %v2950_v58 = vpack.c.b16 %v2940_v9, %v2939_v40  ;;  %v11110_v9 = vld [vmem:[%s16960_s3 + $0xe8] sm:$0xff] }
 0x4b5   :  { %v11313_v42 = vpop.eup %11312  ;;  %3717 = vmatpush.bf16.msra.mxu3 %v11110_v9  ;;  %v11117_v9 = vld [vmem:[%s16960_s3 + $0x120] sm:$0xff] }
 0x4b6   :  { %v10520_v27 = vadd.f32 -1.0, %v11313_v42  ;;  %v11315_v46 = vpop.eup %11314 }
 0x4b7   :  { %v10518_v37 = vadd.f32 -1.0, %v11315_v46  ;;  %v11317_v1 = vpop.eup %11316  ;;  %v2816_v46 = vrot.slane %v12886_v23, 7 }
 0x4b8   :  { %v12890_v32 = vsel %vm2562_vm14, %v2546_v18, %v10520_v27  ;;  %v3243_v18 = vrot.slane %v12844_v61, 2  ;;  %v10519_v20 = vadd.f32 -1.0, %v11317_v1  ;;  %v2814_v27 = vrot.slane %v12852_v0, 7 }
 0x4b9   :  { %v2792_v4 = vrot.slane %v12890_v32, 7  ;;  %v2726_v55 = vrot.slane %v12890_v32, 6  ;;  %v12916_v11 = vsel %vm2560_vm1, %v12830_v43, %v10518_v37  ;;  %v3288_v43 = vpack.c.bf16 %v3250_v35, %v3250_v35 }
 0x4ba   :  { %3073 = vrot.lane.b32.xlu2 %v3061_v54, %s11539_s15  ;;  %v3246_v36 = vsel %vm1180_vm9, %v3243_v18, %v3245_v56  ;;  %v3244_v44 = vsel %vm1180_vm9, %v3242_v2, %v3243_v18  ;;  %v2818_v52 = vrot.slane %v12916_v11, 7  ;;  %v2812_v54 = vrot.slane %v12860_v49, 7 }
 0x4bb   :  { %v2840_v33 = vsel %vm161_vm3, %v2792_v4, %v2809_v50  ;;  %v2774_v45 = vsel %vm765_vm15, %v2726_v55, %v2743_v5  ;;  %v3311_v50 = vsel %vm3293_vm13, %v3309_v21, %v3310_v59  ;;  %v3286_v42 = vpack.c.bf16 %v3246_v36, %v3246_v36 }
 0x4bc   :  { %v2849_v39 = vpack.c.bf16 %v2840_v33, %v2840_v33  ;;  %v2783_v14 = vpack.c.bf16 %v2774_v45, %v2774_v45  ;;  %v3352_v15 = vpack.c.bf16 %v3311_v50, %v3311_v50  ;;  %v3285_v51 = vpack.c.bf16 %v3244_v44, %v3244_v44  ;;  %v11118_v44 = vld [vmem:[%s16960_s3 + $0x128] sm:$0xff] }
 0x4bd   :  { %v3427_v29 = vunpack.c.l.b16 %v3288_v43  ;;  %v3425_v56 = vunpack.c.l.b16 %v3286_v42  ;;  %v2819_v37 = vsel %vm161_vm3, %v2816_v46, %v2818_v52  ;;  %v12940_v34 = vsel %vm2561_vm7, %v12848_v53, %v10519_v20  ;;  %3620 = vmatpush.bf16.msra.mxu1 %v11118_v44 }
 0x4be   :  { %v2993_v5 = vunpack.c.l.b16 %v2849_v39  ;;  %v2937_v48 = vunpack.c.l.b16 %v2783_v14  ;;  %v3426_v59 = vunpack.c.l.b16 %v3287_v25  ;;  %v3480_v18 = vunpack.c.l.b16 %v3352_v15 }
 0x4bf   :  { %v2815_v33 = vsel %vm161_vm3, %v2812_v54, %v2814_v27  ;;  %v3424_v45 = vunpack.c.l.b16 %v3285_v51  ;;  %v2813_v24 = vsel %vm161_vm3, %v2810_v30, %v2812_v54  ;;  %v2854_v53 = vpack.c.bf16 %v2819_v37, %v2819_v37 }
 0x4c0   :  { %v3005_v57 = vpack.c.b16 %v2994_v12, %v2993_v5  ;;  %v2949_v3 = vpack.c.b16 %v2938_v22, %v2937_v48  ;;  %v2817_v22 = vsel %vm161_vm3, %v2814_v27, %v2816_v46  ;;  %v3437_v39 = vpack.c.b16 %v3427_v29, %v3426_v59 }
 0x4c1   :  { %v3492_v14 = vpack.c.b16 %v3481_v60, %v3480_v18  ;;  %v3436_v12 = vpack.c.b16 %v3425_v56, %v3424_v45  ;;  %v2852_v35 = vpack.c.bf16 %v2815_v33, %v2815_v33  ;;  %v2752_v36 = vrot.slane %v12916_v11, 6  ;;  %v11108_v60 = vld [vmem:[%s16960_s3 + $0xd8] sm:$0xff]  ;;  %3621 = vmatpush.bf16.msra.mxu1 %v11117_v9 }
 0x4c2   :  { %2963 = vrot.lane.b32.xlu2 %v2950_v58, %s11537_s0  ;;  %3017 = vrot.lane.b32.xlu1 %v3005_v57, %s11538_s2  ;;  %v3320_v40 = vrot.slane %v12940_v34, 3  ;;  %v2853_v30 = vpack.c.bf16 %v2817_v22, %v2817_v22  ;;  %v2867_v5 = vpack.c.bf16 %v12860_v49, %v12860_v49  ;;  %v3316_v48 = vrot.slane %v12886_v23, 3 }
 0x4c3   :  { %2961 = vrot.lane.b32.xlu0 %v2949_v3, %s11537_s0  ;;  %v2851_v1 = vpack.c.bf16 %v2813_v24, %v2813_v24  ;;  %v3314_v50 = vrot.slane %v12852_v0, 3  ;;  %v3318_v10 = vrot.slane %v12916_v11, 3  ;;  %v2998_v58 = vunpack.c.l.b16 %v2854_v53  ;;  %v11109_v3 = vld [vmem:[%s16960_s3 + $0xe0] sm:$0xff] }
 0x4c4   :  { %v3052_v57 = vunpack.c.l.b16 %v2868_v8  ;;  %v2996_v43 = vunpack.c.l.b16 %v2852_v35  ;;  %v2753_v42 = vsel %vm765_vm15, %v2750_v16, %v2752_v36  ;;  %v2997_v25 = vunpack.c.l.b16 %v2853_v30  ;;  %3718 = vmatpush.bf16.msra.mxu3 %v11109_v3 }
 0x4c5   :  { %v3321_v20 = vsel %vm3293_vm13, %v3318_v10, %v3320_v40  ;;  %v3051_v15 = vunpack.c.l.b16 %v2867_v5  ;;  %v3317_v27 = vsel %vm3293_vm13, %v3314_v50, %v3316_v48  ;;  %v2995_v51 = vunpack.c.l.b16 %v2851_v1  ;;  %v11116_v1 = vld [vmem:[%s16960_s3 + $0x118] sm:$0xff] }
 0x4c6   :  { %v2751_v46 = vsel %vm765_vm15, %v2748_v7, %v2750_v16  ;;  %v3315_v54 = vsel %vm3293_vm13, %v3312_v17, %v3314_v50  ;;  %v3319_v29 = vsel %vm3293_vm13, %v3316_v48, %v3318_v10  ;;  %v3007_v13 = vpack.c.b16 %v2998_v58, %v2997_v25  ;;  %v11107_v48 = vld [vmem:[%s16960_s3 + $0xd0] sm:$0xff]  ;;  %3622 = vmatpush.bf16.msra.mxu1 %v11116_v1 }
 0x4c7   :  { %v3062_v56 = vpack.c.b16 %v3052_v57, %v3051_v15  ;;  %v2788_v37 = vpack.c.bf16 %v2753_v42, %v2753_v42  ;;  %v3357_v59 = vpack.c.bf16 %v3321_v20, %v3321_v20  ;;  %v3006_v18 = vpack.c.b16 %v2996_v43, %v2995_v51 }
 0x4c8   :  { %v3355_v33 = vpack.c.bf16 %v3317_v27, %v3317_v27  ;;  %v3253_v45 = vrot.slane %v12940_v34, 2  ;;  %v2787_v7 = vpack.c.bf16 %v2751_v46, %v2751_v46  ;;  %v3356_v17 = vpack.c.bf16 %v3319_v29, %v3319_v29  ;;  %3719 = vmatpush.bf16.msra.mxu3 %v11108_v60 }
 0x4c9   :  { %v3354_v22 = vpack.c.bf16 %v3315_v54, %v3315_v54  ;;  %v3251_v24 = vrot.slane %v12916_v11, 2  ;;  %v2872_v44 = vpack.c.bf16 %v12890_v32, %v12890_v32  ;;  %v2870_v57 = vpack.c.bf16 %v12916_v11, %v12916_v11 }
 0x4ca   :  { %3450 = vrot.lane.b32.xlu2 %v3437_v39, %s11537_s0  ;;  %3504 = vrot.lane.b32.xlu1 %v3492_v14, %s11538_s2  ;;  %v2942_v39 = vunpack.c.l.b16 %v2788_v37  ;;  %v3485_v14 = vunpack.c.l.b16 %v3357_v59  ;;  %v3483_v53 = vunpack.c.l.b16 %v3355_v33  ;;  %v3484_v35 = vunpack.c.l.b16 %v3356_v17 }
 0x4cb   :  { %3448 = vrot.lane.b32.xlu0 %v3436_v12, %s11537_s0  ;;  %v3254_v8 = vsel %vm1180_vm9, %v3251_v24, %v3253_v45  ;;  %v2941_v12 = vunpack.c.l.b16 %v2787_v7  ;;  %v3482_v30 = vunpack.c.l.b16 %v3354_v22  ;;  %v3252_v5 = vsel %vm1180_vm9, %v3249_v63, %v3251_v24  ;;  %v11115_v63 = vld [vmem:[%s16960_s3 + $0x110] sm:$0xff] }
 0x4cc   :  { %v3494_v50 = vpack.c.b16 %v3485_v14, %v3484_v35  ;;  %v3290_v10 = vpack.c.bf16 %v3254_v8, %v3254_v8  ;;  %3720 = vmatpush.bf16.msra.mxu3 %v11107_v48  ;;  %v3289_v3 = vpack.c.bf16 %v3252_v5, %v3252_v5  ;;  %v2871_v43 = vpack.c.bf16 %v12940_v34, %v12940_v34 }
 0x4cd   :  { %v2951_v16 = vpack.c.b16 %v2942_v39, %v2941_v12  ;;  %v3493_v58 = vpack.c.b16 %v3483_v53, %v3482_v30  ;;  %v2869_v42 = vpack.c.bf16 %v12886_v23, %v12886_v23  ;;  %v2820_v20 = vrot.slane %v12940_v34, 7  ;;  %3623 = vmatpush.bf16.msra.mxu1 %v11115_v63 }
 0x4ce   :  { %v3429_v25 = vunpack.c.l.b16 %v3290_v10  ;;  %v3056_v15 = vunpack.c.l.b16 %v2872_v44  ;;  %v2754_v27 = vrot.slane %v12940_v34, 6  ;;  %v3054_v51 = vunpack.c.l.b16 %v2870_v57 }
 0x4cf   :  { %v2822_v46 = vsel %vm161_vm3, %v2820_v20, %v2792_v4  ;;  %v3428_v54 = vunpack.c.l.b16 %v3289_v3  ;;  %v3055_v29 = vunpack.c.l.b16 %v2871_v43  ;;  %v3322_v17 = vrot.slane %v12890_v32, 3 }
 0x4d0   :  { %v2756_v60 = vsel %vm765_vm15, %v2754_v27, %v2726_v55  ;;  %v2755_v33 = vsel %vm765_vm15, %v2752_v36, %v2754_v27  ;;  %v3255_v22 = vrot.slane %v12890_v32, 2  ;;  %v2645_v14 = vrot.slane %v12679_v62, 5 }
 0x4d1   :  { %v3438_v37 = vpack.c.b16 %v3429_v25, %v3428_v54  ;;  %v3064_v59 = vpack.c.b16 %v3056_v15, %v3055_v29  ;;  %v2790_v7 = vpack.c.bf16 %v2756_v60, %v2756_v60  ;;  %v3323_v36 = vsel %vm3293_vm13, %v3320_v40, %v3322_v17 }
 0x4d2   :  { %3021 = vrot.lane.b32.xlu2 %v3007_v13, %s11538_s2  ;;  %3075 = vrot.lane.b32.xlu1 %v3062_v56, %s11539_s15  ;;  %v3053_v13 = vunpack.c.l.b16 %v2869_v42  ;;  %v2821_v56 = vsel %vm161_vm3, %v2818_v52, %v2820_v20  ;;  %v2789_v52 = vpack.c.bf16 %v2755_v33, %v2755_v33  ;;  %v3343_v39 = vsel %vm3293_vm13, %v3322_v17, %v3309_v21 }
 0x4d3   :  { %3019 = vrot.lane.b32.xlu0 %v3006_v18, %s11538_s2  ;;  %v2856_v18 = vpack.c.bf16 %v2822_v46, %v2822_v46  ;;  %v2855_v55 = vpack.c.bf16 %v2821_v56, %v2821_v56  ;;  %v2944_v9 = vunpack.c.l.b16 %v2790_v7  ;;  %v3256_v8 = vsel %vm1180_vm9, %v3253_v45, %v3255_v22 }
 0x4d4   :  { %v3063_v4 = vpack.c.b16 %v3054_v51, %v3053_v13  ;;  %v3276_v12 = vsel %vm1180_vm9, %v3255_v22, %v3242_v2  ;;  %v2664_v35 = vrot.slane %v12602_v47, 5  ;;  %v2943_v30 = vunpack.c.l.b16 %v2789_v52 }
 0x4d5   :  { %v3000_v24 = vunpack.c.l.b16 %v2856_v18  ;;  %v2999_v53 = vunpack.c.l.b16 %v2855_v55  ;;  %v2663_v40 = vrot.slane %v12597_v26, 5  ;;  %v3358_v48 = vpack.c.bf16 %v3323_v36, %v3323_v36 }
 0x4d6   :  { %v3359_v1 = vpack.c.bf16 %v3343_v39, %v3343_v39  ;;  %v2952_v21 = vpack.c.b16 %v2944_v9, %v2943_v30  ;;  %v3164_v57 = vrot.slane %v12609_v38, 1  ;;  %v3162_v20 = vrot.slane %v12602_v47, 1 }
 0x4d7   :  { %v3008_v5 = vpack.c.b16 %v3000_v24, %v2999_v53  ;;  %v2707_v10 = vsel %vm88_vm0, %v2645_v14, %v2663_v40  ;;  %v2665_v2 = vsel %vm88_vm0, %v2663_v40, %v2664_v35  ;;  %v3486_v45 = vunpack.c.l.b16 %v3358_v48 }
 0x4d8   :  { %v3487_v44 = vunpack.c.l.b16 %v3359_v1  ;;  %v2710_v43 = vpack.c.bf16 %v2665_v2, %v2665_v2  ;;  %v3161_v51 = vrot.slane %v12597_v26, 1  ;;  %v3165_v46 = vsel %vm240_vm2, %v3162_v20, %v3164_v57 }
 0x4d9   :  { %v2668_v60 = vrot.slane %v12618_v28, 5  ;;  %v3212_v56 = vpack.c.bf16 %v3165_v46, %v3165_v46  ;;  %v3168_v39 = vrot.slane %v12633_v31, 1  ;;  %v3166_v30 = vrot.slane %v12618_v28, 1 }
 0x4da   :  { %2965 = vrot.lane.b32.xlu1 %v2951_v16, %s11537_s0  ;;  %3508 = vrot.lane.b32.xlu2 %v3494_v50, %s11538_s2  ;;  %v3291_v16 = vpack.c.bf16 %v3256_v8, %v3256_v8  ;;  %v3292_v50 = vpack.c.bf16 %v3276_v12, %v3276_v12  ;;  %v3495_v25 = vpack.c.b16 %v3487_v44, %v3486_v45  ;;  %v2890_v54 = vunpack.c.l.b16 %v2710_v43 }
 0x4db   :  { %3506 = vrot.lane.b32.xlu0 %v3493_v58, %s11538_s2  ;;  %v2709_v58 = vpack.c.bf16 %v2707_v10, %v2707_v10  ;;  %v3163_v29 = vsel %vm240_vm2, %v3161_v51, %v3162_v20  ;;  %v3377_v22 = vunpack.c.l.b16 %v3212_v56  ;;  %v2672_v45 = vrot.slane %v12649_v41, 5 }
 0x4dc   :  { %v3430_v63 = vunpack.c.l.b16 %v3291_v16  ;;  %v3431_v3 = vunpack.c.l.b16 %v3292_v50  ;;  %v3010_v42 = vpop.permute.xlu2 %3009  ;;  %v3211_v33 = vpack.c.bf16 %v3163_v29, %v3163_v29  ;;  %v3167_v16 = vsel %vm240_vm2, %v3164_v57, %v3166_v30 }
 0x4dd   :  { %v2889_v15 = vunpack.c.l.b16 %v2709_v58  ;;  %v3213_v58 = vpack.c.bf16 %v3167_v16, %v3167_v16  ;;  %v3172_v29 = vrot.slane %v12664_v6, 1  ;;  %v3174_v16 = vrot.slane %v12679_v62, 1 }
 0x4de   :  { %v3439_v27 = vpack.c.b16 %v3431_v3, %v3430_v63  ;;  %v3376_v9 = vunpack.c.l.b16 %v3211_v33  ;;  %v2670_v63 = vrot.slane %v12633_v31, 5 }
 0x4df   :  { %v2905_v13 = vpack.c.b16 %v2890_v54, %v2889_v15  ;;  %v3378_v15 = vunpack.c.l.b16 %v3213_v58 }
 0x4e0   :  { %v3392_v53 = vpack.c.b16 %v3377_v22, %v3376_v9  ;;  %v2673_v20 = vsel %vm88_vm0, %v2670_v63, %v2672_v45 }
 0x4e1   :  { %v2714_v46 = vpack.c.bf16 %v2673_v20, %v2673_v20 }
 0x4e2   :  { %3452 = vrot.lane.b32.xlu1 %v3438_v37, %s11537_s0  ;;  %3079 = vrot.lane.b32.xlu2 %v3064_v59, %s11539_s15  ;;  %v2666_v59 = vrot.slane %v12609_v38, 5 }
 0x4e3   :  { %3077 = vrot.lane.b32.xlu0 %v3063_v4, %s11539_s15  ;;  %v3066_v4 = vpop.permute.xlu0 %3065  ;;  %v2894_v33 = vunpack.c.l.b16 %v2714_v46 }
 0x4e4   :  { %v2669_v17 = vsel %vm88_vm0, %v2666_v59, %v2668_v60  ;;  %v3497_v52 = vpop.permute.xlu2 %3496  ;;  %v2667_v24 = vsel %vm88_vm0, %v2664_v35, %v2666_v59  ;;  %v3170_v59 = vrot.slane %v12649_v41, 1 }
 0x4e5   :  { %v2712_v36 = vpack.c.bf16 %v2669_v17, %v2669_v17  ;;  %v2711_v8 = vpack.c.bf16 %v2667_v24, %v2667_v24  ;;  %v2674_v24 = vrot.slane %v12664_v6, 5 }
 0x4e7   :  { %v2891_v35 = vunpack.c.l.b16 %v2711_v8  ;;  %v2676_v8 = vsel %vm88_vm0, %v2674_v24, %v2645_v14 }
 0x4ea   :  { %3023 = vrot.lane.b32.xlu1 %v3008_v5, %s11538_s2  ;;  %v2892_v5 = vunpack.c.l.b16 %v2712_v36 }
 0x4eb   :  { %2967 = vrot.lane.b32.xlu0 %v2952_v21, %s11537_s0  ;;  %v2956_v48 = vpop.permute.xlu0 %2955  ;;  %v3169_v21 = vsel %vm240_vm2, %v3166_v30, %v3168_v39 }
 0x4ec   :  { %v2906_v50 = vpack.c.b16 %v2892_v5, %v2891_v35  ;;  %v3214_v10 = vpack.c.bf16 %v3169_v21, %v3169_v21  ;;  %v3068_v2 = vpop.permute.xlu2 %3067  ;;  %v2675_v5 = vsel %vm88_vm0, %v2672_v45, %v2674_v24  ;;  %v3209_v45 = vsel %vm240_vm2, %v3174_v16, %v3161_v51 }
 0x4ed   :  { %v2715_v35 = vpack.c.bf16 %v2675_v5, %v2675_v5  ;;  %v3176_v24 = vrot.slane %v12840_v19, 1 }
 0x4ee   :  { %v3086_v44 = vsel %vm459_vm4, %v2906_v50, %v2956_v48 }
 0x4ef   :  { %v2895_v14 = vunpack.c.l.b16 %v2715_v35 }
 0x4f2   :  { %3510 = vrot.lane.b32.xlu1 %v3495_v25, %s11538_s2 }
 0x4f3   :  { %3454 = vrot.lane.b32.xlu0 %v3439_v27, %s11537_s0  ;;  %v3443_v57 = vpop.permute.xlu0 %3442  ;;  %v2671_v27 = vsel %vm88_vm0, %v2668_v60, %v2670_v63  ;;  %v3171_v60 = vsel %vm240_vm2, %v3168_v39, %v3170_v59  ;;  %v3175_v63 = vsel %vm240_vm2, %v3172_v29, %v3174_v16 }
 0x4f4   :  { %v3215_v36 = vpack.c.bf16 %v3171_v60, %v3171_v60  ;;  %v3217_v20 = vpack.c.bf16 %v3175_v63, %v3175_v63 }
 0x4f5   :  { %v2954_v37 = vpop.permute.xlu1 %2953 }
 0x4f6   :  { %v3083_v18 = vsel %vm459_vm4, %v2905_v13, %v2954_v37  ;;  %v2713_v13 = vpack.c.bf16 %v2671_v27, %v2671_v27  ;;  %v2958_v37 = vpop.permute.xlu2 %2957  ;;  %v3380_v39 = vunpack.c.l.b16 %v3215_v36  ;;  %v3382_v27 = vunpack.c.l.b16 %v3217_v20 }
 0x4f7   :  { %v3106_v7 = vsel %vm484_vm5, %v3083_v18, %v3010_v42  ;;  %v3379_v42 = vunpack.c.l.b16 %v3214_v10 }
 0x4f8   :  { %v3122_v55 = vsel %vm549_vm6, %v3106_v7, %v3066_v4  ;;  %v3173_v7 = vsel %vm240_vm2, %v3170_v59, %v3172_v29  ;;  %v2893_v17 = vunpack.c.l.b16 %v2713_v13  ;;  %v2678_v29 = vrot.slane %v12844_v61, 5 }
 0x4f9   :  { %3721 = vmatmul.bf16.vlgmr.msra.gmra.mxu3 %v3122_v55  ;;  %v3393_v54 = vpack.c.b16 %v3379_v42, %v3378_v15  ;;  %v3216_v22 = vpack.c.bf16 %v3173_v7, %v3173_v7  ;;  %v2677_v13 = vrot.slane %v12840_v19, 5 }
 0x4fa   :  { %v2907_v55 = vpack.c.b16 %v2894_v33, %v2893_v17  ;;  %v3179_v17 = vrot.slane %v12860_v49, 1 }
 0x4fb   :  { %v3517_v56 = vsel %vm459_vm4, %v3393_v54, %v3443_v57  ;;  %v2646_v57 = vrot.slane %v12890_v32, 5  ;;  %v2679_v33 = vsel %vm88_vm0, %v2677_v13, %v2678_v29 }
 0x4fc   :  { %v3089_v9 = vsel %vm459_vm4, %v2907_v55, %v2958_v37  ;;  %v2718_v60 = vpack.c.bf16 %v2679_v33, %v2679_v33 }
 0x4fd   :  { %v3441_v12 = vpop.permute.xlu1 %3440  ;;  %v2708_v37 = vsel %vm88_vm0, %v2646_v57, %v2677_v13 }
 0x4fe   :  { %v3514_v40 = vsel %vm459_vm4, %v3392_v53, %v3441_v12  ;;  %v3381_v12 = vunpack.c.l.b16 %v3216_v22  ;;  %v3445_v30 = vpop.permute.xlu2 %3444  ;;  %v2717_v7 = vpack.c.bf16 %v2708_v37, %v2708_v37  ;;  %v3177_v22 = vrot.slane %v12844_v61, 1 }
 0x4ff   :  { %v3537_v1 = vsel %vm484_vm5, %v3514_v40, %v3497_v52  ;;  %v3014_v52 = vpop.permute.xlu0 %3013  ;;  %v2898_v36 = vunpack.c.l.b16 %v2718_v60 }
 0x500   :  { %10545 = vmatmul.msk.bf16.vlgmr.msra.gmra.mxu1 %vm549_vm6, %v3537_v1  ;;  %v3110_v40 = vsel %vm484_vm5, %v3089_v9, %v3014_v52  ;;  %v2716_v1 = vpack.c.bf16 %v2676_v8, %v2676_v8  ;;  %v3394_v21 = vpack.c.b16 %v3381_v12, %v3380_v39  ;;  %v2897_v52 = vunpack.c.l.b16 %v2717_v7 }
 0x501   :  { %v3180_v9 = vsel %vm240_vm2, %v3177_v22, %v3179_v17  ;;  %v2682_v8 = vrot.slane %v12852_v0, 5 }
 0x502   :  { %v3520_v50 = vsel %vm459_vm4, %v3394_v21, %v3445_v30  ;;  %v2896_v10 = vunpack.c.l.b16 %v2716_v1  ;;  %v2909_v30 = vpack.c.b16 %v2898_v36, %v2897_v52 }
 0x505   :  { %v3012_v3 = vpop.permute.xlu1 %3011 }
 0x506   :  { %v3108_v43 = vsel %vm484_vm5, %v3086_v44, %v3012_v3  ;;  %v2908_v3 = vpack.c.b16 %v2896_v10, %v2895_v14 }
 0x507   :  { %v3125_v25 = vsel %vm549_vm6, %v3108_v43, %v3068_v2  ;;  %v3501_v2 = vpop.permute.xlu0 %3500  ;;  %v3016_v43 = vpop.permute.xlu2 %3015 }
 0x508   :  { %v3541_v58 = vsel %vm484_vm5, %v3520_v50, %v3501_v2 }
 0x509   :  { %3726 = vmatmul.bf16.gmra.mxu3 %v3125_v25  ;;  %v3218_v25 = vpack.c.bf16 %v3209_v45, %v3209_v45 }
 0x50b   :  { %v3383_v46 = vunpack.c.l.b16 %v3218_v25 }
 0x50d   :  { %v3499_v18 = vpop.permute.xlu1 %3498  ;;  %v3395_v59 = vpack.c.b16 %v3383_v46, %v3382_v27 }
 0x50e   :  { %v3539_v4 = vsel %vm484_vm5, %v3517_v56, %v3499_v18 }
 0x50f   :  { %v3072_v54 = vpop.permute.xlu0 %3071  ;;  %v3503_v18 = vpop.permute.xlu2 %3502 }
 0x510   :  { %10546 = vmatmul.msk.bf16.gmra.mxu1 %vm549_vm6, %v3539_v4 }
 0x515   :  { %v3070_v53 = vpop.permute.xlu1 %3069 }
 0x516   :  { %v3128_v48 = vsel %vm549_vm6, %v3110_v40, %v3070_v53  ;;  %v3178_v53 = vsel %vm240_vm2, %v3176_v24, %v3177_v22  ;;  %v3220_v40 = vpack.c.bf16 %v3180_v9, %v3180_v9 }
 0x517   :  { %v3074_v5 = vpop.permute.xlu2 %3073  ;;  %v3219_v21 = vpack.c.bf16 %v3178_v53, %v3178_v53 }
 0x518   :  { %v3385_v10 = vunpack.c.l.b16 %v3220_v40 }
 0x519   :  { %3731 = vmatmul.bf16.gmra.mxu3 %v3128_v48  ;;  %v2680_v48 = vrot.slane %v12860_v49, 5  ;;  %v3384_v14 = vunpack.c.l.b16 %v3219_v21 }
 0x51b   :  { %v2683_v16 = vsel %vm88_vm0, %v2680_v48, %v2682_v8  ;;  %v2681_v2 = vsel %vm88_vm0, %v2678_v29, %v2680_v48  ;;  %v3396_v45 = vpack.c.b16 %v3385_v10, %v3384_v14  ;;  %v2688_v14 = vrot.slane %v12940_v34, 5 }
 0x51d   :  { %v2960_v44 = vpop.permute.xlu1 %2959 }
 0x51e   :  { %v3092_v42 = vsel %vm459_vm4, %v2908_v3, %v2960_v44  ;;  %v2720_v44 = vpack.c.bf16 %v2683_v16, %v2683_v16  ;;  %v2719_v3 = vpack.c.bf16 %v2681_v2, %v2681_v2 }
 0x51f   :  { %v3112_v15 = vsel %vm484_vm5, %v3092_v42, %v3016_v43  ;;  %v3181_v42 = vrot.slane %v12852_v0, 1 }
 0x520   :  { %10547 = vmatmul.msk.bf16.gmra.mxu1 %vm549_vm6, %v3541_v58  ;;  %v3131_v51 = vsel %vm549_vm6, %v3112_v15, %v3072_v54  ;;  %v3183_v58 = vrot.slane %v12886_v23, 1  ;;  %v2900_v25 = vunpack.c.l.b16 %v2720_v44  ;;  %v2964_v15 = vpop.permute.xlu2 %2963  ;;  %v2899_v54 = vunpack.c.l.b16 %v2719_v3 }
 0x521   :  { %v3182_v29 = vsel %vm240_vm2, %v3179_v17, %v3181_v42  ;;  %v2690_v3 = vsel %vm88_vm0, %v2688_v14, %v2646_v57 }
 0x522   :  { %v3184_v46 = vsel %vm240_vm2, %v3181_v42, %v3183_v58  ;;  %v2910_v13 = vpack.c.b16 %v2900_v25, %v2899_v54 }
 0x525   :  { %v3447_v56 = vpop.permute.xlu1 %3446 }
 0x526   :  { %v3523_v4 = vsel %vm459_vm4, %v3395_v59, %v3447_v56  ;;  %v2686_v56 = vrot.slane %v12916_v11, 5  ;;  %v3098_v59 = vsel %vm459_vm4, %v2910_v13, %v2964_v15 }
 0x527   :  { %v3543_v55 = vsel %vm484_vm5, %v3523_v4, %v3503_v18  ;;  %v3221_v18 = vpack.c.bf16 %v3182_v29, %v3182_v29  ;;  %v2684_v4 = vrot.slane %v12886_v23, 5  ;;  %v3189_v29 = vrot.slane %v12890_v32, 1 }
 0x528   :  { %v3451_v17 = vpop.permute.xlu2 %3450 }
 0x529   :  { %3736 = vmatmul.bf16.gmra.mxu3 %v3131_v51  ;;  %v3222_v51 = vpack.c.bf16 %v3184_v46, %v3184_v46  ;;  %v2687_v22 = vsel %vm88_vm0, %v2684_v4, %v2686_v56  ;;  %v3386_v52 = vunpack.c.l.b16 %v3221_v18  ;;  %v2685_v9 = vsel %vm88_vm0, %v2682_v8, %v2684_v4 }
 0x52a   :  { %v2722_v36 = vpack.c.bf16 %v2687_v22, %v2687_v22 }
 0x52b   :  { %v3387_v60 = vunpack.c.l.b16 %v3222_v51 }
 0x52c   :  { %v2902_v48 = vunpack.c.l.b16 %v2722_v36 }
 0x52d   :  { %v3397_v53 = vpack.c.b16 %v3387_v60, %v3386_v52 }
 0x52f   :  { %v3529_v40 = vsel %vm459_vm4, %v3397_v53, %v3451_v17 }
 0x530   :  { %10548 = vmatmul.msk.bf16.gmra.mxu1 %vm549_vm6, %v3543_v55  ;;  %v3022_v2 = vpop.permute.xlu2 %3021 }
 0x534   :  { %v3018_v12 = vpop.permute.xlu1 %3017 }
 0x535   :  { %v2962_v39 = vpop.permute.xlu0 %2961 }
 0x536   :  { %v3095_v1 = vsel %vm459_vm4, %v2909_v30, %v2962_v39  ;;  %v2721_v30 = vpack.c.bf16 %v2685_v9, %v2685_v9  ;;  %v3185_v39 = vrot.slane %v12916_v11, 1 }
 0x537   :  { %v3114_v35 = vsel %vm484_vm5, %v3095_v1, %v3018_v12  ;;  %v3187_v12 = vrot.slane %v12940_v34, 1 }
 0x538   :  { %v3134_v50 = vsel %vm549_vm6, %v3114_v35, %v3074_v5  ;;  %v2901_v16 = vunpack.c.l.b16 %v2721_v30  ;;  %v3186_v8 = vsel %vm240_vm2, %v3183_v58, %v3185_v39 }
 0x539   :  { %3741 = vmatmul.bf16.gmra.mxu3 %v3134_v50  ;;  %v3188_v35 = vsel %vm240_vm2, %v3185_v39, %v3187_v12 }
 0x53a   :  { %v2911_v50 = vpack.c.b16 %v2902_v48, %v2901_v16  ;;  %v3224_v10 = vpack.c.bf16 %v3188_v35, %v3188_v35 }
 0x53c   :  { %v3505_v63 = vpop.permute.xlu1 %3504 }
 0x53d   :  { %v3449_v43 = vpop.permute.xlu0 %3448 }
 0x53e   :  { %v3526_v20 = vsel %vm459_vm4, %v3396_v45, %v3449_v43  ;;  %v3389_v43 = vunpack.c.l.b16 %v3224_v10 }
 0x53f   :  { %v3545_v27 = vsel %vm484_vm5, %v3526_v20, %v3505_v63  ;;  %v3223_v63 = vpack.c.bf16 %v3186_v8, %v3186_v8  ;;  %v2689_v20 = vsel %vm88_vm0, %v2686_v56, %v2688_v14  ;;  %v3190_v56 = vsel %vm240_vm2, %v3187_v12, %v3189_v29 }
 0x540   :  { %10549 = vmatmul.msk.bf16.gmra.mxu1 %vm549_vm6, %v3545_v27  ;;  %v2724_v27 = vpack.c.bf16 %v2690_v3, %v2690_v3  ;;  %v2723_v54 = vpack.c.bf16 %v2689_v20, %v2689_v20 }
 0x541   :  { %v3388_v25 = vunpack.c.l.b16 %v3223_v63 }
 0x542   :  { %v2904_v51 = vunpack.c.l.b16 %v2724_v27  ;;  %v2903_v57 = vunpack.c.l.b16 %v2723_v54 }
 0x543   :  { %v3398_v46 = vpack.c.b16 %v3389_v43, %v3388_v25 }
 0x544   :  { %v3076_v37 = vpop.permute.xlu1 %3075  ;;  %v2912_v4 = vpack.c.b16 %v2904_v51, %v2903_v57 }
 0x545   :  { %v3020_v33 = vpop.permute.xlu0 %3019 }
 0x546   :  { %v3116_v7 = vsel %vm484_vm5, %v3098_v59, %v3020_v33  ;;  %v3210_v33 = vsel %vm240_vm2, %v3189_v29, %v3176_v24 }
 0x547   :  { %v3137_v55 = vsel %vm549_vm6, %v3116_v7, %v3076_v37  ;;  %v3509_v37 = vpop.permute.xlu2 %3508  ;;  %v3226_v22 = vpack.c.bf16 %v3210_v33, %v3210_v33 }
 0x549   :  { %3746 = vmatmul.bf16.gmra.mxu3 %v3137_v55  ;;  %v3225_v55 = vpack.c.bf16 %v3190_v56, %v3190_v56  ;;  %v3391_v9 = vunpack.c.l.b16 %v3226_v22 }
 0x54b   :  { %v3390_v17 = vunpack.c.l.b16 %v3225_v55 }
 0x54c   :  { %v2966_v1 = vpop.permute.xlu1 %2965 }
 0x54d   :  { %v3507_v5 = vpop.permute.xlu0 %3506  ;;  %v3101_v44 = vsel %vm459_vm4, %v2911_v50, %v2966_v1  ;;  %v3399_v30 = vpack.c.b16 %v3391_v9, %v3390_v17 }
 0x54e   :  { %v3547_v21 = vsel %vm484_vm5, %v3529_v40, %v3507_v5  ;;  %v3118_v42 = vsel %vm484_vm5, %v3101_v44, %v3022_v2 }
 0x54f   :  { %v3080_v36 = vpop.permute.xlu2 %3079 }
 0x550   :  { %10550 = vmatmul.msk.bf16.gmra.mxu1 %vm549_vm6, %v3547_v21  ;;  %v13186_v21 = vld [vmem:[%s16961_s4 + $0x3] ss:$0 sm:$0xff] }
 0x554   :  { %v3453_v58 = vpop.permute.xlu1 %3452 }
 0x555   :  { %v3078_v45 = vpop.permute.xlu0 %3077  ;;  %v3532_v13 = vsel %vm459_vm4, %v3398_v46, %v3453_v58 }
 0x556   :  { %v3140_v15 = vsel %vm549_vm6, %v3118_v42, %v3078_v45  ;;  %v3549_v18 = vsel %vm484_vm5, %v3532_v13, %v3509_v37 }
 0x559   :  { %3751 = vmatmul.bf16.gmra.mxu3 %v3140_v15 }
 0x55c   :  { %v3024_v7 = vpop.permute.xlu1 %3023 }
 0x55d   :  { %v2968_v59 = vpop.permute.xlu0 %2967 }
 0x55e   :  { %v3104_v60 = vsel %vm459_vm4, %v2912_v4, %v2968_v59 }
 0x55f   :  { %v3120_v52 = vsel %vm484_vm5, %v3104_v60, %v3024_v7 }
 0x560   :  { %10551 = vmatmul.msk.bf16.gmra.mxu1 %vm549_vm6, %v3549_v18  ;;  %v3143_v53 = vsel %vm549_vm6, %v3120_v52, %v3080_v36 }
 0x564   :  { %v3511_v40 = vpop.permute.xlu1 %3510 }
 0x565   :  { %v3455_v12 = vpop.permute.xlu0 %3454 }
 0x566   :  { %v3535_v24 = vsel %vm459_vm4, %v3399_v30, %v3455_v12 }
 0x567   :  { %v3551_v5 = vsel %vm484_vm5, %v3535_v24, %v3511_v40 }
 0x569   :  { %3756 = vmatmul.bf16.gmra.mxu3 %v3143_v53 }
 0x570   :  { %10552 = vmatmul.msk.bf16.gmra.mxu1 %vm549_vm6, %v3551_v5 }
 0x57c   :  { %v3722_v39 = vpop.f32.mrf.mxu3 }
 0x57d   :  { %v3625_v48 = vpop.f32.mrf.mxu1 }
 0x57e   :  { %v3723_v1 = vadd.f32 %v3722_v39, %v3625_v48 }
 0x580   :  { %v3762_v35 = vadd.f32 %v3723_v1, %v12597_v26 }
 0x582   :  { %v3780_v16 = vadd.f32 %v13186_v21, %v3762_v35 }
 0x584   :  { %v3812_v8 = vmin.f32 %v3780_v16, 0.0  ;;  %v3724_v50 = vpop.f32.mrf.mxu3  ;;  %vm3796_vm8 = vcmp.gt.f32.partialorder %v3780_v16, 0.0 }
 0x585   :  { %v3627_v10 = vpop.f32.mrf.mxu1 }
 0x586   :  { %v3828_v2 = vmul.f32 1.442695, %v3812_v8  ;;  %v3725_v14 = vadd.f32 %v3724_v50, %v3627_v10 }
 0x588   :  { %11318 = vpow2.f32 %v3828_v2  ;;  %v3763_v44 = vadd.f32 %v3725_v14, %v12602_v47 }
 0x58a   :  { %v3781_v63 = vadd.f32 %v13186_v21, %v3763_v44 }
 0x58c   :  { %v3813_v45 = vmin.f32 %v3781_v63, 0.0  ;;  %v3727_v3 = vpop.f32.mrf.mxu3  ;;  %vm3797_vm10 = vcmp.gt.f32.partialorder %v3781_v63, 0.0 }
 0x58d   :  { %v3630_v43 = vpop.f32.mrf.mxu1 }
 0x58e   :  { %v11319_v42 = vpop.eup %11318  ;;  %v3830_v20 = vmul.f32 1.442695, %v3813_v45  ;;  %v3728_v25 = vadd.f32 %v3727_v3, %v3630_v43 }
 0x58f   :  { %v10585_v58 = vadd.f32 -1.0, %v11319_v42 }
 0x590   :  { %11320 = vpow2.f32 %v3830_v20  ;;  %v3764_v26 = vadd.f32 %v3728_v25, %v12609_v38 }
 0x591   :  { %v13194_v54 = vsel %vm3796_vm8, %v3780_v16, %v10585_v58 }
 0x592   :  { %v3782_v15 = vadd.f32 %v13186_v21, %v3764_v26  ;;  %v4106_v38 = vpack.c.bf16 %v13194_v54, %v13194_v54 }
 0x594   :  { %v3814_v27 = vmin.f32 %v3782_v15, 0.0  ;;  %v3729_v46 = vpop.f32.mrf.mxu3  ;;  %v4290_v7 = vunpack.c.l.b16 %v4106_v38  ;;  %vm3798_vm11 = vcmp.gt.f32.partialorder %v3782_v15, 0.0 }
 0x595   :  { %v3632_v47 = vpop.f32.mrf.mxu1 }
 0x596   :  { %v11321_v29 = vpop.eup %11320  ;;  %v3832_v13 = vmul.f32 1.442695, %v3814_v27  ;;  %v3730_v51 = vadd.f32 %v3729_v46, %v3632_v47 }
 0x597   :  { %v10586_v37 = vadd.f32 -1.0, %v11321_v29 }
 0x598   :  { %11322 = vpow2.f32 %v3832_v13  ;;  %v3765_v57 = vadd.f32 %v3730_v51, %v12618_v28 }
 0x599   :  { %v13199_v59 = vsel %vm3797_vm10, %v3781_v63, %v10586_v37 }
 0x59a   :  { %v3783_v18 = vadd.f32 %v13186_v21, %v3765_v57  ;;  %v4107_v56 = vpack.c.bf16 %v13199_v59, %v13199_v59  ;;  %v3979_v35 = vrot.slane %v13199_v59, 6 }
 0x59c   :  { %v3815_v33 = vmin.f32 %v3783_v18, 0.0  ;;  %v3732_v4 = vpop.f32.mrf.mxu3  ;;  %v4291_v60 = vunpack.c.l.b16 %v4107_v56  ;;  %vm3799_vm12 = vcmp.gt.f32.partialorder %v3783_v18, 0.0 }
 0x59d   :  { %v3635_v55 = vpop.f32.mrf.mxu1 }
 0x59e   :  { %v11323_v22 = vpop.eup %11322  ;;  %v3834_v52 = vmul.f32 1.442695, %v3815_v33  ;;  %v3733_v17 = vadd.f32 %v3732_v4, %v3635_v55  ;;  %v4306_v9 = vpack.c.b16 %v4291_v60, %v4290_v7 }
 0x59f   :  { %v10587_v28 = vadd.f32 -1.0, %v11323_v22 }
 0x5a0   :  { %11324 = vpow2.f32 %v3834_v52  ;;  %v3766_v36 = vadd.f32 %v3733_v17, %v12633_v31  ;;  %4314 = vrot.lane.b32.xlu1 %v4306_v9, %s11539_s15 }
 0x5a1   :  { %v13206_v53 = vsel %vm3798_vm11, %v3782_v15, %v10587_v28 }
 0x5a2   :  { %v3784_v12 = vadd.f32 %v13186_v21, %v3766_v36  ;;  %v3981_v24 = vrot.slane %v13206_v53, 6  ;;  %v4479_v26 = vrot.slane %v13206_v53, 2 }
 0x5a4   :  { %v3816_v30 = vmin.f32 %v3784_v12, 0.0  ;;  %v3734_v40 = vpop.f32.mrf.mxu3  ;;  %v3982_v8 = vsel %vm765_vm15, %v3979_v35, %v3981_v24  ;;  %vm3800_vm14 = vcmp.gt.f32.partialorder %v3784_v12, 0.0 }
 0x5a5   :  { %v3637_v5 = vpop.f32.mrf.mxu1  ;;  %v4026_v14 = vpack.c.bf16 %v3982_v8, %v3982_v8 }
 0x5a6   :  { %v11325_v39 = vpop.eup %11324  ;;  %v3836_v48 = vmul.f32 1.442695, %v3816_v30  ;;  %v3735_v1 = vadd.f32 %v3734_v40, %v3637_v5 }
 0x5a7   :  { %v10588_v16 = vadd.f32 -1.0, %v11325_v39  ;;  %v4180_v15 = vunpack.c.l.b16 %v4026_v14 }
 0x5a8   :  { %11326 = vpow2.f32 %v3836_v48  ;;  %v3767_v31 = vadd.f32 %v3735_v1, %v12649_v41 }
 0x5a9   :  { %v13215_v50 = vsel %vm3799_vm12, %v3783_v18, %v10588_v16 }
 0x5aa   :  { %v3785_v10 = vadd.f32 %v13186_v21, %v3767_v31  ;;  %v3983_v2 = vrot.slane %v13215_v50, 6  ;;  %v4481_v3 = vrot.slane %v13215_v50, 2  ;;  %v4049_v22 = vrot.slane %v13215_v50, 7 }
 0x5ac   :  { %v3817_v44 = vmin.f32 %v3785_v10, 0.0  ;;  %v3737_v63 = vpop.f32.mrf.mxu3  ;;  %v3984_v45 = vsel %vm765_vm15, %v3981_v24, %v3983_v2  ;;  %v4482_v47 = vsel %vm1180_vm9, %v4479_v26, %v4481_v3  ;;  %vm3801_vm1 = vcmp.gt.f32.partialorder %v3785_v10, 0.0 }
 0x5ad   :  { %v3640_v41 = vpop.f32.mrf.mxu1  ;;  %v4027_v43 = vpack.c.bf16 %v3984_v45, %v3984_v45  ;;  %v4528_v57 = vpack.c.bf16 %v4482_v47, %v4482_v47 }
 0x5ae   :  { %v11327_v42 = vpop.eup %11326  ;;  %v3838_v20 = vmul.f32 1.442695, %v3817_v44  ;;  %v3738_v25 = vadd.f32 %v3737_v63, %v3640_v41 }
 0x5af   :  { %v10589_v58 = vadd.f32 -1.0, %v11327_v42  ;;  %v4181_v27 = vunpack.c.l.b16 %v4027_v43  ;;  %v4666_v17 = vunpack.c.l.b16 %v4528_v57 }
 0x5b0   :  { %11328 = vpow2.f32 %v3838_v20  ;;  %v3768_v46 = vadd.f32 %v3738_v25, %v12664_v6 }
 0x5b1   :  { %v13228_v29 = vsel %vm3800_vm14, %v3784_v12, %v10589_v58  ;;  %v4195_v13 = vpack.c.b16 %v4181_v27, %v4180_v15 }
 0x5b2   :  { %v3786_v51 = vadd.f32 %v13186_v21, %v3768_v46  ;;  %v4483_v37 = vrot.slane %v13228_v29, 2  ;;  %v4051_v56 = vrot.slane %v13228_v29, 7  ;;  %v4549_v14 = vrot.slane %v13228_v29, 3 }
 0x5b3   :  { %4204 = vrot.lane.b32.xlu1 %v4195_v13, %s11537_s0  ;;  %v4045_v46 = vrot.slane %v13199_v59, 7  ;;  %v3978_v13 = vrot.slane %v13194_v54, 6 }
 0x5b4   :  { %v3818_v38 = vmin.f32 %v3786_v51, 0.0  ;;  %v3739_v18 = vpop.f32.mrf.mxu3  ;;  %v4484_v6 = vsel %vm1180_vm9, %v4481_v3, %v4483_v37  ;;  %v4052_v36 = vsel %vm161_vm3, %v4049_v22, %v4051_v56  ;;  %vm3802_vm7 = vcmp.gt.f32.partialorder %v3786_v51, 0.0 }
 0x5b5   :  { %v3642_v33 = vpop.f32.mrf.mxu1  ;;  %v4529_v4 = vpack.c.bf16 %v4484_v6, %v4484_v6  ;;  %v4094_v5 = vpack.c.bf16 %v4052_v36, %v4052_v36  ;;  %v3980_v6 = vsel %vm765_vm15, %v3978_v13, %v3979_v35 }
 0x5b6   :  { %v11329_v7 = vpop.eup %11328  ;;  %v3840_v60 = vmul.f32 1.442695, %v3818_v38  ;;  %v3740_v55 = vadd.f32 %v3739_v18, %v3642_v33  ;;  %v4044_v18 = vrot.slane %v13194_v54, 7 }
 0x5b7   :  { %v10590_v52 = vadd.f32 -1.0, %v11329_v7  ;;  %v4667_v9 = vunpack.c.l.b16 %v4529_v4  ;;  %v4238_v63 = vunpack.c.l.b16 %v4094_v5 }
 0x5b8   :  { %11330 = vpow2.f32 %v3840_v60  ;;  %v3769_v28 = vadd.f32 %v3740_v55, %v12679_v62  ;;  %v4046_v4 = vsel %vm161_vm3, %v4044_v18, %v4045_v46 }
 0x5b9   :  { %v13242_v12 = vsel %vm3801_vm1, %v3785_v10, %v10590_v52  ;;  %v4681_v30 = vpack.c.b16 %v4667_v9, %v4666_v17  ;;  %v4477_v52 = vrot.slane %v13199_v59, 2  ;;  %v4025_v17 = vpack.c.bf16 %v3980_v6, %v3980_v6 }
 0x5ba   :  { %v3787_v40 = vadd.f32 %v13186_v21, %v3769_v28  ;;  %v4053_v24 = vrot.slane %v13242_v12, 7  ;;  %v4551_v1 = vrot.slane %v13242_v12, 3  ;;  %v4091_v36 = vpack.c.bf16 %v4046_v4, %v4046_v4 }
 0x5bb   :  { %4690 = vrot.lane.b32.xlu1 %v4681_v30, %s11537_s0  ;;  %v4480_v30 = vsel %vm1180_vm9, %v4477_v52, %v4479_v26  ;;  %v4047_v4 = vrot.slane %v13206_v53, 7 }
 0x5bc   :  { %v3819_v39 = vmin.f32 %v3787_v40, 0.0  ;;  %v13247_v48 = vpop.f32.mrf.mxu3  ;;  %v4054_v62 = vsel %vm161_vm3, %v4051_v56, %v4053_v24  ;;  %v4552_v3 = vsel %vm3293_vm13, %v4549_v14, %v4551_v1  ;;  %vm3803_vm8 = vcmp.gt.f32.partialorder %v3787_v40, 0.0 }
 0x5bd   :  { %v13253_v16 = vpop.f32.mrf.mxu1  ;;  %v4095_v31 = vpack.c.bf16 %v4054_v62, %v4054_v62  ;;  %v4596_v20 = vpack.c.bf16 %v4552_v3, %v4552_v3 }
 0x5be   :  { %v11331_v8 = vpop.eup %11330  ;;  %v3842_v10 = vmul.f32 1.442695, %v3819_v39 }
 0x5bf   :  { %v10591_v44 = vadd.f32 -1.0, %v11331_v8  ;;  %v4239_v45 = vunpack.c.l.b16 %v4095_v31  ;;  %v4724_v57 = vunpack.c.l.b16 %v4596_v20  ;;  %v4476_v8 = vrot.slane %v13194_v54, 2 }
 0x5c0   :  { %11332 = vpow2.f32 %v3842_v10  ;;  %v4527_v20 = vpack.c.bf16 %v4480_v30, %v4480_v30 }
 0x5c1   :  { %v13259_v41 = vsel %vm3802_vm7, %v3786_v51, %v10591_v44  ;;  %v4252_v43 = vpack.c.b16 %v4239_v45, %v4238_v63  ;;  %v4179_v44 = vunpack.c.l.b16 %v4025_v17  ;;  %v4542_v45 = vrot.slane %v13194_v54, 3 }
 0x5c2   :  { %v4553_v42 = vrot.slane %v13259_v41, 3  ;;  %v4112_v35 = vpack.c.bf16 %v13259_v41, %v13259_v41  ;;  %v4478_v26 = vsel %vm1180_vm9, %v4476_v8, %v4477_v52  ;;  %v4665_v52 = vunpack.c.l.b16 %v4527_v20 }
 0x5c3   :  { %4262 = vrot.lane.b32.xlu1 %v4252_v43, %s11538_s2  ;;  %v4235_v43 = vunpack.c.l.b16 %v4091_v36  ;;  %v3985_v20 = vrot.slane %v13228_v29, 6 }
 0x5c4   :  { %v3744_v25 = vpop.f32.mrf.mxu3  ;;  %v4554_v58 = vsel %vm3293_vm13, %v4551_v1, %v4553_v42  ;;  %v4543_v1 = vrot.slane %v13199_v59, 3  ;;  %v4296_v63 = vunpack.c.l.b16 %v4112_v35  ;;  %v4050_v35 = vsel %vm161_vm3, %v4047_v4, %v4049_v22 }
 0x5c5   :  { %v3647_v15 = vpop.f32.mrf.mxu1  ;;  %v4597_v27 = vpack.c.bf16 %v4554_v58, %v4554_v58  ;;  %v3987_v22 = vrot.slane %v13242_v12, 6 }
 0x5c6   :  { %v11333_v47 = vpop.eup %11332  ;;  %v3745_v36 = vadd.f32 %v3744_v25, %v3647_v15 }
 0x5c7   :  { %v10592_v51 = vadd.f32 -1.0, %v11333_v47  ;;  %v4725_v38 = vunpack.c.l.b16 %v4597_v27  ;;  %v4544_v47 = vsel %vm3293_vm13, %v4542_v45, %v4543_v1 }
 0x5c8   :  { %v4592_v6 = vpack.c.bf16 %v4544_v47, %v4544_v47  ;;  %v3771_v25 = vadd.f32 %v3745_v36, %v12844_v61  ;;  %v4485_v36 = vrot.slane %v13242_v12, 2 }
 0x5c9   :  { %v13272_v56 = vsel %vm3803_vm8, %v3787_v40, %v10592_v51  ;;  %v4738_v33 = vpack.c.b16 %v4725_v38, %v4724_v57  ;;  %v4526_v57 = vpack.c.bf16 %v4478_v26, %v4478_v26 }
 0x5ca   :  { %v3974_v7 = vrot.slane %v13272_v56, 6  ;;  %v4113_v60 = vpack.c.bf16 %v13272_v56, %v13272_v56  ;;  %v4040_v55 = vrot.slane %v13272_v56, 7  ;;  %v4720_v30 = vunpack.c.l.b16 %v4592_v6 }
 0x5cb   :  { %4748 = vrot.lane.b32.xlu1 %v4738_v33, %s11538_s2 }
 0x5cc   :  { %v3747_v9 = vpop.f32.mrf.mxu3  ;;  %v4022_v28 = vsel %vm765_vm15, %v3974_v7, %v3978_v13  ;;  %v4297_v39 = vunpack.c.l.b16 %v4113_v60  ;;  %v4088_v62 = vsel %vm161_vm3, %v4040_v55, %v4044_v18  ;;  %v4545_v13 = vrot.slane %v13206_v53, 3 }
 0x5cd   :  { %v3650_v40 = vpop.f32.mrf.mxu1  ;;  %v4024_v5 = vpack.c.bf16 %v4022_v28, %v4022_v28  ;;  %v4090_v31 = vpack.c.bf16 %v4088_v62, %v4088_v62  ;;  %v4664_v28 = vunpack.c.l.b16 %v4526_v57  ;;  %v4093_v62 = vpack.c.bf16 %v4050_v35, %v4050_v35 }
 0x5ce   :  { %v4309_v27 = vpack.c.b16 %v4297_v39, %v4296_v63  ;;  %v4546_v38 = vsel %vm3293_vm13, %v4543_v1, %v4545_v13  ;;  %v13332_v57 = vadd.f32 %v13186_v21, %v3771_v25 }
 0x5cf   :  { %v4178_v10 = vunpack.c.l.b16 %v4024_v5  ;;  %v4234_v3 = vunpack.c.l.b16 %v4090_v31  ;;  %v4593_v33 = vpack.c.bf16 %v4546_v38, %v4546_v38  ;;  %v4048_v5 = vsel %vm161_vm3, %v4045_v46, %v4047_v4 }
 0x5d0   :  { %v4680_v39 = vpack.c.b16 %v4665_v52, %v4664_v28  ;;  %v4092_v63 = vpack.c.bf16 %v4048_v5, %v4048_v5  ;;  %v4108_v46 = vpack.c.bf16 %v13206_v53, %v13206_v53  ;;  %v4237_v26 = vunpack.c.l.b16 %v4093_v62 }
 0x5d1   :  { %v4194_v58 = vpack.c.b16 %v4179_v44, %v4178_v10  ;;  %v4250_v51 = vpack.c.b16 %v4235_v43, %v4234_v3  ;;  %v4721_v17 = vunpack.c.l.b16 %v4593_v33  ;;  %v4109_v10 = vpack.c.bf16 %v13215_v50, %v13215_v50 }
 0x5d2   :  { %v3743_v44 = vadd.f32 %v13247_v48, %v13253_v16  ;;  %v4547_v3 = vrot.slane %v13215_v50, 3  ;;  %v3748_v48 = vadd.f32 %v3747_v9, %v3650_v40  ;;  %v4236_v47 = vunpack.c.l.b16 %v4092_v63 }
 0x5d3   :  { %4202 = vrot.lane.b32.xlu2 %v4194_v58, %s11537_s0  ;;  %4320 = vrot.lane.b32.xlu1 %v4309_v27, %s11539_s15  ;;  %v4736_v31 = vpack.c.b16 %v4721_v17, %v4720_v30  ;;  %v4293_v58 = vunpack.c.l.b16 %v4109_v10  ;;  %v4292_v38 = vunpack.c.l.b16 %v4108_v46  ;;  %v3821_v52 = vmin.f32 %v13332_v57, 0.0 }
 0x5d4   :  { %4258 = vrot.lane.b32.xlu0 %v4250_v51, %s11538_s2  ;;  %v3749_v18 = vpop.f32.mrf.mxu3  ;;  %v4550_v61 = vsel %vm3293_vm13, %v4547_v3, %v4549_v14  ;;  %v3770_v27 = vadd.f32 %v3743_v44, %v12840_v19  ;;  %v3988_v51 = vsel %vm765_vm15, %v3985_v20, %v3987_v22  ;;  %v4548_v9 = vsel %vm3293_vm13, %v4545_v13, %v4547_v3 }
 0x5d5   :  { %v3652_v60 = vpop.f32.mrf.mxu1  ;;  %v4251_v40 = vpack.c.b16 %v4237_v26, %v4236_v47  ;;  %v3772_v14 = vadd.f32 %v3748_v48, %v12860_v49  ;;  %v4307_v6 = vpack.c.b16 %v4293_v58, %v4292_v38  ;;  %v4029_v33 = vpack.c.bf16 %v3988_v51, %v3988_v51  ;;  %v11134_v51 = vld [vmem:[%s16960_s3 + $0x1a8] sm:$0xff] }
 0x5d6   :  { %v3750_v1 = vadd.f32 %v3749_v18, %v3652_v60  ;;  %v3986_v18 = vsel %vm765_vm15, %v3983_v2, %v3985_v20  ;;  %v13343_v4 = vadd.f32 %v13186_v21, %v3770_v27  ;;  %v4594_v60 = vpack.c.bf16 %v4548_v9, %v4548_v9  ;;  %4866 = vmatpush.bf16.msra.mxu0 %v11134_v51 }
 0x5d7   :  { %v4487_v13 = vrot.slane %v13259_v41, 2  ;;  %v4028_v49 = vpack.c.bf16 %v3986_v18, %v3986_v18  ;;  %v13351_v30 = vadd.f32 %v13186_v21, %v3772_v14  ;;  %v3846_v10 = vmul.f32 1.442695, %v3821_v52 }
 0x5d8   :  { %v3773_v16 = vadd.f32 %v3750_v1, %v12852_v0  ;;  %v4595_v0 = vpack.c.bf16 %v4550_v61, %v4550_v61  ;;  %v3820_v62 = vmin.f32 %v13343_v4, 0.0  ;;  %v4722_v1 = vunpack.c.l.b16 %v4594_v60 }
 0x5d9   :  { %v4182_v63 = vunpack.c.l.b16 %v4028_v49  ;;  %v4111_v46 = vpack.c.bf16 %v13242_v12, %v13242_v12  ;;  %v4486_v3 = vsel %vm1180_vm9, %v4483_v37, %v4485_v36  ;;  %v3822_v26 = vmin.f32 %v13351_v30, 0.0 }
 0x5da   :  { %v13340_v19 = vadd.f32 %v13186_v21, %v3773_v16  ;;  %v4723_v28 = vunpack.c.l.b16 %v4595_v0  ;;  %v4110_v58 = vpack.c.bf16 %v13228_v29, %v13228_v29  ;;  %11334 = vpow2.f32 %v3846_v10 }
 0x5db   :  { %4688 = vrot.lane.b32.xlu2 %v4680_v39, %s11537_s0  ;;  %v4183_v39 = vunpack.c.l.b16 %v4029_v33  ;;  %v4530_v27 = vpack.c.bf16 %v4486_v3, %v4486_v3  ;;  %v3989_v47 = vrot.slane %v13259_v41, 6  ;;  %v4055_v0 = vrot.slane %v13259_v41, 7 }
 0x5dc   :  { %4744 = vrot.lane.b32.xlu0 %v4736_v31, %s11538_s2  ;;  %v3752_v15 = vpop.f32.mrf.mxu3  ;;  %v3823_v5 = vmin.f32 %v13340_v19, 0.0  ;;  %v4488_v31 = vsel %vm1180_vm9, %v4485_v36, %v4487_v13  ;;  %v3848_v18 = vmul.f32 1.442695, %v3822_v26  ;;  %v4294_v33 = vunpack.c.l.b16 %v4110_v58 }
 0x5dd   :  { %v3655_v43 = vpop.f32.mrf.mxu1  ;;  %v4196_v48 = vpack.c.b16 %v4183_v39, %v4182_v63  ;;  %v4531_v16 = vpack.c.bf16 %v4488_v31, %v4488_v31  ;;  %v4057_v60 = vsel %vm161_vm3, %v4055_v0, %v4040_v55  ;;  %v4668_v52 = vunpack.c.l.b16 %v4530_v27 }
 0x5de   :  { %v3753_v17 = vadd.f32 %v3752_v15, %v3655_v43  ;;  %v4737_v15 = vpack.c.b16 %v4723_v28, %v4722_v1  ;;  %v11128_v43 = vld [vmem:[%s16960_s3 + $0x178] sm:$0xff]  ;;  %v3850_v20 = vmul.f32 1.442695, %v3823_v5  ;;  %v4097_v36 = vpack.c.bf16 %v4057_v60, %v4057_v60 }
 0x5df   :  { %4961 = vmatpush.bf16.msra.mxu2 %v11128_v43  ;;  %v4669_v14 = vunpack.c.l.b16 %v4531_v16  ;;  %v4489_v5 = vrot.slane %v13272_v56, 2  ;;  %vm3804_vm10 = vcmp.gt.f32.partialorder %v13343_v4, 0.0  ;;  %vm3805_vm11 = vcmp.gt.f32.partialorder %v13332_v57, 0.0 }
 0x5e0   :  { %v3774_v44 = vadd.f32 %v3753_v17, %v12886_v23  ;;  %v3844_v23 = vmul.f32 1.442695, %v3820_v62  ;;  %11336 = vpow2.f32 %v3850_v20  ;;  %v3990_v17 = vsel %vm765_vm15, %v3987_v22, %v3989_v47  ;;  %v11335_v28 = vpop.eup %11334 }
 0x5e1   :  { %v4682_v55 = vpack.c.b16 %v4669_v14, %v4668_v52  ;;  %v4030_v39 = vpack.c.bf16 %v3990_v17, %v3990_v17  ;;  %v4555_v22 = vrot.slane %v13272_v56, 3  ;;  %v10594_v63 = vadd.f32 -1.0, %v11335_v28 }
 0x5e2   :  { %v13372_v61 = vadd.f32 %v13186_v21, %v3774_v44  ;;  %11338 = vpow2.f32 %v3844_v23  ;;  %v4241_v26 = vunpack.c.l.b16 %v4097_v36  ;;  %v4490_v20 = vsel %vm1180_vm9, %v4487_v13, %v4489_v5 }
 0x5e3   :  { %4260 = vrot.lane.b32.xlu2 %v4251_v40, %s11538_s2  ;;  %v4295_v40 = vunpack.c.l.b16 %v4111_v46  ;;  %11340 = vpow2.f32 %v3848_v18  ;;  %v4184_v23 = vunpack.c.l.b16 %v4030_v39  ;;  %v4556_v58 = vsel %vm3293_vm13, %v4553_v42, %v4555_v22 }
 0x5e4   :  { %4316 = vrot.lane.b32.xlu0 %v4307_v6, %s11539_s15  ;;  %v3754_v2 = vpop.f32.mrf.mxu3  ;;  %v3991_v6 = vsel %vm765_vm15, %v3989_v47, %v3974_v7  ;;  %v4056_v7 = vsel %vm161_vm3, %v4053_v24, %v4055_v0  ;;  %v11127_v24 = vld [vmem:[%s16960_s3 + $0x170] sm:$0xff]  ;;  %v4598_v42 = vpack.c.bf16 %v4556_v58, %v4556_v58  ;;  %vm3806_vm12 = vcmp.gt.f32.partialorder %v13351_v30, 0.0 }
 0x5e5   :  { %v3657_v35 = vpop.f32.mrf.mxu1  ;;  %v4308_v49 = vpack.c.b16 %v4295_v40, %v4294_v33  ;;  %v4096_v44 = vpack.c.bf16 %v4056_v7, %v4056_v7  ;;  %4962 = vmatpush.bf16.msra.mxu2 %v11127_v24  ;;  %vm3807_vm14 = vcmp.gt.f32.partialorder %v13340_v19, 0.0  ;;  %v13433_v33 = vsel %vm3805_vm11, %v13332_v57, %v10594_v63 }
 0x5e6   :  { %v3755_v25 = vadd.f32 %v3754_v2, %v3657_v35  ;;  %v4031_v35 = vpack.c.bf16 %v3991_v6, %v3991_v6  ;;  %v11337_v62 = vpop.eup %11336  ;;  %vm3808_vm1 = vcmp.gt.f32.partialorder %v13372_v61, 0.0 }
 0x5e7   :  { %v10596_v16 = vadd.f32 -1.0, %v11337_v62  ;;  %v4240_v51 = vunpack.c.l.b16 %v4096_v44  ;;  %v4059_v62 = vrot.slane %v13433_v33, 7 }
 0x5e8   :  { %v3775_v38 = vadd.f32 %v3755_v25, %v12916_v11  ;;  %v3824_v11 = vmin.f32 %v13372_v61, 0.0  ;;  %v4185_v46 = vunpack.c.l.b16 %v4031_v35  ;;  %v11339_v3 = vpop.eup %11338  ;;  %v4726_v35 = vunpack.c.l.b16 %v4598_v42 }
 0x5e9   :  { %v11341_v27 = vpop.eup %11340  ;;  %v4253_v18 = vpack.c.b16 %v4241_v26, %v4240_v51  ;;  %v13436_v60 = vsel %vm3807_vm14, %v13340_v19, %v10596_v16  ;;  %v4115_v19 = vpack.c.bf16 %v13433_v33, %v13433_v33  ;;  %v11133_v26 = vld [vmem:[%s16960_s3 + $0x1a0] sm:$0xff]  ;;  %vm5160_vm14 = vcmask 1043456  }
 0x5ea   :  { %v13392_v2 = vadd.f32 %v13186_v21, %v3775_v38  ;;  %v3852_v1 = vmul.f32 1.442695, %v3824_v11  ;;  %v10595_v6 = vadd.f32 -1.0, %v11341_v27  ;;  %4867 = vmatpush.bf16.msra.mxu0 %v11133_v26  ;;  %v4496_v42 = vrot.slane %v13436_v60, 2 }
 0x5eb   :  { %4746 = vrot.lane.b32.xlu2 %v4737_v15, %s11538_s2 }
 0x5ec   :  { %4206 = vrot.lane.b32.xlu0 %v4196_v48, %s11537_s0  ;;  %v3757_v37 = vpop.f32.mrf.mxu3  ;;  %v3825_v25 = vmin.f32 %v13392_v2, 0.0  ;;  %v4524_v48 = vsel %vm1180_vm9, %v4489_v5, %v4476_v8  ;;  %11342 = vpow2.f32 %v3852_v1  ;;  %v4197_v8 = vpack.c.b16 %v4185_v46, %v4184_v23 }
 0x5ed   :  { %v3660_v9 = vpop.f32.mrf.mxu1  ;;  %v4533_v40 = vpack.c.bf16 %v4524_v48, %v4524_v48  ;;  %v13444_v28 = vsel %vm3806_vm12, %v13351_v30, %v10595_v6  ;;  %v3993_v30 = vrot.slane %v13433_v33, 6  ;;  %vm3809_vm7 = vcmp.gt.f32.partialorder %v13392_v2, 0.0 }
 0x5ee   :  { %v3758_v31 = vadd.f32 %v3757_v37, %v3660_v9  ;;  %v4590_v37 = vsel %vm3293_vm13, %v4555_v22, %v4542_v45  ;;  %v3854_v38 = vmul.f32 1.442695, %v3825_v25  ;;  %v4532_v9 = vpack.c.bf16 %v4490_v20, %v4490_v20  ;;  %v11126_v20 = vld [vmem:[%s16960_s3 + $0x168] sm:$0xff] }
 0x5ef   :  { %v4599_v14 = vpack.c.bf16 %v4590_v37, %v4590_v37  ;;  %v10593_v45 = vadd.f32 -1.0, %v11339_v3  ;;  %v4671_v52 = vunpack.c.l.b16 %v4533_v40  ;;  %4963 = vmatpush.bf16.msra.mxu2 %v11126_v20  ;;  %v4558_v6 = vrot.slane %v13433_v33, 3 }
 0x5f0   :  { %v3776_v47 = vadd.f32 %v3758_v31, %v12940_v34  ;;  %v4670_v11 = vunpack.c.l.b16 %v4532_v9  ;;  %11344 = vpow2.f32 %v3854_v38  ;;  %v4560_v9 = vrot.slane %v13444_v28, 3 }
 0x5f1   :  { %v4727_v7 = vunpack.c.l.b16 %v4599_v14 }
 0x5f2   :  { %v11343_v17 = vpop.eup %11342  ;;  %v4683_v5 = vpack.c.b16 %v4671_v52, %v4670_v11 }
 0x5f3   :  { %4318 = vrot.lane.b32.xlu2 %v4308_v49, %s11539_s15  ;;  %v10597_v36 = vadd.f32 -1.0, %v11343_v17  ;;  %v4739_v39 = vpack.c.b16 %v4727_v7, %v4726_v35  ;;  %v4561_v7 = vsel %vm3293_vm13, %v4558_v6, %v4560_v9 }
 0x5f4   :  { %4692 = vrot.lane.b32.xlu0 %v4682_v55, %s11537_s0  ;;  %v3759_v10 = vpop.f32.mrf.mxu3  ;;  %v3997_v55 = vrot.slane %v13436_v60, 6 }
 0x5f5   :  { %v3662_v15 = vpop.f32.mrf.mxu1  ;;  %v13463_v63 = vsel %vm3808_vm1, %v13372_v61, %v10597_v36 }
 0x5f6   :  { %v3760_v43 = vadd.f32 %v3759_v10, %v3662_v15  ;;  %v11345_v1 = vpop.eup %11344  ;;  %v4299_v10 = vunpack.c.l.b16 %v4115_v19 }
 0x5f7   :  { %v10598_v61 = vadd.f32 -1.0, %v11345_v1 }
 0x5f8   :  { %v3777_v13 = vadd.f32 %v3760_v43, %v12890_v32  ;;  %v13428_v32 = vadd.f32 %v13186_v21, %v3776_v47 }
 0x5f9   :  { %v13490_v40 = vsel %vm3809_vm7, %v13392_v2, %v10598_v61 }
 0x5fa   :  { %v13420_v0 = vadd.f32 %v13186_v21, %v3777_v13  ;;  %v13441_v21 = vsel %vm3804_vm10, %v13343_v4, %v10593_v45  ;;  %v3826_v57 = vmin.f32 %v13428_v32, 0.0  ;;  %v3995_v4 = vrot.slane %v13444_v28, 6 }
 0x5fb   :  { %4208 = vrot.lane.b32.xlu2 %v4197_v8, %s11537_s0  ;;  %v4114_v22 = vpack.c.bf16 %v13441_v21, %v13441_v21  ;;  %v4058_v24 = vrot.slane %v13441_v21, 7  ;;  %v3992_v43 = vrot.slane %v13441_v21, 6  ;;  %v4498_v13 = vrot.slane %v13463_v63, 2 }
 0x5fc   :  { %v3827_v34 = vmin.f32 %v13420_v0, 0.0  ;;  %4264 = vrot.lane.b32.xlu0 %v4253_v18, %s11538_s2  ;;  %v3856_v31 = vmul.f32 1.442695, %v3826_v57  ;;  %v3998_v44 = vsel %vm765_vm15, %v3995_v4, %v3997_v55  ;;  %v3996_v46 = vsel %vm765_vm15, %v3993_v30, %v3995_v4 }
 0x5fd   :  { %v4298_v15 = vunpack.c.l.b16 %v4114_v22  ;;  %v4060_v3 = vsel %vm161_vm3, %v4058_v24, %v4059_v62  ;;  %v4035_v16 = vpack.c.bf16 %v3998_v44, %v3998_v44  ;;  %vm3811_vm8 = vcmp.gt.f32.partialorder %v13420_v0, 0.0 }
 0x5fe   :  { %v3858_v49 = vmul.f32 1.442695, %v3827_v34  ;;  %v3994_v58 = vsel %vm765_vm15, %v3992_v43, %v3993_v30  ;;  %v4034_v27 = vpack.c.bf16 %v3996_v46, %v3996_v46  ;;  %v4099_v47 = vpack.c.bf16 %v4060_v3, %v4060_v3 }
 0x5ff   :  { %v4310_v23 = vpack.c.b16 %v4299_v10, %v4298_v15  ;;  %v4494_v8 = vrot.slane %v13444_v28, 2  ;;  %v4189_v18 = vunpack.c.l.b16 %v4035_v16  ;;  %v4492_v34 = vrot.slane %v13433_v33, 2 }
 0x600   :  { %11346 = vpow2.f32 %v3858_v49  ;;  %v4243_v11 = vunpack.c.l.b16 %v4099_v47  ;;  %v4499_v17 = vsel %vm1180_vm9, %v4496_v42, %v4498_v13  ;;  %v4557_v35 = vrot.slane %v13441_v21, 3 }
 0x601   :  { %11348 = vpow2.f32 %v3856_v31  ;;  %v4491_v57 = vrot.slane %v13441_v21, 2  ;;  %v4495_v19 = vsel %vm1180_vm9, %v4492_v34, %v4494_v8  ;;  %v4497_v22 = vsel %vm1180_vm9, %v4494_v8, %v4496_v42  ;;  %v11132_v42 = vld [vmem:[%s16960_s3 + $0x198] sm:$0xff] }
 0x602   :  { %v4188_v4 = vunpack.c.l.b16 %v4034_v27  ;;  %v4537_v30 = vpack.c.bf16 %v4499_v17, %v4499_v17  ;;  %v4559_v1 = vsel %vm3293_vm13, %v4557_v35, %v4558_v6  ;;  %v4536_v46 = vpack.c.bf16 %v4497_v22, %v4497_v22  ;;  %4868 = vmatpush.bf16.msra.mxu0 %v11132_v42 }
 0x603   :  { %4694 = vrot.lane.b32.xlu2 %v4683_v5, %s11537_s0  ;;  %v4493_v31 = vsel %vm1180_vm9, %v4491_v57, %v4492_v34  ;;  %v4063_v3 = vrot.slane %v13436_v60, 7  ;;  %v4067_v20 = vrot.slane %v13490_v40, 7  ;;  %v4061_v16 = vrot.slane %v13444_v28, 7 }
 0x604   :  { %4750 = vrot.lane.b32.xlu0 %v4739_v39, %s11538_s2  ;;  %v4199_v15 = vpack.c.b16 %v4189_v18, %v4188_v4  ;;  %v4534_v26 = vpack.c.bf16 %v4493_v31, %v4493_v31  ;;  %v4065_v47 = vrot.slane %v13463_v63, 7  ;;  %v4674_v8 = vunpack.c.l.b16 %v4536_v46  ;;  %v11123_v4 = vld [vmem:[%s16960_s3 + $0x150] sm:$0xff] }
 0x605   :  { %v4064_v18 = vsel %vm161_vm3, %v4061_v16, %v4063_v3  ;;  %vm3810_vm10 = vcmp.gt.f32.partialorder %v13428_v32, 0.0  ;;  %v3999_v31 = vrot.slane %v13463_v63, 6 }
 0x606   :  { %v11347_v25 = vpop.eup %11346  ;;  %v4068_v6 = vsel %vm161_vm3, %v4065_v47, %v4067_v20 }
 0x607   :  { %v10600_v48 = vadd.f32 -1.0, %v11347_v25  ;;  %v11349_v49 = vpop.eup %11348  ;;  %v4535_v25 = vpack.c.bf16 %v4495_v19, %v4495_v19  ;;  %v4101_v19 = vpack.c.bf16 %v4064_v18, %v4064_v18 }
 0x608   :  { %v10599_v61 = vadd.f32 -1.0, %v11349_v49 }
 0x609   :  { %v13480_v37 = vsel %vm3811_vm8, %v13420_v0, %v10600_v48  ;;  %v4033_v0 = vpack.c.bf16 %v3994_v58, %v3994_v58  ;;  %v4675_v48 = vunpack.c.l.b16 %v4537_v30  ;;  %v4673_v27 = vunpack.c.l.b16 %v4535_v25 }
 0x60a   :  { %v4041_v51 = vrot.slane %v13480_v37, 7  ;;  %v3975_v38 = vrot.slane %v13480_v37, 6  ;;  %v13540_v34 = vsel %vm3810_vm10, %v13428_v32, %v10599_v61  ;;  %v4001_v32 = vrot.slane %v13490_v40, 6 }
 0x60b   :  { %v4187_v39 = vunpack.c.l.b16 %v4033_v0  ;;  %v11124_v0 = vld [vmem:[%s16960_s3 + $0x158] sm:$0xff]  ;;  %v4568_v22 = vrot.slane %v13540_v34, 3 }
 0x60c   :  { %4322 = vrot.lane.b32.xlu0 %v4310_v23, %s11539_s15  ;;  %v4089_v14 = vsel %vm161_vm3, %v4041_v51, %v4058_v24  ;;  %v4023_v45 = vsel %vm765_vm15, %v3975_v38, %v3992_v43  ;;  %v4601_v24 = vpack.c.bf16 %v4561_v7, %v4561_v7  ;;  %v4600_v43 = vpack.c.bf16 %v4559_v1, %v4559_v1  ;;  %v11125_v23 = vld [vmem:[%s16960_s3 + $0x160] sm:$0xff] }
 0x60d   :  { %v4098_v2 = vpack.c.bf16 %v4089_v14, %v4089_v14  ;;  %v4032_v52 = vpack.c.bf16 %v4023_v45, %v4023_v45  ;;  %4964 = vmatpush.bf16.msra.mxu2 %v11125_v23  ;;  %v4672_v45 = vunpack.c.l.b16 %v4534_v26  ;;  %v4066_v7 = vsel %vm161_vm3, %v4063_v3, %v4065_v47 }
 0x60e   :  { %v4729_v58 = vunpack.c.l.b16 %v4601_v24  ;;  %v4728_v14 = vunpack.c.l.b16 %v4600_v43  ;;  %v4102_v30 = vpack.c.bf16 %v4066_v7, %v4066_v7  ;;  %v4566_v24 = vrot.slane %v13490_v40, 3  ;;  %v11122_v43 = vld [vmem:[%s16960_s3 + $0x148] sm:$0xff] }
 0x60f   :  { %v4242_v36 = vunpack.c.l.b16 %v4098_v2  ;;  %v4186_v5 = vunpack.c.l.b16 %v4032_v52  ;;  %v4685_v2 = vpack.c.b16 %v4675_v48, %v4674_v8  ;;  %v4062_v52 = vsel %vm161_vm3, %v4059_v62, %v4061_v16 }
 0x610   :  { %v4740_v17 = vpack.c.b16 %v4729_v58, %v4728_v14  ;;  %v4684_v49 = vpack.c.b16 %v4673_v27, %v4672_v45  ;;  %v4100_v62 = vpack.c.bf16 %v4062_v52, %v4062_v52  ;;  %v4002_v46 = vsel %vm765_vm15, %v3999_v31, %v4001_v32 }
 0x611   :  { %v4254_v10 = vpack.c.b16 %v4243_v11, %v4242_v36  ;;  %v4198_v44 = vpack.c.b16 %v4187_v39, %v4186_v5  ;;  %v4117_v11 = vpack.c.bf16 %v13436_v60, %v13436_v60  ;;  %v4103_v36 = vpack.c.bf16 %v4068_v6, %v4068_v6  ;;  %4965 = vmatpush.bf16.msra.mxu2 %v11124_v0  ;;  %v11121_v6 = vld [vmem:[%s16960_s3 + $0x140] sm:$0xff] }
 0x612   :  { %v4116_v5 = vpack.c.bf16 %v13444_v28, %v13444_v28  ;;  %v4564_v39 = vrot.slane %v13463_v63, 3  ;;  %v4244_v26 = vunpack.c.l.b16 %v4100_v62  ;;  %v4569_v61 = vsel %vm3293_vm13, %v4566_v24, %v4568_v22 }
 0x613   :  { %4266 = vrot.lane.b32.xlu2 %v4254_v10, %s11538_s2  ;;  %4210 = vrot.lane.b32.xlu1 %v4198_v44, %s11537_s0  ;;  %v4301_v1 = vunpack.c.l.b16 %v4117_v11  ;;  %v4562_v10 = vrot.slane %v13436_v60, 3  ;;  %v4245_v44 = vunpack.c.l.b16 %v4101_v19  ;;  %v4247_v25 = vunpack.c.l.b16 %v4103_v36 }
 0x614   :  { %4212 = vrot.lane.b32.xlu0 %v4199_v15, %s11537_s0  ;;  %v4300_v15 = vunpack.c.l.b16 %v4116_v5  ;;  %v4246_v48 = vunpack.c.l.b16 %v4102_v30  ;;  %v4000_v23 = vsel %vm765_vm15, %v3997_v55, %v3999_v31  ;;  %v4037_v47 = vpack.c.bf16 %v4002_v46, %v4002_v46 }
 0x615   :  { %v4565_v3 = vsel %vm3293_vm13, %v4562_v10, %v4564_v39  ;;  %4966 = vmatpush.bf16.msra.mxu2 %v11123_v4  ;;  %v4563_v58 = vsel %vm3293_vm13, %v4560_v9, %v4562_v10  ;;  %v4255_v27 = vpack.c.b16 %v4245_v44, %v4244_v26  ;;  %v4567_v18 = vsel %vm3293_vm13, %v4564_v39, %v4566_v24  ;;  %v11131_v9 = vld [vmem:[%s16960_s3 + $0x190] sm:$0xff]  ;;  %v11130_v4 = vld [vmem:[%s16960_s3 + $0x188] sm:$0xff] }
 0x616   :  { %v4311_v16 = vpack.c.b16 %v4301_v1, %v4300_v15  ;;  %v4603_v8 = vpack.c.bf16 %v4565_v3, %v4565_v3  ;;  %v4256_v0 = vpack.c.b16 %v4247_v25, %v4246_v48  ;;  %v4605_v42 = vpack.c.bf16 %v4569_v61, %v4569_v61  ;;  %4869 = vmatpush.bf16.msra.mxu0 %v11131_v9  ;;  %v11129_v25 = vld [vmem:[%s16960_s3 + $0x180] sm:$0xff] }
 0x617   :  { %v4502_v14 = vrot.slane %v13540_v34, 2  ;;  %v4036_v45 = vpack.c.bf16 %v4000_v23, %v4000_v23  ;;  %v4602_v55 = vpack.c.bf16 %v4563_v58, %v4563_v58  ;;  %v4500_v11 = vrot.slane %v13490_v40, 2 }
 0x618   :  { %v4191_v52 = vunpack.c.l.b16 %v4037_v47  ;;  %v4119_v39 = vpack.c.bf16 %v13490_v40, %v13490_v40  ;;  %v4118_v44 = vpack.c.bf16 %v13463_v63, %v13463_v63  ;;  %v4121_v24 = vpack.c.bf16 %v13480_v37, %v13480_v37 }
 0x619   :  { %4967 = vmatpush.bf16.msra.mxu2 %v11122_v43  ;;  %v4503_v7 = vsel %vm1180_vm9, %v4500_v11, %v4502_v14  ;;  %v4190_v19 = vunpack.c.l.b16 %v4036_v45  ;;  %v4730_v36 = vunpack.c.l.b16 %v4602_v55  ;;  %v4501_v62 = vsel %vm1180_vm9, %v4498_v13, %v4500_v11 }
 0x61a   :  { %v4539_v31 = vpack.c.bf16 %v4503_v7, %v4503_v7  ;;  %4870 = vmatpush.bf16.msra.mxu0 %v11130_v4  ;;  %v4538_v13 = vpack.c.bf16 %v4501_v62, %v4501_v62  ;;  %v4303_v15 = vunpack.c.l.b16 %v4119_v39  ;;  %v4120_v46 = vpack.c.bf16 %v13540_v34, %v13540_v34 }
 0x61b   :  { %4752 = vrot.lane.b32.xlu2 %v4740_v17, %s11538_s2  ;;  %4696 = vrot.lane.b32.xlu1 %v4684_v49, %s11537_s0  ;;  %v4731_v17 = vunpack.c.l.b16 %v4603_v8  ;;  %v4733_v49 = vunpack.c.l.b16 %v4605_v42  ;;  %v4200_v30 = vpack.c.b16 %v4191_v52, %v4190_v19  ;;  %v4069_v3 = vrot.slane %v13540_v34, 7 }
 0x61c   :  { %4698 = vrot.lane.b32.xlu0 %v4685_v2, %s11537_s0  ;;  %v4604_v2 = vpack.c.bf16 %v4567_v18, %v4567_v18  ;;  %v4003_v43 = vrot.slane %v13540_v34, 6  ;;  %v4677_v26 = vunpack.c.l.b16 %v4539_v31  ;;  %v4302_v61 = vunpack.c.l.b16 %v4118_v44 }
 0x61d   :  { %4968 = vmatpush.bf16.msra.mxu2 %v11121_v6  ;;  %v4741_v1 = vpack.c.b16 %v4731_v17, %v4730_v36  ;;  %v4305_v48 = vunpack.c.l.b16 %v4121_v24  ;;  %v4676_v58 = vunpack.c.l.b16 %v4538_v13  ;;  %v4304_v47 = vunpack.c.l.b16 %v4120_v46 }
 0x61e   :  { %v4732_v5 = vunpack.c.l.b16 %v4604_v2  ;;  %v4005_v23 = vsel %vm765_vm15, %v4003_v43, %v3975_v38  ;;  %4871 = vmatpush.bf16.msra.mxu0 %v11129_v25  ;;  %v4070_v8 = vsel %vm161_vm3, %v4067_v20, %v4069_v3  ;;  %v4004_v18 = vsel %vm765_vm15, %v4001_v32, %v4003_v43 }
 0x61f   :  { %v4039_v45 = vpack.c.bf16 %v4005_v23, %v4005_v23  ;;  %v4313_v55 = vpack.c.b16 %v4305_v48, %v4304_v47  ;;  %v4504_v38 = vrot.slane %v13480_v37, 2  ;;  %v4104_v9 = vpack.c.bf16 %v4070_v8, %v4070_v8 }
 0x620   :  { %v4742_v10 = vpack.c.b16 %v4733_v49, %v4732_v5  ;;  %v4038_v6 = vpack.c.bf16 %v4004_v18, %v4004_v18  ;;  %v3894_v20 = vrot.slane %v13272_v56, 5  ;;  %v3912_v17 = vrot.slane %v13194_v54, 5 }
 0x621   :  { %v4193_v32 = vunpack.c.l.b16 %v4039_v45  ;;  %v4505_v49 = vsel %vm1180_vm9, %v4502_v14, %v4504_v38  ;;  %v4525_v7 = vsel %vm1180_vm9, %v4504_v38, %v4491_v57  ;;  %v3913_v19 = vrot.slane %v13199_v59, 5  ;;  %v4315_v45 = vpop.permute.xlu1 %4314 }
 0x622   :  { %v4248_v36 = vunpack.c.l.b16 %v4104_v9  ;;  %v4192_v5 = vunpack.c.l.b16 %v4038_v6  ;;  %v4413_v31 = vrot.slane %v13206_v53, 1  ;;  %v4411_v46 = vrot.slane %v13199_v59, 1 }
 0x623   :  { %4324 = vrot.lane.b32.xlu2 %v4311_v16, %s11539_s15  ;;  %4268 = vrot.lane.b32.xlu1 %v4255_v27, %s11538_s2  ;;  %v4071_v16 = vsel %vm161_vm3, %v4069_v3, %v4041_v51  ;;  %v4312_v27 = vpack.c.b16 %v4303_v15, %v4302_v61  ;;  %v4570_v51 = vrot.slane %v13480_v37, 3  ;;  %v3914_v14 = vsel %vm88_vm0, %v3912_v17, %v3913_v19 }
 0x624   :  { %4270 = vrot.lane.b32.xlu0 %v4256_v0, %s11538_s2  ;;  %v4686_v0 = vpack.c.b16 %v4677_v26, %v4676_v58  ;;  %v4105_v42 = vpack.c.bf16 %v4071_v16, %v4071_v16  ;;  %v4201_v4 = vpack.c.b16 %v4193_v32, %v4192_v5  ;;  %v3959_v13 = vpack.c.bf16 %v3914_v14, %v3914_v14 }
 0x625   :  { %v4571_v11 = vsel %vm3293_vm13, %v4568_v22, %v4570_v51  ;;  %v4591_v52 = vsel %vm3293_vm13, %v4570_v51, %v4557_v35  ;;  %v3956_v22 = vsel %vm88_vm0, %v3894_v20, %v3912_v17  ;;  %v4410_v43 = vrot.slane %v13194_v54, 1 }
 0x626   :  { %v4249_v2 = vunpack.c.l.b16 %v4105_v42  ;;  %v4606_v39 = vpack.c.bf16 %v4571_v11, %v4571_v11  ;;  %v4607_v35 = vpack.c.bf16 %v4591_v52, %v4591_v52  ;;  %v3958_v57 = vpack.c.bf16 %v3956_v22, %v3956_v22 }
 0x627   :  { %v4414_v26 = vsel %vm240_vm2, %v4411_v46, %v4413_v31  ;;  %v4139_v16 = vunpack.c.l.b16 %v3959_v13  ;;  %v4412_v23 = vsel %vm240_vm2, %v4410_v43, %v4411_v46  ;;  %v3917_v58 = vrot.slane %v13215_v50, 5 }
 0x628   :  { %v4257_v62 = vpack.c.b16 %v4249_v2, %v4248_v36  ;;  %v4735_v44 = vunpack.c.l.b16 %v4607_v35  ;;  %v4138_v3 = vunpack.c.l.b16 %v3958_v57  ;;  %v4461_v47 = vpack.c.bf16 %v4414_v26, %v4414_v26 }
 0x629   :  { %v3915_v8 = vrot.slane %v13206_v53, 5  ;;  %v4205_v22 = vpop.permute.xlu1 %4204  ;;  %v3919_v57 = vrot.slane %v13228_v29, 5 }
 0x62a   :  { %v4625_v38 = vunpack.c.l.b16 %v4461_v47 }
 0x62b   :  { %4214 = vrot.lane.b32.xlu2 %v4200_v30, %s11537_s0  ;;  %4754 = vrot.lane.b32.xlu1 %v4741_v1, %s11538_s2  ;;  %v4540_v30 = vpack.c.bf16 %v4505_v49, %v4505_v49  ;;  %v4541_v1 = vpack.c.bf16 %v4525_v7, %v4525_v7  ;;  %v3916_v2 = vsel %vm88_vm0, %v3913_v19, %v3915_v8  ;;  %v4417_v49 = vrot.slane %v13228_v29, 1 }
 0x62c   :  { %4756 = vrot.lane.b32.xlu0 %v4742_v10, %s11538_s2  ;;  %v4734_v10 = vunpack.c.l.b16 %v4606_v39  ;;  %v3960_v17 = vpack.c.bf16 %v3916_v2, %v3916_v2  ;;  %v4415_v39 = vrot.slane %v13215_v50, 1 }
 0x62d   :  { %v4678_v24 = vunpack.c.l.b16 %v4540_v30  ;;  %v4679_v25 = vunpack.c.l.b16 %v4541_v1  ;;  %v4203_v15 = vpop.permute.xlu2 %4202 }
 0x62e   :  { %v4743_v61 = vpack.c.b16 %v4735_v44, %v4734_v10  ;;  %v4418_v19 = vsel %vm240_vm2, %v4415_v39, %v4417_v49  ;;  %v4416_v14 = vsel %vm240_vm2, %v4413_v31, %v4415_v39 }
 0x62f   :  { %v4687_v48 = vpack.c.b16 %v4679_v25, %v4678_v24  ;;  %v4463_v10 = vpack.c.bf16 %v4418_v19, %v4418_v19  ;;  %v4462_v25 = vpack.c.bf16 %v4416_v14, %v4416_v14  ;;  %v4423_v14 = vrot.slane %v13272_v56, 1 }
 0x631   :  { %v4627_v26 = vunpack.c.l.b16 %v4463_v10  ;;  %v4626_v31 = vunpack.c.l.b16 %v4462_v25 }
 0x633   :  { %4326 = vrot.lane.b32.xlu1 %v4312_v27, %s11539_s15  ;;  %4700 = vrot.lane.b32.xlu2 %v4686_v0, %s11537_s0  ;;  %v4154_v27 = vpack.c.b16 %v4139_v16, %v4138_v3  ;;  %v4460_v0 = vpack.c.bf16 %v4412_v23, %v4412_v23  ;;  %v3920_v3 = vsel %vm88_vm0, %v3917_v58, %v3919_v57  ;;  %v4421_v23 = vrot.slane %v13259_v41, 1 }
 0x634   :  { %4328 = vrot.lane.b32.xlu0 %v4313_v55, %s11539_s15  ;;  %v3918_v55 = vsel %vm88_vm0, %v3915_v8, %v3917_v58  ;;  %v3962_v16 = vpack.c.bf16 %v3920_v3, %v3920_v3 }
 0x635   :  { %v4332_v18 = vsel %vm459_vm4, %v4154_v27, %v4203_v15  ;;  %v4689_v9 = vpop.permute.xlu2 %4688  ;;  %v4624_v32 = vunpack.c.l.b16 %v4460_v0  ;;  %v3961_v11 = vpack.c.bf16 %v3918_v55, %v3918_v55  ;;  %v4641_v27 = vpack.c.b16 %v4627_v26, %v4626_v31 }
 0x636   :  { %v4424_v25 = vsel %vm240_vm2, %v4421_v23, %v4423_v14  ;;  %v3927_v31 = vrot.slane %v13433_v33, 5 }
 0x637   :  { %v4640_v52 = vpack.c.b16 %v4625_v38, %v4624_v32  ;;  %v4141_v5 = vunpack.c.l.b16 %v3961_v11  ;;  %v3923_v11 = vrot.slane %v13259_v41, 5 }
 0x639   :  { %v4762_v7 = vsel %vm459_vm4, %v4640_v52, %v4689_v9 }
 0x63b   :  { %4272 = vrot.lane.b32.xlu2 %v4257_v62, %s11538_s2  ;;  %4216 = vrot.lane.b32.xlu1 %v4201_v4, %s11537_s0  ;;  %v4140_v62 = vunpack.c.l.b16 %v3960_v17  ;;  %v3921_v4 = vrot.slane %v13242_v12, 5 }
 0x63d   :  { %v4261_v30 = vpop.permute.xlu2 %4260  ;;  %v4155_v1 = vpack.c.b16 %v4141_v5, %v4140_v62  ;;  %v3922_v24 = vsel %vm88_vm0, %v3919_v57, %v3921_v4  ;;  %v3925_v5 = vsel %vm88_vm0, %v3923_v11, %v3894_v20 }
 0x63f   :  { %v4335_v44 = vsel %vm459_vm4, %v4155_v1, %v4205_v22 }
 0x640   :  { %v4357_v13 = vsel %vm484_vm5, %v4335_v44, %v4261_v30 }
 0x643   :  { %4758 = vrot.lane.b32.xlu2 %v4743_v61, %s11538_s2  ;;  %4702 = vrot.lane.b32.xlu1 %v4687_v48, %s11537_s0  ;;  %v3963_v61 = vpack.c.bf16 %v3922_v24, %v3922_v24  ;;  %v4691_v48 = vpop.permute.xlu1 %4690 }
 0x644   :  { %v4765_v0 = vsel %vm459_vm4, %v4641_v27, %v4691_v48 }
 0x645   :  { %v4747_v47 = vpop.permute.xlu2 %4746  ;;  %v4143_v8 = vunpack.c.l.b16 %v3963_v61  ;;  %v3895_v61 = vrot.slane %v13480_v37, 5 }
 0x646   :  { %v4259_v42 = vpop.permute.xlu0 %4258 }
 0x647   :  { %v4355_v51 = vsel %vm484_vm5, %v4332_v18, %v4259_v42  ;;  %v4419_v18 = vrot.slane %v13242_v12, 1  ;;  %v4142_v42 = vunpack.c.l.b16 %v3962_v16  ;;  %v3926_v16 = vrot.slane %v13441_v21, 5 }
 0x648   :  { %v4371_v6 = vsel %vm549_vm6, %v4355_v51, %v4315_v45  ;;  %v4787_v51 = vsel %vm484_vm5, %v4765_v0, %v4747_v47 }
 0x649   :  { %4969 = vmatmul.bf16.vlgmr.msra.gmra.mxu2 %v4371_v6  ;;  %v4422_v58 = vsel %vm240_vm2, %v4419_v18, %v4421_v23  ;;  %v4156_v55 = vpack.c.b16 %v4143_v8, %v4142_v42  ;;  %v4420_v38 = vsel %vm240_vm2, %v4417_v49, %v4419_v18  ;;  %v3924_v49 = vsel %vm88_vm0, %v3921_v4, %v3923_v11 }
 0x64a   :  { %v4465_v6 = vpack.c.bf16 %v4422_v58, %v4422_v58  ;;  %v4464_v32 = vpack.c.bf16 %v4420_v38, %v4420_v38  ;;  %v3964_v19 = vpack.c.bf16 %v3924_v49, %v3924_v49  ;;  %v4458_v4 = vsel %vm240_vm2, %v4423_v14, %v4410_v43 }
 0x64b   :  { %v4263_v2 = vpop.permute.xlu1 %4262  ;;  %v4467_v3 = vpack.c.bf16 %v4458_v4, %v4458_v4  ;;  %v3957_v43 = vsel %vm88_vm0, %v3895_v61, %v3926_v16  ;;  %v3928_v0 = vsel %vm88_vm0, %v3926_v16, %v3927_v31  ;;  %v3929_v49 = vrot.slane %v13444_v28, 5 }
 0x64c   :  { %v4628_v22 = vunpack.c.l.b16 %v4464_v32  ;;  %v4144_v44 = vunpack.c.l.b16 %v3964_v19 }
 0x64d   :  { %v4319_v17 = vpop.permute.xlu2 %4318  ;;  %v4631_v23 = vunpack.c.l.b16 %v4467_v3 }
 0x64e   :  { %v4745_v36 = vpop.permute.xlu0 %4744 }
 0x64f   :  { %v4785_v35 = vsel %vm484_vm5, %v4762_v7, %v4745_v36  ;;  %v4629_v7 = vunpack.c.l.b16 %v4465_v6 }
 0x650   :  { %10625 = vmatmul.msk.bf16.vlgmr.msra.gmra.mxu0 %vm549_vm6, %v4785_v35  ;;  %v3965_v35 = vpack.c.bf16 %v3925_v5, %v3925_v5 }
 0x651   :  { %v4642_v62 = vpack.c.b16 %v4629_v7, %v4628_v22 }
 0x652   :  { %v4145_v57 = vunpack.c.l.b16 %v3965_v35 }
 0x653   :  { %v4749_v1 = vpop.permute.xlu1 %4748 }
 0x655   :  { %v4209_v24 = vpop.permute.xlu2 %4208 }
 0x656   :  { %v4317_v15 = vpop.permute.xlu0 %4316 }
 0x657   :  { %v4374_v46 = vsel %vm549_vm6, %v4357_v13, %v4317_v15  ;;  %v4157_v13 = vpack.c.b16 %v4145_v57, %v4144_v44  ;;  %v3930_v57 = vsel %vm88_vm0, %v3927_v31, %v3929_v49 }
 0x658   :  { %v3968_v4 = vpack.c.bf16 %v3930_v57, %v3930_v57 }
 0x659   :  { %4974 = vmatmul.bf16.gmra.mxu2 %v4374_v46  ;;  %v4341_v15 = vsel %vm459_vm4, %v4157_v13, %v4209_v24  ;;  %v4466_v46 = vpack.c.bf16 %v4424_v25, %v4424_v25 }
 0x65a   :  { %v4148_v31 = vunpack.c.l.b16 %v3968_v4 }
 0x65b   :  { %v4321_v48 = vpop.permute.xlu1 %4320  ;;  %v4630_v27 = vunpack.c.l.b16 %v4466_v46  ;;  %v4430_v46 = vrot.slane %v13436_v60, 1 }
 0x65d   :  { %v4695_v8 = vpop.permute.xlu2 %4694  ;;  %v4643_v42 = vpack.c.b16 %v4631_v23, %v4630_v27 }
 0x65e   :  { %v4207_v45 = vpop.permute.xlu0 %4206 }
 0x65f   :  { %v4338_v9 = vsel %vm459_vm4, %v4156_v55, %v4207_v45  ;;  %v3966_v45 = vpack.c.bf16 %v3957_v43, %v3957_v43  ;;  %v4771_v58 = vsel %vm459_vm4, %v4643_v42, %v4695_v8  ;;  %v3967_v55 = vpack.c.bf16 %v3928_v0, %v3928_v0 }
 0x660   :  { %10626 = vmatmul.msk.bf16.gmra.mxu0 %vm549_vm6, %v4787_v51  ;;  %v4359_v52 = vsel %vm484_vm5, %v4338_v9, %v4263_v2  ;;  %v4428_v51 = vrot.slane %v13444_v28, 1  ;;  %v4426_v9 = vrot.slane %v13433_v33, 1  ;;  %v4425_v2 = vrot.slane %v13441_v21, 1 }
 0x661   :  { %v4377_v39 = vsel %vm549_vm6, %v4359_v52, %v4319_v17  ;;  %v4146_v6 = vunpack.c.l.b16 %v3966_v45  ;;  %v4147_v52 = vunpack.c.l.b16 %v3967_v55  ;;  %v3935_v8 = vrot.slane %v13490_v40, 5 }
 0x662   :  { %v4429_v32 = vsel %vm240_vm2, %v4426_v9, %v4428_v51  ;;  %v4427_v17 = vsel %vm240_vm2, %v4425_v2, %v4426_v9  ;;  %v4431_v27 = vsel %vm240_vm2, %v4428_v51, %v4430_v46 }
 0x663   :  { %v4158_v5 = vpack.c.b16 %v4147_v52, %v4146_v6  ;;  %v4469_v22 = vpack.c.bf16 %v4429_v32, %v4429_v32 }
 0x665   :  { %v4633_v14 = vunpack.c.l.b16 %v4469_v22 }
 0x666   :  { %v4693_v36 = vpop.permute.xlu0 %4692 }
 0x667   :  { %v4768_v30 = vsel %vm459_vm4, %v4642_v62, %v4693_v36  ;;  %v3931_v36 = vrot.slane %v13436_v60, 5  ;;  %v4468_v62 = vpack.c.bf16 %v4427_v17, %v4427_v17 }
 0x668   :  { %v4789_v10 = vsel %vm484_vm5, %v4768_v30, %v4749_v1 }
 0x669   :  { %4979 = vmatmul.bf16.gmra.mxu2 %v4377_v39  ;;  %v3932_v30 = vsel %vm88_vm0, %v3929_v49, %v3931_v36  ;;  %v4434_v49 = vrot.slane %v13490_v40, 1 }
 0x66a   :  { %v3969_v44 = vpack.c.bf16 %v3932_v30, %v3932_v30 }
 0x66d   :  { %v4267_v11 = vpop.permute.xlu2 %4266 }
 0x66e   :  { %v4265_v20 = vpop.permute.xlu0 %4264 }
 0x66f   :  { %v4361_v26 = vsel %vm484_vm5, %v4341_v15, %v4265_v20  ;;  %v4432_v20 = vrot.slane %v13463_v63, 1 }
 0x670   :  { %10627 = vmatmul.msk.bf16.gmra.mxu0 %vm549_vm6, %v4789_v10  ;;  %v4380_v47 = vsel %vm549_vm6, %v4361_v26, %v4321_v48  ;;  %v4632_v10 = vunpack.c.l.b16 %v4468_v62  ;;  %v4149_v26 = vunpack.c.l.b16 %v3969_v44 }
 0x671   :  { %v4433_v16 = vsel %vm240_vm2, %v4430_v46, %v4432_v20 }
 0x672   :  { %v4644_v25 = vpack.c.b16 %v4633_v14, %v4632_v10  ;;  %v4159_v23 = vpack.c.b16 %v4149_v26, %v4148_v31  ;;  %v3937_v14 = vrot.slane %v13540_v34, 5  ;;  %v4438_v31 = vrot.slane %v13480_v37, 1 }
 0x675   :  { %v4753_v24 = vpop.permute.xlu2 %4752 }
 0x676   :  { %v4751_v18 = vpop.permute.xlu0 %4750 }
 0x677   :  { %v4791_v38 = vsel %vm484_vm5, %v4771_v58, %v4751_v18  ;;  %v4470_v18 = vpack.c.bf16 %v4431_v27, %v4431_v27  ;;  %v3933_v58 = vrot.slane %v13463_v63, 5 }
 0x679   :  { %4984 = vmatmul.bf16.gmra.mxu2 %v4380_v47  ;;  %v4471_v47 = vpack.c.bf16 %v4433_v16, %v4433_v16  ;;  %v3936_v6 = vsel %vm88_vm0, %v3933_v58, %v3935_v8  ;;  %v4634_v51 = vunpack.c.l.b16 %v4470_v18  ;;  %v3934_v32 = vsel %vm88_vm0, %v3931_v36, %v3933_v58 }
 0x67a   :  { %v3971_v52 = vpack.c.bf16 %v3936_v6, %v3936_v6  ;;  %v3970_v22 = vpack.c.bf16 %v3934_v32, %v3934_v32 }
 0x67b   :  { %v4635_v55 = vunpack.c.l.b16 %v4471_v47 }
 0x67c   :  { %v4150_v30 = vunpack.c.l.b16 %v3970_v22 }
 0x67d   :  { %v4325_v42 = vpop.permute.xlu2 %4324 }
 0x67e   :  { %v4323_v7 = vpop.permute.xlu0 %4322 }
 0x680   :  { %10628 = vmatmul.msk.bf16.gmra.mxu0 %vm549_vm6, %v4791_v38 }
 0x685   :  { %v4211_v39 = vpop.permute.xlu1 %4210  ;;  %v4215_v62 = vpop.permute.xlu2 %4214 }
 0x686   :  { %v4344_v35 = vsel %vm459_vm4, %v4158_v5, %v4211_v39  ;;  %v4213_v15 = vpop.permute.xlu0 %4212 }
 0x687   :  { %v4363_v19 = vsel %vm484_vm5, %v4344_v35, %v4267_v11  ;;  %v4347_v43 = vsel %vm459_vm4, %v4159_v23, %v4213_v15  ;;  %v4645_v11 = vpack.c.b16 %v4635_v55, %v4634_v51  ;;  %v4151_v35 = vunpack.c.l.b16 %v3971_v52 }
 0x688   :  { %v4383_v1 = vsel %vm549_vm6, %v4363_v19, %v4323_v7  ;;  %v4436_v7 = vrot.slane %v13540_v34, 1  ;;  %v3938_v15 = vsel %vm88_vm0, %v3935_v8, %v3937_v14 }
 0x689   :  { %4989 = vmatmul.bf16.gmra.mxu2 %v4383_v1  ;;  %v4435_v1 = vsel %vm240_vm2, %v4432_v20, %v4434_v49  ;;  %v4160_v57 = vpack.c.b16 %v4151_v35, %v4150_v30  ;;  %v3972_v16 = vpack.c.bf16 %v3938_v15, %v3938_v15 }
 0x68a   :  { %v4437_v19 = vsel %vm240_vm2, %v4434_v49, %v4436_v7  ;;  %v4472_v4 = vpack.c.bf16 %v4435_v1, %v4435_v1  ;;  %v4439_v8 = vsel %vm240_vm2, %v4436_v7, %v4438_v31 }
 0x68b   :  { %v4473_v10 = vpack.c.bf16 %v4437_v19, %v4437_v19  ;;  %v4474_v55 = vpack.c.bf16 %v4439_v8, %v4439_v8 }
 0x68c   :  { %v4636_v26 = vunpack.c.l.b16 %v4472_v4 }
 0x68d   :  { %v4697_v13 = vpop.permute.xlu1 %4696  ;;  %v4637_v46 = vunpack.c.l.b16 %v4473_v10  ;;  %v4638_v51 = vunpack.c.l.b16 %v4474_v55 }
 0x68e   :  { %v4774_v3 = vsel %vm459_vm4, %v4644_v25, %v4697_v13  ;;  %v4699_v9 = vpop.permute.xlu0 %4698  ;;  %v4350_v25 = vsel %vm459_vm4, %v4160_v57, %v4215_v62  ;;  %v13779_v62 = vld [vmem:[%s16961_s4 + $0x4] ss:$0 sm:$0xff] }
 0x68f   :  { %v4793_v48 = vsel %vm484_vm5, %v4774_v3, %v4753_v24  ;;  %v4777_v17 = vsel %vm459_vm4, %v4645_v11, %v4699_v9  ;;  %v3939_v24 = vsel %vm88_vm0, %v3937_v14, %v3895_v61  ;;  %v4646_v27 = vpack.c.b16 %v4637_v46, %v4636_v26 }
 0x690   :  { %10629 = vmatmul.msk.bf16.gmra.mxu0 %vm549_vm6, %v4793_v48  ;;  %v3973_v20 = vpack.c.bf16 %v3939_v24, %v3939_v24  ;;  %v4701_v48 = vpop.permute.xlu2 %4700 }
 0x691   :  { %v4780_v47 = vsel %vm459_vm4, %v4646_v27, %v4701_v48 }
 0x692   :  { %v4153_v61 = vunpack.c.l.b16 %v3973_v20 }
 0x695   :  { %v4269_v0 = vpop.permute.xlu1 %4268 }
 0x696   :  { %v4365_v45 = vsel %vm484_vm5, %v4347_v43, %v4269_v0  ;;  %v4271_v36 = vpop.permute.xlu0 %4270  ;;  %v4152_v43 = vunpack.c.l.b16 %v3972_v16 }
 0x697   :  { %v4386_v38 = vsel %vm549_vm6, %v4365_v45, %v4325_v42  ;;  %v4367_v13 = vsel %vm484_vm5, %v4350_v25, %v4271_v36  ;;  %v4459_v42 = vsel %vm240_vm2, %v4438_v31, %v4425_v2 }
 0x698   :  { %v4161_v45 = vpack.c.b16 %v4153_v61, %v4152_v43  ;;  %v4273_v9 = vpop.permute.xlu2 %4272 }
 0x699   :  { %4994 = vmatmul.bf16.gmra.mxu2 %v4386_v38  ;;  %v4475_v38 = vpack.c.bf16 %v4459_v42, %v4459_v42 }
 0x69b   :  { %v4639_v32 = vunpack.c.l.b16 %v4475_v38 }
 0x69d   :  { %v4755_v5 = vpop.permute.xlu1 %4754  ;;  %v4647_v7 = vpack.c.b16 %v4639_v32, %v4638_v51 }
 0x69e   :  { %v4795_v39 = vsel %vm484_vm5, %v4777_v17, %v4755_v5  ;;  %v4757_v23 = vpop.permute.xlu0 %4756 }
 0x69f   :  { %v4797_v18 = vsel %vm484_vm5, %v4780_v47, %v4757_v23 }
 0x6a0   :  { %10630 = vmatmul.msk.bf16.gmra.mxu0 %vm549_vm6, %v4795_v39  ;;  %v4759_v5 = vpop.permute.xlu2 %4758 }
 0x6a5   :  { %v4327_v44 = vpop.permute.xlu1 %4326 }
 0x6a6   :  { %v4389_v3 = vsel %vm549_vm6, %v4367_v13, %v4327_v44  ;;  %v4329_v11 = vpop.permute.xlu0 %4328 }
 0x6a9   :  { %4999 = vmatmul.bf16.gmra.mxu2 %v4389_v3 }
 0x6ad   :  { %v4217_v0 = vpop.permute.xlu1 %4216 }
 0x6ae   :  { %v4353_v58 = vsel %vm459_vm4, %v4161_v45, %v4217_v0 }
 0x6af   :  { %v4369_v6 = vsel %vm484_vm5, %v4353_v58, %v4273_v9 }
 0x6b0   :  { %10631 = vmatmul.msk.bf16.gmra.mxu0 %vm549_vm6, %v4797_v18  ;;  %v4392_v52 = vsel %vm549_vm6, %v4369_v6, %v4329_v11 }
 0x6b5   :  { %v4703_v17 = vpop.permute.xlu1 %4702 }
 0x6b6   :  { %v4783_v2 = vsel %vm459_vm4, %v4647_v7, %v4703_v17 }
 0x6b7   :  { %v4799_v22 = vsel %vm484_vm5, %v4783_v2, %v4759_v5 }
 0x6b9   :  { %5004 = vmatmul.bf16.gmra.mxu2 %v4392_v52 }
 0x6c0   :  { %10632 = vmatmul.msk.bf16.gmra.mxu0 %vm549_vm6, %v4799_v22 }
 0x6cc   :  { %v4970_v39 = vpop.f32.mrf.mxu2 }
 0x6cd   :  { %v4873_v49 = vpop.f32.mrf.mxu0 }
 0x6ce   :  { %v4971_v35 = vadd.f32 %v4970_v39, %v4873_v49 }
 0x6d0   :  { %v5010_v19 = vadd.f32 %v4971_v35, %v13194_v54 }
 0x6d2   :  { %v5028_v30 = vadd.f32 %v13779_v62, %v5010_v19 }
 0x6d4   :  { %v5060_v36 = vmin.f32 %v5028_v30, 0.0  ;;  %v4972_v1 = vpop.f32.mrf.mxu2  ;;  %vm5044_vm11 = vcmp.gt.f32.partialorder %v5028_v30, 0.0 }
 0x6d5   :  { %v4875_v14 = vpop.f32.mrf.mxu0 }
 0x6d6   :  { %v5076_v57 = vmul.f32 1.442695, %v5060_v36  ;;  %v4973_v10 = vadd.f32 %v4972_v1, %v4875_v14 }
 0x6d8   :  { %11350 = vpow2.f32 %v5076_v57  ;;  %v5011_v44 = vadd.f32 %v4973_v10, %v13199_v59 }
 0x6da   :  { %v5029_v24 = vadd.f32 %v13779_v62, %v5011_v44 }
 0x6dc   :  { %v5061_v25 = vmin.f32 %v5029_v24, 0.0  ;;  %v4975_v4 = vpop.f32.mrf.mxu2  ;;  %vm5045_vm12 = vcmp.gt.f32.partialorder %v5029_v24, 0.0 }
 0x6dd   :  { %v4878_v13 = vpop.f32.mrf.mxu0 }
 0x6de   :  { %v11351_v15 = vpop.eup %11350  ;;  %v5078_v46 = vmul.f32 1.442695, %v5061_v25  ;;  %v4976_v3 = vadd.f32 %v4975_v4, %v4878_v13 }
 0x6df   :  { %v10665_v20 = vadd.f32 -1.0, %v11351_v15 }
 0x6e0   :  { %11352 = vpow2.f32 %v5078_v46  ;;  %v5012_v54 = vadd.f32 %v4976_v3, %v13206_v53 }
 0x6e1   :  { %v13787_v31 = vsel %vm5044_vm11, %v5028_v30, %v10665_v20 }
 0x6e2   :  { %v5030_v26 = vadd.f32 %v13779_v62, %v5012_v54  ;;  %v5625_v53 = vpack.c.bf16 %v13787_v31, %v13787_v31  ;;  %v5161_v11 = vrot.slane %v13787_v31, 4 }
 0x6e4   :  { %v5062_v48 = vmin.f32 %v5030_v26, 0.0  ;;  %v4977_v16 = vpop.f32.mrf.mxu2  ;;  %v5763_v58 = vunpack.c.l.b16 %v5625_v53  ;;  %vm5046_vm1 = vcmp.gt.f32.partialorder %v5030_v26, 0.0 }
 0x6e5   :  { %v4880_v59 = vpop.f32.mrf.mxu0 }
 0x6e6   :  { %v11353_v27 = vpop.eup %11352  ;;  %v5080_v23 = vmul.f32 1.442695, %v5062_v48  ;;  %v4978_v61 = vadd.f32 %v4977_v16, %v4880_v59 }
 0x6e7   :  { %v10666_v47 = vadd.f32 -1.0, %v11353_v27 }
 0x6e8   :  { %11354 = vpow2.f32 %v5080_v23  ;;  %v5013_v43 = vadd.f32 %v4978_v61, %v13215_v50 }
 0x6e9   :  { %v13792_v18 = vsel %vm5045_vm12, %v5029_v24, %v10666_v47 }
 0x6ea   :  { %v5031_v0 = vadd.f32 %v13779_v62, %v5013_v43  ;;  %v5626_v8 = vpack.c.bf16 %v13792_v18, %v13792_v18  ;;  %v5162_v38 = vrot.slane %v13792_v18, 4 }
 0x6ec   :  { %v5063_v42 = vmin.f32 %v5031_v0, 0.0  ;;  %v4980_v45 = vpop.f32.mrf.mxu2  ;;  %v5764_v55 = vunpack.c.l.b16 %v5626_v8  ;;  %v5163_v7 = vsel %vm5160_vm14, %v5161_v11, %v5162_v38  ;;  %vm5047_vm7 = vcmp.gt.f32.partialorder %v5031_v0, 0.0 }
 0x6ed   :  { %v4883_v9 = vpop.f32.mrf.mxu0  ;;  %v5208_v39 = vpack.c.bf16 %v5163_v7, %v5163_v7 }
 0x6ee   :  { %v11355_v6 = vpop.eup %11354  ;;  %v5082_v50 = vmul.f32 1.442695, %v5063_v42  ;;  %v4981_v51 = vadd.f32 %v4980_v45, %v4883_v9  ;;  %v5779_v32 = vpack.c.b16 %v5764_v55, %v5763_v58 }
 0x6ef   :  { %v10667_v52 = vadd.f32 -1.0, %v11355_v6  ;;  %v13809_v10 = vunpack.c.l.b16 %v5208_v39 }
 0x6f0   :  { %11356 = vpow2.f32 %v5082_v50  ;;  %v5014_v17 = vadd.f32 %v4981_v51, %v13228_v29  ;;  %5787 = vrot.lane.b32.xlu2 %v5779_v32, %s11537_s0 }
 0x6f1   :  { %v13804_v2 = vsel %vm5046_vm1, %v5030_v26, %v10667_v52 }
 0x6f2   :  { %v5032_v5 = vadd.f32 %v13779_v62, %v5014_v17  ;;  %v5164_v22 = vrot.slane %v13804_v2, 4  ;;  %v5627_v46 = vpack.c.bf16 %v13804_v2, %v13804_v2 }
 0x6f4   :  { %v5064_v49 = vmin.f32 %v5032_v5, 0.0  ;;  %v4982_v35 = vpop.f32.mrf.mxu2  ;;  %v5165_v19 = vsel %vm5160_vm14, %v5162_v38, %v5164_v22  ;;  %v5765_v23 = vunpack.c.l.b16 %v5627_v46  ;;  %vm5048_vm8 = vcmp.gt.f32.partialorder %v5032_v5, 0.0 }
 0x6f5   :  { %v4885_v30 = vpop.f32.mrf.mxu0  ;;  %v5209_v36 = vpack.c.bf16 %v5165_v19, %v5165_v19 }
 0x6f6   :  { %v11357_v29 = vpop.eup %11356  ;;  %v5084_v1 = vmul.f32 1.442695, %v5064_v49  ;;  %v4983_v14 = vadd.f32 %v4982_v35, %v4885_v30 }
 0x6f7   :  { %v10668_v57 = vadd.f32 -1.0, %v11357_v29  ;;  %v13811_v44 = vunpack.c.l.b16 %v5209_v36 }
 0x6f8   :  { %11358 = vpow2.f32 %v5084_v1  ;;  %v5015_v24 = vadd.f32 %v4983_v14, %v13242_v12 }
 0x6f9   :  { %v13814_v25 = vsel %vm5047_vm7, %v5031_v0, %v10668_v57  ;;  %v6341_v4 = vpack.c.b16 %v13811_v44, %v13809_v10 }
 0x6fa   :  { %v5033_v13 = vadd.f32 %v13779_v62, %v5015_v24  ;;  %v5628_v15 = vpack.c.bf16 %v13814_v25, %v13814_v25  ;;  %v5166_v20 = vrot.slane %v13814_v25, 4 }
 0x6fb   :  { %6349 = vrot.lane.b32.xlu2 %v6341_v4, %s11538_s2 }
 0x6fc   :  { %v5065_v3 = vmin.f32 %v5033_v13, 0.0  ;;  %v4985_v54 = vpop.f32.mrf.mxu2  ;;  %v5766_v26 = vunpack.c.l.b16 %v5628_v15  ;;  %v5167_v47 = vsel %vm5160_vm14, %v5164_v22, %v5166_v20  ;;  %vm5049_vm10 = vcmp.gt.f32.partialorder %v5033_v13, 0.0 }
 0x6fd   :  { %v4888_v12 = vpop.f32.mrf.mxu0  ;;  %v5210_v42 = vpack.c.bf16 %v5167_v47, %v5167_v47 }
 0x6fe   :  { %v11359_v48 = vpop.eup %11358  ;;  %v5086_v16 = vmul.f32 1.442695, %v5065_v3  ;;  %v4986_v59 = vadd.f32 %v4985_v54, %v4888_v12  ;;  %v5780_v53 = vpack.c.b16 %v5766_v26, %v5765_v23  ;;  %v5228_v54 = vrot.slane %v13792_v18, 5 }
 0x6ff   :  { %v10669_v27 = vadd.f32 -1.0, %v11359_v48  ;;  %v13833_v32 = vunpack.c.l.b16 %v5210_v42  ;;  %v5227_v26 = vrot.slane %v13787_v31, 5  ;;  %v5294_v48 = vrot.slane %v13792_v18, 6 }
 0x700   :  { %11360 = vpow2.f32 %v5086_v16  ;;  %v5016_v61 = vadd.f32 %v4986_v59, %v13259_v41  ;;  %v5293_v16 = vrot.slane %v13787_v31, 6 }
 0x701   :  { %v13827_v43 = vsel %vm5048_vm8, %v5032_v5, %v10669_v27  ;;  %v5229_v23 = vsel %vm88_vm0, %v5227_v26, %v5228_v54 }
 0x702   :  { %v5034_v0 = vadd.f32 %v13779_v62, %v5016_v61  ;;  %v5168_v8 = vrot.slane %v13827_v43, 4  ;;  %v5629_v35 = vpack.c.bf16 %v13827_v43, %v13827_v43 }
 0x703   :  { %5789 = vrot.lane.b32.xlu2 %v5780_v53, %s11537_s0 }
 0x704   :  { %v5066_v45 = vmin.f32 %v5034_v0, 0.0  ;;  %v4987_v58 = vpop.f32.mrf.mxu2  ;;  %v5169_v55 = vsel %vm5160_vm14, %v5166_v20, %v5168_v8  ;;  %v5767_v4 = vunpack.c.l.b16 %v5629_v35  ;;  %vm5050_vm11 = vcmp.gt.f32.partialorder %v5034_v0, 0.0 }
 0x705   :  { %v4890_v38 = vpop.f32.mrf.mxu0  ;;  %v5211_v9 = vpack.c.bf16 %v5169_v55, %v5169_v55 }
 0x706   :  { %v11361_v6 = vpop.eup %11360  ;;  %v5088_v41 = vmul.f32 1.442695, %v5066_v45  ;;  %v4988_v50 = vadd.f32 %v4987_v58, %v4890_v38 }
 0x707   :  { %v10670_v51 = vadd.f32 -1.0, %v11361_v6  ;;  %v13835_v52 = vunpack.c.l.b16 %v5211_v9  ;;  %v5274_v9 = vpack.c.bf16 %v5229_v23, %v5229_v23 }
 0x708   :  { %11362 = vpow2.f32 %v5088_v41  ;;  %v5017_v17 = vadd.f32 %v4988_v50, %v13272_v56 }
 0x709   :  { %v13838_v7 = vsel %vm5049_vm10, %v5033_v13, %v10670_v51  ;;  %v6342_v5 = vpack.c.b16 %v13835_v52, %v13833_v32 }
 0x70a   :  { %v5035_v22 = vadd.f32 %v13779_v62, %v5017_v17  ;;  %v5630_v39 = vpack.c.bf16 %v13838_v7, %v13838_v7  ;;  %v5170_v49 = vrot.slane %v13838_v7, 4 }
 0x70b   :  { %6351 = vrot.lane.b32.xlu2 %v6342_v5, %s11538_s2  ;;  %v5641_v5 = vrot.slane %v13787_v31, 1 }
 0x70c   :  { %v5067_v19 = vmin.f32 %v5035_v22, 0.0  ;;  %v4990_v30 = vpop.f32.mrf.mxu2  ;;  %v5768_v36 = vunpack.c.l.b16 %v5630_v39  ;;  %v5171_v57 = vsel %vm5160_vm14, %v5168_v8, %v5170_v49  ;;  %vm5051_vm12 = vcmp.gt.f32.partialorder %v5035_v22, 0.0 }
 0x70d   :  { %v4893_v56 = vpop.f32.mrf.mxu0  ;;  %v5212_v3 = vpack.c.bf16 %v5171_v57, %v5171_v57  ;;  %v5642_v39 = vrot.slane %v13792_v18, 1 }
 0x70e   :  { %v11363_v29 = vpop.eup %11362  ;;  %v5090_v1 = vmul.f32 1.442695, %v5067_v19  ;;  %v4991_v14 = vadd.f32 %v4990_v30, %v4893_v56  ;;  %v5781_v46 = vpack.c.b16 %v5768_v36, %v5767_v4  ;;  %v5412_v19 = vunpack.c.l.b16 %v5274_v9 }
 0x70f   :  { %v10671_v24 = vadd.f32 -1.0, %v11363_v29  ;;  %v13874_v58 = vunpack.c.l.b16 %v5212_v3  ;;  %v5643_v56 = vsel %vm240_vm2, %v5641_v5, %v5642_v39  ;;  %v5644_v36 = vrot.slane %v13804_v2, 1 }
 0x710   :  { %11364 = vpow2.f32 %v5090_v1  ;;  %v5018_v13 = vadd.f32 %v4991_v14, %v13441_v21 }
 0x711   :  { %v13851_v15 = vsel %vm5050_vm11, %v5034_v0, %v10671_v24  ;;  %v5295_v0 = vsel %vm765_vm15, %v5293_v16, %v5294_v48  ;;  %v5645_v3 = vsel %vm240_vm2, %v5642_v39, %v5644_v36 }
 0x712   :  { %v13855_v20 = vadd.f32 %v13779_v62, %v5018_v13  ;;  %v5172_v12 = vrot.slane %v13851_v15, 4  ;;  %v5631_v61 = vpack.c.bf16 %v13851_v15, %v13851_v15  ;;  %v5340_v6 = vpack.c.bf16 %v5295_v0, %v5295_v0 }
 0x713   :  { %5791 = vrot.lane.b32.xlu2 %v5781_v46, %s11537_s0 }
 0x714   :  { %v5068_v21 = vmin.f32 %v13855_v20, 0.0  ;;  %v4992_v59 = vpop.f32.mrf.mxu2  ;;  %v5173_v27 = vsel %vm5160_vm14, %v5170_v49, %v5172_v12  ;;  %v5769_v50 = vunpack.c.l.b16 %v5631_v61  ;;  %vm5052_vm1 = vcmp.gt.f32.partialorder %v13855_v20, 0.0 }
 0x715   :  { %v4895_v47 = vpop.f32.mrf.mxu0  ;;  %v5213_v53 = vpack.c.bf16 %v5173_v27, %v5173_v27  ;;  %v5468_v30 = vunpack.c.l.b16 %v5340_v6 }
 0x716   :  { %v11365_v8 = vpop.eup %11364  ;;  %v5092_v42 = vmul.f32 1.442695, %v5068_v21  ;;  %v4993_v45 = vadd.f32 %v4992_v59, %v4895_v47  ;;  %v5691_v21 = vpack.c.bf16 %v5643_v56, %v5643_v56 }
 0x717   :  { %v10672_v55 = vadd.f32 -1.0, %v11365_v8  ;;  %v13876_v38 = vunpack.c.l.b16 %v5213_v53  ;;  %v5692_v8 = vpack.c.bf16 %v5645_v3, %v5645_v3 }
 0x718   :  { %11366 = vpow2.f32 %v5092_v42  ;;  %v5019_v41 = vadd.f32 %v4993_v45, %v13433_v33  ;;  %v5819_v9 = vunpack.c.l.b16 %v5691_v21 }
 0x719   :  { %v13879_v51 = vsel %vm5051_vm12, %v5035_v22, %v10672_v55  ;;  %v6343_v17 = vpack.c.b16 %v13876_v38, %v13874_v58  ;;  %v5820_v6 = vunpack.c.l.b16 %v5692_v8 }
 0x71a   :  { %v13887_v49 = vadd.f32 %v13779_v62, %v5019_v41  ;;  %v5223_v35 = vrot.slane %v13879_v51, 5  ;;  %v5632_v33 = vpack.c.bf16 %v13879_v51, %v13879_v51  ;;  %v5289_v22 = vrot.slane %v13879_v51, 6 }
 0x71b   :  { %6353 = vrot.lane.b32.xlu2 %v6343_v17, %s11538_s2  ;;  %v5142_v24 = vrot.slane %v13879_v51, 4 }
 0x71c   :  { %v5069_v29 = vmin.f32 %v13887_v49, 0.0  ;;  %v4995_v1 = vpop.f32.mrf.mxu2  ;;  %v5271_v14 = vsel %vm88_vm0, %v5223_v35, %v5227_v26  ;;  %v5770_v57 = vunpack.c.l.b16 %v5632_v33  ;;  %v5337_v46 = vsel %vm765_vm15, %v5289_v22, %v5293_v16 }
 0x71d   :  { %v4898_v4 = vpop.f32.mrf.mxu0  ;;  %v5273_v13 = vpack.c.bf16 %v5271_v14, %v5271_v14  ;;  %v5339_v61 = vpack.c.bf16 %v5337_v46, %v5337_v46  ;;  %v6179_v26 = vrot.slane %v13787_v31, 3  ;;  %vm5053_vm7 = vcmp.gt.f32.partialorder %v13887_v49, 0.0 }
 0x71e   :  { %v11367_v59 = vpop.eup %11366  ;;  %v5094_v27 = vmul.f32 1.442695, %v5069_v29  ;;  %v4996_v23 = vadd.f32 %v4995_v1, %v4898_v4  ;;  %v5782_v0 = vpack.c.b16 %v5770_v57, %v5769_v50  ;;  %v5174_v45 = vsel %vm5160_vm14, %v5172_v12, %v5142_v24 }
 0x71f   :  { %v10673_v47 = vadd.f32 -1.0, %v11367_v59  ;;  %v5411_v53 = vunpack.c.l.b16 %v5273_v13  ;;  %v5467_v42 = vunpack.c.l.b16 %v5339_v61  ;;  %v5205_v41 = vsel %vm5160_vm14, %v5142_v24, %v5161_v11 }
 0x720   :  { %11368 = vpow2.f32 %v5094_v27  ;;  %v5020_v16 = vadd.f32 %v4996_v23, %v13444_v28  ;;  %v5207_v39 = vpack.c.bf16 %v5205_v41, %v5205_v41  ;;  %v5214_v33 = vpack.c.bf16 %v5174_v45, %v5174_v45 }
 0x721   :  { %v5427_v55 = vpack.c.b16 %v5412_v19, %v5411_v53  ;;  %v5483_v17 = vpack.c.b16 %v5468_v30, %v5467_v42  ;;  %v13924_v28 = vsel %vm5052_vm1, %v13855_v20, %v10673_v47  ;;  %v6180_v12 = vrot.slane %v13792_v18, 3 }
 0x722   :  { %v13919_v50 = vadd.f32 %v13779_v62, %v5020_v16  ;;  %v6182_v19 = vrot.slane %v13804_v2, 3  ;;  %v5230_v11 = vrot.slane %v13804_v2, 5  ;;  %v5835_v29 = vpack.c.b16 %v5820_v6, %v5819_v9 }
 0x723   :  { %5435 = vrot.lane.b32.xlu0 %v5427_v55, %s11537_s0  ;;  %5793 = vrot.lane.b32.xlu2 %v5782_v0, %s11537_s0  ;;  %v13933_v1 = vunpack.c.l.b16 %v5207_v39  ;;  %v13935_v20 = vunpack.c.l.b16 %v5214_v33  ;;  %v6181_v57 = vsel %vm3293_vm13, %v6179_v26, %v6180_v12  ;;  %v5232_v13 = vrot.slane %v13814_v25, 5 }
 0x724   :  { %v5070_v56 = vmin.f32 %v13919_v50, 0.0  ;;  %5491 = vrot.lane.b32.xlu1 %v5483_v17, %s11538_s2  ;;  %v4997_v30 = vpop.f32.mrf.mxu2  ;;  %v6183_v24 = vsel %vm3293_vm13, %v6180_v12, %v6182_v19  ;;  %v5231_v4 = vsel %vm88_vm0, %v5228_v54, %v5230_v11  ;;  %v6229_v27 = vpack.c.bf16 %v6181_v57, %v6181_v57 }
 0x725   :  { %v4900_v14 = vpop.f32.mrf.mxu0  ;;  %v6344_v59 = vpack.c.b16 %v13933_v1, %v13935_v20  ;;  %v6230_v61 = vpack.c.bf16 %v6183_v24, %v6183_v24  ;;  %v5233_v47 = vsel %vm88_vm0, %v5230_v11, %v5232_v13  ;;  %v5275_v53 = vpack.c.bf16 %v5231_v4, %v5231_v4 }
 0x726   :  { %v11369_v46 = vpop.eup %11368  ;;  %v5096_v3 = vmul.f32 1.442695, %v5070_v56  ;;  %v4998_v21 = vadd.f32 %v4997_v30, %v4900_v14  ;;  %v6301_v54 = vunpack.c.l.b16 %v6229_v27  ;;  %v5276_v8 = vpack.c.bf16 %v5233_v47, %v5233_v47 }
 0x727   :  { %v10674_v23 = vadd.f32 -1.0, %v11369_v46  ;;  %v6302_v42 = vunpack.c.l.b16 %v6230_v61  ;;  %v5413_v45 = vunpack.c.l.b16 %v5275_v53  ;;  %v5633_v55 = vpack.c.bf16 %v13924_v28, %v13924_v28 }
 0x728   :  { %11370 = vpow2.f32 %v5096_v3  ;;  %v5021_v0 = vadd.f32 %v4998_v21, %v13436_v60  ;;  %v5414_v6 = vunpack.c.l.b16 %v5276_v8  ;;  %v5296_v60 = vrot.slane %v13804_v2, 6 }
 0x729   :  { %v13956_v16 = vsel %vm5053_vm7, %v13887_v49, %v10674_v23  ;;  %vm5054_vm8 = vcmp.gt.f32.partialorder %v13919_v50, 0.0  ;;  %v6317_v49 = vpack.c.b16 %v6302_v42, %v6301_v54  ;;  %v5298_v17 = vrot.slane %v13814_v25, 6 }
 0x72a   :  { %v13961_v9 = vadd.f32 %v13779_v62, %v5021_v0  ;;  %v5634_v41 = vpack.c.bf16 %v13956_v16, %v13956_v16  ;;  %v5646_v39 = vrot.slane %v13814_v25, 1  ;;  %v5428_v11 = vpack.c.b16 %v5414_v6, %v5413_v45 }
 0x72b   :  { %5843 = vrot.lane.b32.xlu0 %v5835_v29, %s11538_s2  ;;  %6355 = vrot.lane.b32.xlu2 %v6344_v59, %s11538_s2  ;;  %v5771_v56 = vunpack.c.l.b16 %v5633_v55  ;;  %v5297_v29 = vsel %vm765_vm15, %v5294_v48, %v5296_v60  ;;  %v5299_v57 = vsel %vm765_vm15, %v5296_v60, %v5298_v17  ;;  %v5648_v4 = vrot.slane %v13827_v43, 1 }
 0x72c   :  { %v5071_v33 = vmin.f32 %v13961_v9, 0.0  ;;  %v5000_v12 = vpop.f32.mrf.mxu2  ;;  %v5772_v30 = vunpack.c.l.b16 %v5634_v41  ;;  %6325 = vrot.lane.b32.xlu1 %v6317_v49, %s11537_s0  ;;  %v5647_v24 = vsel %vm240_vm2, %v5644_v36, %v5646_v39  ;;  %v5341_v27 = vpack.c.bf16 %v5297_v29, %v5297_v29 }
 0x72d   :  { %v4903_v14 = vpop.f32.mrf.mxu0  ;;  %v5342_v61 = vpack.c.bf16 %v5299_v57, %v5299_v57  ;;  %v5649_v48 = vsel %vm240_vm2, %v5646_v39, %v5648_v4  ;;  %v5693_v47 = vpack.c.bf16 %v5647_v24, %v5647_v24  ;;  %v6184_v45 = vrot.slane %v13814_v25, 3 }
 0x72e   :  { %v11371_v46 = vpop.eup %11370  ;;  %v5098_v3 = vmul.f32 1.442695, %v5071_v33  ;;  %v5001_v21 = vadd.f32 %v5000_v12, %v4903_v14  ;;  %v5783_v59 = vpack.c.b16 %v5772_v30, %v5771_v56  ;;  %v5469_v0 = vunpack.c.l.b16 %v5341_v27 }
 0x72f   :  { %v10675_v23 = vadd.f32 -1.0, %v11371_v46  ;;  %v5694_v54 = vpack.c.bf16 %v5649_v48, %v5649_v48  ;;  %v5470_v8 = vunpack.c.l.b16 %v5342_v61  ;;  %v5821_v42 = vunpack.c.l.b16 %v5693_v47 }
 0x730   :  { %11372 = vpow2.f32 %v5098_v3  ;;  %v5022_v53 = vadd.f32 %v5001_v21, %v13463_v63  ;;  %v6186_v41 = vrot.slane %v13827_v43, 3  ;;  %v5175_v60 = vrot.slane %v13924_v28, 4 }
 0x731   :  { %v13990_v36 = vsel %vm5054_vm8, %v13919_v50, %v10675_v23  ;;  %v5822_v6 = vunpack.c.l.b16 %v5694_v54  ;;  %v5484_v63 = vpack.c.b16 %v5470_v8, %v5469_v0  ;;  %v6185_v50 = vsel %vm3293_vm13, %v6182_v19, %v6184_v45 }
 0x732   :  { %v13994_v55 = vadd.f32 %v13779_v62, %v5022_v53  ;;  %v5176_v49 = vrot.slane %v13956_v16, 4  ;;  %v5178_v39 = vrot.slane %v13990_v36, 4  ;;  %vm5055_vm10 = vcmp.gt.f32.partialorder %v13961_v9, 0.0 }
 0x733   :  { %5437 = vrot.lane.b32.xlu0 %v5428_v11, %s11537_s0  ;;  %5795 = vrot.lane.b32.xlu2 %v5783_v59, %s11537_s0  ;;  %v5836_v56 = vpack.c.b16 %v5822_v6, %v5821_v42  ;;  %v6187_v11 = vsel %vm3293_vm13, %v6184_v45, %v6186_v41  ;;  %v6231_v14 = vpack.c.bf16 %v6185_v50, %v6185_v50  ;;  %v5234_v48 = vrot.slane %v13827_v43, 5 }
 0x734   :  { %v5072_v33 = vmin.f32 %v13994_v55, 0.0  ;;  %v5002_v12 = vpop.f32.mrf.mxu2  ;;  %5493 = vrot.lane.b32.xlu1 %v5484_v63, %s11538_s2  ;;  %v6232_v29 = vpack.c.bf16 %v6187_v11, %v6187_v11  ;;  %v5177_v19 = vsel %vm5160_vm14, %v5175_v60, %v5176_v49  ;;  %v5179_v57 = vsel %vm5160_vm14, %v5176_v49, %v5178_v39 }
 0x735   :  { %v4905_v30 = vpop.f32.mrf.mxu0  ;;  %v5216_v21 = vpack.c.bf16 %v5177_v19, %v5177_v19  ;;  %v5217_v59 = vpack.c.bf16 %v5179_v57, %v5179_v57  ;;  %v6303_v23 = vunpack.c.l.b16 %v6231_v14  ;;  %v5235_v42 = vsel %vm88_vm0, %v5232_v13, %v5234_v48 }
 0x736   :  { %v11373_v24 = vpop.eup %11372  ;;  %v5100_v46 = vmul.f32 1.442695, %v5072_v33  ;;  %v5003_v3 = vadd.f32 %v5002_v12, %v4905_v30  ;;  %v6304_v61 = vunpack.c.l.b16 %v6232_v29  ;;  %v5236_v45 = vrot.slane %v13838_v7, 5 }
 0x737   :  { %v10676_v27 = vadd.f32 -1.0, %v11373_v24  ;;  %v14019_v53 = vunpack.c.l.b16 %v5216_v21  ;;  %v14021_v0 = vunpack.c.l.b16 %v5217_v59  ;;  %v5277_v63 = vpack.c.bf16 %v5235_v42, %v5235_v42 }
 0x738   :  { %11374 = vpow2.f32 %v5100_v46  ;;  %v5023_v47 = vadd.f32 %v5003_v3, %v13490_v40  ;;  %v6318_v8 = vpack.c.b16 %v6304_v61, %v6303_v23  ;;  %v5300_v50 = vrot.slane %v13827_v43, 6 }
 0x739   :  { %v14026_v54 = vsel %vm5055_vm10, %v13961_v9, %v10676_v27  ;;  %v6345_v40 = vpack.c.b16 %v14021_v0, %v14019_v53  ;;  %v5237_v9 = vsel %vm88_vm0, %v5234_v48, %v5236_v45  ;;  %v5302_v49 = vrot.slane %v13838_v7, 6 }
 0x73a   :  { %v14033_v6 = vadd.f32 %v13779_v62, %v5023_v47  ;;  %v5635_v13 = vpack.c.bf16 %v13990_v36, %v13990_v36  ;;  %v5636_v33 = vpack.c.bf16 %v14026_v54, %v14026_v54  ;;  %v5278_v30 = vpack.c.bf16 %v5237_v9, %v5237_v9 }
 0x73b   :  { %5845 = vrot.lane.b32.xlu0 %v5836_v56, %s11538_s2  ;;  %6357 = vrot.lane.b32.xlu2 %v6345_v40, %s11538_s2  ;;  %v11140_v56 = vld [vmem:[%s16960_s3 + $0x1d8] sm:$0xff]  ;;  %v5301_v29 = vsel %vm765_vm15, %v5298_v17, %v5300_v50  ;;  %v5303_v19 = vsel %vm765_vm15, %v5300_v50, %v5302_v49  ;;  %v5415_v23 = vunpack.c.l.b16 %v5277_v63  ;;  %v5650_v50 = vrot.slane %v13838_v7, 1 }
 0x73c   :  { %v5073_v12 = vmin.f32 %v14033_v6, 0.0  ;;  %v5005_v11 = vpop.f32.mrf.mxu2  ;;  %6327 = vrot.lane.b32.xlu1 %v6318_v8, %s11537_s0  ;;  %v5773_v57 = vunpack.c.l.b16 %v5635_v13  ;;  %v5774_v24 = vunpack.c.l.b16 %v5636_v33  ;;  %v5416_v59 = vunpack.c.l.b16 %v5278_v30  ;;  %6066 = vmatpush.bf16.msrb.mxu3 %v11140_v56  ;;  %v11146_v30 = vld [vmem:[%s16960_s3 + $0x208] sm:$0xff]  ;;  %v11152_v56 = vld [vmem:[%s16960_s3 + $0x238] sm:$0xff] }
 0x73d   :  { %v4908_v14 = vpop.f32.mrf.mxu0  ;;  %v5343_v27 = vpack.c.bf16 %v5301_v29, %v5301_v29  ;;  %v5344_v61 = vpack.c.bf16 %v5303_v19, %v5303_v19  ;;  %v5652_v9 = vrot.slane %v13851_v15, 1  ;;  %v6188_v13 = vrot.slane %v13838_v7, 3  ;;  %5965 = vmatpush.bf16.msrb.mxu1 %v11146_v30  ;;  %6471 = vmatpush.bf16.msrb.mxu0 %v11152_v56 }
 0x73e   :  { %v11375_v46 = vpop.eup %11374  ;;  %v5102_v3 = vmul.f32 1.442695, %v5073_v12  ;;  %v5006_v21 = vadd.f32 %v5005_v11, %v4908_v14  ;;  %v5784_v47 = vpack.c.b16 %v5774_v24, %v5773_v57  ;;  %v5429_v8 = vpack.c.b16 %v5416_v59, %v5415_v23 }
 0x73f   :  { %v5471_v17 = vunpack.c.l.b16 %v5343_v27  ;;  %v5472_v42 = vunpack.c.l.b16 %v5344_v61  ;;  %v10677_v33 = vadd.f32 -1.0, %v11375_v46  ;;  %v5651_v29 = vsel %vm240_vm2, %v5648_v4, %v5650_v50 }
 0x740   :  { %v5024_v48 = vadd.f32 %v5006_v21, %v13540_v34  ;;  %11376 = vpow2.f32 %v5102_v3  ;;  %v6190_v34 = vrot.slane %v13851_v15, 3  ;;  %v5653_v19 = vsel %vm240_vm2, %v5650_v50, %v5652_v9 }
 0x741   :  { %v5485_v63 = vpack.c.b16 %v5472_v42, %v5471_v17  ;;  %v6189_v57 = vsel %vm3293_vm13, %v6186_v41, %v6188_v13  ;;  %vm5056_vm11 = vcmp.gt.f32.partialorder %v13994_v55, 0.0  ;;  %v5695_v59 = vpack.c.bf16 %v5651_v29, %v5651_v29 }
 0x742   :  { %v14061_v40 = vadd.f32 %v13779_v62, %v5024_v48  ;;  %v6191_v24 = vsel %vm3293_vm13, %v6188_v13, %v6190_v34  ;;  %v14091_v4 = vsel %vm5056_vm11, %v13994_v55, %v10677_v33  ;;  %v5696_v27 = vpack.c.bf16 %v5653_v19, %v5653_v19 }
 0x743   :  { %5439 = vrot.lane.b32.xlu0 %v5429_v8, %s11537_s0  ;;  %5797 = vrot.lane.b32.xlu2 %v5784_v47, %s11537_s0  ;;  %v6233_v23 = vpack.c.bf16 %v6189_v57, %v6189_v57  ;;  %v6234_v61 = vpack.c.bf16 %v6191_v24, %v6191_v24  ;;  %v5823_v48 = vunpack.c.l.b16 %v5695_v59  ;;  %v5180_v50 = vrot.slane %v14026_v54, 4 }
 0x744   :  { %v5074_v12 = vmin.f32 %v14061_v40, 0.0  ;;  %v5007_v11 = vpop.f32.mrf.mxu2  ;;  %5495 = vrot.lane.b32.xlu1 %v5485_v63, %s11538_s2  ;;  %v5824_v47 = vunpack.c.l.b16 %v5696_v27  ;;  %v5182_v13 = vrot.slane %v14091_v4, 4  ;;  %v5238_v63 = vrot.slane %v13851_v15, 5 }
 0x745   :  { %v4910_v14 = vpop.f32.mrf.mxu0  ;;  %v6305_v8 = vunpack.c.l.b16 %v6233_v23  ;;  %v6306_v42 = vunpack.c.l.b16 %v6234_v61  ;;  %vm5057_vm12 = vcmp.gt.f32.partialorder %v14033_v6, 0.0  ;;  %vm5058_vm1 = vcmp.gt.f32.partialorder %v14061_v40, 0.0 }
 0x746   :  { %v5104_v46 = vmul.f32 1.442695, %v5074_v12  ;;  %v5008_v3 = vadd.f32 %v5007_v11, %v4910_v14  ;;  %v11377_v21 = vpop.eup %11376  ;;  %v5837_v33 = vpack.c.b16 %v5824_v47, %v5823_v48  ;;  %v5304_v12 = vrot.slane %v13851_v15, 6 }
 0x747   :  { %v10678_v55 = vadd.f32 -1.0, %v11377_v21  ;;  %v6319_v11 = vpack.c.b16 %v6306_v42, %v6305_v8  ;;  %v5183_v30 = vsel %vm5160_vm14, %v5180_v50, %v5182_v13  ;;  %v5239_v14 = vsel %vm88_vm0, %v5236_v45, %v5238_v63 }
 0x748   :  { %11378 = vpow2.f32 %v5104_v46  ;;  %v5025_v41 = vadd.f32 %v5008_v3, %v13480_v37  ;;  %v5240_v29 = vsel %vm88_vm0, %v5238_v63, %v5223_v35  ;;  %v5219_v24 = vpack.c.bf16 %v5183_v30, %v5183_v30 }
 0x749   :  { %v5279_v46 = vpack.c.bf16 %v5239_v14, %v5239_v14  ;;  %v14116_v3 = vsel %vm5057_vm12, %v14033_v6, %v10678_v55  ;;  %v5305_v59 = vsel %vm765_vm15, %v5302_v49, %v5304_v12  ;;  %v5306_v45 = vsel %vm765_vm15, %v5304_v12, %v5289_v22 }
 0x74a   :  { %v14095_v17 = vadd.f32 %v13779_v62, %v5025_v41  ;;  %v5181_v62 = vsel %vm5160_vm14, %v5178_v39, %v5180_v50  ;;  %v5280_v39 = vpack.c.bf16 %v5240_v29, %v5240_v29  ;;  %v14126_v27 = vunpack.c.l.b16 %v5219_v24 }
 0x74b   :  { %5847 = vrot.lane.b32.xlu0 %v5837_v33, %s11538_s2  ;;  %v5218_v56 = vpack.c.bf16 %v5181_v62, %v5181_v62  ;;  %v5417_v41 = vunpack.c.l.b16 %v5279_v46  ;;  %v5345_v6 = vpack.c.bf16 %v5305_v59, %v5305_v59  ;;  %v5346_v61 = vpack.c.bf16 %v5306_v45, %v5306_v45 }
 0x74c   :  { %v5075_v37 = vmin.f32 %v14095_v17, 0.0  ;;  %6329 = vrot.lane.b32.xlu1 %v6319_v11, %s11537_s0  ;;  %v5418_v23 = vunpack.c.l.b16 %v5280_v39  ;;  %v5638_v22 = vpack.c.bf16 %v14116_v3, %v14116_v3  ;;  %v5654_v47 = vrot.slane %v13879_v51, 1 }
 0x74d   :  { %v14124_v35 = vunpack.c.l.b16 %v5218_v56  ;;  %v5473_v42 = vunpack.c.l.b16 %v5345_v6  ;;  %v5474_v50 = vunpack.c.l.b16 %v5346_v61  ;;  %v6192_v55 = vrot.slane %v13879_v51, 3 }
 0x74e   :  { %v11379_v19 = vpop.eup %11378  ;;  %v5106_v57 = vmul.f32 1.442695, %v5075_v37  ;;  %v5430_v8 = vpack.c.b16 %v5418_v23, %v5417_v41  ;;  %v5637_v33 = vpack.c.bf16 %v14091_v4, %v14091_v4  ;;  %v5689_v63 = vsel %vm240_vm2, %v5654_v47, %v5641_v5  ;;  %v11139_v37 = vld [vmem:[%s16960_s3 + $0x1d0] sm:$0xff] }
 0x74f   :  { %v10679_v21 = vadd.f32 -1.0, %v11379_v19  ;;  %v6346_v49 = vpack.c.b16 %v14126_v27, %v14124_v35  ;;  %v5184_v12 = vrot.slane %v14116_v3, 4  ;;  %v5486_v11 = vpack.c.b16 %v5474_v50, %v5473_v42  ;;  %6067 = vmatpush.bf16.msrb.mxu3 %v11139_v37 }
 0x750   :  { %11380 = vpow2.f32 %v5106_v57  ;;  %v5698_v30 = vpack.c.bf16 %v5689_v63, %v5689_v63  ;;  %v6193_v56 = vsel %vm3293_vm13, %v6190_v34, %v6192_v55  ;;  %v5776_v14 = vunpack.c.l.b16 %v5638_v22  ;;  %v11145_v34 = vld [vmem:[%s16960_s3 + $0x200] sm:$0xff] }
 0x751   :  { %v14130_v48 = vsel %vm5058_vm1, %v14061_v40, %v10679_v21  ;;  %6359 = vrot.lane.b32.xlu2 %v6346_v49, %s11538_s2  ;;  %v5655_v40 = vsel %vm240_vm2, %v5652_v9, %v5654_v47  ;;  %v6227_v5 = vsel %vm3293_vm13, %v6192_v55, %v6179_v26  ;;  %v6235_v29 = vpack.c.bf16 %v6193_v56, %v6193_v56  ;;  %v11151_v21 = vld [vmem:[%s16960_s3 + $0x230] sm:$0xff] }
 0x752   :  { %v5697_v62 = vpack.c.bf16 %v5655_v40, %v5655_v40  ;;  %v5185_v19 = vsel %vm5160_vm14, %v5182_v13, %v5184_v12  ;;  %v5826_v46 = vunpack.c.l.b16 %v5698_v30  ;;  %v6236_v39 = vpack.c.bf16 %v6227_v5, %v6227_v5  ;;  %5966 = vmatpush.bf16.msrb.mxu1 %v11145_v34  ;;  %6472 = vmatpush.bf16.msrb.mxu0 %v11151_v21 }
 0x753   :  { %5441 = vrot.lane.b32.xlu0 %v5430_v8, %s11537_s0  ;;  %vm5059_vm7 = vcmp.gt.f32.partialorder %v14095_v17, 0.0  ;;  %v5775_v26 = vunpack.c.l.b16 %v5637_v33  ;;  %v5186_v13 = vrot.slane %v14130_v48, 4  ;;  %v6307_v45 = vunpack.c.l.b16 %v6235_v29 }
 0x754   :  { %5497 = vrot.lane.b32.xlu1 %v5486_v11, %s11538_s2  ;;  %v5825_v24 = vunpack.c.l.b16 %v5697_v62  ;;  %v6308_v23 = vunpack.c.l.b16 %v6236_v39  ;;  %v5220_v61 = vpack.c.bf16 %v5185_v19, %v5185_v19  ;;  %v5307_v8 = vrot.slane %v13924_v28, 6 }
 0x755   :  { %v5785_v41 = vpack.c.b16 %v5776_v14, %v5775_v26  ;;  %v5187_v6 = vsel %vm5160_vm14, %v5184_v12, %v5186_v13  ;;  %v5308_v42 = vrot.slane %v13956_v16, 6  ;;  %v5241_v33 = vrot.slane %v13924_v28, 5 }
 0x756   :  { %v11381_v9 = vpop.eup %11380  ;;  %v5838_v22 = vpack.c.b16 %v5826_v46, %v5825_v24  ;;  %v5221_v47 = vpack.c.bf16 %v5187_v6, %v5187_v6  ;;  %v6320_v50 = vpack.c.b16 %v6308_v23, %v6307_v45  ;;  %v5242_v40 = vrot.slane %v13956_v16, 5 }
 0x757   :  { %v10680_v57 = vadd.f32 -1.0, %v11381_v9  ;;  %v14182_v63 = vunpack.c.l.b16 %v5220_v61  ;;  %v5309_v12 = vsel %vm765_vm15, %v5307_v8, %v5308_v42  ;;  %v5639_v46 = vpack.c.bf16 %v14130_v48, %v14130_v48 }
 0x758   :  { %v14178_v55 = vunpack.c.l.b16 %v5221_v47  ;;  %v5348_v62 = vpack.c.bf16 %v5309_v12, %v5309_v12  ;;  %v5243_v30 = vsel %vm88_vm0, %v5241_v33, %v5242_v40  ;;  %v6194_v39 = vrot.slane %v13924_v28, 3 }
 0x759   :  { %v14169_v59 = vsel %vm5059_vm7, %v14095_v17, %v10680_v57  ;;  %5799 = vrot.lane.b32.xlu2 %v5785_v41, %s11537_s0  ;;  %v5282_v14 = vpack.c.bf16 %v5243_v30, %v5243_v30  ;;  %v6195_v26 = vrot.slane %v13956_v16, 3  ;;  %v6197_v45 = vrot.slane %v13990_v36, 3 }
 0x75a   :  { %v5290_v49 = vrot.slane %v14169_v59, 6  ;;  %v5224_v17 = vrot.slane %v14169_v59, 5  ;;  %v6347_v56 = vpack.c.b16 %v14178_v55, %v14182_v63  ;;  %v5640_v5 = vpack.c.bf16 %v14169_v59, %v14169_v59 }
 0x75b   :  { %5849 = vrot.lane.b32.xlu0 %v5838_v22, %s11538_s2  ;;  %v5476_v19 = vunpack.c.l.b16 %v5348_v62  ;;  %v5420_v24 = vunpack.c.l.b16 %v5282_v14  ;;  %v5656_v41 = vrot.slane %v13924_v28, 1  ;;  %v5657_v6 = vrot.slane %v13956_v16, 1  ;;  %v11144_v14 = vld [vmem:[%s16960_s3 + $0x1f8] sm:$0xff] }
 0x75c   :  { %v5338_v37 = vsel %vm765_vm15, %v5290_v49, %v5307_v8  ;;  %6331 = vrot.lane.b32.xlu1 %v6320_v50, %s11537_s0  ;;  %v5272_v9 = vsel %vm88_vm0, %v5224_v17, %v5241_v33  ;;  %v5778_v23 = vunpack.c.l.b16 %v5640_v5  ;;  %v5659_v61 = vrot.slane %v13990_v36, 1  ;;  %5967 = vmatpush.bf16.msrb.mxu1 %v11144_v14  ;;  %v11150_v14 = vld [vmem:[%s16960_s3 + $0x228] sm:$0xff] }
 0x75d   :  { %v5347_v11 = vpack.c.bf16 %v5338_v37, %v5338_v37  ;;  %v5281_v57 = vpack.c.bf16 %v5272_v9, %v5272_v9  ;;  %v6196_v47 = vsel %vm3293_vm13, %v6194_v39, %v6195_v26  ;;  %v6198_v8 = vsel %vm3293_vm13, %v6195_v26, %v6197_v45  ;;  %v11138_v9 = vld [vmem:[%s16960_s3 + $0x1c8] sm:$0xff]  ;;  %6473 = vmatpush.bf16.msrb.mxu0 %v11150_v14 }
 0x75e   :  { %v5143_v50 = vrot.slane %v14169_v59, 4  ;;  %v6237_v33 = vpack.c.bf16 %v6196_v47, %v6196_v47  ;;  %v6238_v12 = vpack.c.bf16 %v6198_v8, %v6198_v8  ;;  %v5658_v37 = vsel %vm240_vm2, %v5656_v41, %v5657_v6  ;;  %6068 = vmatpush.bf16.msrb.mxu3 %v11138_v9  ;;  %v11137_v9 = vld [vmem:[%s16960_s3 + $0x1c0] sm:$0xff] }
 0x75f   :  { %v5475_v29 = vunpack.c.l.b16 %v5347_v11  ;;  %v5419_v21 = vunpack.c.l.b16 %v5281_v57  ;;  %v5660_v11 = vsel %vm240_vm2, %v5657_v6, %v5659_v61  ;;  %v5699_v62 = vpack.c.bf16 %v5658_v37, %v5658_v37 }
 0x760   :  { %v5700_v30 = vpack.c.bf16 %v5660_v11, %v5660_v11  ;;  %v5777_v5 = vunpack.c.l.b16 %v5639_v46  ;;  %v5310_v6 = vrot.slane %v13990_v36, 6  ;;  %v5244_v47 = vrot.slane %v13990_v36, 5 }
 0x761   :  { %v5487_v34 = vpack.c.b16 %v5476_v19, %v5475_v29  ;;  %6361 = vrot.lane.b32.xlu2 %v6347_v56, %s11538_s2  ;;  %v5431_v22 = vpack.c.b16 %v5420_v24, %v5419_v21  ;;  %v5188_v56 = vsel %vm5160_vm14, %v5186_v13, %v5143_v50  ;;  %v6310_v29 = vunpack.c.l.b16 %v6238_v12 }
 0x762   :  { %v5206_v19 = vsel %vm5160_vm14, %v5143_v50, %v5175_v60  ;;  %v5828_v57 = vunpack.c.l.b16 %v5700_v30  ;;  %v5222_v24 = vpack.c.bf16 %v5188_v56, %v5188_v56  ;;  %v6309_v13 = vunpack.c.l.b16 %v6237_v33  ;;  %6069 = vmatpush.bf16.msrb.mxu3 %v11137_v9  ;;  %v11149_v9 = vld [vmem:[%s16960_s3 + $0x220] sm:$0xff] }
 0x763   :  { %5443 = vrot.lane.b32.xlu0 %v5431_v22, %s11537_s0  ;;  %v5215_v21 = vpack.c.bf16 %v5206_v19, %v5206_v19  ;;  %v5827_v26 = vunpack.c.l.b16 %v5699_v62  ;;  %v5312_v22 = vrot.slane %v14026_v54, 6  ;;  %v5246_v8 = vrot.slane %v14026_v54, 5  ;;  %v11143_v19 = vld [vmem:[%s16960_s3 + $0x1f0] sm:$0xff]  ;;  %6474 = vmatpush.bf16.msrb.mxu0 %v11149_v9 }
 0x764   :  { %5499 = vrot.lane.b32.xlu1 %v5487_v34, %s11538_s2  ;;  %v5786_v34 = vpack.c.b16 %v5778_v23, %v5777_v5  ;;  %v6321_v46 = vpack.c.b16 %v6310_v29, %v6309_v13  ;;  %v14240_v50 = vunpack.c.l.b16 %v5222_v24  ;;  %v5311_v23 = vsel %vm765_vm15, %v5308_v42, %v5310_v6  ;;  %5968 = vmatpush.bf16.msrb.mxu1 %v11143_v19 }
 0x765   :  { %v5839_v60 = vpack.c.b16 %v5828_v57, %v5827_v26  ;;  %v5313_v33 = vsel %vm765_vm15, %v5310_v6, %v5312_v22  ;;  %v14248_v12 = vunpack.c.l.b16 %v5215_v21  ;;  %v5245_v11 = vsel %vm88_vm0, %v5242_v40, %v5244_v47 }
 0x766   :  { %v5350_v37 = vpack.c.bf16 %v5313_v33, %v5313_v33  ;;  %v5247_v62 = vsel %vm88_vm0, %v5244_v47, %v5246_v8  ;;  %v5349_v42 = vpack.c.bf16 %v5311_v23, %v5311_v23  ;;  %v5283_v30 = vpack.c.bf16 %v5245_v11, %v5245_v11 }
 0x767   :  { %v5284_v56 = vpack.c.bf16 %v5247_v62, %v5247_v62  ;;  %v6199_v40 = vrot.slane %v14026_v54, 3  ;;  %v6201_v5 = vrot.slane %v14091_v4, 3  ;;  %v5661_v29 = vrot.slane %v14026_v54, 1 }
 0x768   :  { %v5478_v57 = vunpack.c.l.b16 %v5350_v37  ;;  %v6348_v13 = vpack.c.b16 %v14248_v12, %v14240_v50  ;;  %v5477_v26 = vunpack.c.l.b16 %v5349_v42  ;;  %v5421_v6 = vunpack.c.l.b16 %v5283_v30 }
 0x769   :  { %5801 = vrot.lane.b32.xlu2 %v5786_v34, %s11537_s0  ;;  %v5422_v24 = vunpack.c.l.b16 %v5284_v56  ;;  %v11136_v34 = vld [vmem:[%s16960_s3 + $0x1b8] sm:$0xff]  ;;  %v6202_v21 = vsel %vm3293_vm13, %v6199_v40, %v6201_v5  ;;  %v6200_v47 = vsel %vm3293_vm13, %v6197_v45, %v6199_v40  ;;  %v5316_v42 = vrot.slane %v14116_v3, 6 }
 0x76a   :  { %v5488_v23 = vpack.c.b16 %v5478_v57, %v5477_v26  ;;  %v6240_v37 = vpack.c.bf16 %v6202_v21, %v6202_v21  ;;  %6070 = vmatpush.bf16.msrb.mxu3 %v11136_v34  ;;  %v6239_v30 = vpack.c.bf16 %v6200_v47, %v6200_v47  ;;  %v5250_v45 = vrot.slane %v14116_v3, 5  ;;  %v11141_v21 = vld [vmem:[%s16960_s3 + $0x1e0] sm:$0xff] }
 0x76b   :  { %5851 = vrot.lane.b32.xlu0 %v5839_v60, %s11538_s2  ;;  %v5662_v60 = vsel %vm240_vm2, %v5659_v61, %v5661_v29  ;;  %v5432_v33 = vpack.c.b16 %v5422_v24, %v5421_v6  ;;  %v11135_v61 = vld [vmem:[%s16960_s3 + $0x1b0] sm:$0xff]  ;;  %v5314_v14 = vrot.slane %v14091_v4, 6  ;;  %v5248_v40 = vrot.slane %v14091_v4, 5  ;;  %v11148_v24 = vld [vmem:[%s16960_s3 + $0x218] sm:$0xff] }
 0x76c   :  { %6333 = vrot.lane.b32.xlu1 %v6321_v46, %s11537_s0  ;;  %v5663_v46 = vrot.slane %v14091_v4, 1  ;;  %v5701_v56 = vpack.c.bf16 %v5662_v60, %v5662_v60  ;;  %v6312_v19 = vunpack.c.l.b16 %v6240_v37  ;;  %v6311_v26 = vunpack.c.l.b16 %v6239_v30  ;;  %6475 = vmatpush.bf16.msrb.mxu0 %v11148_v24 }
 0x76d   :  { %v5317_v34 = vsel %vm765_vm15, %v5314_v14, %v5316_v42  ;;  %v5315_v47 = vsel %vm765_vm15, %v5312_v22, %v5314_v14  ;;  %v5249_v60 = vsel %vm88_vm0, %v5246_v8, %v5248_v40  ;;  %v5667_v30 = vrot.slane %v14130_v48, 1  ;;  %v11147_v8 = vld [vmem:[%s16960_s3 + $0x210] sm:$0xff] }
 0x76e   :  { %v5664_v11 = vsel %vm240_vm2, %v5661_v29, %v5663_v46  ;;  %v11142_v29 = vld [vmem:[%s16960_s3 + $0x1e8] sm:$0xff]  ;;  %6071 = vmatpush.bf16.msrb.mxu3 %v11135_v61  ;;  %v5829_v6 = vunpack.c.l.b16 %v5701_v56  ;;  %v5352_v37 = vpack.c.bf16 %v5317_v34, %v5317_v34  ;;  %v6205_v61 = vrot.slane %v14130_v48, 3 }
 0x76f   :  { %v5702_v62 = vpack.c.bf16 %v5664_v11, %v5664_v11  ;;  %5969 = vmatpush.bf16.msrb.mxu1 %v11142_v29  ;;  %v5351_v22 = vpack.c.bf16 %v5315_v47, %v5315_v47  ;;  %v5285_v56 = vpack.c.bf16 %v5249_v60, %v5249_v60  ;;  %v6203_v9 = vrot.slane %v14116_v3, 3 }
 0x770   :  { %v5665_v14 = vrot.slane %v14116_v3, 1  ;;  %6476 = vmatpush.bf16.msrb.mxu0 %v11147_v8 }
 0x771   :  { %6363 = vrot.lane.b32.xlu2 %v6348_v13, %s11538_s2  ;;  %v5830_v57 = vunpack.c.l.b16 %v5702_v62  ;;  %v5251_v13 = vsel %vm88_vm0, %v5248_v40, %v5250_v45  ;;  %v14320_v62 = vpop.permute.xlu2 %5787  ;;  %v5480_v40 = vunpack.c.l.b16 %v5352_v37  ;;  %v5479_v24 = vunpack.c.l.b16 %v5351_v22 }
 0x772   :  { %v5286_v11 = vpack.c.bf16 %v5251_v13, %v5251_v13  ;;  %v5423_v34 = vunpack.c.l.b16 %v5285_v56  ;;  %v6204_v13 = vsel %vm3293_vm13, %v6201_v5, %v6203_v9  ;;  %v5252_v22 = vrot.slane %v14130_v48, 5 }
 0x773   :  { %5445 = vrot.lane.b32.xlu0 %v5432_v33, %s11537_s0  ;;  %v5840_v33 = vpack.c.b16 %v5830_v57, %v5829_v6  ;;  %5970 = vmatpush.bf16.msrb.mxu1 %v11141_v21  ;;  %v5668_v57 = vsel %vm240_vm2, %v5665_v14, %v5667_v30  ;;  %v5666_v21 = vsel %vm240_vm2, %v5663_v46, %v5665_v14 }
 0x774   :  { %5501 = vrot.lane.b32.xlu1 %v5488_v23, %s11538_s2  ;;  %v6322_v23 = vpack.c.b16 %v6312_v19, %v6311_v26  ;;  %v5424_v29 = vunpack.c.l.b16 %v5286_v11  ;;  %v6206_v19 = vsel %vm3293_vm13, %v6203_v9, %v6205_v61  ;;  %v5489_v26 = vpack.c.b16 %v5480_v40, %v5479_v24 }
 0x775   :  { %v6242_v47 = vpack.c.bf16 %v6206_v19, %v6206_v19  ;;  %v5704_v60 = vpack.c.bf16 %v5668_v57, %v5668_v57  ;;  %v5703_v37 = vpack.c.bf16 %v5666_v21, %v5666_v21  ;;  %v5318_v11 = vrot.slane %v14130_v48, 6 }
 0x776   :  { %v5433_v6 = vpack.c.b16 %v5424_v29, %v5423_v34  ;;  %v5254_v8 = vsel %vm88_vm0, %v5252_v22, %v5224_v17  ;;  %v5559_v9 = vrot.slane %v13879_v51, 7  ;;  %v5563_v19 = vrot.slane %v13787_v31, 7 }
 0x777   :  { %v6314_v56 = vunpack.c.l.b16 %v6242_v47  ;;  %v5832_v5 = vunpack.c.l.b16 %v5704_v60  ;;  %v5320_v46 = vsel %vm765_vm15, %v5318_v11, %v5290_v49  ;;  %v5831_v40 = vunpack.c.l.b16 %v5703_v37 }
 0x778   :  { %v5319_v29 = vsel %vm765_vm15, %v5316_v42, %v5318_v11  ;;  %v5564_v57 = vrot.slane %v13792_v18, 7  ;;  %v5354_v24 = vpack.c.bf16 %v5320_v46, %v5320_v46  ;;  %v5253_v49 = vsel %vm88_vm0, %v5250_v45, %v5252_v22 }
 0x779   :  { %v5288_v17 = vpack.c.bf16 %v5254_v8, %v5254_v8  ;;  %v6207_v21 = vrot.slane %v14169_v59, 3  ;;  %v5607_v42 = vsel %vm161_vm3, %v5559_v9, %v5563_v19  ;;  %v5287_v47 = vpack.c.bf16 %v5253_v49, %v5253_v49 }
 0x77a   :  { %v6116_v60 = vrot.slane %v13804_v2, 2  ;;  %v5565_v45 = vsel %vm161_vm3, %v5563_v19, %v5564_v57  ;;  %v5482_v37 = vunpack.c.l.b16 %v5354_v24  ;;  %v5609_v46 = vpack.c.bf16 %v5607_v42, %v5607_v42 }
 0x77b   :  { %5853 = vrot.lane.b32.xlu0 %v5840_v33, %s11538_s2  ;;  %v6241_v33 = vpack.c.bf16 %v6204_v13, %v6204_v13  ;;  %v5841_v13 = vpack.c.b16 %v5832_v5, %v5831_v40  ;;  %v5426_v11 = vunpack.c.l.b16 %v5288_v17  ;;  %v6208_v22 = vsel %vm3293_vm13, %v6205_v61, %v6207_v21 }
 0x77c   :  { %6335 = vrot.lane.b32.xlu1 %v6322_v23, %s11537_s0  ;;  %v14337_v23 = vpop.permute.xlu2 %6349  ;;  %v6114_v5 = vrot.slane %v13792_v18, 2  ;;  %v5425_v19 = vunpack.c.l.b16 %v5287_v47  ;;  %v6113_v24 = vrot.slane %v13787_v31, 2 }
 0x77d   :  { %v6313_v14 = vunpack.c.l.b16 %v6241_v33 }
 0x77e   :  { %v6117_v61 = vsel %vm1180_vm9, %v6114_v5, %v6116_v60  ;;  %v5434_v17 = vpack.c.b16 %v5426_v11, %v5425_v19  ;;  %v5568_v19 = vrot.slane %v13814_v25, 7 }
 0x77f   :  { %v6323_v34 = vpack.c.b16 %v6314_v56, %v6313_v14  ;;  %v6228_v56 = vsel %vm3293_vm13, %v6207_v21, %v6194_v39  ;;  %v5387_v39 = vpack.c.b16 %v13809_v10, %v13933_v1  ;;  %v6164_v47 = vpack.c.bf16 %v6117_v61, %v6117_v61 }
 0x783   :  { %5447 = vrot.lane.b32.xlu0 %v5433_v6, %s11537_s0  ;;  %v5669_v6 = vrot.slane %v14169_v59, 1 }
 0x784   :  { %5503 = vrot.lane.b32.xlu1 %v5489_v26, %s11538_s2  ;;  %v5353_v26 = vpack.c.bf16 %v5319_v29, %v5319_v29  ;;  %v14369_v33 = vpop.permute.xlu2 %5789  ;;  %v5610_v29 = vpack.c.bf16 %v5565_v45, %v5565_v45  ;;  %v5723_v45 = vunpack.c.l.b16 %v5609_v46 }
 0x785   :  { %v5670_v14 = vsel %vm240_vm2, %v5667_v30, %v5669_v6  ;;  %v5690_v40 = vsel %vm240_vm2, %v5669_v6, %v5656_v41  ;;  %v6115_v41 = vsel %vm1180_vm9, %v6113_v24, %v6114_v5 }
 0x786   :  { %v5481_v8 = vunpack.c.l.b16 %v5353_v26  ;;  %v5705_v21 = vpack.c.bf16 %v5670_v14, %v5670_v14  ;;  %v5706_v26 = vpack.c.bf16 %v5690_v40, %v5690_v40  ;;  %v5724_v1 = vunpack.c.l.b16 %v5610_v29 }
 0x787   :  { %v6262_v14 = vunpack.c.l.b16 %v6164_v47  ;;  %v5566_v29 = vrot.slane %v13804_v2, 7 }
 0x788   :  { %v5490_v49 = vpack.c.b16 %v5482_v37, %v5481_v8  ;;  %v6163_v37 = vpack.c.bf16 %v6115_v41, %v6115_v41  ;;  %v5834_v8 = vunpack.c.l.b16 %v5706_v26  ;;  %v5739_v40 = vpack.c.b16 %v5724_v1, %v5723_v45 }
 0x789   :  { %v5569_v26 = vsel %vm161_vm3, %v5566_v29, %v5568_v19  ;;  %v5388_v1 = vpack.c.b16 %v13833_v32, %v13811_v44 }
 0x78a   :  { %v6261_v46 = vunpack.c.l.b16 %v6163_v37  ;;  %v5861_v61 = vsel %vm459_vm4, %v5739_v40, %v14320_v62  ;;  %v5612_v47 = vpack.c.bf16 %v5569_v26, %v5569_v26 }
 0x78b   :  { %5855 = vrot.lane.b32.xlu0 %v5841_v13, %s11538_s2  ;;  %v6244_v13 = vpack.c.bf16 %v6228_v56, %v6228_v56  ;;  %v5833_v56 = vunpack.c.l.b16 %v5705_v21  ;;  %v6120_v21 = vrot.slane %v13827_v43, 2 }
 0x78c   :  { %6337 = vrot.lane.b32.xlu1 %v6323_v34, %s11537_s0  ;;  %v6243_v34 = vpack.c.bf16 %v6208_v22, %v6208_v22  ;;  %v6352_v5 = vpop.permute.xlu2 %6351 }
 0x78d   :  { %v6316_v22 = vunpack.c.l.b16 %v6244_v13 }
 0x78e   :  { %v6315_v11 = vunpack.c.l.b16 %v6243_v34  ;;  %v6277_v34 = vpack.c.b16 %v6262_v14, %v6261_v46 }
 0x793   :  { %5449 = vrot.lane.b32.xlu0 %v5434_v17, %s11537_s0 }
 0x794   :  { %5505 = vrot.lane.b32.xlu1 %v5490_v49, %s11538_s2  ;;  %v6324_v49 = vpack.c.b16 %v6316_v22, %v6315_v11 }
 0x795   :  { %v5436_v30 = vpop.permute.xlu0 %5435 }
 0x796   :  { %v5509_v6 = vsel %vm459_vm4, %v5387_v39, %v5436_v30  ;;  %v5492_v42 = vpop.permute.xlu1 %5491  ;;  %v5842_v39 = vpack.c.b16 %v5834_v8, %v5833_v56  ;;  %v5726_v8 = vunpack.c.l.b16 %v5612_v47  ;;  %v5389_v47 = vpack.c.b16 %v13874_v58, %v13835_v52 }
 0x797   :  { %v5532_v10 = vsel %vm484_vm5, %v5509_v6, %v5492_v42  ;;  %v6118_v6 = vrot.slane %v13814_v25, 2  ;;  %v5567_v42 = vsel %vm161_vm3, %v5564_v57, %v5566_v29 }
 0x798   :  { %10737 = vmatmul.msk.bf16.vlgmr.msrb.gmra.mxu3 %vm549_vm6, %v5532_v10  ;;  %v5792_v10 = vpop.permute.xlu2 %5791  ;;  %v5611_v37 = vpack.c.bf16 %v5567_v42, %v5567_v42 }
 0x799   :  { %v6121_v45 = vsel %vm1180_vm9, %v6118_v6, %v6120_v21 }
 0x79a   :  { %v6166_v56 = vpack.c.bf16 %v6121_v45, %v6121_v45  ;;  %v5725_v46 = vunpack.c.l.b16 %v5611_v37 }
 0x79b   :  { %5857 = vrot.lane.b32.xlu0 %v5842_v39, %s11538_s2 }
 0x79c   :  { %6339 = vrot.lane.b32.xlu1 %v6324_v49, %s11537_s0  ;;  %v5740_v49 = vpack.c.b16 %v5726_v8, %v5725_v46 }
 0x79d   :  { %v5844_v17 = vpop.permute.xlu0 %5843 }
 0x79e   :  { %v5884_v30 = vsel %vm484_vm5, %v5861_v61, %v5844_v17  ;;  %v6326_v13 = vpop.permute.xlu1 %6325  ;;  %v6264_v61 = vunpack.c.l.b16 %v6166_v56  ;;  %v5864_v32 = vsel %vm459_vm4, %v5740_v49, %v14369_v33 }
 0x79f   :  { %v6367_v41 = vsel %vm459_vm4, %v6277_v34, %v6326_v13  ;;  %10705 = vmatmul.msk.bf16.vlgmr.msrb.gmra.mxu1 %vm549_vm6, %v5884_v30  ;;  %v5570_v13 = vrot.slane %v13827_v43, 7 }
 0x7a0   :  { %v6390_v62 = vsel %vm484_vm5, %v6367_v41, %v14337_v23  ;;  %v6119_v23 = vsel %vm1180_vm9, %v6116_v60, %v6118_v6  ;;  %v5572_v60 = vrot.slane %v13838_v7, 7  ;;  %v6354_v17 = vpop.permute.xlu2 %6353  ;;  %v6124_v41 = vrot.slane %v13851_v15, 2 }
 0x7a1   :  { %10769 = vmatmul.msk.bf16.vlgmr.msrb.gmra.mxu0 %vm549_vm6, %v6390_v62  ;;  %v6165_v40 = vpack.c.bf16 %v6119_v23, %v6119_v23  ;;  %v6122_v6 = vrot.slane %v13838_v7, 2  ;;  %v5571_v42 = vsel %vm161_vm3, %v5568_v19, %v5570_v13 }
 0x7a2   :  { %v5573_v33 = vsel %vm161_vm3, %v5570_v13, %v5572_v60 }
 0x7a3   :  { %v6263_v44 = vunpack.c.l.b16 %v6165_v40  ;;  %v6125_v45 = vsel %vm1180_vm9, %v6122_v6, %v6124_v41  ;;  %v6123_v23 = vsel %vm1180_vm9, %v6120_v21, %v6122_v6  ;;  %v5574_v21 = vrot.slane %v13851_v15, 7 }
 0x7a4   :  { %v6168_v56 = vpack.c.bf16 %v6125_v45, %v6125_v45  ;;  %v6167_v19 = vpack.c.bf16 %v6123_v23, %v6123_v23 }
 0x7a5   :  { %v5438_v11 = vpop.permute.xlu0 %5437  ;;  %v6278_v30 = vpack.c.b16 %v6264_v61, %v6263_v44 }
 0x7a6   :  { %v5512_v22 = vsel %vm459_vm4, %v5388_v1, %v5438_v11  ;;  %v5494_v57 = vpop.permute.xlu1 %5493  ;;  %v5614_v1 = vpack.c.bf16 %v5573_v33, %v5573_v33  ;;  %v6266_v52 = vunpack.c.l.b16 %v6168_v56  ;;  %v6265_v46 = vunpack.c.l.b16 %v6167_v19 }
 0x7a7   :  { %v5534_v14 = vsel %vm484_vm5, %v5512_v22, %v5494_v57 }
 0x7a8   :  { %10738 = vmatmul.msk.bf16.gmra.mxu3 %vm549_vm6, %v5534_v14  ;;  %v5794_v8 = vpop.permute.xlu2 %5793  ;;  %v5728_v14 = vunpack.c.l.b16 %v5614_v1  ;;  %v6279_v44 = vpack.c.b16 %v6266_v52, %v6265_v46  ;;  %v5577_v52 = vrot.slane %v13924_v28, 7 }
 0x7ad   :  { %v5846_v39 = vpop.permute.xlu0 %5845 }
 0x7ae   :  { %v5886_v29 = vsel %vm484_vm5, %v5864_v32, %v5846_v39  ;;  %v6328_v34 = vpop.permute.xlu1 %6327 }
 0x7af   :  { %v6370_v26 = vsel %vm459_vm4, %v6278_v30, %v6328_v34  ;;  %10706 = vmatmul.msk.bf16.gmra.mxu1 %vm549_vm6, %v5886_v29  ;;  %v6126_v30 = vrot.slane %v13879_v51, 2  ;;  %v5576_v34 = vsel %vm161_vm3, %v5574_v21, %v5559_v9 }
 0x7b0   :  { %v6392_v62 = vsel %vm484_vm5, %v6370_v26, %v6352_v5  ;;  %v5613_v5 = vpack.c.bf16 %v5571_v42, %v5571_v42  ;;  %v6356_v13 = vpop.permute.xlu2 %6355  ;;  %v5575_v26 = vsel %vm161_vm3, %v5572_v60, %v5574_v21  ;;  %v5390_v42 = vpack.c.b16 %v13935_v20, %v13876_v38 }
 0x7b1   :  { %10770 = vmatmul.msk.bf16.gmra.mxu0 %vm549_vm6, %v6392_v62  ;;  %v5616_v62 = vpack.c.bf16 %v5576_v34, %v5576_v34  ;;  %v6127_v33 = vsel %vm1180_vm9, %v6124_v41, %v6126_v30  ;;  %v6161_v6 = vsel %vm1180_vm9, %v6126_v30, %v6113_v24  ;;  %v5560_v20 = vrot.slane %v14169_v59, 7 }
 0x7b2   :  { %v5727_v40 = vunpack.c.l.b16 %v5613_v5  ;;  %v6169_v1 = vpack.c.bf16 %v6127_v33, %v6127_v33  ;;  %v5391_v34 = vpack.c.b16 %v14019_v53, %v14248_v12 }
 0x7b4   :  { %v5741_v58 = vpack.c.b16 %v5728_v14, %v5727_v40  ;;  %v6267_v5 = vunpack.c.l.b16 %v6169_v1  ;;  %v6131_v40 = vrot.slane %v13990_v36, 2 }
 0x7b5   :  { %v5440_v37 = vpop.permute.xlu0 %5439 }
 0x7b6   :  { %v5515_v11 = vsel %vm459_vm4, %v5389_v47, %v5440_v37  ;;  %v5496_v22 = vpop.permute.xlu1 %5495  ;;  %v5867_v61 = vsel %vm459_vm4, %v5741_v58, %v5792_v10  ;;  %v5615_v47 = vpack.c.bf16 %v5575_v26, %v5575_v26  ;;  %v5730_v37 = vunpack.c.l.b16 %v5616_v62 }
 0x7b7   :  { %v5536_v57 = vsel %vm484_vm5, %v5515_v11, %v5496_v22  ;;  %v5578_v58 = vrot.slane %v13956_v16, 7 }
 0x7b8   :  { %10739 = vmatmul.msk.bf16.gmra.mxu3 %vm549_vm6, %v5536_v57  ;;  %v5729_v23 = vunpack.c.l.b16 %v5615_v47  ;;  %v5796_v41 = vpop.permute.xlu2 %5795 }
 0x7ba   :  { %v5742_v24 = vpack.c.b16 %v5730_v37, %v5729_v23  ;;  %v5582_v37 = vrot.slane %v14026_v54, 7 }
 0x7bc   :  { %v5870_v56 = vsel %vm459_vm4, %v5742_v24, %v5794_v8  ;;  %v6129_v8 = vrot.slane %v13956_v16, 2 }
 0x7bd   :  { %v5848_v49 = vpop.permute.xlu0 %5847 }
 0x7be   :  { %v5888_v32 = vsel %vm484_vm5, %v5867_v61, %v5848_v49  ;;  %v6330_v39 = vpop.permute.xlu1 %6329  ;;  %v5608_v49 = vsel %vm161_vm3, %v5560_v20, %v5577_v52  ;;  %v6132_v21 = vsel %vm1180_vm9, %v6129_v8, %v6131_v40 }
 0x7bf   :  { %v6373_v29 = vsel %vm459_vm4, %v6279_v44, %v6330_v39  ;;  %10707 = vmatmul.msk.bf16.gmra.mxu1 %vm549_vm6, %v5888_v32  ;;  %v6128_v44 = vrot.slane %v13924_v28, 2  ;;  %v5579_v32 = vsel %vm161_vm3, %v5577_v52, %v5578_v58 }
 0x7c0   :  { %v6394_v10 = vsel %vm484_vm5, %v6373_v29, %v6354_v17  ;;  %v6170_v17 = vpack.c.bf16 %v6161_v6, %v6161_v6  ;;  %v6358_v39 = vpop.permute.xlu2 %6357  ;;  %v5617_v29 = vpack.c.bf16 %v5608_v49, %v5608_v49 }
 0x7c1   :  { %10771 = vmatmul.msk.bf16.gmra.mxu0 %vm549_vm6, %v6394_v10  ;;  %v6130_v30 = vsel %vm1180_vm9, %v6128_v44, %v6129_v8  ;;  %v5618_v10 = vpack.c.bf16 %v5579_v32, %v5579_v32 }
 0x7c2   :  { %v6268_v22 = vunpack.c.l.b16 %v6170_v17  ;;  %v6171_v6 = vpack.c.bf16 %v6130_v30, %v6130_v30 }
 0x7c4   :  { %v6280_v14 = vpack.c.b16 %v6268_v22, %v6267_v5  ;;  %v6269_v1 = vunpack.c.l.b16 %v6171_v6  ;;  %v6135_v5 = vrot.slane %v14091_v4, 2  ;;  %v5580_v22 = vrot.slane %v13990_v36, 7 }
 0x7c5   :  { %v5442_v45 = vpop.permute.xlu0 %5441 }
 0x7c6   :  { %v5518_v9 = vsel %vm459_vm4, %v5390_v42, %v5442_v45  ;;  %v5498_v11 = vpop.permute.xlu1 %5497  ;;  %v5731_v42 = vunpack.c.l.b16 %v5617_v29 }
 0x7c7   :  { %v5538_v60 = vsel %vm484_vm5, %v5518_v9, %v5498_v11  ;;  %v5732_v9 = vunpack.c.l.b16 %v5618_v10 }
 0x7c8   :  { %10740 = vmatmul.msk.bf16.gmra.mxu3 %vm549_vm6, %v5538_v60  ;;  %v5798_v11 = vpop.permute.xlu2 %5797 }
 0x7c9   :  { %v5743_v17 = vpack.c.b16 %v5732_v9, %v5731_v42  ;;  %v6139_v42 = vrot.slane %v14130_v48, 2 }
 0x7cb   :  { %v5873_v12 = vsel %vm459_vm4, %v5743_v17, %v5796_v41  ;;  %v6137_v17 = vrot.slane %v14116_v3, 2 }
 0x7cd   :  { %v5850_v38 = vpop.permute.xlu0 %5849 }
 0x7ce   :  { %v5890_v57 = vsel %vm484_vm5, %v5870_v56, %v5850_v38  ;;  %v6332_v19 = vpop.permute.xlu1 %6331 }
 0x7cf   :  { %10708 = vmatmul.msk.bf16.gmra.mxu1 %vm549_vm6, %v5890_v57  ;;  %v6376_v46 = vsel %vm459_vm4, %v6280_v14, %v6332_v19  ;;  %v6133_v57 = vrot.slane %v14026_v54, 2  ;;  %v5583_v14 = vsel %vm161_vm3, %v5580_v22, %v5582_v37  ;;  %v5581_v19 = vsel %vm161_vm3, %v5578_v58, %v5580_v22 }
 0x7d0   :  { %v6396_v61 = vsel %vm484_vm5, %v6376_v46, %v6356_v13  ;;  %v6172_v13 = vpack.c.bf16 %v6132_v21, %v6132_v21  ;;  %v5620_v52 = vpack.c.bf16 %v5583_v14, %v5583_v14  ;;  %v5619_v49 = vpack.c.bf16 %v5581_v19, %v5581_v19 }
 0x7d1   :  { %10772 = vmatmul.msk.bf16.gmra.mxu0 %vm549_vm6, %v6396_v61  ;;  %v6136_v41 = vsel %vm1180_vm9, %v6133_v57, %v6135_v5  ;;  %v6134_v46 = vsel %vm1180_vm9, %v6131_v40, %v6133_v57  ;;  %v5392_v61 = vpack.c.b16 %v14124_v35, %v14021_v0  ;;  %v6138_v22 = vsel %vm1180_vm9, %v6135_v5, %v6137_v17 }
 0x7d2   :  { %v6270_v45 = vunpack.c.l.b16 %v6172_v13  ;;  %v6174_v8 = vpack.c.bf16 %v6136_v41, %v6136_v41  ;;  %v6173_v30 = vpack.c.bf16 %v6134_v46, %v6134_v46  ;;  %v5733_v10 = vunpack.c.l.b16 %v5619_v49 }
 0x7d3   :  { %v6175_v19 = vpack.c.bf16 %v6138_v22, %v6138_v22 }
 0x7d4   :  { %v6281_v53 = vpack.c.b16 %v6270_v45, %v6269_v1  ;;  %v6272_v58 = vunpack.c.l.b16 %v6174_v8 }
 0x7d5   :  { %v5444_v62 = vpop.permute.xlu0 %5443  ;;  %v6273_v49 = vunpack.c.l.b16 %v6175_v19 }
 0x7d6   :  { %v5500_v26 = vpop.permute.xlu1 %5499  ;;  %v5521_v33 = vsel %vm459_vm4, %v5391_v34, %v5444_v62  ;;  %v5734_v34 = vunpack.c.l.b16 %v5620_v52  ;;  %v5586_v62 = vrot.slane %v14116_v3, 7 }
 0x7d7   :  { %v5540_v47 = vsel %vm484_vm5, %v5521_v33, %v5500_v26  ;;  %v6271_v26 = vunpack.c.l.b16 %v6173_v30 }
 0x7d8   :  { %10741 = vmatmul.msk.bf16.gmra.mxu3 %vm549_vm6, %v5540_v47  ;;  %v5744_v40 = vpack.c.b16 %v5734_v34, %v5733_v10  ;;  %v5584_v47 = vrot.slane %v14091_v4, 7 }
 0x7d9   :  { %v6282_v0 = vpack.c.b16 %v6272_v58, %v6271_v26 }
 0x7da   :  { %v5876_v35 = vsel %vm459_vm4, %v5744_v40, %v5798_v11  ;;  %v6140_v11 = vsel %vm1180_vm9, %v6137_v17, %v6139_v42 }
 0x7dd   :  { %v5852_v23 = vpop.permute.xlu0 %5851 }
 0x7de   :  { %v6334_v60 = vpop.permute.xlu1 %6333  ;;  %v5892_v56 = vsel %vm484_vm5, %v5873_v12, %v5852_v23 }
 0x7df   :  { %v6379_v24 = vsel %vm459_vm4, %v6281_v53, %v6334_v60  ;;  %10709 = vmatmul.msk.bf16.gmra.mxu1 %vm549_vm6, %v5892_v56  ;;  %v5587_v53 = vsel %vm161_vm3, %v5584_v47, %v5586_v62  ;;  %v5585_v60 = vsel %vm161_vm3, %v5582_v37, %v5584_v47  ;;  %v6176_v56 = vpack.c.bf16 %v6140_v11, %v6140_v11 }
 0x7e0   :  { %v6398_v38 = vsel %vm484_vm5, %v6379_v24, %v6358_v39  ;;  %v6360_v39 = vpop.permute.xlu2 %6359  ;;  %v5622_v23 = vpack.c.bf16 %v5587_v53, %v5587_v53  ;;  %v5393_v24 = vpack.c.b16 %v14182_v63, %v14126_v27 }
 0x7e1   :  { %10773 = vmatmul.msk.bf16.gmra.mxu0 %vm549_vm6, %v6398_v38  ;;  %v5621_v38 = vpack.c.bf16 %v5585_v60, %v5585_v60 }
 0x7e2   :  { %v5736_v52 = vunpack.c.l.b16 %v5622_v23 }
 0x7e3   :  { %v5735_v37 = vunpack.c.l.b16 %v5621_v38 }
 0x7e5   :  { %v5446_v32 = vpop.permute.xlu0 %5445  ;;  %v5745_v5 = vpack.c.b16 %v5736_v52, %v5735_v37  ;;  %v14555_v52 = vld [vmem:[%s16961_s4 + $0x5] ss:$0 sm:$0xff] }
 0x7e6   :  { %v5502_v21 = vpop.permute.xlu1 %5501  ;;  %v5524_v29 = vsel %vm459_vm4, %v5392_v61, %v5446_v32  ;;  %v6274_v61 = vunpack.c.l.b16 %v6176_v56 }
 0x7e7   :  { %v5542_v13 = vsel %vm484_vm5, %v5524_v29, %v5502_v21  ;;  %v5588_v29 = vrot.slane %v14130_v48, 7 }
 0x7e8   :  { %10742 = vmatmul.msk.bf16.gmra.mxu3 %vm549_vm6, %v5542_v13  ;;  %v5800_v12 = vpop.permute.xlu2 %5799  ;;  %v6283_v21 = vpack.c.b16 %v6274_v61, %v6273_v49 }
 0x7e9   :  { %v5879_v27 = vsel %vm459_vm4, %v5745_v5, %v5800_v12  ;;  %v5590_v58 = vsel %vm161_vm3, %v5588_v29, %v5560_v20  ;;  %v5589_v40 = vsel %vm161_vm3, %v5586_v62, %v5588_v29 }
 0x7ed   :  { %v5854_v6 = vpop.permute.xlu0 %5853 }
 0x7ee   :  { %v6336_v33 = vpop.permute.xlu1 %6335  ;;  %v5894_v9 = vsel %vm484_vm5, %v5876_v35, %v5854_v6 }
 0x7ef   :  { %v6382_v45 = vsel %vm459_vm4, %v6282_v0, %v6336_v33  ;;  %10710 = vmatmul.msk.bf16.gmra.mxu1 %vm549_vm6, %v5894_v9  ;;  %v5624_v0 = vpack.c.bf16 %v5590_v58, %v5590_v58  ;;  %v5394_v33 = vpack.c.b16 %v14240_v50, %v14178_v55 }
 0x7f0   :  { %v6400_v1 = vsel %vm484_vm5, %v6382_v45, %v6360_v39  ;;  %v6362_v8 = vpop.permute.xlu2 %6361  ;;  %v6141_v39 = vrot.slane %v14169_v59, 2  ;;  %v5623_v45 = vpack.c.bf16 %v5589_v40, %v5589_v40 }
 0x7f1   :  { %10774 = vmatmul.msk.bf16.gmra.mxu0 %vm549_vm6, %v6400_v1  ;;  %v5738_v17 = vunpack.c.l.b16 %v5624_v0 }
 0x7f2   :  { %v6142_v10 = vsel %vm1180_vm9, %v6139_v42, %v6141_v39  ;;  %v6162_v26 = vsel %vm1180_vm9, %v6141_v39, %v6128_v44  ;;  %v5737_v62 = vunpack.c.l.b16 %v5623_v45 }
 0x7f3   :  { %v6177_v6 = vpack.c.bf16 %v6142_v10, %v6142_v10  ;;  %v6178_v47 = vpack.c.bf16 %v6162_v26, %v6162_v26 }
 0x7f4   :  { %v5746_v12 = vpack.c.b16 %v5738_v17, %v5737_v62 }
 0x7f5   :  { %v5448_v14 = vpop.permute.xlu0 %5447  ;;  %v6275_v44 = vunpack.c.l.b16 %v6177_v6  ;;  %v6276_v53 = vunpack.c.l.b16 %v6178_v47 }
 0x7f6   :  { %v5504_v57 = vpop.permute.xlu1 %5503  ;;  %v5527_v41 = vsel %vm459_vm4, %v5393_v24, %v5448_v14 }
 0x7f7   :  { %v5544_v46 = vsel %vm484_vm5, %v5527_v41, %v5504_v57  ;;  %v6284_v11 = vpack.c.b16 %v6276_v53, %v6275_v44 }
 0x7f8   :  { %10743 = vmatmul.msk.bf16.gmra.mxu3 %vm549_vm6, %v5544_v46  ;;  %v5802_v35 = vpop.permute.xlu2 %5801 }
 0x7f9   :  { %v5882_v60 = vsel %vm459_vm4, %v5746_v12, %v5802_v35 }
 0x7fd   :  { %v5856_v32 = vpop.permute.xlu0 %5855 }
 0x7fe   :  { %v6338_v63 = vpop.permute.xlu1 %6337  ;;  %v5896_v34 = vsel %vm484_vm5, %v5879_v27, %v5856_v32 }
 0x7ff   :  { %v6385_v30 = vsel %vm459_vm4, %v6283_v21, %v6338_v63  ;;  %10711 = vmatmul.msk.bf16.gmra.mxu1 %vm549_vm6, %v5896_v34 }
 0x800   :  { %v6402_v13 = vsel %vm484_vm5, %v6385_v30, %v6362_v8  ;;  %v6364_v23 = vpop.permute.xlu2 %6363 }
 0x801   :  { %10775 = vmatmul.msk.bf16.gmra.mxu0 %vm549_vm6, %v6402_v13 }
 0x805   :  { %v5450_v20 = vpop.permute.xlu0 %5449 }
 0x806   :  { %v5506_v9 = vpop.permute.xlu1 %5505  ;;  %v5530_v1 = vsel %vm459_vm4, %v5394_v33, %v5450_v20 }
 0x807   :  { %v5546_v42 = vsel %vm484_vm5, %v5530_v1, %v5506_v9 }
 0x808   :  { %10744 = vmatmul.msk.bf16.gmra.mxu3 %vm549_vm6, %v5546_v42 }
 0x80d   :  { %v5858_v50 = vpop.permute.xlu0 %5857 }
 0x80e   :  { %v6340_v55 = vpop.permute.xlu1 %6339  ;;  %v5898_v24 = vsel %vm484_vm5, %v5882_v60, %v5858_v50 }
 0x80f   :  { %v6388_v22 = vsel %vm459_vm4, %v6284_v11, %v6340_v55  ;;  %10712 = vmatmul.msk.bf16.gmra.mxu1 %vm549_vm6, %v5898_v24 }
 0x810   :  { %v6404_v56 = vsel %vm484_vm5, %v6388_v22, %v6364_v23 }
 0x811   :  { %10776 = vmatmul.msk.bf16.gmra.mxu0 %vm549_vm6, %v6404_v56 }
 0x81b   :  { %v6073_v38 = vpop.f32.mrf.mxu3 }
 0x81c   :  { %v5972_v57 = vpop.f32.mrf.mxu1 }
 0x81d   :  { %v6074_v14 = vadd.f32 %v6073_v38, %v5972_v57 }
 0x81e   :  { %v6478_v41 = vpop.f32.mrf.mxu0 }
 0x81f   :  { %v6518_v19 = vadd.f32 %v6478_v41, %v6074_v14 }
 0x821   :  { %v6534_v46 = vadd.f32 %v6518_v19, %v13787_v31 }
 0x823   :  { %v6075_v61 = vpop.f32.mrf.mxu3  ;;  %v6552_v37 = vadd.f32 %v14555_v52, %v6534_v46 }
 0x824   :  { %v5974_v8 = vpop.f32.mrf.mxu1 }
 0x825   :  { %v6584_v49 = vmin.f32 %v6552_v37, 0.0  ;;  %v6076_v5 = vadd.f32 %v6075_v61, %v5974_v8  ;;  %vm6568_vm8 = vcmp.gt.f32.partialorder %v6552_v37, 0.0 }
 0x826   :  { %v6480_v21 = vpop.f32.mrf.mxu0 }
 0x827   :  { %v6600_v27 = vmul.f32 1.442695, %v6584_v49  ;;  %v6519_v63 = vadd.f32 %v6480_v21, %v6076_v5 }
 0x829   :  { %11382 = vpow2.f32 %v6600_v27  ;;  %v6535_v32 = vadd.f32 %v6519_v63, %v13792_v18 }
 0x82b   :  { %v6553_v39 = vadd.f32 %v14555_v52, %v6535_v32  ;;  %v6078_v29 = vpop.f32.mrf.mxu3 }
 0x82c   :  { %v5977_v30 = vpop.f32.mrf.mxu1 }
 0x82d   :  { %v6585_v34 = vmin.f32 %v6553_v39, 0.0  ;;  %v6079_v13 = vadd.f32 %v6078_v29, %v5977_v30  ;;  %vm6569_vm10 = vcmp.gt.f32.partialorder %v6553_v39, 0.0 }
 0x82e   :  { %v6483_v58 = vpop.f32.mrf.mxu0 }
 0x82f   :  { %v11383_v31 = vpop.eup %11382  ;;  %v6602_v10 = vmul.f32 1.442695, %v6585_v34  ;;  %v6520_v26 = vadd.f32 %v6483_v58, %v6079_v13 }
 0x830   :  { %v10777_v0 = vadd.f32 -1.0, %v11383_v31 }
 0x831   :  { %11384 = vpow2.f32 %v6602_v10  ;;  %v6536_v40 = vadd.f32 %v6520_v26, %v13804_v2 }
 0x832   :  { %v14563_v45 = vsel %vm6568_vm8, %v6552_v37, %v10777_v0 }
 0x833   :  { %v6554_v35 = vadd.f32 %v14555_v52, %v6536_v40  ;;  %v6080_v33 = vpop.f32.mrf.mxu3  ;;  %v7148_v2 = vpack.c.bf16 %v14563_v45, %v14563_v45  ;;  %v7164_v56 = vrot.slane %v14563_v45, 1  ;;  %v6684_v46 = vrot.slane %v14563_v45, 4 }
 0x834   :  { %v5979_v6 = vpop.f32.mrf.mxu1  ;;  %v7702_v49 = vrot.slane %v14563_v45, 3 }
 0x835   :  { %v6586_v18 = vmin.f32 %v6554_v35, 0.0  ;;  %v6081_v47 = vadd.f32 %v6080_v33, %v5979_v6  ;;  %v7286_v23 = vunpack.c.l.b16 %v7148_v2  ;;  %vm6570_vm11 = vcmp.gt.f32.partialorder %v6554_v35, 0.0 }
 0x836   :  { %v6485_v9 = vpop.f32.mrf.mxu0 }
 0x837   :  { %v11385_v20 = vpop.eup %11384  ;;  %v6604_v1 = vmul.f32 1.442695, %v6586_v18  ;;  %v6521_v17 = vadd.f32 %v6485_v9, %v6081_v47 }
 0x838   :  { %v10778_v42 = vadd.f32 -1.0, %v11385_v20 }
 0x839   :  { %11386 = vpow2.f32 %v6604_v1  ;;  %v6537_v44 = vadd.f32 %v6521_v17, %v13814_v25 }
 0x83a   :  { %v14568_v53 = vsel %vm6569_vm10, %v6553_v39, %v10778_v42 }
 0x83b   :  { %v6555_v62 = vadd.f32 %v14555_v52, %v6537_v44  ;;  %v6083_v12 = vpop.f32.mrf.mxu3  ;;  %v7149_v11 = vpack.c.bf16 %v14568_v53, %v14568_v53  ;;  %v7165_v60 = vrot.slane %v14568_v53, 1  ;;  %v6685_v24 = vrot.slane %v14568_v53, 4 }
 0x83c   :  { %v5982_v50 = vpop.f32.mrf.mxu1  ;;  %v7703_v38 = vrot.slane %v14568_v53, 3 }
 0x83d   :  { %v6587_v55 = vmin.f32 %v6555_v62, 0.0  ;;  %v7287_v22 = vunpack.c.l.b16 %v7149_v11  ;;  %v6084_v25 = vadd.f32 %v6083_v12, %v5982_v50  ;;  %v7166_v8 = vsel %vm240_vm2, %v7164_v56, %v7165_v60 }
 0x83e   :  { %v6488_v41 = vpop.f32.mrf.mxu0  ;;  %v6686_v5 = vsel %vm5160_vm14, %v6684_v46, %v6685_v24  ;;  %v7704_v63 = vsel %vm3293_vm13, %v7702_v49, %v7703_v38  ;;  %v7214_v29 = vpack.c.bf16 %v7166_v8, %v7166_v8  ;;  %vm6571_vm12 = vcmp.gt.f32.partialorder %v6555_v62, 0.0 }
 0x83f   :  { %v11387_v57 = vpop.eup %11386  ;;  %v6606_v14 = vmul.f32 1.442695, %v6587_v55  ;;  %v7302_v19 = vpack.c.b16 %v7287_v22, %v7286_v23  ;;  %v6522_v37 = vadd.f32 %v6488_v41, %v6084_v25  ;;  %v6731_v58 = vpack.c.bf16 %v6686_v5, %v6686_v5 }
 0x840   :  { %v10779_v61 = vadd.f32 -1.0, %v11387_v57  ;;  %v7752_v40 = vpack.c.bf16 %v7704_v63, %v7704_v63  ;;  %v7342_v47 = vunpack.c.l.b16 %v7214_v29 }
 0x841   :  { %11388 = vpow2.f32 %v6606_v14  ;;  %7310 = vrot.lane.b32.xlu0 %v7302_v19, %s11537_s0  ;;  %v6538_v27 = vadd.f32 %v6522_v37, %v13827_v43  ;;  %v14603_v2 = vunpack.c.l.b16 %v6731_v58 }
 0x842   :  { %v14586_v21 = vsel %vm6570_vm11, %v6554_v35, %v10779_v61  ;;  %v7824_v11 = vunpack.c.l.b16 %v7752_v40 }
 0x843   :  { %v6085_v32 = vpop.f32.mrf.mxu3  ;;  %v7167_v39 = vrot.slane %v14586_v21, 1  ;;  %v6687_v30 = vrot.slane %v14586_v21, 4  ;;  %v7705_v34 = vrot.slane %v14586_v21, 3  ;;  %v6556_v13 = vadd.f32 %v14555_v52, %v6538_v27 }
 0x844   :  { %v5984_v31 = vpop.f32.mrf.mxu1 }
 0x845   :  { %v7168_v43 = vsel %vm240_vm2, %v7165_v60, %v7167_v39  ;;  %v6688_v10 = vsel %vm5160_vm14, %v6685_v24, %v6687_v30  ;;  %v7706_v26 = vsel %vm3293_vm13, %v7703_v38, %v7705_v34  ;;  %v6588_v0 = vmin.f32 %v6556_v13, 0.0 }
 0x846   :  { %v6086_v35 = vadd.f32 %v6085_v32, %v5984_v31  ;;  %v7215_v33 = vpack.c.bf16 %v7168_v43, %v7168_v43  ;;  %v6490_v18 = vpop.f32.mrf.mxu0  ;;  %v6732_v9 = vpack.c.bf16 %v6688_v10, %v6688_v10  ;;  %v7753_v20 = vpack.c.bf16 %v7706_v26, %v7706_v26 }
 0x847   :  { %v11389_v6 = vpop.eup %11388  ;;  %v6608_v17 = vmul.f32 1.442695, %v6588_v0  ;;  %vm6572_vm1 = vcmp.gt.f32.partialorder %v6556_v13, 0.0 }
 0x848   :  { %v10780_v1 = vadd.f32 -1.0, %v11389_v6  ;;  %v6523_v42 = vadd.f32 %v6490_v18, %v6086_v35  ;;  %v7343_v44 = vunpack.c.l.b16 %v7215_v33  ;;  %v14605_v12 = vunpack.c.l.b16 %v6732_v9 }
 0x849   :  { %v7825_v60 = vunpack.c.l.b16 %v7753_v20  ;;  %11390 = vpow2.f32 %v6608_v17 }
 0x84a   :  { %v14607_v55 = vsel %vm6571_vm12, %v6555_v62, %v10780_v1  ;;  %v6539_v50 = vadd.f32 %v6523_v42, %v13838_v7  ;;  %v7358_v23 = vpack.c.b16 %v7343_v44, %v7342_v47  ;;  %v7864_v22 = vpack.c.b16 %v14605_v12, %v14603_v2 }
 0x84b   :  { %v7840_v24 = vpack.c.b16 %v7825_v60, %v7824_v11  ;;  %v7151_v25 = vpack.c.bf16 %v14607_v55, %v14607_v55  ;;  %v6088_v57 = vpop.f32.mrf.mxu3  ;;  %v7150_v7 = vpack.c.bf16 %v14586_v21, %v14586_v21  ;;  %v6689_v62 = vrot.slane %v14607_v55, 4 }
 0x84c   :  { %v6557_v38 = vadd.f32 %v14555_v52, %v6539_v50  ;;  %7366 = vrot.lane.b32.xlu1 %v7358_v23, %s11538_s2  ;;  %v5987_v14 = vpop.f32.mrf.mxu1  ;;  %7872 = vrot.lane.b32.xlu0 %v7864_v22, %s11538_s2 }
 0x84d   :  { %7848 = vrot.lane.b32.xlu2 %v7840_v24, %s11537_s0  ;;  %v6089_v19 = vadd.f32 %v6088_v57, %v5987_v14  ;;  %v7289_v61 = vunpack.c.l.b16 %v7151_v25  ;;  %v7288_v32 = vunpack.c.l.b16 %v7150_v7  ;;  %v6690_v29 = vsel %vm5160_vm14, %v6687_v30, %v6689_v62 }
 0x84e   :  { %v6589_v41 = vmin.f32 %v6557_v38, 0.0  ;;  %v6493_v5 = vpop.f32.mrf.mxu0  ;;  %v6733_v26 = vpack.c.bf16 %v6690_v29, %v6690_v29  ;;  %vm6573_vm7 = vcmp.gt.f32.partialorder %v6557_v38, 0.0  ;;  %v6750_v29 = vrot.slane %v14563_v45, 5 }
 0x84f   :  { %v11391_v37 = vpop.eup %11390  ;;  %v6524_v63 = vadd.f32 %v6493_v5, %v6089_v19  ;;  %v7303_v43 = vpack.c.b16 %v7289_v61, %v7288_v32 }
 0x850   :  { %v6610_v8 = vmul.f32 1.442695, %v6589_v41  ;;  %v10781_v27 = vadd.f32 -1.0, %v11391_v37  ;;  %v14629_v9 = vunpack.c.l.b16 %v6733_v26  ;;  %v6817_v26 = vrot.slane %v14568_v53, 6 }
 0x851   :  { %v6540_v31 = vadd.f32 %v6524_v63, %v13851_v15 }
 0x852   :  { %11392 = vpow2.f32 %v6610_v8  ;;  %v14622_v58 = vsel %vm6572_vm1, %v6556_v13, %v10781_v27 }
 0x853   :  { %v6691_v10 = vrot.slane %v14622_v58, 4  ;;  %v6558_v40 = vadd.f32 %v14555_v52, %v6540_v31  ;;  %v6090_v0 = vpop.f32.mrf.mxu3  ;;  %v7152_v23 = vpack.c.bf16 %v14622_v58, %v14622_v58  ;;  %v6751_v31 = vrot.slane %v14568_v53, 5 }
 0x854   :  { %v5989_v35 = vpop.f32.mrf.mxu1  ;;  %7312 = vrot.lane.b32.xlu0 %v7303_v43, %s11537_s0 }
 0x855   :  { %v6091_v33 = vadd.f32 %v6090_v0, %v5989_v35  ;;  %v6692_v6 = vsel %vm5160_vm14, %v6689_v62, %v6691_v10  ;;  %v6590_v30 = vmin.f32 %v6558_v40, 0.0  ;;  %v7290_v41 = vunpack.c.l.b16 %v7152_v23 }
 0x856   :  { %v6734_v18 = vpack.c.bf16 %v6692_v6, %v6692_v6  ;;  %v6495_v13 = vpop.f32.mrf.mxu0  ;;  %vm6574_vm8 = vcmp.gt.f32.partialorder %v6558_v40, 0.0  ;;  %v6816_v35 = vrot.slane %v14563_v45, 6 }
 0x857   :  { %v6612_v20 = vmul.f32 1.442695, %v6590_v30  ;;  %v6525_v1 = vadd.f32 %v6495_v13, %v6091_v33 }
 0x858   :  { %v11393_v47 = vpop.eup %11392  ;;  %v14631_v17 = vunpack.c.l.b16 %v6734_v18 }
 0x859   :  { %v10782_v15 = vadd.f32 -1.0, %v11393_v47  ;;  %11394 = vpow2.f32 %v6612_v20  ;;  %v6541_v44 = vadd.f32 %v6525_v1, %v13879_v51  ;;  %v6818_v1 = vsel %vm765_vm15, %v6816_v35, %v6817_v26 }
 0x85a   :  { %v7865_v11 = vpack.c.b16 %v14631_v17, %v14629_v9 }
 0x85b   :  { %v14633_v42 = vsel %vm6573_vm7, %v6557_v38, %v10782_v15  ;;  %v6559_v50 = vadd.f32 %v14555_v52, %v6541_v44  ;;  %v6093_v22 = vpop.f32.mrf.mxu3 }
 0x85c   :  { %v7153_v60 = vpack.c.bf16 %v14633_v42, %v14633_v42  ;;  %7874 = vrot.lane.b32.xlu0 %v7865_v11, %s11538_s2  ;;  %v6693_v24 = vrot.slane %v14633_v42, 4  ;;  %v5992_v38 = vpop.f32.mrf.mxu1 }
 0x85d   :  { %v6591_v25 = vmin.f32 %v6559_v50, 0.0  ;;  %v6094_v51 = vadd.f32 %v6093_v22, %v5992_v38  ;;  %vm6575_vm10 = vcmp.gt.f32.partialorder %v6559_v50, 0.0  ;;  %v6863_v22 = vpack.c.bf16 %v6818_v1, %v6818_v1 }
 0x85e   :  { %v7291_v57 = vunpack.c.l.b16 %v7153_v60  ;;  %v6498_v14 = vpop.f32.mrf.mxu0  ;;  %v6694_v37 = vsel %vm5160_vm14, %v6691_v10, %v6693_v24 }
 0x85f   :  { %v11395_v7 = vpop.eup %11394  ;;  %v6614_v62 = vmul.f32 1.442695, %v6591_v25  ;;  %v6526_v61 = vadd.f32 %v6498_v14, %v6094_v51  ;;  %v6735_v32 = vpack.c.bf16 %v6694_v37, %v6694_v37 }
 0x860   :  { %v10783_v19 = vadd.f32 -1.0, %v11395_v7  ;;  %v7304_v8 = vpack.c.b16 %v7291_v57, %v7290_v41  ;;  %v7169_v41 = vrot.slane %v14607_v55, 1 }
 0x861   :  { %11396 = vpow2.f32 %v6614_v62  ;;  %v6542_v27 = vadd.f32 %v6526_v61, %v13924_v28  ;;  %v14665_v13 = vunpack.c.l.b16 %v6735_v32 }
 0x862   :  { %v14646_v5 = vsel %vm6574_vm8, %v6558_v40, %v10783_v19  ;;  %v6752_v40 = vsel %vm88_vm0, %v6750_v29, %v6751_v31  ;;  %v7171_v19 = vrot.slane %v14622_v58, 1 }
 0x863   :  { %v6695_v63 = vrot.slane %v14646_v5, 4  ;;  %v14654_v43 = vadd.f32 %v14555_v52, %v6542_v27  ;;  %v6095_v10 = vpop.f32.mrf.mxu3  ;;  %v6797_v15 = vpack.c.bf16 %v6752_v40, %v6752_v40  ;;  %v7154_v20 = vpack.c.bf16 %v14646_v5, %v14646_v5 }
 0x864   :  { %7314 = vrot.lane.b32.xlu0 %v7304_v8, %s11537_s0  ;;  %v5994_v0 = vpop.f32.mrf.mxu1  ;;  %v6991_v27 = vunpack.c.l.b16 %v6863_v22 }
 0x865   :  { %v6696_v28 = vsel %vm5160_vm14, %v6693_v24, %v6695_v63  ;;  %v6592_v33 = vmin.f32 %v14654_v43, 0.0  ;;  %v6096_v6 = vadd.f32 %v6095_v10, %v5994_v0  ;;  %v7292_v14 = vunpack.c.l.b16 %v7154_v20 }
 0x866   :  { %v6500_v30 = vpop.f32.mrf.mxu0  ;;  %v6736_v18 = vpack.c.bf16 %v6696_v28, %v6696_v28  ;;  %vm6576_vm11 = vcmp.gt.f32.partialorder %v14654_v43, 0.0 }
 0x867   :  { %v11397_v47 = vpop.eup %11396  ;;  %v6616_v11 = vmul.f32 1.442695, %v6592_v33  ;;  %v6527_v60 = vadd.f32 %v6500_v30, %v6096_v6  ;;  %v7170_v30 = vsel %vm240_vm2, %v7167_v39, %v7169_v41 }
 0x868   :  { %v10784_v44 = vadd.f32 -1.0, %v11397_v47  ;;  %v14672_v23 = vunpack.c.l.b16 %v6736_v18  ;;  %v7216_v1 = vpack.c.bf16 %v7170_v30, %v7170_v30 }
 0x869   :  { %11398 = vpow2.f32 %v6616_v11  ;;  %v6543_v25 = vadd.f32 %v6527_v60, %v13956_v16  ;;  %v6935_v16 = vunpack.c.l.b16 %v6797_v15 }
 0x86a   :  { %v14674_v24 = vsel %vm6575_vm10, %v6559_v50, %v10784_v44  ;;  %v7866_v38 = vpack.c.b16 %v14672_v23, %v14665_v13 }
 0x86b   :  { %v6746_v57 = vrot.slane %v14674_v24, 5  ;;  %v7155_v51 = vpack.c.bf16 %v14674_v24, %v14674_v24  ;;  %v6812_v7 = vrot.slane %v14674_v24, 6  ;;  %v14685_v62 = vadd.f32 %v14555_v52, %v6543_v25  ;;  %v6098_v50 = vpop.f32.mrf.mxu3 }
 0x86c   :  { %7876 = vrot.lane.b32.xlu0 %v7866_v38, %s11538_s2  ;;  %v5997_v61 = vpop.f32.mrf.mxu1  ;;  %v6666_v32 = vrot.slane %v14674_v24, 4 }
 0x86d   :  { %v6794_v37 = vsel %vm88_vm0, %v6746_v57, %v6750_v29  ;;  %v6860_v8 = vsel %vm765_vm15, %v6812_v7, %v6816_v35  ;;  %v6593_v10 = vmin.f32 %v14685_v62, 0.0  ;;  %v6099_v0 = vadd.f32 %v6098_v50, %v5997_v61 }
 0x86e   :  { %v6503_v28 = vpop.f32.mrf.mxu0  ;;  %v6796_v40 = vpack.c.bf16 %v6794_v37, %v6794_v37  ;;  %v7293_v33 = vunpack.c.l.b16 %v7155_v51  ;;  %v6862_v6 = vpack.c.bf16 %v6860_v8, %v6860_v8  ;;  %v7172_v29 = vsel %vm240_vm2, %v7169_v41, %v7171_v19 }
 0x86f   :  { %v7707_v35 = vrot.slane %v14607_v55, 3  ;;  %v11399_v18 = vpop.eup %11398  ;;  %v6618_v47 = vmul.f32 1.442695, %v6593_v10  ;;  %v6528_v15 = vadd.f32 %v6503_v28, %v6099_v0  ;;  %v7217_v60 = vpack.c.bf16 %v7172_v29, %v7172_v29 }
 0x870   :  { %v6934_v20 = vunpack.c.l.b16 %v6796_v40  ;;  %v10785_v44 = vadd.f32 -1.0, %v11399_v18  ;;  %v6990_v11 = vunpack.c.l.b16 %v6862_v6  ;;  %v6697_v22 = vsel %vm5160_vm14, %v6695_v63, %v6666_v32 }
 0x871   :  { %vm6577_vm12 = vcmp.gt.f32.partialorder %v14685_v62, 0.0  ;;  %11400 = vpow2.f32 %v6618_v47  ;;  %v6544_v39 = vadd.f32 %v6528_v15, %v13990_v36  ;;  %v7305_v38 = vpack.c.b16 %v7293_v33, %v7292_v14 }
 0x872   :  { %v6950_v25 = vpack.c.b16 %v6935_v16, %v6934_v20  ;;  %v7006_v51 = vpack.c.b16 %v6991_v27, %v6990_v11  ;;  %v7344_v50 = vunpack.c.l.b16 %v7216_v1  ;;  %v7345_v41 = vunpack.c.l.b16 %v7217_v60 }
 0x873   :  { %v6728_v61 = vsel %vm5160_vm14, %v6666_v32, %v6684_v46  ;;  %v14714_v37 = vadd.f32 %v14555_v52, %v6544_v39  ;;  %v6100_v8 = vpop.f32.mrf.mxu3  ;;  %v6737_v10 = vpack.c.bf16 %v6697_v22, %v6697_v22  ;;  %v7709_v36 = vrot.slane %v14622_v58, 3 }
 0x874   :  { %6958 = vrot.lane.b32.xlu1 %v6950_v25, %s11537_s0  ;;  %7316 = vrot.lane.b32.xlu0 %v7305_v38, %s11537_s0  ;;  %v6730_v63 = vpack.c.bf16 %v6728_v61, %v6728_v61  ;;  %v14722_v14 = vsel %vm6576_vm11, %v14654_v43, %v10785_v44  ;;  %v5999_v46 = vpop.f32.mrf.mxu1  ;;  %v7708_v16 = vsel %vm3293_vm13, %v7705_v34, %v7707_v35  ;;  %v6753_v27 = vrot.slane %v14586_v21, 5 }
 0x875   :  { %7014 = vrot.lane.b32.xlu2 %v7006_v51, %s11538_s2  ;;  %v6755_v32 = vrot.slane %v14607_v55, 5  ;;  %v6594_v0 = vmin.f32 %v14714_v37, 0.0  ;;  %v6101_v28 = vadd.f32 %v6100_v8, %v5999_v46  ;;  %v7359_v33 = vpack.c.b16 %v7345_v41, %v7344_v50 }
 0x876   :  { %v6505_v40 = vpop.f32.mrf.mxu0  ;;  %v14731_v6 = vunpack.c.l.b16 %v6730_v63  ;;  %v14733_v43 = vunpack.c.l.b16 %v6737_v10  ;;  %v7710_v30 = vsel %vm3293_vm13, %v7707_v35, %v7709_v36  ;;  %v7754_v29 = vpack.c.bf16 %v7708_v16, %v7708_v16 }
 0x877   :  { %v6754_v34 = vsel %vm88_vm0, %v6751_v31, %v6753_v27  ;;  %v11401_v18 = vpop.eup %11400  ;;  %v6620_v47 = vmul.f32 1.442695, %v6594_v0  ;;  %v6529_v15 = vadd.f32 %v6505_v40, %v6101_v28  ;;  %v7755_v20 = vpack.c.bf16 %v7710_v30, %v7710_v30 }
 0x878   :  { %v6756_v1 = vsel %vm88_vm0, %v6753_v27, %v6755_v32  ;;  %v10786_v44 = vadd.f32 -1.0, %v11401_v18  ;;  %v7867_v11 = vpack.c.b16 %v14731_v6, %v14733_v43  ;;  %v7826_v60 = vunpack.c.l.b16 %v7754_v29 }
 0x879   :  { %v6798_v22 = vpack.c.bf16 %v6754_v34, %v6754_v34  ;;  %11402 = vpow2.f32 %v6620_v47  ;;  %v6545_v35 = vadd.f32 %v6529_v15, %v14026_v54  ;;  %v7827_v39 = vunpack.c.l.b16 %v7755_v20 }
 0x87a   :  { %v6799_v25 = vpack.c.bf16 %v6756_v1, %v6756_v1  ;;  %v14750_v31 = vsel %vm6577_vm12, %v14685_v62, %v10786_v44  ;;  %v7156_v51 = vpack.c.bf16 %v14722_v14, %v14722_v14  ;;  %v6819_v50 = vrot.slane %v14586_v21, 6 }
 0x87b   :  { %v6936_v38 = vunpack.c.l.b16 %v6798_v22  ;;  %v14756_v41 = vadd.f32 %v14555_v52, %v6545_v35  ;;  %v6103_v61 = vpop.f32.mrf.mxu3  ;;  %v7841_v54 = vpack.c.b16 %v7827_v39, %v7826_v60  ;;  %v7157_v62 = vpack.c.bf16 %v14750_v31, %v14750_v31 }
 0x87c   :  { %7368 = vrot.lane.b32.xlu1 %v7359_v33, %s11538_s2  ;;  %7878 = vrot.lane.b32.xlu0 %v7867_v11, %s11538_s2  ;;  %v6937_v8 = vunpack.c.l.b16 %v6799_v25  ;;  %vm6578_vm1 = vcmp.gt.f32.partialorder %v14714_v37, 0.0  ;;  %v6002_v63 = vpop.f32.mrf.mxu1  ;;  %v6820_v10 = vsel %vm765_vm15, %v6817_v26, %v6819_v50  ;;  %v6821_v46 = vrot.slane %v14607_v55, 6 }
 0x87d   :  { %v7173_v16 = vrot.slane %v14633_v42, 1  ;;  %v6595_v27 = vmin.f32 %v14756_v41, 0.0  ;;  %7850 = vrot.lane.b32.xlu2 %v7841_v54, %s11537_s0  ;;  %v6104_v0 = vadd.f32 %v6103_v61, %v6002_v63  ;;  %v7294_v33 = vunpack.c.l.b16 %v7156_v51 }
 0x87e   :  { %v6508_v28 = vpop.f32.mrf.mxu0  ;;  %v6951_v40 = vpack.c.b16 %v6937_v8, %v6936_v38  ;;  %v7295_v30 = vunpack.c.l.b16 %v7157_v62  ;;  %v6822_v29 = vsel %vm765_vm15, %v6819_v50, %v6821_v46  ;;  %v6864_v34 = vpack.c.bf16 %v6820_v10, %v6820_v10 }
 0x87f   :  { %v7174_v26 = vsel %vm240_vm2, %v7171_v19, %v7173_v16  ;;  %v11403_v18 = vpop.eup %11402  ;;  %v6622_v47 = vmul.f32 1.442695, %v6595_v27  ;;  %v6530_v15 = vadd.f32 %v6508_v28, %v6104_v0  ;;  %v6865_v20 = vpack.c.bf16 %v6822_v29, %v6822_v29 }
 0x880   :  { %v7175_v1 = vrot.slane %v14646_v5, 1  ;;  %v10787_v44 = vadd.f32 -1.0, %v11403_v18  ;;  %v7306_v11 = vpack.c.b16 %v7295_v30, %v7294_v33  ;;  %v6992_v60 = vunpack.c.l.b16 %v6864_v34 }
 0x881   :  { %v7218_v22 = vpack.c.bf16 %v7174_v26, %v7174_v26  ;;  %11404 = vpow2.f32 %v6622_v47  ;;  %v6546_v35 = vadd.f32 %v6530_v15, %v14091_v4  ;;  %v6993_v39 = vunpack.c.l.b16 %v6865_v20 }
 0x882   :  { %v7176_v25 = vsel %vm240_vm2, %v7173_v16, %v7175_v1  ;;  %v14784_v19 = vsel %vm6578_vm1, %v14714_v37, %v10787_v44  ;;  %v7711_v50 = vrot.slane %v14633_v42, 3  ;;  %v7713_v8 = vrot.slane %v14646_v5, 3 }
 0x883   :  { %v7219_v38 = vpack.c.bf16 %v7176_v25, %v7176_v25  ;;  %v7346_v51 = vunpack.c.l.b16 %v7218_v22  ;;  %v14788_v61 = vadd.f32 %v14555_v52, %v6546_v35  ;;  %v6105_v54 = vpop.f32.mrf.mxu3  ;;  %v7007_v4 = vpack.c.b16 %v6993_v39, %v6992_v60 }
 0x884   :  { %6960 = vrot.lane.b32.xlu1 %v6951_v40, %s11537_s0  ;;  %7318 = vrot.lane.b32.xlu0 %v7306_v11, %s11537_s0  ;;  %v6698_v62 = vrot.slane %v14722_v14, 4  ;;  %v6004_v63 = vpop.f32.mrf.mxu1  ;;  %v7712_v10 = vsel %vm3293_vm13, %v7709_v36, %v7711_v50  ;;  %v6699_v16 = vrot.slane %v14750_v31, 4  ;;  %v6701_v27 = vrot.slane %v14784_v19, 4 }
 0x885   :  { %v7347_v37 = vunpack.c.l.b16 %v7219_v38  ;;  %vm6579_vm7 = vcmp.gt.f32.partialorder %v14756_v41, 0.0  ;;  %v6596_v0 = vmin.f32 %v14788_v61, 0.0  ;;  %7016 = vrot.lane.b32.xlu2 %v7007_v4, %s11538_s2  ;;  %v6106_v28 = vadd.f32 %v6105_v54, %v6004_v63  ;;  %v11164_v4 = vld [vmem:[%s16960_s3 + $0x298] sm:$0xff] }
 0x886   :  { %v6510_v40 = vpop.f32.mrf.mxu0  ;;  %v7714_v33 = vsel %vm3293_vm13, %v7711_v50, %v7713_v8  ;;  %v7756_v29 = vpack.c.bf16 %v7712_v10, %v7712_v10  ;;  %v6700_v36 = vsel %vm5160_vm14, %v6698_v62, %v6699_v16  ;;  %v6702_v15 = vsel %vm5160_vm14, %v6699_v16, %v6701_v27  ;;  %7488 = vmatpush.bf16.msrb.mxu2 %v11164_v4 }
 0x887   :  { %v7360_v30 = vpack.c.b16 %v7347_v37, %v7346_v51  ;;  %v7757_v34 = vpack.c.bf16 %v7714_v33, %v7714_v33  ;;  %v11405_v26 = vpop.eup %11404  ;;  %v6624_v18 = vmul.f32 1.442695, %v6596_v0  ;;  %v6531_v47 = vadd.f32 %v6510_v40, %v6106_v28  ;;  %v11158_v0 = vld [vmem:[%s16960_s3 + $0x268] sm:$0xff] }
 0x888   :  { %v6739_v20 = vpack.c.bf16 %v6700_v36, %v6700_v36  ;;  %v10788_v44 = vadd.f32 -1.0, %v11405_v26  ;;  %v7828_v11 = vunpack.c.l.b16 %v7756_v29  ;;  %v6740_v22 = vpack.c.bf16 %v6702_v15, %v6702_v15  ;;  %7589 = vmatpush.bf16.msra.mxu1 %v11158_v0 }
 0x889   :  { %v7829_v60 = vunpack.c.l.b16 %v7757_v34  ;;  %11406 = vpow2.f32 %v6624_v18  ;;  %v6547_v35 = vadd.f32 %v6531_v47, %v14116_v3  ;;  %v6757_v25 = vrot.slane %v14622_v58, 5  ;;  %v11170_v3 = vld [vmem:[%s16960_s3 + $0x2c8] sm:$0xff] }
 0x88a   :  { %v14812_v39 = vunpack.c.l.b16 %v6739_v20  ;;  %v14818_v38 = vsel %vm6579_vm7, %v14756_v41, %v10788_v44  ;;  %v14820_v50 = vunpack.c.l.b16 %v6740_v22  ;;  %v6759_v54 = vrot.slane %v14633_v42, 5  ;;  %7994 = vmatpush.bf16.msra.mxu3 %v11170_v3  ;;  %v11169_v3 = vld [vmem:[%s16960_s3 + $0x2c0] sm:$0xff] }
 0x88b   :  { %v7842_v51 = vpack.c.b16 %v7829_v60, %v7828_v11  ;;  %v14830_v63 = vadd.f32 %v14555_v52, %v6547_v35  ;;  %v6108_v41 = vpop.f32.mrf.mxu3  ;;  %v6758_v37 = vsel %vm88_vm0, %v6755_v32, %v6757_v25  ;;  %v6823_v10 = vrot.slane %v14622_v58, 6 }
 0x88c   :  { %7370 = vrot.lane.b32.xlu1 %v7360_v30, %s11538_s2  ;;  %v6825_v16 = vrot.slane %v14633_v42, 6  ;;  %v7868_v28 = vpack.c.b16 %v14820_v50, %v14812_v39  ;;  %v6007_v40 = vpop.f32.mrf.mxu1  ;;  %v6760_v33 = vsel %vm88_vm0, %v6757_v25, %v6759_v54  ;;  %v6800_v30 = vpack.c.bf16 %v6758_v37, %v6758_v37 }
 0x88d   :  { %v6597_v32 = vmin.f32 %v14830_v63, 0.0  ;;  %7852 = vrot.lane.b32.xlu2 %v7842_v51, %s11537_s0  ;;  %v6109_v29 = vadd.f32 %v6108_v41, %v6007_v40  ;;  %v6801_v36 = vpack.c.bf16 %v6760_v33, %v6760_v33  ;;  %v7158_v26 = vpack.c.bf16 %v14784_v19, %v14784_v19 }
 0x88e   :  { %v6513_v34 = vpop.f32.mrf.mxu0  ;;  %7880 = vrot.lane.b32.xlu0 %v7868_v28, %s11538_s2  ;;  %v6938_v18 = vunpack.c.l.b16 %v6800_v30  ;;  %v6824_v47 = vsel %vm765_vm15, %v6821_v46, %v6823_v10  ;;  %v6826_v15 = vsel %vm765_vm15, %v6823_v10, %v6825_v16  ;;  %v7159_v20 = vpack.c.bf16 %v14818_v38, %v14818_v38  ;;  %v11163_v46 = vld [vmem:[%s16960_s3 + $0x290] sm:$0xff]  ;;  %7995 = vmatpush.bf16.msra.mxu3 %v11169_v3 }
 0x88f   :  { %v11407_v44 = vpop.eup %11406  ;;  %v6626_v11 = vmul.f32 1.442695, %v6597_v32  ;;  %v6532_v60 = vadd.f32 %v6513_v34, %v6109_v29  ;;  %v6939_v22 = vunpack.c.l.b16 %v6801_v36  ;;  %v6866_v35 = vpack.c.bf16 %v6824_v47, %v6824_v47  ;;  %7489 = vmatpush.bf16.msrb.mxu2 %v11163_v46  ;;  %v11168_v36 = vld [vmem:[%s16960_s3 + $0x2b8] sm:$0xff] }
 0x890   :  { %vm6580_vm8 = vcmp.gt.f32.partialorder %v14788_v61, 0.0  ;;  %v10789_v25 = vadd.f32 -1.0, %v11407_v44  ;;  %v6867_v51 = vpack.c.bf16 %v6826_v15, %v6826_v15  ;;  %v7297_v4 = vunpack.c.l.b16 %v7159_v20 }
 0x891   :  { %vm6581_vm10 = vcmp.gt.f32.partialorder %v14830_v63, 0.0  ;;  %11408 = vpow2.f32 %v6626_v11  ;;  %v6548_v41 = vadd.f32 %v6532_v60, %v14130_v48  ;;  %v6952_v37 = vpack.c.b16 %v6939_v22, %v6938_v18 }
 0x892   :  { %v7296_v10 = vunpack.c.l.b16 %v7158_v26  ;;  %v14869_v0 = vsel %vm6580_vm8, %v14788_v61, %v10789_v25  ;;  %v6994_v28 = vunpack.c.l.b16 %v6866_v35  ;;  %v6995_v40 = vunpack.c.l.b16 %v6867_v51  ;;  %v11162_v61 = vld [vmem:[%s16960_s3 + $0x288] sm:$0xff]  ;;  %7996 = vmatpush.bf16.msra.mxu3 %v11168_v36 }
 0x893   :  { %v7177_v33 = vrot.slane %v14674_v24, 1  ;;  %v14873_v30 = vadd.f32 %v14555_v52, %v6548_v41  ;;  %v6110_v32 = vpop.f32.mrf.mxu3  ;;  %v7715_v48 = vrot.slane %v14674_v24, 3  ;;  %v6703_v34 = vrot.slane %v14818_v38, 4  ;;  %7490 = vmatpush.bf16.msrb.mxu2 %v11162_v61 }
 0x894   :  { %6962 = vrot.lane.b32.xlu1 %v6952_v37, %s11537_s0  ;;  %v7307_v29 = vpack.c.b16 %v7297_v4, %v7296_v10  ;;  %v7008_v26 = vpack.c.b16 %v6995_v40, %v6994_v28  ;;  %v6009_v18 = vpop.f32.mrf.mxu1  ;;  %v6705_v20 = vrot.slane %v14869_v0, 4  ;;  %v6761_v35 = vrot.slane %v14646_v5, 5  ;;  %v11161_v10 = vld [vmem:[%s16960_s3 + $0x280] sm:$0xff] }
 0x895   :  { %v7178_v47 = vsel %vm240_vm2, %v7175_v1, %v7177_v33  ;;  %v7212_v15 = vsel %vm240_vm2, %v7177_v33, %v7164_v56  ;;  %v6598_v44 = vmin.f32 %v14873_v30, 0.0  ;;  %v6111_v11 = vadd.f32 %v6110_v32, %v6009_v18  ;;  %v11167_v33 = vld [vmem:[%s16960_s3 + $0x2b0] sm:$0xff] }
 0x896   :  { %v6515_v60 = vpop.f32.mrf.mxu0  ;;  %v7220_v22 = vpack.c.bf16 %v7178_v47, %v7178_v47  ;;  %7018 = vrot.lane.b32.xlu2 %v7008_v26, %s11538_s2  ;;  %7320 = vrot.lane.b32.xlu0 %v7307_v29, %s11537_s0  ;;  %v7221_v25 = vpack.c.bf16 %v7212_v15, %v7212_v15  ;;  %v7716_v1 = vsel %vm3293_vm13, %v7713_v8, %v7715_v48  ;;  %v6827_v51 = vrot.slane %v14646_v5, 6 }
 0x897   :  { %v7750_v56 = vsel %vm3293_vm13, %v7715_v48, %v7702_v49  ;;  %v11409_v4 = vpop.eup %11408  ;;  %v6628_v46 = vmul.f32 1.442695, %v6598_v44  ;;  %v6533_v3 = vadd.f32 %v6515_v60, %v6111_v11  ;;  %v7758_v37 = vpack.c.bf16 %v7716_v1, %v7716_v1  ;;  %7491 = vmatpush.bf16.msrb.mxu2 %v11161_v10  ;;  %7997 = vmatpush.bf16.msra.mxu3 %v11167_v33  ;;  %v11166_v11 = vld [vmem:[%s16960_s3 + $0x2a8] sm:$0xff] }
 0x898   :  { %v7348_v41 = vunpack.c.l.b16 %v7220_v22  ;;  %v10790_v28 = vadd.f32 -1.0, %v11409_v4  ;;  %v7349_v40 = vunpack.c.l.b16 %v7221_v25  ;;  %v7759_v8 = vpack.c.bf16 %v7750_v56, %v7750_v56 }
 0x899   :  { %v6704_v49 = vsel %vm5160_vm14, %v6701_v27, %v6703_v34  ;;  %11410 = vpow2.f32 %v6628_v46  ;;  %v6549_v32 = vadd.f32 %v6533_v3, %v14169_v59  ;;  %v7830_v29 = vunpack.c.l.b16 %v7758_v37 }
 0x89a   :  { %v6706_v48 = vsel %vm5160_vm14, %v6703_v34, %v6705_v20  ;;  %v14918_v61 = vsel %vm6581_vm10, %v14830_v63, %v10790_v28  ;;  %v7361_v36 = vpack.c.b16 %v7349_v40, %v7348_v41  ;;  %v7831_v26 = vunpack.c.l.b16 %v7759_v8  ;;  %v11160_v63 = vld [vmem:[%s16960_s3 + $0x278] sm:$0xff] }
 0x89b   :  { %v6741_v27 = vpack.c.bf16 %v6704_v49, %v6704_v49  ;;  %v14921_v18 = vadd.f32 %v14555_v52, %v6549_v32  ;;  %v6742_v47 = vpack.c.bf16 %v6706_v48, %v6706_v48  ;;  %v6762_v59 = vsel %vm88_vm0, %v6759_v54, %v6761_v35  ;;  %7492 = vmatpush.bf16.msrb.mxu2 %v11160_v63  ;;  %v11157_v48 = vld [vmem:[%s16960_s3 + $0x260] sm:$0xff] }
 0x89c   :  { %v6763_v34 = vsel %vm88_vm0, %v6761_v35, %v6746_v57  ;;  %7372 = vrot.lane.b32.xlu1 %v7361_v36, %s11538_s2  ;;  %v7843_v15 = vpack.c.b16 %v7831_v26, %v7830_v29  ;;  %v6802_v44 = vpack.c.bf16 %v6762_v59, %v6762_v59  ;;  %v6828_v22 = vsel %vm765_vm15, %v6825_v16, %v6827_v51  ;;  %v11159_v16 = vld [vmem:[%s16960_s3 + $0x270] sm:$0xff] }
 0x89d   :  { %v6803_v52 = vpack.c.bf16 %v6763_v34, %v6763_v34  ;;  %v6599_v54 = vmin.f32 %v14921_v18, 0.0  ;;  %v14937_v60 = vunpack.c.l.b16 %v6741_v27  ;;  %v14939_v57 = vunpack.c.l.b16 %v6742_v47  ;;  %7998 = vmatpush.bf16.msra.mxu3 %v11166_v11  ;;  %7590 = vmatpush.bf16.msra.mxu1 %v11157_v48 }
 0x89e   :  { %7854 = vrot.lane.b32.xlu2 %v7843_v15, %s11537_s0  ;;  %v6829_v25 = vsel %vm765_vm15, %v6827_v51, %v6812_v7  ;;  %v6868_v1 = vpack.c.bf16 %v6828_v22, %v6828_v22  ;;  %v6940_v3 = vunpack.c.l.b16 %v6802_v44  ;;  %vm6582_vm11 = vcmp.gt.f32.partialorder %v14873_v30, 0.0  ;;  %v11165_v51 = vld [vmem:[%s16960_s3 + $0x2a0] sm:$0xff] }
 0x89f   :  { %v6941_v35 = vunpack.c.l.b16 %v6803_v52  ;;  %v11411_v56 = vpop.eup %11410  ;;  %v6630_v4 = vmul.f32 1.442695, %v6599_v54  ;;  %v7869_v46 = vpack.c.b16 %v14939_v57, %v14937_v60  ;;  %v6869_v41 = vpack.c.bf16 %v6829_v25, %v6829_v25  ;;  %7493 = vmatpush.bf16.msrb.mxu2 %v11159_v16 }
 0x8a0   :  { %v10791_v37 = vadd.f32 -1.0, %v11411_v56  ;;  %v7160_v10 = vpack.c.bf16 %v14869_v0, %v14869_v0  ;;  %v7161_v7 = vpack.c.bf16 %v14918_v61, %v14918_v61  ;;  %vm6583_vm12 = vcmp.gt.f32.partialorder %v14921_v18, 0.0 }
 0x8a1   :  { %11412 = vpow2.f32 %v6630_v4  ;;  %7882 = vrot.lane.b32.xlu0 %v7869_v46, %s11538_s2  ;;  %v6953_v28 = vpack.c.b16 %v6941_v35, %v6940_v3  ;;  %v6996_v40 = vunpack.c.l.b16 %v6868_v1  ;;  %v6997_v8 = vunpack.c.l.b16 %v6869_v41  ;;  %7999 = vmatpush.bf16.msra.mxu3 %v11165_v51 }
 0x8a2   :  { %v14964_v49 = vsel %vm6582_vm11, %v14873_v30, %v10791_v37  ;;  %v16968_v33 = vrot.slane %v14563_v45, 2  ;;  %v7637_v32 = vrot.slane %v14568_v53, 2  ;;  %v7639_v29 = vrot.slane %v14586_v21, 2 }
 0x8a3   :  { %v7299_v36 = vunpack.c.l.b16 %v7161_v7  ;;  %v7179_v26 = vrot.slane %v14722_v14, 1  ;;  %v7180_v27 = vrot.slane %v14750_v31, 1  ;;  %v7182_v47 = vrot.slane %v14784_v19, 1 }
 0x8a4   :  { %6964 = vrot.lane.b32.xlu1 %v6953_v28, %s11537_s0  ;;  %v7009_v30 = vpack.c.b16 %v6997_v8, %v6996_v40  ;;  %v7298_v59 = vunpack.c.l.b16 %v7160_v10  ;;  %v7638_v34 = vsel %vm1180_vm9, %v16968_v33, %v7637_v32  ;;  %v7640_v63 = vsel %vm1180_vm9, %v7637_v32, %v7639_v29 }
 0x8a5   :  { %v7686_v15 = vpack.c.bf16 %v7638_v34, %v7638_v34  ;;  %v7181_v44 = vsel %vm240_vm2, %v7179_v26, %v7180_v27  ;;  %v7183_v52 = vsel %vm240_vm2, %v7180_v27, %v7182_v47  ;;  %v7717_v11 = vrot.slane %v14722_v14, 3 }
 0x8a6   :  { %7020 = vrot.lane.b32.xlu2 %v7009_v30, %s11538_s2  ;;  %v7222_v54 = vpack.c.bf16 %v7181_v44, %v7181_v44  ;;  %v7223_v22 = vpack.c.bf16 %v7183_v52, %v7183_v52  ;;  %v7718_v35 = vrot.slane %v14750_v31, 3  ;;  %v7720_v25 = vrot.slane %v14784_v19, 3 }
 0x8a7   :  { %v11413_v1 = vpop.eup %11412  ;;  %v7308_v56 = vpack.c.b16 %v7299_v36, %v7298_v59  ;;  %v7687_v4 = vpack.c.bf16 %v7640_v63, %v7640_v63  ;;  %v6707_v46 = vrot.slane %v14918_v61, 4  ;;  %v6709_v3 = vrot.slane %v14964_v49, 4 }
 0x8a8   :  { %v10792_v41 = vadd.f32 -1.0, %v11413_v1  ;;  %v7350_v16 = vunpack.c.l.b16 %v7222_v54  ;;  %v7351_v37 = vunpack.c.l.b16 %v7223_v22  ;;  %v7719_v10 = vsel %vm3293_vm13, %v7717_v11, %v7718_v35 }
 0x8a9   :  { %7322 = vrot.lane.b32.xlu0 %v7308_v56, %s11537_s0  ;;  %v7784_v7 = vunpack.c.l.b16 %v7686_v15  ;;  %v7721_v51 = vsel %vm3293_vm13, %v7718_v35, %v7720_v25  ;;  %v7760_v28 = vpack.c.bf16 %v7719_v10, %v7719_v10  ;;  %v6708_v40 = vsel %vm5160_vm14, %v6705_v20, %v6707_v46  ;;  %v7849_v35 = vpop.permute.xlu2 %7848 }
 0x8aa   :  { %v15007_v8 = vsel %vm6583_vm12, %v14921_v18, %v10792_v41  ;;  %v7362_v32 = vpack.c.b16 %v7351_v37, %v7350_v16  ;;  %v7761_v48 = vpack.c.bf16 %v7721_v51, %v7721_v51  ;;  %v6710_v36 = vsel %vm5160_vm14, %v6707_v46, %v6709_v3 }
 0x8ab   :  { %v7785_v27 = vunpack.c.l.b16 %v7687_v4  ;;  %v7832_v30 = vunpack.c.l.b16 %v7760_v28  ;;  %v6743_v59 = vpack.c.bf16 %v6708_v40, %v6708_v40  ;;  %v6744_v34 = vpack.c.bf16 %v6710_v36, %v6710_v36 }
 0x8ac   :  { %7374 = vrot.lane.b32.xlu1 %v7362_v32, %s11538_s2  ;;  %v7833_v63 = vunpack.c.l.b16 %v7761_v48  ;;  %v16967_v20 = vrot.slane %v14674_v24, 7  ;;  %v7086_v15 = vrot.slane %v14563_v45, 7  ;;  %v16969_v18 = vrot.slane %v14568_v53, 7 }
 0x8ad   :  { %v15016_v44 = vunpack.c.l.b16 %v6743_v59  ;;  %v15018_v52 = vunpack.c.l.b16 %v6744_v34  ;;  %v6813_v54 = vrot.slane %v15007_v8, 6  ;;  %v6830_v22 = vrot.slane %v14722_v14, 6 }
 0x8ae   :  { %v7844_v1 = vpack.c.b16 %v7833_v63, %v7832_v30  ;;  %v7088_v56 = vsel %vm161_vm3, %v7086_v15, %v16969_v18  ;;  %v7130_v4 = vsel %vm161_vm3, %v16967_v20, %v7086_v15  ;;  %v6831_v46 = vrot.slane %v14750_v31, 6  ;;  %v11156_v15 = vld [vmem:[%s16960_s3 + $0x258] sm:$0xff] }
 0x8af   :  { %v7800_v41 = vpack.c.b16 %v7785_v27, %v7784_v7  ;;  %v7870_v16 = vpack.c.b16 %v15018_v52, %v15016_v44  ;;  %v7132_v37 = vpack.c.bf16 %v7130_v4, %v7130_v4  ;;  %v6861_v10 = vsel %vm765_vm15, %v6813_v54, %v6830_v22  ;;  %7591 = vmatpush.bf16.msra.mxu1 %v11156_v15 }
 0x8b0   :  { %7856 = vrot.lane.b32.xlu2 %v7844_v1, %s11537_s0  ;;  %v6832_v51 = vsel %vm765_vm15, %v6830_v22, %v6831_v46  ;;  %v6870_v28 = vpack.c.bf16 %v6861_v10, %v6861_v10  ;;  %v16970_v40 = vrot.slane %v15007_v8, 5  ;;  %v6764_v32 = vrot.slane %v14722_v14, 5 }
 0x8b1   :  { %v7890_v7 = vsel %vm459_vm4, %v7800_v41, %v7849_v35  ;;  %7884 = vrot.lane.b32.xlu0 %v7870_v16, %s11538_s2  ;;  %v7133_v48 = vpack.c.bf16 %v7088_v56, %v7088_v56  ;;  %v6871_v36 = vpack.c.bf16 %v6832_v51, %v6832_v51  ;;  %v6765_v27 = vrot.slane %v14750_v31, 5 }
 0x8b2   :  { %v6998_v30 = vunpack.c.l.b16 %v6870_v28  ;;  %v6795_v59 = vsel %vm88_vm0, %v16970_v40, %v6764_v32  ;;  %v7162_v34 = vpack.c.bf16 %v14964_v49, %v14964_v49  ;;  %v7163_v63 = vpack.c.bf16 %v15007_v8, %v15007_v8 }
 0x8b3   :  { %v7246_v22 = vunpack.c.l.b16 %v7132_v37  ;;  %v6999_v35 = vunpack.c.l.b16 %v6871_v36  ;;  %v6766_v1 = vsel %vm88_vm0, %v6764_v32, %v6765_v27  ;;  %v6804_v56 = vpack.c.bf16 %v6795_v59, %v6795_v59  ;;  %v7311_v4 = vpop.permute.xlu0 %7310 }
 0x8b4   :  { %v6805_v41 = vpack.c.bf16 %v6766_v1, %v6766_v1  ;;  %v7300_v16 = vunpack.c.l.b16 %v7162_v34  ;;  %v7301_v10 = vunpack.c.l.b16 %v7163_v63  ;;  %v7722_v51 = vrot.slane %v14818_v38, 3 }
 0x8b5   :  { %v7247_v28 = vunpack.c.l.b16 %v7133_v48  ;;  %v7010_v20 = vpack.c.b16 %v6999_v35, %v6998_v30  ;;  %v6942_v33 = vunpack.c.l.b16 %v6804_v56  ;;  %v7724_v18 = vrot.slane %v14869_v0, 3 }
 0x8b6   :  { %v6943_v40 = vunpack.c.l.b16 %v6805_v41  ;;  %v7309_v37 = vpack.c.b16 %v7301_v10, %v7300_v16  ;;  %v7723_v36 = vsel %vm3293_vm13, %v7720_v25, %v7722_v51  ;;  %v7184_v32 = vrot.slane %v14818_v38, 1 }
 0x8b7   :  { %v7725_v59 = vsel %vm3293_vm13, %v7722_v51, %v7724_v18  ;;  %v7762_v34 = vpack.c.bf16 %v7723_v36, %v7723_v36  ;;  %v7186_v63 = vrot.slane %v14869_v0, 1  ;;  %v6667_v48 = vrot.slane %v15007_v8, 4 }
 0x8b8   :  { %v7262_v30 = vpack.c.b16 %v7247_v28, %v7246_v22  ;;  %7022 = vrot.lane.b32.xlu2 %v7010_v20, %s11538_s2  ;;  %v6954_v15 = vpack.c.b16 %v6943_v40, %v6942_v33  ;;  %v7763_v35 = vpack.c.bf16 %v7725_v59, %v7725_v59  ;;  %v7185_v25 = vsel %vm240_vm2, %v7182_v47, %v7184_v32 }
 0x8b9   :  { %7324 = vrot.lane.b32.xlu0 %v7309_v37, %s11537_s0  ;;  %v7187_v1 = vsel %vm240_vm2, %v7184_v32, %v7186_v63  ;;  %v7224_v56 = vpack.c.bf16 %v7185_v25, %v7185_v25  ;;  %v6711_v41 = vsel %vm5160_vm14, %v6709_v3, %v6667_v48  ;;  %v6833_v22 = vrot.slane %v14784_v19, 6 }
 0x8ba   :  { %6966 = vrot.lane.b32.xlu1 %v6954_v15, %s11537_s0  ;;  %v7835_v33 = vunpack.c.l.b16 %v7763_v35  ;;  %v7225_v20 = vpack.c.bf16 %v7187_v1, %v7187_v1  ;;  %v6729_v47 = vsel %vm5160_vm14, %v6667_v48, %v6698_v62  ;;  %v6745_v40 = vpack.c.bf16 %v6711_v41, %v6711_v41 }
 0x8bb   :  { %v7384_v16 = vsel %vm459_vm4, %v7262_v30, %v7311_v4  ;;  %v7834_v10 = vunpack.c.l.b16 %v7762_v34  ;;  %v6738_v51 = vpack.c.bf16 %v6729_v47, %v6729_v47  ;;  %v6835_v37 = vrot.slane %v14818_v38, 6 }
 0x8bc   :  { %v7352_v36 = vunpack.c.l.b16 %v7224_v56  ;;  %v7353_v3 = vunpack.c.l.b16 %v7225_v20  ;;  %v15085_v32 = vunpack.c.l.b16 %v6745_v40  ;;  %v6834_v62 = vsel %vm765_vm15, %v6831_v46, %v6833_v22 }
 0x8bd   :  { %v15088_v35 = vunpack.c.l.b16 %v6738_v51  ;;  %v6836_v4 = vsel %vm765_vm15, %v6833_v22, %v6835_v37  ;;  %v7845_v34 = vpack.c.b16 %v7835_v33, %v7834_v10  ;;  %v6767_v30 = vrot.slane %v14784_v19, 5 }
 0x8be   :  { %v7367_v28 = vpop.permute.xlu1 %7366  ;;  %v7873_v15 = vpop.permute.xlu0 %7872  ;;  %v6873_v48 = vpack.c.bf16 %v6836_v4, %v6836_v4  ;;  %v6769_v1 = vrot.slane %v14818_v38, 5  ;;  %v6872_v41 = vpack.c.bf16 %v6834_v62, %v6834_v62  ;;  %v7726_v20 = vrot.slane %v14918_v61, 3 }
 0x8bf   :  { %v7407_v59 = vsel %vm484_vm5, %v7384_v16, %v7367_v28  ;;  %v7913_v25 = vsel %vm484_vm5, %v7890_v7, %v7873_v15  ;;  %v7871_v56 = vpack.c.b16 %v15088_v35, %v15085_v32  ;;  %v7363_v7 = vpack.c.b16 %v7353_v3, %v7352_v36  ;;  %v11155_v16 = vld [vmem:[%s16960_s3 + $0x250] sm:$0xff] }
 0x8c0   :  { %10817 = vmatmul.msk.bf16.vlgmr.msrb.gmra.mxu2 %vm549_vm6, %v7407_v59  ;;  %10881 = vmatmul.msk.bf16.vlgmr.msra.gmra.mxu3 %vm549_vm6, %v7913_v25  ;;  %v6768_v46 = vsel %vm88_vm0, %v6765_v27, %v6767_v30  ;;  %v6770_v22 = vsel %vm88_vm0, %v6767_v30, %v6769_v1  ;;  %v7001_v47 = vunpack.c.l.b16 %v6873_v48  ;;  %v7728_v10 = vrot.slane %v14964_v49, 3  ;;  %v11154_v59 = vld [vmem:[%s16960_s3 + $0x248] sm:$0xff] }
 0x8c1   :  { %7858 = vrot.lane.b32.xlu2 %v7845_v34, %s11537_s0  ;;  %7886 = vrot.lane.b32.xlu0 %v7871_v56, %s11538_s2  ;;  %v6807_v33 = vpack.c.bf16 %v6770_v22, %v6770_v22  ;;  %v6806_v40 = vpack.c.bf16 %v6768_v46, %v6768_v46  ;;  %v7000_v51 = vunpack.c.l.b16 %v6872_v41  ;;  %v7188_v36 = vrot.slane %v14918_v61, 1 }
 0x8c2   :  { %7376 = vrot.lane.b32.xlu1 %v7363_v7, %s11538_s2  ;;  %v7190_v3 = vrot.slane %v14964_v49, 1  ;;  %7592 = vmatpush.bf16.msra.mxu1 %v11155_v16  ;;  %v7727_v15 = vsel %vm3293_vm13, %v7724_v18, %v7726_v20  ;;  %v7729_v25 = vsel %vm3293_vm13, %v7726_v20, %v7728_v10  ;;  %v6839_v56 = vrot.slane %v14918_v61, 6 }
 0x8c3   :  { %v6945_v28 = vunpack.c.l.b16 %v6807_v33  ;;  %v7011_v62 = vpack.c.b16 %v7001_v47, %v7000_v51  ;;  %v6944_v4 = vunpack.c.l.b16 %v6806_v40  ;;  %v7765_v34 = vpack.c.bf16 %v7729_v25, %v7729_v25 }
 0x8c4   :  { %v7191_v48 = vsel %vm240_vm2, %v7188_v36, %v7190_v3  ;;  %v7189_v30 = vsel %vm240_vm2, %v7186_v63, %v7188_v36  ;;  %v7764_v41 = vpack.c.bf16 %v7727_v15, %v7727_v15  ;;  %v6837_v18 = vrot.slane %v14869_v0, 6  ;;  %v11153_v63 = vld [vmem:[%s16960_s3 + $0x240] sm:$0xff] }
 0x8c5   :  { %v6955_v7 = vpack.c.b16 %v6945_v28, %v6944_v4  ;;  %v7227_v46 = vpack.c.bf16 %v7191_v48, %v7191_v48  ;;  %v16971_v22 = vrot.slane %v14918_v61, 5  ;;  %v7837_v33 = vunpack.c.l.b16 %v7765_v34 }
 0x8c6   :  { %v15113_v27 = vpop.permute.xlu0 %7312  ;;  %7593 = vmatpush.bf16.msra.mxu1 %v11154_v59  ;;  %v7226_v20 = vpack.c.bf16 %v7189_v30, %v7189_v30  ;;  %v6771_v47 = vrot.slane %v14869_v0, 5  ;;  %v6840_v40 = vsel %vm765_vm15, %v6837_v18, %v6839_v56  ;;  %v7836_v16 = vunpack.c.l.b16 %v7764_v41 }
 0x8c7   :  { %v7355_v51 = vunpack.c.l.b16 %v7227_v46  ;;  %v6838_v36 = vsel %vm765_vm15, %v6835_v37, %v6837_v18  ;;  %v7641_v59 = vrot.slane %v14607_v55, 2  ;;  %v7643_v25 = vrot.slane %v14622_v58, 2 }
 0x8c8   :  { %v6774_v15 = vsel %vm88_vm0, %v6771_v47, %v16971_v22  ;;  %v7354_v4 = vunpack.c.l.b16 %v7226_v20  ;;  %v6875_v48 = vpack.c.bf16 %v6840_v40, %v6840_v40  ;;  %v6772_v30 = vsel %vm88_vm0, %v6769_v1, %v6771_v47 }
 0x8c9   :  { %7024 = vrot.lane.b32.xlu2 %v7011_v62, %s11538_s2  ;;  %v7846_v62 = vpack.c.b16 %v7837_v33, %v7836_v16  ;;  %v7642_v37 = vsel %vm1180_vm9, %v7639_v29, %v7641_v59  ;;  %v7644_v41 = vsel %vm1180_vm9, %v7641_v59, %v7643_v25  ;;  %v7730_v46 = vrot.slane %v15007_v8, 3 }
 0x8ca   :  { %6968 = vrot.lane.b32.xlu1 %v6955_v7, %s11537_s0  ;;  %7594 = vmatpush.bf16.msra.mxu1 %v11153_v63  ;;  %v6874_v7 = vpack.c.bf16 %v6838_v36, %v6838_v36  ;;  %v7364_v18 = vpack.c.b16 %v7355_v51, %v7354_v4  ;;  %v6809_v63 = vpack.c.bf16 %v6774_v15, %v6774_v15  ;;  %v7192_v40 = vrot.slane %v15007_v8, 1 }
 0x8cb   :  { %v7688_v33 = vpack.c.bf16 %v7642_v37, %v7642_v37  ;;  %v7689_v20 = vpack.c.bf16 %v7644_v41, %v7644_v41  ;;  %v6808_v16 = vpack.c.bf16 %v6772_v30, %v6772_v30  ;;  %v7003_v1 = vunpack.c.l.b16 %v6875_v48 }
 0x8cc   :  { %v7731_v36 = vsel %vm3293_vm13, %v7728_v10, %v7730_v46  ;;  %v7751_v29 = vsel %vm3293_vm13, %v7730_v46, %v7717_v11  ;;  %v7002_v59 = vunpack.c.l.b16 %v6874_v7  ;;  %v6947_v22 = vunpack.c.l.b16 %v6809_v63 }
 0x8cd   :  { %v7787_v47 = vunpack.c.l.b16 %v7689_v20  ;;  %v7786_v51 = vunpack.c.l.b16 %v7688_v33  ;;  %v6946_v15 = vunpack.c.l.b16 %v6808_v16  ;;  %v7193_v4 = vsel %vm240_vm2, %v7190_v3, %v7192_v40 }
 0x8ce   :  { %v7875_v28 = vpop.permute.xlu0 %7874  ;;  %v7213_v30 = vsel %vm240_vm2, %v7192_v40, %v7179_v26  ;;  %v7012_v48 = vpack.c.b16 %v7003_v1, %v7002_v59  ;;  %v7766_v41 = vpack.c.bf16 %v7731_v36, %v7731_v36  ;;  %v7767_v10 = vpack.c.bf16 %v7751_v29, %v7751_v29 }
 0x8cf   :  { %v15146_v34 = vpop.permute.xlu2 %7014  ;;  %v7801_v37 = vpack.c.b16 %v7787_v47, %v7786_v51  ;;  %v6956_v11 = vpack.c.b16 %v6947_v22, %v6946_v15  ;;  %v7228_v46 = vpack.c.bf16 %v7193_v4, %v7193_v4  ;;  %v7229_v63 = vpack.c.bf16 %v7213_v30, %v7213_v30 }
 0x8d0   :  { %v6841_v3 = vrot.slane %v14964_v49, 6  ;;  %v7838_v26 = vunpack.c.l.b16 %v7766_v41  ;;  %v7839_v20 = vunpack.c.l.b16 %v7767_v10  ;;  %v7645_v16 = vrot.slane %v14633_v42, 2 }
 0x8d1   :  { %7860 = vrot.lane.b32.xlu2 %v7846_v62, %s11537_s0  ;;  %v7647_v40 = vrot.slane %v14646_v5, 2  ;;  %v7091_v22 = vrot.slane %v14607_v55, 7  ;;  %v7356_v47 = vunpack.c.l.b16 %v7228_v46  ;;  %v7357_v36 = vunpack.c.l.b16 %v7229_v63 }
 0x8d2   :  { %7378 = vrot.lane.b32.xlu1 %v7364_v18, %s11538_s2  ;;  %v6843_v1 = vsel %vm765_vm15, %v6841_v3, %v6813_v54  ;;  %v7089_v59 = vrot.slane %v14586_v21, 7  ;;  %v6842_v15 = vsel %vm765_vm15, %v6839_v56, %v6841_v3  ;;  %v17008_v4 = vrot.slane %v15007_v8, 5 }
 0x8d3   :  { %v7648_v29 = vsel %vm1180_vm9, %v7645_v16, %v7647_v40  ;;  %v7847_v54 = vpack.c.b16 %v7839_v20, %v7838_v26  ;;  %v7365_v56 = vpack.c.b16 %v7357_v36, %v7356_v47  ;;  %v6876_v46 = vpack.c.bf16 %v6842_v15, %v6842_v15 }
 0x8d4   :  { %v7691_v41 = vpack.c.bf16 %v7648_v29, %v7648_v29  ;;  %v7092_v10 = vsel %vm161_vm3, %v7089_v59, %v7091_v22 }
 0x8d5   :  { %v7004_v29 = vunpack.c.l.b16 %v6876_v46 }
 0x8d6   :  { %v15161_v62 = vpop.permute.xlu0 %7314 }
 0x8d7   :  { %v7851_v18 = vpop.permute.xlu2 %7850 }
 0x8d8   :  { %v7893_v7 = vsel %vm459_vm4, %v7801_v37, %v7851_v18  ;;  %v6877_v37 = vpack.c.bf16 %v6843_v1, %v6843_v1  ;;  %v7135_v1 = vpack.c.bf16 %v7092_v10, %v7092_v10 }
 0x8d9   :  { %7026 = vrot.lane.b32.xlu2 %v7012_v48, %s11538_s2  ;;  %v7915_v33 = vsel %vm484_vm5, %v7893_v7, %v7875_v28  ;;  %v6775_v28 = vrot.slane %v14964_v49, 5  ;;  %v7646_v48 = vsel %vm1180_vm9, %v7643_v25, %v7645_v16  ;;  %v17010_v25 = vrot.slane %v14568_v53, 7 }
 0x8da   :  { %6970 = vrot.lane.b32.xlu1 %v6956_v11, %s11537_s0  ;;  %10882 = vmatmul.msk.bf16.gmra.mxu3 %vm549_vm6, %v7915_v33  ;;  %v17009_v11 = vrot.slane %v14918_v61, 5  ;;  %v7690_v33 = vpack.c.bf16 %v7646_v48, %v7646_v48  ;;  %v7005_v26 = vunpack.c.l.b16 %v6877_v37  ;;  %v7789_v16 = vunpack.c.l.b16 %v7691_v41 }
 0x8db   :  { %v6777_v30 = vsel %vm88_vm0, %v6775_v28, %v17008_v4  ;;  %v7090_v3 = vsel %vm161_vm3, %v17010_v25, %v7089_v59  ;;  %v17011_v25 = vrot.slane %v14563_v45, 2 }
 0x8dc   :  { %v6776_v7 = vsel %vm88_vm0, %v17009_v11, %v6775_v28  ;;  %v6811_v63 = vpack.c.bf16 %v6777_v30, %v6777_v30  ;;  %v6910_v28 = vpack.c.b16 %v14603_v2, %v14731_v6  ;;  %v7134_v47 = vpack.c.bf16 %v7090_v3, %v7090_v3 }
 0x8dd   :  { %v6810_v20 = vpack.c.bf16 %v6776_v7, %v6776_v7  ;;  %v7013_v30 = vpack.c.b16 %v7005_v26, %v7004_v29  ;;  %v7649_v6 = vrot.slane %v14674_v24, 2 }
 0x8de   :  { %v7877_v51 = vpop.permute.xlu0 %7876  ;;  %v6949_v4 = vunpack.c.l.b16 %v6811_v63  ;;  %v7248_v7 = vunpack.c.l.b16 %v7134_v47 }
 0x8df   :  { %v7017_v18 = vpop.permute.xlu2 %7016  ;;  %v6948_v48 = vunpack.c.l.b16 %v6810_v20  ;;  %v7684_v3 = vsel %vm1180_vm9, %v7649_v6, %v17011_v25  ;;  %v7651_v25 = vrot.slane %v14722_v14, 2 }
 0x8e1   :  { %7862 = vrot.lane.b32.xlu2 %v7847_v54, %s11537_s0  ;;  %v7788_v54 = vunpack.c.l.b16 %v7690_v33  ;;  %v6957_v10 = vpack.c.b16 %v6949_v4, %v6948_v48  ;;  %v7650_v33 = vsel %vm1180_vm9, %v7647_v40, %v7649_v6  ;;  %v7693_v4 = vpack.c.bf16 %v7684_v3, %v7684_v3 }
 0x8e2   :  { %7380 = vrot.lane.b32.xlu1 %v7365_v56, %s11538_s2  ;;  %v7249_v56 = vunpack.c.l.b16 %v7135_v1  ;;  %v7692_v29 = vpack.c.bf16 %v7650_v33, %v7650_v33 }
 0x8e3   :  { %v7802_v11 = vpack.c.b16 %v7789_v16, %v7788_v54 }
 0x8e4   :  { %v7263_v63 = vpack.c.b16 %v7249_v56, %v7248_v7 }
 0x8e6   :  { %v6959_v36 = vpop.permute.xlu1 %6958  ;;  %v15202_v15 = vpop.permute.xlu0 %7316  ;;  %v7387_v26 = vsel %vm459_vm4, %v7263_v63, %v15113_v27  ;;  %v7791_v27 = vunpack.c.l.b16 %v7693_v4 }
 0x8e7   :  { %v7032_v59 = vsel %vm459_vm4, %v6910_v28, %v6959_v36  ;;  %v7853_v41 = vpop.permute.xlu2 %7852  ;;  %v7790_v36 = vunpack.c.l.b16 %v7692_v29 }
 0x8e8   :  { %v7055_v37 = vsel %vm484_vm5, %v7032_v59, %v15146_v34  ;;  %v7896_v2 = vsel %vm459_vm4, %v7802_v11, %v7853_v41  ;;  %v7095_v34 = vrot.slane %v14633_v42, 7 }
 0x8e9   :  { %7028 = vrot.lane.b32.xlu2 %v7013_v30, %s11538_s2  ;;  %10849 = vmatmul.msk.bf16.vlgmr.msra.gmra.mxu1 %vm549_vm6, %v7055_v37  ;;  %v7917_v46 = vsel %vm484_vm5, %v7896_v2, %v7877_v51  ;;  %v7093_v51 = vrot.slane %v14622_v58, 7  ;;  %v6911_v30 = vpack.c.b16 %v14629_v9, %v14605_v12  ;;  %v7803_v41 = vpack.c.b16 %v7791_v27, %v7790_v36 }
 0x8ea   :  { %6972 = vrot.lane.b32.xlu1 %v6957_v10, %s11537_s0  ;;  %10883 = vmatmul.msk.bf16.gmra.mxu3 %vm549_vm6, %v7917_v46  ;;  %v7654_v12 = vrot.slane %v14784_v19, 2  ;;  %v7652_v46 = vrot.slane %v14750_v31, 2 }
 0x8eb   :  { %v7096_v28 = vsel %vm161_vm3, %v7093_v51, %v7095_v34  ;;  %v7094_v54 = vsel %vm161_vm3, %v7091_v22, %v7093_v51 }
 0x8ec   :  { %v7137_v47 = vpack.c.bf16 %v7096_v28, %v7096_v28  ;;  %v7136_v48 = vpack.c.bf16 %v7094_v54, %v7094_v54  ;;  %v7655_v3 = vsel %vm1180_vm9, %v7652_v46, %v7654_v12  ;;  %v7653_v51 = vsel %vm1180_vm9, %v7651_v25, %v7652_v46 }
 0x8ed   :  { %v7695_v29 = vpack.c.bf16 %v7655_v3, %v7655_v3  ;;  %v7694_v28 = vpack.c.bf16 %v7653_v51, %v7653_v51 }
 0x8ee   :  { %v7369_v20 = vpop.permute.xlu1 %7368  ;;  %v7879_v16 = vpop.permute.xlu0 %7878  ;;  %v7251_v37 = vunpack.c.l.b16 %v7137_v47  ;;  %v7250_v22 = vunpack.c.l.b16 %v7136_v48  ;;  %v6912_v47 = vpack.c.b16 %v14665_v13, %v14631_v17 }
 0x8ef   :  { %v7409_v1 = vsel %vm484_vm5, %v7387_v26, %v7369_v20  ;;  %v7097_v26 = vrot.slane %v14646_v5, 7  ;;  %v7793_v27 = vunpack.c.l.b16 %v7695_v29 }
 0x8f0   :  { %10818 = vmatmul.msk.bf16.gmra.mxu2 %vm549_vm6, %v7409_v1  ;;  %v7019_v40 = vpop.permute.xlu2 %7018  ;;  %v7264_v9 = vpack.c.b16 %v7251_v37, %v7250_v22  ;;  %v17012_v1 = vrot.slane %v14674_v24, 7  ;;  %v7658_v22 = vrot.slane %v14869_v0, 2 }
 0x8f1   :  { %v7098_v4 = vsel %vm161_vm3, %v7095_v34, %v7097_v26 }
 0x8f2   :  { %v7390_v63 = vsel %vm459_vm4, %v7264_v9, %v15161_v62  ;;  %v7099_v62 = vsel %vm161_vm3, %v7097_v26, %v17012_v1  ;;  %v7083_v9 = vrot.slane %v15007_v8, 7 }
 0x8f3   :  { %v7139_v54 = vpack.c.bf16 %v7099_v62, %v7099_v62 }
 0x8f5   :  { %v7253_v37 = vunpack.c.l.b16 %v7139_v54 }
 0x8f6   :  { %v6961_v59 = vpop.permute.xlu1 %6960  ;;  %v15231_v56 = vpop.permute.xlu0 %7318 }
 0x8f7   :  { %v7035_v11 = vsel %vm459_vm4, %v6911_v30, %v6961_v59  ;;  %v7138_v30 = vpack.c.bf16 %v7098_v4, %v7098_v4  ;;  %v7792_v59 = vunpack.c.l.b16 %v7694_v28  ;;  %v6913_v28 = vpack.c.b16 %v14733_v43, %v14672_v23 }
 0x8f8   :  { %v7057_v10 = vsel %vm484_vm5, %v7035_v11, %v7017_v18  ;;  %v7855_v2 = vpop.permute.xlu2 %7854  ;;  %v7660_v43 = vrot.slane %v14918_v61, 2 }
 0x8f9   :  { %10850 = vmatmul.msk.bf16.gmra.mxu1 %vm549_vm6, %v7057_v10  ;;  %v7899_v6 = vsel %vm459_vm4, %v7803_v41, %v7855_v2  ;;  %v7804_v41 = vpack.c.b16 %v7793_v27, %v7792_v59  ;;  %v7252_v34 = vunpack.c.l.b16 %v7138_v30 }
 0x8fa   :  { %v7919_v7 = vsel %vm484_vm5, %v7899_v6, %v7879_v16 }
 0x8fb   :  { %10884 = vmatmul.msk.bf16.gmra.mxu3 %vm549_vm6, %v7919_v7  ;;  %v7265_v13 = vpack.c.b16 %v7253_v37, %v7252_v34  ;;  %v7656_v7 = vrot.slane %v14818_v38, 2 }
 0x8fd   :  { %v7657_v26 = vsel %vm1180_vm9, %v7654_v12, %v7656_v7 }
 0x8fe   :  { %v7371_v33 = vpop.permute.xlu1 %7370  ;;  %v7696_v29 = vpack.c.bf16 %v7657_v26, %v7657_v26  ;;  %v7103_v26 = vrot.slane %v14784_v19, 7 }
 0x8ff   :  { %v7411_v18 = vsel %vm484_vm5, %v7390_v63, %v7371_v33  ;;  %v7659_v63 = vsel %vm1180_vm9, %v7656_v7, %v7658_v22  ;;  %v7100_v33 = vrot.slane %v14722_v14, 7 }
 0x900   :  { %10819 = vmatmul.msk.bf16.gmra.mxu2 %vm549_vm6, %v7411_v18  ;;  %v7021_v20 = vpop.permute.xlu2 %7020  ;;  %v7881_v16 = vpop.permute.xlu0 %7880  ;;  %v7101_v18 = vrot.slane %v14750_v31, 7  ;;  %v7697_v51 = vpack.c.bf16 %v7659_v63, %v7659_v63  ;;  %v7794_v12 = vunpack.c.l.b16 %v7696_v29 }
 0x902   :  { %v7795_v54 = vunpack.c.l.b16 %v7697_v51 }
 0x904   :  { %v7805_v59 = vpack.c.b16 %v7795_v54, %v7794_v12  ;;  %v7664_v54 = vrot.slane %v15007_v8, 2 }
 0x906   :  { %v6963_v36 = vpop.permute.xlu1 %6962 }
 0x907   :  { %v7038_v48 = vsel %vm459_vm4, %v6912_v47, %v6963_v36 }
 0x908   :  { %v7059_v11 = vsel %vm484_vm5, %v7038_v48, %v7019_v40  ;;  %v15259_v10 = vpop.permute.xlu0 %7320  ;;  %v7393_v40 = vsel %vm459_vm4, %v7265_v13, %v15202_v15  ;;  %v7102_v15 = vsel %vm161_vm3, %v7100_v33, %v7101_v18 }
 0x909   :  { %10851 = vmatmul.msk.bf16.gmra.mxu1 %vm549_vm6, %v7059_v11  ;;  %v7141_v47 = vpack.c.bf16 %v7102_v15, %v7102_v15 }
 0x90a   :  { %v7857_v2 = vpop.permute.xlu2 %7856 }
 0x90b   :  { %v7902_v17 = vsel %vm459_vm4, %v7804_v41, %v7857_v2  ;;  %v7255_v11 = vunpack.c.l.b16 %v7141_v47  ;;  %v7662_v41 = vrot.slane %v14964_v49, 2 }
 0x90c   :  { %v7921_v6 = vsel %vm484_vm5, %v7902_v17, %v7881_v16  ;;  %v7131_v16 = vsel %vm161_vm3, %v7083_v9, %v7100_v33  ;;  %v7105_v33 = vrot.slane %v14818_v38, 7 }
 0x90d   :  { %10885 = vmatmul.msk.bf16.gmra.mxu3 %vm549_vm6, %v7921_v6  ;;  %v7140_v4 = vpack.c.bf16 %v7131_v16, %v7131_v16  ;;  %v7663_v6 = vsel %vm1180_vm9, %v7660_v43, %v7662_v41 }
 0x90e   :  { %v7373_v46 = vpop.permute.xlu1 %7372  ;;  %v7106_v51 = vsel %vm161_vm3, %v7103_v26, %v7105_v33 }
 0x90f   :  { %v7413_v3 = vsel %vm484_vm5, %v7393_v40, %v7373_v46  ;;  %v7254_v30 = vunpack.c.l.b16 %v7140_v4  ;;  %v7661_v40 = vsel %vm1180_vm9, %v7658_v22, %v7660_v43  ;;  %v7699_v46 = vpack.c.bf16 %v7663_v6, %v7663_v6 }
 0x910   :  { %10820 = vmatmul.msk.bf16.gmra.mxu2 %vm549_vm6, %v7413_v3  ;;  %v7698_v3 = vpack.c.bf16 %v7661_v40, %v7661_v40  ;;  %v7143_v4 = vpack.c.bf16 %v7106_v51, %v7106_v51  ;;  %v6914_v22 = vpack.c.b16 %v14812_v39, %v15088_v35  ;;  %v7109_v43 = vrot.slane %v14918_v61, 7 }
 0x911   :  { %v7266_v2 = vpack.c.b16 %v7255_v11, %v7254_v30  ;;  %v7797_v16 = vunpack.c.l.b16 %v7699_v46  ;;  %v7665_v11 = vsel %vm1180_vm9, %v7662_v41, %v7664_v54 }
 0x912   :  { %v7023_v1 = vpop.permute.xlu2 %7022  ;;  %v7796_v15 = vunpack.c.l.b16 %v7698_v3 }
 0x913   :  { %v7883_v62 = vpop.permute.xlu0 %7882 }
 0x914   :  { %v7806_v29 = vpack.c.b16 %v7797_v16, %v7796_v15 }
 0x916   :  { %v6965_v36 = vpop.permute.xlu1 %6964 }
 0x917   :  { %v7041_v27 = vsel %vm459_vm4, %v6913_v28, %v6965_v36 }
 0x918   :  { %v7061_v48 = vsel %vm484_vm5, %v7041_v27, %v7021_v20  ;;  %v7396_v20 = vsel %vm459_vm4, %v7266_v2, %v15231_v56 }
 0x919   :  { %10852 = vmatmul.msk.bf16.gmra.mxu1 %vm549_vm6, %v7061_v48  ;;  %v7257_v48 = vunpack.c.l.b16 %v7143_v4 }
 0x91b   :  { %v7859_v37 = vpop.permute.xlu2 %7858  ;;  %v15288_v17 = vpop.permute.xlu0 %7322 }
 0x91c   :  { %v7905_v34 = vsel %vm459_vm4, %v7805_v59, %v7859_v37  ;;  %v7685_v59 = vsel %vm1180_vm9, %v7664_v54, %v7651_v25 }
 0x91d   :  { %v7923_v23 = vsel %vm484_vm5, %v7905_v34, %v7883_v62  ;;  %v7104_v62 = vsel %vm161_vm3, %v7101_v18, %v7103_v26  ;;  %v7701_v37 = vpack.c.bf16 %v7685_v59, %v7685_v59  ;;  %v7700_v34 = vpack.c.bf16 %v7665_v11, %v7665_v11 }
 0x91e   :  { %10886 = vmatmul.msk.bf16.gmra.mxu3 %vm549_vm6, %v7923_v23  ;;  %v7375_v13 = vpop.permute.xlu1 %7374  ;;  %v7142_v36 = vpack.c.bf16 %v7104_v62, %v7104_v62 }
 0x91f   :  { %v7415_v7 = vsel %vm484_vm5, %v7396_v20, %v7375_v13  ;;  %v7107_v13 = vrot.slane %v14869_v0, 7  ;;  %v7799_v6 = vunpack.c.l.b16 %v7701_v37  ;;  %v7798_v41 = vunpack.c.l.b16 %v7700_v34 }
 0x920   :  { %10821 = vmatmul.msk.bf16.gmra.mxu2 %vm549_vm6, %v7415_v7  ;;  %v7256_v39 = vunpack.c.l.b16 %v7142_v36 }
 0x921   :  { %v7110_v7 = vsel %vm161_vm3, %v7107_v13, %v7109_v43  ;;  %v7108_v40 = vsel %vm161_vm3, %v7105_v33, %v7107_v13  ;;  %v7807_v46 = vpack.c.b16 %v7799_v6, %v7798_v41  ;;  %v15355_v41 = vld [vmem:[%s16961_s4 + $0x6] ss:$0 sm:$0xff] }
 0x922   :  { %v7267_v2 = vpack.c.b16 %v7257_v48, %v7256_v39  ;;  %v7145_v3 = vpack.c.bf16 %v7110_v7, %v7110_v7 }
 0x923   :  { %v7025_v63 = vpop.permute.xlu2 %7024  ;;  %v7885_v56 = vpop.permute.xlu0 %7884 }
 0x924   :  { %v7399_v20 = vsel %vm459_vm4, %v7267_v2, %v15259_v10  ;;  %v6915_v10 = vpack.c.b16 %v14937_v60, %v14820_v50  ;;  %v7259_v4 = vunpack.c.l.b16 %v7145_v3 }
 0x92b   :  { %v7861_v28 = vpop.permute.xlu2 %7860  ;;  %v7325_v35 = vpop.permute.xlu0 %7324 }
 0x92c   :  { %v7908_v47 = vsel %vm459_vm4, %v7806_v29, %v7861_v28  ;;  %v6967_v27 = vpop.permute.xlu1 %6966 }
 0x92d   :  { %v7925_v12 = vsel %vm484_vm5, %v7908_v47, %v7885_v56  ;;  %v7044_v30 = vsel %vm459_vm4, %v6914_v22, %v6967_v27  ;;  %v7144_v56 = vpack.c.bf16 %v7108_v40, %v7108_v40  ;;  %v7111_v22 = vrot.slane %v14964_v49, 7 }
 0x92e   :  { %10887 = vmatmul.msk.bf16.gmra.mxu3 %vm549_vm6, %v7925_v12  ;;  %v7063_v18 = vsel %vm484_vm5, %v7044_v30, %v7023_v1  ;;  %v6916_v12 = vpack.c.b16 %v15016_v44, %v14939_v57  ;;  %v6917_v57 = vpack.c.b16 %v15085_v32, %v15018_v52 }
 0x92f   :  { %10853 = vmatmul.msk.bf16.gmra.mxu1 %vm549_vm6, %v7063_v18  ;;  %v7258_v28 = vunpack.c.l.b16 %v7144_v56  ;;  %v7113_v36 = vsel %vm161_vm3, %v7111_v22, %v7083_v9 }
 0x930   :  { %v7147_v27 = vpack.c.bf16 %v7113_v36, %v7113_v36 }
 0x931   :  { %v7268_v54 = vpack.c.b16 %v7259_v4, %v7258_v28 }
 0x932   :  { %v7261_v18 = vunpack.c.l.b16 %v7147_v27 }
 0x933   :  { %v7027_v23 = vpop.permute.xlu2 %7026  ;;  %v7887_v16 = vpop.permute.xlu0 %7886  ;;  %v7402_v50 = vsel %vm459_vm4, %v7268_v54, %v15288_v17 }
 0x934   :  { %v7377_v1 = vpop.permute.xlu1 %7376 }
 0x935   :  { %v7417_v25 = vsel %vm484_vm5, %v7399_v20, %v7377_v1 }
 0x936   :  { %10822 = vmatmul.msk.bf16.gmra.mxu2 %vm549_vm6, %v7417_v25 }
 0x93b   :  { %v7863_v26 = vpop.permute.xlu2 %7862 }
 0x93c   :  { %v7911_v51 = vsel %vm459_vm4, %v7807_v46, %v7863_v26  ;;  %v6969_v15 = vpop.permute.xlu1 %6968 }
 0x93d   :  { %v7927_v62 = vsel %vm484_vm5, %v7911_v51, %v7887_v16  ;;  %v7047_v29 = vsel %vm459_vm4, %v6915_v10, %v6969_v15 }
 0x93e   :  { %10888 = vmatmul.msk.bf16.gmra.mxu3 %vm549_vm6, %v7927_v62  ;;  %v7065_v33 = vsel %vm484_vm5, %v7047_v29, %v7025_v63  ;;  %v7112_v63 = vsel %vm161_vm3, %v7109_v43, %v7111_v22 }
 0x93f   :  { %10854 = vmatmul.msk.bf16.gmra.mxu1 %vm549_vm6, %v7065_v33  ;;  %v7146_v30 = vpack.c.bf16 %v7112_v63, %v7112_v63 }
 0x941   :  { %v7260_v11 = vunpack.c.l.b16 %v7146_v30 }
 0x943   :  { %v7269_v39 = vpack.c.b16 %v7261_v18, %v7260_v11  ;;  %v7029_v2 = vpop.permute.xlu2 %7028  ;;  %v8001_v20 = vpop.f32.mrf.mxu3 }
 0x944   :  { %v7379_v60 = vpop.permute.xlu1 %7378  ;;  %v7495_v1 = vpop.f32.mrf.mxu2 }
 0x945   :  { %v7419_v47 = vsel %vm484_vm5, %v7402_v50, %v7379_v60  ;;  %v7405_v37 = vsel %vm459_vm4, %v7269_v39, %v7325_v35 }
 0x946   :  { %10823 = vmatmul.msk.bf16.gmra.mxu2 %vm549_vm6, %v7419_v47 }
 0x94b   :  { %v8003_v25 = vpop.f32.mrf.mxu3 }
 0x94c   :  { %v6971_v48 = vpop.permute.xlu1 %6970  ;;  %v7497_v52 = vpop.f32.mrf.mxu2 }
 0x94d   :  { %v7050_v17 = vsel %vm459_vm4, %v6916_v12, %v6971_v48 }
 0x94e   :  { %v7067_v59 = vsel %vm484_vm5, %v7050_v17, %v7027_v23 }
 0x94f   :  { %10855 = vmatmul.msk.bf16.gmra.mxu1 %vm549_vm6, %v7067_v59 }
 0x954   :  { %v7381_v9 = vpop.permute.xlu1 %7380 }
 0x955   :  { %v7421_v34 = vsel %vm484_vm5, %v7405_v37, %v7381_v9 }
 0x956   :  { %10824 = vmatmul.msk.bf16.gmra.mxu2 %vm549_vm6, %v7421_v34 }
 0x95c   :  { %v6973_v44 = vpop.permute.xlu1 %6972 }
 0x95d   :  { %v7053_v43 = vsel %vm459_vm4, %v6917_v57, %v6973_v44  ;;  %v8006_v26 = vpop.f32.mrf.mxu3 }
 0x95e   :  { %v7069_v23 = vsel %vm484_vm5, %v7053_v43, %v7029_v2 }
 0x95f   :  { %10856 = vmatmul.msk.bf16.gmra.mxu1 %vm549_vm6, %v7069_v23 }
 0x965   :  { %v8008_v54 = vpop.f32.mrf.mxu3 }
 0x966   :  { %v7596_v13 = vpop.f32.mrf.mxu1 }
 0x967   :  { %v7597_v35 = vadd.f32 %v7596_v13, %v7495_v1 }
 0x969   :  { %v8041_v6 = vadd.f32 %v8001_v20, %v7597_v35 }
 0x96b   :  { %v8057_v32 = vadd.f32 %v8041_v6, %v14563_v45 }
 0x96d   :  { %v8075_v7 = vadd.f32 %v15355_v41, %v8057_v32  ;;  %v8011_v39 = vpop.f32.mrf.mxu3 }
 0x96e   :  { %v7598_v40 = vpop.f32.mrf.mxu1 }
 0x96f   :  { %v8107_v46 = vmin.f32 %v8075_v7, 0.0  ;;  %v7599_v3 = vadd.f32 %v7598_v40, %v7497_v52  ;;  %vm8091_vm1 = vcmp.gt.f32.partialorder %v8075_v7, 0.0 }
 0x971   :  { %v8123_v16 = vmul.f32 1.442695, %v8107_v46  ;;  %v8042_v10 = vadd.f32 %v8003_v25, %v7599_v3 }
 0x973   :  { %11414 = vpow2.f32 %v8123_v16  ;;  %v8058_v51 = vadd.f32 %v8042_v10, %v14568_v53  ;;  %v7500_v56 = vpop.f32.mrf.mxu2 }
 0x975   :  { %v8076_v15 = vadd.f32 %v15355_v41, %v8058_v51  ;;  %v8013_v16 = vpop.f32.mrf.mxu3 }
 0x976   :  { %v7601_v62 = vpop.f32.mrf.mxu1 }
 0x977   :  { %v8108_v29 = vmin.f32 %v8076_v15, 0.0  ;;  %v7602_v4 = vadd.f32 %v7601_v62, %v7500_v56  ;;  %vm8092_vm7 = vcmp.gt.f32.partialorder %v8076_v15, 0.0 }
 0x979   :  { %v11415_v33 = vpop.eup %11414  ;;  %v8125_v28 = vmul.f32 1.442695, %v8108_v29  ;;  %v8043_v45 = vadd.f32 %v8006_v26, %v7602_v4 }
 0x97a   :  { %v10889_v22 = vadd.f32 -1.0, %v11415_v33 }
 0x97b   :  { %11416 = vpow2.f32 %v8125_v28  ;;  %v8059_v50 = vadd.f32 %v8043_v45, %v14586_v21  ;;  %v7502_v60 = vpop.f32.mrf.mxu2 }
 0x97c   :  { %v15363_v27 = vsel %vm8091_vm1, %v8075_v7, %v10889_v22 }
 0x97d   :  { %v8077_v47 = vadd.f32 %v15355_v41, %v8059_v50  ;;  %v8953_v21 = vpack.c.bf16 %v15363_v27, %v15363_v27  ;;  %v8891_v32 = vrot.slane %v15363_v27, 7  ;;  %v8405_v3 = vrot.slane %v15363_v27, 4 }
 0x97e   :  { %v7603_v36 = vpop.f32.mrf.mxu1 }
 0x97f   :  { %v8109_v53 = vmin.f32 %v8077_v47, 0.0  ;;  %v7604_v63 = vadd.f32 %v7603_v36, %v7502_v60  ;;  %v9137_v2 = vunpack.c.l.b16 %v8953_v21  ;;  %vm8093_vm8 = vcmp.gt.f32.partialorder %v8077_v47, 0.0 }
 0x981   :  { %v11417_v12 = vpop.eup %11416  ;;  %v8127_v30 = vmul.f32 1.442695, %v8109_v53  ;;  %v8044_v48 = vadd.f32 %v8008_v54, %v7604_v63 }
 0x982   :  { %v10890_v17 = vadd.f32 -1.0, %v11417_v12 }
 0x983   :  { %11418 = vpow2.f32 %v8127_v30  ;;  %v8060_v18 = vadd.f32 %v8044_v48, %v14607_v55  ;;  %v7505_v59 = vpop.f32.mrf.mxu2 }
 0x984   :  { %v15368_v11 = vsel %vm8092_vm7, %v8076_v15, %v10890_v17  ;;  %v8825_v15 = vrot.slane %v15363_v27, 6 }
 0x985   :  { %17013 = vst [vmem:[#allocation5_spill] sm:$0xff] %v15368_v11  ;;  %v8078_v37 = vadd.f32 %v15355_v41, %v8060_v18  ;;  %v8954_v9 = vpack.c.bf16 %v15368_v11, %v15368_v11  ;;  %v8892_v7 = vrot.slane %v15368_v11, 7  ;;  %v8826_v53 = vrot.slane %v15368_v11, 6 }
 0x986   :  { %v7606_v34 = vpop.f32.mrf.mxu1 }
 0x987   :  { %v8110_v57 = vmin.f32 %v8078_v37, 0.0  ;;  %v7607_v44 = vadd.f32 %v7606_v34, %v7505_v59  ;;  %v9138_v43 = vunpack.c.l.b16 %v8954_v9  ;;  %vm8094_vm10 = vcmp.gt.f32.partialorder %v8078_v37, 0.0 }
 0x988   :  { %v8893_v56 = vsel %vm161_vm3, %v8891_v32, %v8892_v7  ;;  %v8827_v18 = vsel %vm765_vm15, %v8825_v15, %v8826_v53  ;;  %v8273_v9 = vrot.slane %v15363_v27, 2 }
 0x989   :  { %v11419_v20 = vpop.eup %11418  ;;  %v8129_v23 = vmul.f32 1.442695, %v8110_v57  ;;  %v8045_v55 = vadd.f32 %v8011_v39, %v7607_v44  ;;  %v9153_v1 = vpack.c.b16 %v9138_v43, %v9137_v2  ;;  %v8938_v29 = vpack.c.bf16 %v8893_v56, %v8893_v56 }
 0x98a   :  { %v10891_v13 = vadd.f32 -1.0, %v11419_v20  ;;  %v8872_v39 = vpack.c.bf16 %v8827_v18, %v8827_v18  ;;  %v8274_v57 = vrot.slane %v15368_v11, 2 }
 0x98b   :  { %11420 = vpow2.f32 %v8129_v23  ;;  %v8061_v35 = vadd.f32 %v8045_v55, %v14622_v58  ;;  %9161 = vrot.lane.b32.xlu1 %v9153_v1, %s11539_s15  ;;  %v7507_v52 = vpop.f32.mrf.mxu2  ;;  %v8406_v58 = vrot.slane %v15368_v11, 4 }
 0x98c   :  { %v15375_v25 = vsel %vm8093_vm8, %v8077_v47, %v10891_v13  ;;  %v15398_v47 = vunpack.c.l.b16 %v8938_v29  ;;  %v15428_v55 = vunpack.c.l.b16 %v8872_v39  ;;  %v8275_v13 = vsel %vm1180_vm9, %v8273_v9, %v8274_v57 }
 0x98d   :  { %17014 = vst [vmem:[#allocation6_spill] sm:$0xff] %v15375_v25  ;;  %v15378_v6 = vadd.f32 %v15355_v41, %v8061_v35  ;;  %v8894_v40 = vrot.slane %v15375_v25, 7  ;;  %v8408_v26 = vrot.slane %v15375_v25, 4  ;;  %v8407_v4 = vsel %vm5160_vm14, %v8405_v3, %v8406_v58 }
 0x98e   :  { %v7608_v46 = vpop.f32.mrf.mxu1  ;;  %v8452_v60 = vpack.c.bf16 %v8407_v4, %v8407_v4  ;;  %v8828_v59 = vrot.slane %v15375_v25, 6  ;;  %v8276_v44 = vrot.slane %v15375_v25, 2  ;;  %v8339_v4 = vrot.slane %v15363_v27, 3 }
 0x98f   :  { %v8111_v10 = vmin.f32 %v15378_v6, 0.0  ;;  %v7609_v51 = vadd.f32 %v7608_v46, %v7507_v52  ;;  %v8895_v62 = vsel %vm161_vm3, %v8892_v7, %v8894_v40  ;;  %v8409_v33 = vsel %vm5160_vm14, %v8406_v58, %v8408_v26  ;;  %v8016_v46 = vpop.f32.mrf.mxu3 }
 0x990   :  { %v8939_v50 = vpack.c.bf16 %v8895_v62, %v8895_v62  ;;  %v8453_v36 = vpack.c.bf16 %v8409_v33, %v8409_v33  ;;  %v15404_v30 = vunpack.c.l.b16 %v8452_v60  ;;  %vm8095_vm11 = vcmp.gt.f32.partialorder %v15378_v6, 0.0 }
 0x991   :  { %v11421_v28 = vpop.eup %11420  ;;  %v8131_v45 = vmul.f32 1.442695, %v8111_v10  ;;  %v8046_v54 = vadd.f32 %v8013_v16, %v7609_v51  ;;  %v8277_v35 = vsel %vm1180_vm9, %v8274_v57, %v8276_v44  ;;  %v8320_v10 = vpack.c.bf16 %v8275_v13, %v8275_v13 }
 0x992   :  { %v10892_v22 = vadd.f32 -1.0, %v11421_v28  ;;  %v15402_v12 = vunpack.c.l.b16 %v8939_v50  ;;  %v8637_v17 = vunpack.c.l.b16 %v8453_v36  ;;  %v8321_v51 = vpack.c.bf16 %v8277_v35, %v8277_v35 }
 0x993   :  { %11422 = vpow2.f32 %v8131_v45  ;;  %v8062_v63 = vadd.f32 %v8046_v54, %v14633_v42  ;;  %v7510_v43 = vpop.f32.mrf.mxu2  ;;  %v15444_v28 = vunpack.c.l.b16 %v8320_v10  ;;  %v8342_v36 = vrot.slane %v15375_v25, 3 }
 0x994   :  { %v15407_v48 = vsel %vm8094_vm10, %v8078_v37, %v10892_v22  ;;  %v9756_v42 = vpack.c.b16 %v15402_v12, %v15398_v47  ;;  %v9507_v34 = vpack.c.b16 %v8637_v17, %v15404_v30  ;;  %v8829_v37 = vsel %vm765_vm15, %v8826_v53, %v8828_v59 }
 0x995   :  { %17015 = vst [vmem:[#allocation7_spill] sm:$0xff] %v15407_v48  ;;  %v15414_v21 = vadd.f32 %v15355_v41, %v8062_v63  ;;  %v8873_v23 = vpack.c.bf16 %v8829_v37, %v8829_v37  ;;  %v8410_v52 = vrot.slane %v15407_v48, 4  ;;  %v8525_v45 = vunpack.c.l.b16 %v8321_v51 }
 0x996   :  { %v7611_v20 = vpop.f32.mrf.mxu1  ;;  %9764 = vrot.lane.b32.xlu2 %v9756_v42, %s11538_s2  ;;  %9515 = vrot.lane.b32.xlu1 %v9507_v34, %s11539_s15  ;;  %v8340_v22 = vrot.slane %v15368_v11, 3  ;;  %v8278_v53 = vrot.slane %v15407_v48, 2  ;;  %v8896_v63 = vrot.slane %v15407_v48, 7 }
 0x997   :  { %v8112_v2 = vmin.f32 %v15414_v21, 0.0  ;;  %v7612_v1 = vadd.f32 %v7611_v20, %v7510_v43  ;;  %v15436_v16 = vunpack.c.l.b16 %v8873_v23  ;;  %v8411_v29 = vsel %vm5160_vm14, %v8408_v26, %v8410_v52 }
 0x998   :  { %v8454_v60 = vpack.c.bf16 %v8411_v29, %v8411_v29  ;;  %v9459_v26 = vpack.c.b16 %v8525_v45, %v15444_v28  ;;  %v8343_v39 = vsel %vm3293_vm13, %v8340_v22, %v8342_v36  ;;  %v8279_v37 = vsel %vm1180_vm9, %v8276_v44, %v8278_v53 }
 0x999   :  { %v11423_v7 = vpop.eup %11422  ;;  %v8133_v58 = vmul.f32 1.442695, %v8112_v2  ;;  %v8047_v62 = vadd.f32 %v8016_v46, %v7612_v1  ;;  %v9732_v33 = vpack.c.b16 %v15436_v16, %v15428_v55  ;;  %v8897_v57 = vsel %vm161_vm3, %v8894_v40, %v8896_v63 }
 0x99a   :  { %v10893_v56 = vadd.f32 -1.0, %v11423_v7  ;;  %v8387_v20 = vpack.c.bf16 %v8343_v39, %v8343_v39  ;;  %v8322_v23 = vpack.c.bf16 %v8279_v37, %v8279_v37  ;;  %v8940_v35 = vpack.c.bf16 %v8897_v57, %v8897_v57  ;;  %v8018_v39 = vpop.f32.mrf.mxu3 }
 0x99b   :  { %11424 = vpow2.f32 %v8133_v58  ;;  %v8063_v50 = vadd.f32 %v8047_v62, %v14646_v5  ;;  %9740 = vrot.lane.b32.xlu0 %v9732_v33, %s11537_s0  ;;  %v8341_v5 = vsel %vm3293_vm13, %v8339_v4, %v8340_v22  ;;  %v7512_v51 = vpop.f32.mrf.mxu2  ;;  %v8956_v33 = vpack.c.bf16 %v15407_v48, %v15407_v48 }
 0x99c   :  { %v15449_v54 = vsel %vm8095_vm11, %v15378_v6, %v10893_v56  ;;  %v15461_v6 = vunpack.c.l.b16 %v8454_v60  ;;  %v8386_v34 = vpack.c.bf16 %v8341_v5, %v8341_v5  ;;  %v15481_v46 = vunpack.c.l.b16 %v8387_v20 }
 0x99d   :  { %17016 = vst [vmem:[#allocation8_spill] sm:$0xff] %v15449_v54  ;;  %v15459_v18 = vadd.f32 %v15355_v41, %v8063_v50  ;;  %v8898_v42 = vrot.slane %v15449_v54, 7  ;;  %v8526_v40 = vunpack.c.l.b16 %v8322_v23  ;;  %v9084_v10 = vunpack.c.l.b16 %v8940_v35 }
 0x99e   :  { %9467 = vrot.lane.b32.xlu2 %v9459_v26, %s11537_s0  ;;  %v8652_v2 = vpack.c.b16 %v15461_v6, %v8637_v17  ;;  %v7613_v7 = vpop.f32.mrf.mxu1  ;;  %v15479_v44 = vunpack.c.l.b16 %v8386_v34  ;;  %v8280_v60 = vrot.slane %v15449_v54, 2  ;;  %vm8096_vm12 = vcmp.gt.f32.partialorder %v15414_v21, 0.0 }
 0x99f   :  { %v8899_v1 = vsel %vm161_vm3, %v8896_v63, %v8898_v42  ;;  %v8113_v13 = vmin.f32 %v15459_v18, 0.0  ;;  %v8540_v62 = vpack.c.b16 %v8526_v40, %v8525_v45  ;;  %v7614_v50 = vadd.f32 %v7613_v7, %v7512_v51 }
 0x9a0   :  { %8661 = vrot.lane.b32.xlu1 %v8652_v2, %s11539_s15  ;;  %v8941_v58 = vpack.c.bf16 %v8899_v1, %v8899_v1  ;;  %v9483_v56 = vpack.c.b16 %v15481_v46, %v15479_v44  ;;  %v8955_v63 = vpack.c.bf16 %v15375_v25, %v15375_v25  ;;  %v8344_v45 = vrot.slane %v15407_v48, 3 }
 0x9a1   :  { %v11425_v43 = vpop.eup %11424  ;;  %v8135_v22 = vmul.f32 1.442695, %v8113_v13  ;;  %v8281_v5 = vsel %vm1180_vm9, %v8278_v53, %v8280_v60  ;;  %v9140_v37 = vunpack.c.l.b16 %v8956_v33  ;;  %v8048_v2 = vadd.f32 %v8018_v39, %v7614_v50 }
 0x9a2   :  { %v10894_v17 = vadd.f32 -1.0, %v11425_v43  ;;  %v15485_v29 = vunpack.c.l.b16 %v8941_v58  ;;  %v8323_v57 = vpack.c.bf16 %v8281_v5, %v8281_v5  ;;  %v8345_v43 = vsel %vm3293_vm13, %v8342_v36, %v8344_v45 }
 0x9a3   :  { %9491 = vrot.lane.b32.xlu0 %v9483_v56, %s11538_s2  ;;  %11426 = vpow2.f32 %v8135_v22  ;;  %v9139_v20 = vunpack.c.l.b16 %v8955_v63  ;;  %v8830_v23 = vrot.slane %v15407_v48, 6  ;;  %v8832_v1 = vrot.slane %v15449_v54, 6 }
 0x9a4   :  { %v9757_v26 = vpack.c.b16 %v15485_v29, %v9084_v10  ;;  %v15499_v34 = vsel %vm8096_vm12, %v15414_v21, %v10894_v17  ;;  %v9098_v13 = vpack.c.b16 %v9084_v10, %v15402_v12  ;;  %v8527_v53 = vunpack.c.l.b16 %v8323_v57 }
 0x9a5   :  { %17017 = vst [vmem:[#allocation9_spill] sm:$0xff] %v15499_v34  ;;  %v8282_v35 = vrot.slane %v15499_v34, 2  ;;  %v9154_v21 = vpack.c.b16 %v9140_v37, %v9139_v20  ;;  %v8388_v58 = vpack.c.bf16 %v8345_v43, %v8345_v43  ;;  %v8831_v17 = vsel %vm765_vm15, %v8828_v59, %v8830_v23 }
 0x9a6   :  { %8549 = vrot.lane.b32.xlu2 %v8540_v62, %s11537_s0  ;;  %v8833_v36 = vsel %vm765_vm15, %v8830_v23, %v8832_v1  ;;  %v8064_v56 = vadd.f32 %v8048_v2, %v14674_v24  ;;  %v15514_v62 = vpop.f32.mrf.mxu2  ;;  %v8874_v12 = vpack.c.bf16 %v8831_v17, %v8831_v17  ;;  %v9460_v33 = vpack.c.b16 %v8527_v53, %v8526_v40  ;;  %v15524_v24 = vpop.f32.mrf.mxu3 }
 0x9a7   :  { %v8875_v51 = vpack.c.bf16 %v8833_v36, %v8833_v36  ;;  %v8283_v10 = vsel %vm1180_vm9, %v8280_v60, %v8282_v35  ;;  %v8582_v59 = vunpack.c.l.b16 %v8388_v58  ;;  %v8346_v39 = vrot.slane %v15449_v54, 3 }
 0x9a8   :  { %9766 = vrot.lane.b32.xlu1 %v9757_v26, %s11538_s2  ;;  %v8324_v50 = vpack.c.bf16 %v8283_v10, %v8283_v10  ;;  %v15527_v63 = vadd.f32 %v15355_v41, %v8064_v56  ;;  %v9028_v5 = vunpack.c.l.b16 %v8874_v12  ;;  %v8900_v37 = vrot.slane %v15499_v34, 7 }
 0x9a9   :  { %v11427_v22 = vpop.eup %11426  ;;  %v15521_v26 = vunpack.c.l.b16 %v8875_v51  ;;  %v8412_v40 = vrot.slane %v15449_v54, 4  ;;  %v8596_v2 = vpack.c.b16 %v8582_v59, %v15481_v46  ;;  %v8347_v20 = vsel %vm3293_vm13, %v8344_v45, %v8346_v39 }
 0x9aa   :  { %v10895_v57 = vadd.f32 -1.0, %v11427_v22  ;;  %v15531_v60 = vunpack.c.l.b16 %v8324_v50  ;;  %v8901_v23 = vsel %vm161_vm3, %v8898_v42, %v8900_v37  ;;  %vm8097_vm1 = vcmp.gt.f32.partialorder %v15459_v18, 0.0 }
 0x9ab   :  { %9163 = vrot.lane.b32.xlu0 %v9154_v21, %s11539_s15  ;;  %v9733_v43 = vpack.c.b16 %v15521_v26, %v9028_v5  ;;  %v8114_v21 = vmin.f32 %v15527_v63, 0.0  ;;  %v8942_v45 = vpack.c.bf16 %v8901_v23, %v8901_v23  ;;  %v8413_v17 = vsel %vm5160_vm14, %v8410_v52, %v8412_v40 }
 0x9ac   :  { %v15507_v7 = vpop.f32.mrf.mxu1  ;;  %v8541_v46 = vpack.c.b16 %v15531_v60, %v8527_v53  ;;  %v15553_v42 = vsel %vm8097_vm1, %v15459_v18, %v10895_v57  ;;  %v8455_v12 = vpack.c.bf16 %v8413_v17, %v8413_v17  ;;  %v8834_v53 = vrot.slane %v15499_v34, 6 }
 0x9ad   :  { %v8137_v56 = vmul.f32 1.442695, %v8114_v21  ;;  %v15556_v10 = vunpack.c.l.b16 %v8942_v45  ;;  %v8836_v50 = vrot.slane %v15553_v42, 6  ;;  %v9042_v52 = vpack.c.b16 %v9028_v5, %v15436_v16 }
 0x9ae   :  { %9107 = vrot.lane.b32.xlu2 %v9098_v13, %s11538_s2  ;;  %v8389_v13 = vpack.c.bf16 %v8347_v20, %v8347_v20  ;;  %v7517_v36 = vpop.f32.mrf.mxu2  ;;  %v15562_v22 = vpop.f32.mrf.mxu3  ;;  %v8957_v57 = vpack.c.bf16 %v15449_v54, %v15449_v54  ;;  %v8348_v17 = vrot.slane %v15499_v34, 3  ;;  %vm8098_vm7 = vcmp.gt.f32.partialorder %v15527_v63, 0.0 }
 0x9af   :  { %11428 = vpow2.f32 %v8137_v56  ;;  %v8837_v20 = vsel %vm765_vm15, %v8834_v53, %v8836_v50  ;;  %v9099_v16 = vpack.c.b16 %v15556_v10, %v15485_v29  ;;  %v8350_v56 = vrot.slane %v15553_v42, 3 }
 0x9b0   :  { %9469 = vrot.lane.b32.xlu1 %v9460_v33, %s11537_s0  ;;  %v8583_v51 = vunpack.c.l.b16 %v8389_v13  ;;  %v8958_v33 = vpack.c.bf16 %v15499_v34, %v15499_v34  ;;  %v8877_v23 = vpack.c.bf16 %v8837_v20, %v8837_v20  ;;  %v9141_v21 = vunpack.c.l.b16 %v8957_v57 }
 0x9b1   :  { %v8351_v57 = vsel %vm3293_vm13, %v8348_v17, %v8350_v56 }
 0x9b2   :  { %v9484_v18 = vpack.c.b16 %v8583_v51, %v8582_v59  ;;  %v8639_v59 = vunpack.c.l.b16 %v8455_v12  ;;  %v9142_v5 = vunpack.c.l.b16 %v8958_v33  ;;  %v15583_v12 = vunpack.c.l.b16 %v8877_v23 }
 0x9b3   :  { %8605 = vrot.lane.b32.xlu0 %v8596_v2, %s11538_s2  ;;  %v8414_v2 = vrot.slane %v15499_v34, 4 }
 0x9b4   :  { %v15544_v58 = vpop.f32.mrf.mxu1  ;;  %v9155_v29 = vpack.c.b16 %v9142_v5, %v9141_v21  ;;  %v8391_v5 = vpack.c.bf16 %v8351_v57, %v8351_v57 }
 0x9b5   :  { %v8415_v45 = vsel %vm5160_vm14, %v8412_v40, %v8414_v2  ;;  %v11429_v33 = vpop.eup %11428  ;;  %v8902_v40 = vrot.slane %v15553_v42, 7 }
 0x9b6   :  { %9742 = vrot.lane.b32.xlu2 %v9733_v43, %s11537_s0  ;;  %v8835_v43 = vsel %vm765_vm15, %v8832_v1, %v8834_v53  ;;  %v9508_v53 = vpack.c.b16 %v8639_v59, %v15461_v6  ;;  %v10896_v23 = vadd.f32 -1.0, %v11429_v33 }
 0x9b8   :  { %8551 = vrot.lane.b32.xlu1 %v8541_v46, %s11537_s0  ;;  %v8876_v46 = vpack.c.bf16 %v8835_v43, %v8835_v43 }
 0x9b9   :  { %v7520_v1 = vpop.f32.mrf.mxu2 }
 0x9ba   :  { %v9030_v43 = vunpack.c.l.b16 %v8876_v46 }
 0x9bb   :  { %9051 = vrot.lane.b32.xlu0 %v9042_v52, %s11537_s0  ;;  %v8456_v52 = vpack.c.bf16 %v8415_v45, %v8415_v45  ;;  %v8903_v45 = vsel %vm161_vm3, %v8900_v37, %v8902_v40  ;;  %v7619_v37 = vadd.f32 %v15544_v58, %v7517_v36  ;;  %v8959_v58 = vpack.c.bf16 %v15553_v42, %v15553_v42 }
 0x9bc   :  { %v7621_v13 = vpop.f32.mrf.mxu1  ;;  %v9734_v6 = vpack.c.b16 %v15583_v12, %v9030_v43  ;;  %v8416_v36 = vrot.slane %v15553_v42, 4 }
 0x9bd   :  { %v15593_v21 = vunpack.c.l.b16 %v8456_v52  ;;  %v7622_v57 = vadd.f32 %v7621_v13, %v7520_v1 }
 0x9be   :  { %9493 = vrot.lane.b32.xlu2 %v9484_v18, %s11538_s2  ;;  %v8349_v18 = vsel %vm3293_vm13, %v8346_v39, %v8348_v17  ;;  %v15602_v17 = vunpack.c.l.b16 %v8391_v5 }
 0x9bf   :  { %v8390_v20 = vpack.c.bf16 %v8349_v18, %v8349_v18  ;;  %v8653_v52 = vpack.c.b16 %v15593_v21, %v8639_v59 }
 0x9c0   :  { %9109 = vrot.lane.b32.xlu1 %v9099_v16, %s11538_s2  ;;  %v8026_v16 = vpop.f32.mrf.mxu3 }
 0x9c1   :  { %v8584_v39 = vunpack.c.l.b16 %v8390_v20  ;;  %v7522_v33 = vpop.f32.mrf.mxu2  ;;  %v8284_v20 = vrot.slane %v15553_v42, 2  ;;  %v8051_v13 = vadd.f32 %v8026_v16, %v7622_v57 }
 0x9c3   :  { %9517 = vrot.lane.b32.xlu0 %v9508_v53, %s11539_s15  ;;  %v8943_v53 = vpack.c.bf16 %v8903_v45, %v8903_v45  ;;  %v8597_v18 = vpack.c.b16 %v8584_v39, %v8583_v51  ;;  %v9485_v5 = vpack.c.b16 %v15602_v17, %v8584_v39  ;;  %v9043_v45 = vpack.c.b16 %v9030_v43, %v15521_v26 }
 0x9c4   :  { %v7623_v46 = vpop.f32.mrf.mxu1 }
 0x9c6   :  { %9165 = vrot.lane.b32.xlu2 %v9155_v29, %s11539_s15  ;;  %v15605_v29 = vsel %vm8098_vm7, %v15527_v63, %v10896_v23  ;;  %v15615_v63 = vunpack.c.l.b16 %v8943_v53 }
 0x9c7   :  { %v8960_v59 = vpack.c.bf16 %v15605_v29, %v15605_v29  ;;  %v8335_v1 = vrot.slane %v15605_v29, 3  ;;  %v8269_v23 = vrot.slane %v15605_v29, 2 }
 0x9c8   :  { %9744 = vrot.lane.b32.xlu1 %v9734_v6, %s11537_s0  ;;  %v7617_v6 = vadd.f32 %v15507_v7, %v15514_v62  ;;  %v8028_v51 = vpop.f32.mrf.mxu3  ;;  %v8285_v7 = vsel %vm1180_vm9, %v8282_v35, %v8284_v20  ;;  %v8050_v62 = vadd.f32 %v15562_v22, %v7619_v37  ;;  %v9758_v39 = vpack.c.b16 %v15615_v63, %v15556_v10 }
 0x9c9   :  { %v9144_v53 = vunpack.c.l.b16 %v8960_v59  ;;  %v8417_v35 = vsel %vm5160_vm14, %v8414_v2, %v8416_v36  ;;  %v8383_v22 = vsel %vm3293_vm13, %v8335_v1, %v8339_v4  ;;  %v8317_v26 = vsel %vm1180_vm9, %v8269_v23, %v8273_v9  ;;  %v15652_v37 = vpop.f32.mrf.mxu2 }
 0x9ca   :  { %v8049_v16 = vadd.f32 %v15524_v24, %v7617_v6  ;;  %v8067_v24 = vadd.f32 %v8051_v13, %v14784_v19  ;;  %v9143_v10 = vunpack.c.l.b16 %v8959_v58  ;;  %v8457_v43 = vpack.c.bf16 %v8417_v35, %v8417_v35 }
 0x9cb   :  { %8663 = vrot.lane.b32.xlu0 %v8653_v52, %s11539_s15  ;;  %v8066_v57 = vadd.f32 %v8050_v62, %v14750_v31  ;;  %v8319_v2 = vpack.c.bf16 %v8317_v26, %v8317_v26  ;;  %v8385_v6 = vpack.c.bf16 %v8383_v22, %v8383_v22  ;;  %v7624_v31 = vadd.f32 %v7623_v46, %v7522_v33  ;;  %v11200_v46 = vld [vmem:[%s16960_s3 + $0x3b8] sm:$0xff] }
 0x9cc   :  { %v15635_v52 = vpop.f32.mrf.mxu1  ;;  %v9156_v4 = vpack.c.b16 %v9144_v53, %v9143_v10  ;;  %v15659_v9 = vunpack.c.l.b16 %v8457_v43  ;;  %v15664_v13 = vadd.f32 %v15355_v41, %v8067_v24  ;;  %v8401_v62 = vrot.slane %v15605_v29, 4  ;;  %9886 = vmatpush.bf16.msrb.mxu3 %v11200_v46  ;;  %v11198_v46 = vld [vmem:[%s16960_s3 + $0x3a8] sm:$0xff] }
 0x9cd   :  { %v15661_v19 = vunpack.c.l.b16 %v8319_v2  ;;  %v15681_v33 = vunpack.c.l.b16 %v8385_v6  ;;  %v8052_v22 = vadd.f32 %v8028_v51, %v7624_v31  ;;  %v8887_v24 = vrot.slane %v15605_v29, 7 }
 0x9ce   :  { %8607 = vrot.lane.b32.xlu2 %v8597_v18, %s11538_s2  ;;  %v8325_v18 = vpack.c.bf16 %v8285_v7, %v8285_v7  ;;  %v15670_v7 = vadd.f32 %v15355_v41, %v8066_v57  ;;  %v9509_v53 = vpack.c.b16 %v15659_v9, %v15593_v21  ;;  %v8117_v35 = vmin.f32 %v15664_v13, 0.0  ;;  %v11199_v21 = vld [vmem:[%s16960_s3 + $0x3b0] sm:$0xff] }
 0x9cf   :  { %v8595_v51 = vpack.c.b16 %v15479_v44, %v15681_v33  ;;  %v8935_v44 = vsel %vm161_vm3, %v8887_v24, %v8891_v32  ;;  %v8352_v32 = vsel %vm3293_vm13, %v8350_v56, %v8335_v1  ;;  %v11197_v56 = vld [vmem:[%s16960_s3 + $0x3a0] sm:$0xff]  ;;  %vm8101_vm10 = vcmp.gt.f32.partialorder %v15664_v13, 0.0 }
 0x9d0   :  { %9495 = vrot.lane.b32.xlu1 %v9485_v5, %s11538_s2  ;;  %v8065_v5 = vadd.f32 %v8049_v16, %v14722_v14  ;;  %v15657_v59 = vunpack.c.l.b16 %v8325_v18  ;;  %v15667_v58 = vpop.f32.mrf.mxu3  ;;  %v8539_v14 = vpack.c.b16 %v15444_v28, %v15661_v19  ;;  %v11194_v16 = vld [vmem:[%s16960_s3 + $0x388] sm:$0xff]  ;;  %v8449_v18 = vsel %vm5160_vm14, %v8401_v62, %v8405_v3  ;;  %9887 = vmatpush.bf16.msrb.mxu3 %v11199_v21 }
 0x9d1   :  { %9659 = vmatpush.bf16.msrb.mxu1 %v11194_v16  ;;  %v8451_v26 = vpack.c.bf16 %v8449_v18, %v8449_v18  ;;  %v8116_v10 = vmin.f32 %v15670_v7, 0.0  ;;  %v8143_v31 = vmul.f32 1.442695, %v8117_v35  ;;  %v8068_v16 = vadd.f32 %v8052_v22, %v14818_v38 }
 0x9d2   :  { %v9461_v28 = vpack.c.b16 %v15657_v59, %v15531_v60  ;;  %v11193_v60 = vld [vmem:[%s16960_s3 + $0x380] sm:$0xff]  ;;  %v8937_v35 = vpack.c.bf16 %v8935_v44, %v8935_v44  ;;  %v8904_v21 = vsel %vm161_vm3, %v8902_v40, %v8887_v24  ;;  %vm8100_vm8 = vcmp.gt.f32.partialorder %v15670_v7, 0.0 }
 0x9d3   :  { %9768 = vrot.lane.b32.xlu0 %v9758_v39, %s11538_s2  ;;  %v8821_v39 = vrot.slane %v15605_v29, 6  ;;  %v15715_v6 = vunpack.c.l.b16 %v8451_v26  ;;  %11430 = vpow2.f32 %v8143_v31  ;;  %v15741_v22 = vadd.f32 %v15355_v41, %v8068_v16 }
 0x9d4   :  { %v15697_v43 = vpop.f32.mrf.mxu1  ;;  %9888 = vmatpush.bf16.msrb.mxu3 %v11198_v46  ;;  %v7627_v26 = vadd.f32 %v15635_v52, %v15652_v37  ;;  %v15759_v37 = vunpack.c.l.b16 %v8937_v35  ;;  %v8944_v24 = vpack.c.bf16 %v8904_v21, %v8904_v21  ;;  %v16979_v35 = vrot.slane %v15407_v48, 1 }
 0x9d5   :  { %v8869_v3 = vsel %vm765_vm15, %v8821_v39, %v8825_v15  ;;  %9660 = vmatpush.bf16.msrb.mxu1 %v11193_v60  ;;  %v11192_v15 = vld [vmem:[%s16960_s3 + $0x378] sm:$0xff]  ;;  %v8651_v38 = vpack.c.b16 %v15404_v30, %v15715_v6  ;;  %v11191_v30 = vld [vmem:[%s16960_s3 + $0x370] sm:$0xff]  ;;  %v8118_v60 = vmin.f32 %v15741_v22, 0.0  ;;  %vm8102_vm12 = vcmp.gt.f32.partialorder %v15741_v22, 0.0 }
 0x9d6   :  { %9053 = vrot.lane.b32.xlu2 %v9043_v45, %s11537_s0  ;;  %v15685_v45 = vadd.f32 %v15355_v41, %v8065_v5  ;;  %v8871_v57 = vpack.c.bf16 %v8869_v3, %v8869_v3  ;;  %v8418_v5 = vsel %vm5160_vm14, %v8416_v36, %v8401_v62  ;;  %v8141_v36 = vmul.f32 1.442695, %v8116_v10 }
 0x9d7   :  { %v8392_v3 = vpack.c.bf16 %v8352_v32, %v8352_v32  ;;  %v8145_v16 = vmul.f32 1.442695, %v8118_v60 }
 0x9d8   :  { %9167 = vrot.lane.b32.xlu1 %v9156_v4, %s11539_s15  ;;  %v8115_v2 = vmin.f32 %v15685_v45, 0.0  ;;  %v7527_v4 = vpop.f32.mrf.mxu2  ;;  %v15729_v62 = vunpack.c.l.b16 %v8871_v57  ;;  %v15731_v18 = vpop.f32.mrf.mxu3  ;;  %11432 = vpow2.f32 %v8141_v36  ;;  %9889 = vmatpush.bf16.msrb.mxu3 %v11197_v56  ;;  %v8053_v57 = vadd.f32 %v15667_v58, %v7627_v26 }
 0x9d9   :  { %9661 = vmatpush.bf16.msrb.mxu1 %v11192_v15  ;;  %v15782_v31 = vunpack.c.l.b16 %v8392_v3  ;;  %v8838_v58 = vsel %vm765_vm15, %v8836_v50, %v8821_v39  ;;  %v11195_v50 = vld [vmem:[%s16960_s3 + $0x390] sm:$0xff]  ;;  %v8210_v3 = vrot.slane %v15375_v25, 1  ;;  %vm8099_vm11 = vcmp.gt.f32.partialorder %v15685_v45, 0.0 }
 0x9da   :  { %v9041_v1 = vpack.c.b16 %v15428_v55, %v15729_v62  ;;  %v8286_v55 = vsel %vm1180_vm9, %v8284_v20, %v8269_v23  ;;  %v9097_v23 = vpack.c.b16 %v15398_v47, %v15759_v37  ;;  %v8069_v36 = vadd.f32 %v8053_v57, %v14869_v0  ;;  %v11189_v47 = vld [vmem:[%s16960_s3 + $0x360] sm:$0xff] }
 0x9db   :  { %9471 = vrot.lane.b32.xlu0 %v9461_v28, %s11537_s0  ;;  %v8458_v28 = vpack.c.bf16 %v8418_v5, %v8418_v5  ;;  %v11431_v5 = vpop.eup %11430  ;;  %v8326_v40 = vpack.c.bf16 %v8286_v55, %v8286_v55 }
 0x9dc   :  { %v15757_v52 = vpop.f32.mrf.mxu1  ;;  %v10899_v46 = vadd.f32 -1.0, %v11431_v5 }
 0x9dd   :  { %v15755_v10 = vunpack.c.l.b16 %v8458_v28  ;;  %9662 = vmatpush.bf16.msrb.mxu1 %v11191_v30  ;;  %v7629_v28 = vadd.f32 %v15697_v43, %v7527_v4  ;;  %v15805_v0 = vunpack.c.l.b16 %v8326_v40  ;;  %v15809_v4 = vunpack.c.l.b16 %v8944_v24 }
 0x9de   :  { %9519 = vrot.lane.b32.xlu2 %v9509_v53, %s11539_s15  ;;  %v8139_v53 = vmul.f32 1.442695, %v8115_v2  ;;  %v11433_v20 = vpop.eup %11432  ;;  %v15819_v26 = vsel %vm8101_vm10, %v15664_v13, %v10899_v46  ;;  %v15822_v30 = vadd.f32 %v15355_v41, %v8069_v36 }
 0x9df   :  { %v8654_v15 = vpack.c.b16 %v15755_v10, %v15659_v9  ;;  %v10898_v39 = vadd.f32 -1.0, %v11433_v20  ;;  %v8054_v56 = vadd.f32 %v15731_v18, %v7629_v28  ;;  %v8542_v21 = vpack.c.b16 %v15805_v0, %v15657_v59  ;;  %v11187_v20 = vld [vmem:[%s16960_s3 + $0x350] sm:$0xff] }
 0x9e0   :  { %8603 = vrot.lane.b32.xlu1 %v8595_v51, %s11538_s2  ;;  %11434 = vpow2.f32 %v8139_v53  ;;  %v11196_v51 = vld [vmem:[%s16960_s3 + $0x398] sm:$0xff]  ;;  %v15778_v2 = vpop.f32.mrf.mxu2  ;;  %v15791_v9 = vpop.f32.mrf.mxu3  ;;  %v8598_v53 = vpack.c.b16 %v15782_v31, %v15602_v17  ;;  %v9759_v13 = vpack.c.b16 %v15759_v37, %v15809_v4  ;;  %v8213_v18 = vsel %vm240_vm2, %v8210_v3, %v16979_v35 }
 0x9e1   :  { %9890 = vmatpush.bf16.msrb.mxu3 %v11196_v51  ;;  %11436 = vpow2.f32 %v8145_v16  ;;  %v11188_v17 = vld [vmem:[%s16960_s3 + $0x358] sm:$0xff]  ;;  %v8208_v51 = vrot.slane %v15368_v11, 1  ;;  %v8119_v59 = vmin.f32 %v15822_v30, 0.0  ;;  %v8256_v40 = vpack.c.bf16 %v8213_v18, %v8213_v18 }
 0x9e2   :  { %v16982_v16 = vrot.slane %v15819_v26, 7  ;;  %vm8103_vm1 = vcmp.gt.f32.partialorder %v15822_v30, 0.0 }
 0x9e3   :  { %8547 = vrot.lane.b32.xlu0 %v8539_v14, %s11537_s0  ;;  %v11190_v14 = vld [vmem:[%s16960_s3 + $0x368] sm:$0xff]  ;;  %v8211_v37 = vsel %vm240_vm2, %v8208_v51, %v8210_v3 }
 0x9e4   :  { %9663 = vmatpush.bf16.msrb.mxu1 %v11190_v14  ;;  %v15827_v14 = vsel %vm8100_vm8, %v15670_v7, %v10898_v39  ;;  %v16981_v7 = vrot.slane %v15819_v26, 6  ;;  %v8255_v46 = vpack.c.bf16 %v8211_v37, %v8211_v37 }
 0x9e5   :  { %9891 = vmatpush.bf16.msrb.mxu3 %v11195_v50  ;;  %v8840_v24 = vrot.slane %v15827_v14, 6  ;;  %v8906_v39 = vrot.slane %v15827_v14, 7 }
 0x9e6   :  { %8659 = vrot.lane.b32.xlu2 %v8651_v38, %s11539_s15  ;;  %v11435_v44 = vpop.eup %11434  ;;  %v8878_v38 = vpack.c.bf16 %v8838_v58, %v8838_v58 }
 0x9e7   :  { %v10897_v32 = vadd.f32 -1.0, %v11435_v44  ;;  %v8843_v28 = vsel %vm765_vm15, %v8840_v24, %v16981_v7 }
 0x9e8   :  { %9049 = vrot.lane.b32.xlu1 %v9041_v1, %s11537_s0  ;;  %9664 = vmatpush.bf16.msrb.mxu1 %v11189_v47  ;;  %v7633_v1 = vpop.f32.mrf.mxu1  ;;  %v9032_v60 = vunpack.c.l.b16 %v8878_v38  ;;  %v7532_v55 = vpop.f32.mrf.mxu2  ;;  %v15862_v47 = vmul.f32 1.442695, %v8119_v59  ;;  %v9462_v38 = vpack.c.b16 %v15661_v19, %v15805_v0  ;;  %v16973_v19 = vrot.slane %v15363_v27, 1 }
 0x9e9   :  { %v7634_v57 = vadd.f32 %v7633_v1, %v7532_v55  ;;  %v15840_v5 = vsel %vm8099_vm11, %v15685_v45, %v10897_v32  ;;  %v8038_v58 = vpop.f32.mrf.mxu3  ;;  %v15871_v32 = vunpack.c.l.b16 %v8256_v40  ;;  %v15884_v0 = vunpack.c.l.b16 %v8255_v46 }
 0x9ea   :  { %v9044_v45 = vpack.c.b16 %v9032_v60, %v15583_v12  ;;  %v16976_v36 = vrot.slane %v15840_v5, 6  ;;  %v16975_v1 = vrot.slane %v15840_v5, 7  ;;  %v9510_v55 = vpack.c.b16 %v15715_v6, %v15755_v10 }
 0x9eb   :  { %9105 = vrot.lane.b32.xlu0 %v9097_v23, %s11538_s2  ;;  %v11437_v23 = vpop.eup %11436  ;;  %v8056_v44 = vadd.f32 %v8038_v58, %v7634_v57  ;;  %v8500_v18 = vpack.c.b16 %v15871_v32, %v15884_v0  ;;  %v8354_v59 = vrot.slane %v15827_v14, 3  ;;  %v16972_v6 = vrot.slane %v15363_v27, 5 }
 0x9ec   :  { %9665 = vmatpush.bf16.msrb.mxu1 %v11188_v17  ;;  %v10900_v12 = vadd.f32 -1.0, %v11437_v23  ;;  %v8841_v17 = vsel %vm765_vm15, %v16976_v36, %v8840_v24  ;;  %v8290_v23 = vrot.slane %v15819_v26, 2  ;;  %v16974_v58 = vrot.slane %v15840_v5, 3 }
 0x9ed   :  { %v8072_v3 = vadd.f32 %v8056_v44, %v15007_v8  ;;  %v8760_v8 = vrot.slane %v15368_v11, 5  ;;  %v9100_v46 = vpack.c.b16 %v15809_v4, %v15615_v63  ;;  %11438 = vpow2.f32 %v15862_v47 }
 0x9ee   :  { %8665 = vrot.lane.b32.xlu2 %v8654_v15, %s11539_s15  ;;  %v8070_v15 = vadd.f32 %v8054_v56, %v14918_v61  ;;  %v8881_v56 = vpack.c.bf16 %v8843_v28, %v8843_v28  ;;  %v8962_v47 = vpack.c.bf16 %v15827_v14, %v15827_v14  ;;  %v8420_v36 = vrot.slane %v15827_v14, 4 }
 0x9ef   :  { %v8419_v7 = vrot.slane %v15840_v5, 4 }
 0x9f0   :  { %v15807_v43 = vpop.permute.xlu2 %9764  ;;  %8609 = vrot.lane.b32.xlu1 %v8598_v53, %s11538_s2  ;;  %9666 = vmatpush.bf16.msrb.mxu1 %v11187_v20  ;;  %v15865_v50 = vadd.f32 %v15355_v41, %v8070_v15  ;;  %v9735_v53 = vpack.c.b16 %v15729_v62, %v9032_v60  ;;  %v8909_v41 = vsel %vm161_vm3, %v8906_v39, %v16982_v16  ;;  %v8762_v62 = vrot.slane %v15375_v25, 5 }
 0x9f1   :  { %v16983_v60 = vrot.slane %v15819_v26, 3  ;;  %v8947_v57 = vpack.c.bf16 %v8909_v41, %v8909_v41  ;;  %v8764_v15 = vrot.slane %v15407_v48, 5  ;;  %v15899_v20 = vunpack.c.l.b16 %v8881_v56 }
 0x9f2   :  { %v8763_v10 = vsel %vm88_vm0, %v8760_v8, %v8762_v62  ;;  %v8355_v56 = vsel %vm3293_vm13, %v16974_v58, %v8354_v59  ;;  %v17022_v25 = vrot.slane %v15819_v26, 7  ;;  %vm8104_vm8 = vcmp.gt.f32.partialorder %v15865_v50, 0.0 }
 0x9f3   :  { %8553 = vrot.lane.b32.xlu0 %v8542_v21, %s11537_s0  ;;  %v8880_v21 = vpack.c.bf16 %v8841_v17, %v8841_v17  ;;  %v8357_v44 = vsel %vm3293_vm13, %v8354_v59, %v16983_v60  ;;  %v8807_v17 = vpack.c.bf16 %v8763_v10, %v8763_v10  ;;  %v8765_v41 = vsel %vm88_vm0, %v8762_v62, %v8764_v15  ;;  %v15956_v59 = vld [vmem:[%s16961_s4 + $0x6] ss:$0 sm:$0xff]  ;;  %v11439_v58 = vpop.eup %11438 }
 0x9f4   :  { %v8395_v4 = vpack.c.bf16 %v8357_v44, %v8357_v44  ;;  %v8120_v44 = vmin.f32 %v15865_v50, 0.0  ;;  %v10901_v60 = vadd.f32 -1.0, %v11439_v58 }
 0x9f5   :  { %v15916_v28 = vunpack.c.l.b16 %v8880_v21  ;;  %v15963_v10 = vunpack.c.l.b16 %v8807_v17 }
 0x9f6   :  { %9770 = vrot.lane.b32.xlu2 %v9759_v13, %s11538_s2  ;;  %v8907_v13 = vsel %vm161_vm3, %v16975_v1, %v8906_v39  ;;  %v8761_v39 = vsel %vm88_vm0, %v16972_v6, %v8760_v8  ;;  %v15944_v8 = vsel %vm240_vm2, %v16973_v19, %v8208_v51  ;;  %v15959_v51 = vadd.f32 %v15956_v59, %v8072_v3 }
 0x9f7   :  { %v8946_v24 = vpack.c.bf16 %v8907_v13, %v8907_v13  ;;  %v9736_v63 = vpack.c.b16 %v15899_v20, %v15916_v28  ;;  %v15937_v13 = vsel %vm8102_vm12, %v15741_v22, %v10900_v12  ;;  %v8808_v12 = vpack.c.bf16 %v8765_v41, %v8765_v41 }
 0x9f8   :  { %v15854_v61 = vpop.permute.xlu2 %9467  ;;  %9055 = vrot.lane.b32.xlu1 %v9044_v45, %s11537_s0  ;;  %17018 = vst [vmem:[#allocation10_spill] sm:$0xff] %v15937_v13  ;;  %v15974_v3 = vadd.f32 %v15757_v52, %v15778_v2  ;;  %v8122_v52 = vmin.f32 %v15959_v51, 0.0  ;;  %v9486_v2 = vpack.c.b16 %v15681_v33, %v15782_v31  ;;  %v8961_v31 = vpack.c.bf16 %v15840_v5, %v15840_v5 }
 0x9f9   :  { %v15946_v62 = vunpack.c.l.b16 %v8946_v24  ;;  %v15988_v6 = vunpack.c.l.b16 %v8808_v12  ;;  %vm8106_vm7 = vcmp.gt.f32.partialorder %v15959_v51, 0.0 }
 0x9fa   :  { %v8153_v19 = vmul.f32 1.442695, %v8122_v52 }
 0x9fb   :  { %9746 = vrot.lane.b32.xlu0 %v9735_v53, %s11537_s0  ;;  %v8288_v53 = vrot.slane %v15827_v14, 2 }
 0x9fc   :  { %11440 = vpow2.f32 %v8153_v19 }
 0x9fd   :  { %v15904_v45 = vpop.permute.xlu1 %9161  ;;  %v8291_v21 = vsel %vm1180_vm9, %v8288_v53, %v8290_v23 }
 0x9fe   :  { %9473 = vrot.lane.b32.xlu2 %v9462_v38, %s11537_s0  ;;  %v15922_v38 = vunpack.c.l.b16 %v8947_v57  ;;  %v8394_v57 = vpack.c.bf16 %v8355_v56, %v8355_v56  ;;  %v8329_v24 = vpack.c.bf16 %v8291_v21, %v8291_v21  ;;  %v16980_v21 = vrot.slane %v15449_v54, 5 }
 0xa00   :  { %v8550_v37 = vpop.permute.xlu2 %8549  ;;  %9521 = vrot.lane.b32.xlu1 %v9510_v55, %s11539_s15  ;;  %v16977_v55 = vrot.slane %v15840_v5, 2 }
 0xa01   :  { %v15908_v40 = vsel %vm459_vm4, %v8500_v18, %v8550_v37  ;;  %v8806_v18 = vpack.c.bf16 %v8761_v39, %v8761_v39  ;;  %v9760_v37 = vpack.c.b16 %v15922_v38, %v15946_v62  ;;  %v15969_v39 = vunpack.c.l.b16 %v8395_v4 }
 0xa02   :  { %v8289_v22 = vsel %vm1180_vm9, %v16977_v55, %v8288_v53  ;;  %v16978_v53 = vrot.slane %v15937_v13, 2  ;;  %v15985_v4 = vunpack.c.l.b16 %v8394_v57  ;;  %v8964_v57 = vpack.c.bf16 %v15937_v13, %v15937_v13 }
 0xa03   :  { %9111 = vrot.lane.b32.xlu0 %v9100_v46, %s11538_s2  ;;  %v15979_v17 = vunpack.c.l.b16 %v8806_v18  ;;  %v8328_v41 = vpack.c.bf16 %v8289_v22, %v8289_v22  ;;  %v15995_v22 = vunpack.c.l.b16 %v8329_v24  ;;  %v9146_v24 = vunpack.c.l.b16 %v8962_v47 }
 0xa04   :  { %v8293_v12 = vsel %vm1180_vm9, %v8290_v23, %v16978_v53  ;;  %v8767_v23 = vsel %vm88_vm0, %v8764_v15, %v16980_v21  ;;  %v9148_v21 = vunpack.c.l.b16 %v8964_v57  ;;  %v8149_v47 = vmul.f32 1.442695, %v8120_v44 }
 0xa05   :  { %v9724_v18 = vpack.c.b16 %v15963_v10, %v15979_v17  ;;  %v16006_v33 = vunpack.c.l.b16 %v8328_v41  ;;  %v8963_v41 = vpack.c.bf16 %v15819_v26, %v15819_v26  ;;  %v8421_v53 = vsel %vm5160_vm14, %v8419_v7, %v8420_v36 }
 0xa06   :  { %9748 = vrot.lane.b32.xlu2 %v9736_v63, %s11537_s0  ;;  %v8254_v63 = vpack.c.bf16 %v15944_v8, %v15944_v8  ;;  %v9487_v8 = vpack.c.b16 %v15969_v39, %v15985_v4  ;;  %11442 = vpow2.f32 %v8149_v47  ;;  %v11178_v47 = vld [vmem:[%s16960_s3 + $0x308] sm:$0xff] }
 0xa07   :  { %v9147_v57 = vunpack.c.l.b16 %v8963_v41  ;;  %9402 = vmatpush.bf16.msra.mxu2 %v11178_v47 }
 0xa08   :  { %v15967_v46 = vpop.permute.xlu2 %9107  ;;  %9772 = vrot.lane.b32.xlu1 %v9760_v37, %s11538_s2  ;;  %v15977_v56 = vpop.permute.xlu1 %9515  ;;  %v8422_v37 = vrot.slane %v15819_v26, 4  ;;  %v16043_v58 = vunpack.c.l.b16 %v8254_v63  ;;  %v8460_v63 = vpack.c.bf16 %v8421_v53, %v8421_v53 }
 0xa0a   :  { %v8423_v16 = vsel %vm5160_vm14, %v8420_v36, %v8422_v37  ;;  %v16058_v36 = vsel %vm8103_vm1, %v15822_v30, %v10901_v60 }
 0xa0b   :  { %9497 = vrot.lane.b32.xlu0 %v9486_v2, %s11538_s2  ;;  %v9463_v2 = vpack.c.b16 %v15995_v22, %v16006_v33  ;;  %v8461_v52 = vpack.c.bf16 %v8423_v16, %v8423_v16  ;;  %v8844_v16 = vrot.slane %v15937_v13, 6 }
 0xa0d   :  { %v9741_v1 = vpop.permute.xlu0 %9740  ;;  %v16071_v19 = vunpack.c.l.b16 %v8461_v52 }
 0xa0e   :  { %9499 = vrot.lane.b32.xlu2 %v9487_v8, %s11538_s2  ;;  %v9782_v55 = vsel %vm459_vm4, %v9724_v18, %v9741_v1  ;;  %v8330_v8 = vpack.c.bf16 %v8293_v12, %v8293_v12  ;;  %v17019_v1 = vrot.slane %v15937_v13, 3  ;;  %v17020_v18 = vrot.slane %v15819_v26, 3 }
 0xa0f   :  { %v9805_v35 = vsel %vm484_vm5, %v9782_v55, %v15807_v43  ;;  %v9145_v55 = vunpack.c.l.b16 %v8961_v31  ;;  %v8809_v12 = vpack.c.bf16 %v8767_v23, %v8767_v23  ;;  %v9158_v23 = vpack.c.b16 %v9148_v21, %v9147_v57 }
 0xa10   :  { %v16029_v15 = vpop.permute.xlu2 %9742  ;;  %11025 = vmatmul.msk.bf16.vlgmr.msrb.gmra.mxu3 %vm549_vm6, %v9805_v35  ;;  %9475 = vrot.lane.b32.xlu1 %v9463_v2, %s11537_s0  ;;  %v8359_v43 = vsel %vm3293_vm13, %v17020_v18, %v17019_v1  ;;  %v16047_v35 = vunpack.c.l.b16 %v8330_v8  ;;  %v17021_v2 = vrot.slane %v15937_v13, 7  ;;  %v8424_v18 = vrot.slane %v15937_v13, 4 }
 0xa11   :  { %v9157_v31 = vpack.c.b16 %v9146_v24, %v9145_v55  ;;  %v8396_v41 = vpack.c.bf16 %v8359_v43, %v8359_v43  ;;  %v9451_v8 = vpack.c.b16 %v15884_v0, %v16043_v58  ;;  %v8055_v24 = vadd.f32 %v15791_v9, %v15974_v3 }
 0xa12   :  { %v16045_v44 = vpop.permute.xlu1 %8661  ;;  %v8911_v1 = vsel %vm161_vm3, %v17022_v25, %v17021_v2  ;;  %v16064_v25 = vunpack.c.l.b16 %v8809_v12  ;;  %v8544_v30 = vpack.c.b16 %v16047_v35, %v15995_v22  ;;  %v8425_v55 = vsel %vm5160_vm14, %v8422_v37, %v8424_v18  ;;  %v11441_v2 = vpop.eup %11440 }
 0xa13   :  { %9169 = vrot.lane.b32.xlu0 %v9157_v31, %s11539_s15  ;;  %v8948_v21 = vpack.c.bf16 %v8911_v1, %v8911_v1  ;;  %v9533_v60 = vsel %vm459_vm4, %v9451_v8, %v15854_v61  ;;  %v16077_v43 = vunpack.c.l.b16 %v8396_v41  ;;  %v16987_v12 = vrot.slane %v16058_v36, 6 }
 0xa14   :  { %v16083_v3 = vunpack.c.l.b16 %v8460_v63  ;;  %v17023_v22 = vrot.slane %v15819_v26, 6  ;;  %v9725_v57 = vpack.c.b16 %v16064_v25, %v15988_v6  ;;  %v16986_v41 = vrot.slane %v16058_v36, 7 }
 0xa15   :  { %v9492_v53 = vpop.permute.xlu0 %9491  ;;  %v16092_v37 = vunpack.c.l.b16 %v8948_v21  ;;  %v16985_v63 = vrot.slane %v15499_v34, 1  ;;  %v8847_v21 = vsel %vm765_vm15, %v8844_v16, %v16987_v12 }
 0xa16   :  { %9171 = vrot.lane.b32.xlu2 %v9158_v23, %s11539_s15  ;;  %v9556_v9 = vsel %vm484_vm5, %v9533_v60, %v9492_v53  ;;  %v8845_v61 = vsel %vm765_vm15, %v17023_v22, %v8844_v16  ;;  %v9511_v1 = vpack.c.b16 %v16071_v19, %v16083_v3  ;;  %v8462_v23 = vpack.c.bf16 %v8425_v55, %v8425_v55  ;;  %v11443_v22 = vpop.eup %11442 }
 0xa17   :  { %v9572_v52 = vsel %vm549_vm6, %v9556_v9, %v15977_v56  ;;  %v8600_v56 = vpack.c.b16 %v16077_v43, %v15969_v39  ;;  %v8882_v8 = vpack.c.bf16 %v8845_v61, %v8845_v61  ;;  %v8071_v60 = vadd.f32 %v8055_v24, %v14964_v49 }
 0xa18   :  { %v16075_v0 = vpop.permute.xlu2 %9493  ;;  %8557 = vrot.lane.b32.xlu1 %v8544_v30, %s11537_s0  ;;  %9667 = vmatmul.bf16.vlgmr.msrb.gmra.mxu1 %v9572_v52  ;;  %v16989_v30 = vrot.slane %v16058_v36, 4  ;;  %v9785_v53 = vsel %vm459_vm4, %v9725_v57, %v16029_v15  ;;  %v8214_v55 = vrot.slane %v15449_v54, 1  ;;  %v10904_v9 = vadd.f32 -1.0, %v11441_v2 }
 0xa19   :  { %v9102_v16 = vpack.c.b16 %v16092_v37, %v15922_v38  ;;  %v17024_v49 = vrot.slane %v15937_v13, 7  ;;  %v8883_v15 = vpack.c.bf16 %v8847_v21, %v8847_v21  ;;  %v16991_v57 = vrot.slane %v16058_v36, 3  ;;  %v11186_v21 = vld [vmem:[%s16960_s3 + $0x348] sm:$0xff] }
 0xa1a   :  { %v9767_v31 = vpop.permute.xlu1 %9766  ;;  %v8217_v61 = vsel %vm240_vm2, %v8214_v55, %v16985_v63  ;;  %v16127_v47 = vunpack.c.l.b16 %v8462_v23  ;;  %v9036_v38 = vunpack.c.l.b16 %v8882_v8  ;;  %v16142_v23 = vadd.f32 %v15956_v59, %v8071_v60  ;;  %9305 = vmatpush.bf16.msra.mxu0 %v11186_v21 }
 0xa1b   :  { %9523 = vrot.lane.b32.xlu0 %v9511_v1, %s11539_s15  ;;  %v9807_v39 = vsel %vm484_vm5, %v9785_v53, %v9767_v31  ;;  %v8913_v24 = vsel %vm161_vm3, %v17024_v49, %v16986_v41  ;;  %v8427_v1 = vsel %vm5160_vm14, %v8424_v18, %v16989_v30  ;;  %v16988_v31 = vrot.slane %v15499_v34, 5 }
 0xa1c   :  { %v17025_v18 = vrot.slane %v15407_v48, 1  ;;  %v10902_v53 = vadd.f32 -1.0, %v11443_v22  ;;  %v16151_v49 = vsel %vm8106_vm7, %v15959_v51, %v10904_v9  ;;  %v8949_v63 = vpack.c.bf16 %v8913_v24, %v8913_v24  ;;  %v11176_v51 = vld [vmem:[%s16960_s3 + $0x2f8] sm:$0xff] }
 0xa1d   :  { %v16125_v52 = vpop.permute.xlu0 %9163  ;;  %v8258_v41 = vpack.c.bf16 %v8217_v61, %v8217_v61  ;;  %v16155_v60 = vunpack.c.l.b16 %v8883_v15  ;;  %v8463_v12 = vpack.c.bf16 %v8427_v1, %v8427_v1  ;;  %v8656_v9 = vpack.c.b16 %v16127_v47, %v16071_v19 }
 0xa1e   :  { %8613 = vrot.lane.b32.xlu2 %v8600_v56, %s11538_s2  ;;  %v11177_v56 = vld [vmem:[%s16960_s3 + $0x300] sm:$0xff]  ;;  %v8215_v8 = vsel %vm240_vm2, %v17025_v18, %v8214_v55  ;;  %v8294_v55 = vrot.slane %v16058_v36, 2  ;;  %v9046_v24 = vpack.c.b16 %v9036_v38, %v15899_v20  ;;  %v17027_v15 = vrot.slane %v15449_v54, 5 }
 0xa1f   :  { %9403 = vmatpush.bf16.msra.mxu2 %v11177_v56  ;;  %v8257_v22 = vpack.c.bf16 %v8215_v8, %v8215_v8  ;;  %v8121_v1 = vmin.f32 %v16142_v23, 0.0  ;;  %v16990_v56 = vrot.slane %v16151_v49, 2  ;;  %v16179_v19 = vunpack.c.l.b16 %v8949_v63 }
 0xa20   :  { %v16129_v2 = vpop.permute.xlu2 %9165  ;;  %11026 = vmatmul.msk.bf16.gmra.mxu3 %vm549_vm6, %v9807_v39  ;;  %9115 = vrot.lane.b32.xlu1 %v9102_v16, %s11538_s2  ;;  %v17026_v39 = vrot.slane %v15937_v13, 3  ;;  %v8769_v61 = vsel %vm88_vm0, %v17027_v15, %v16988_v31  ;;  %v16181_v21 = vunpack.c.l.b16 %v8258_v41  ;;  %v9737_v18 = vpack.c.b16 %v16155_v60, %v9036_v38 }
 0xa21   :  { %v16184_v8 = vunpack.c.l.b16 %v8463_v12  ;;  %v8810_v31 = vpack.c.bf16 %v8769_v61, %v8769_v61  ;;  %v16190_v30 = vsel %vm8104_vm8, %v15865_v50, %v10902_v53  ;;  %v16994_v41 = vrot.slane %v16151_v49, 4  ;;  %v11185_v53 = vld [vmem:[%s16960_s3 + $0x340] sm:$0xff] }
 0xa22   :  { %v16153_v59 = vpop.permute.xlu1 %9469  ;;  %v8361_v16 = vsel %vm3293_vm13, %v17026_v39, %v16991_v57  ;;  %v17028_v39 = vrot.slane %v15937_v13, 2  ;;  %v17029_v38 = vrot.slane %v15840_v5, 2  ;;  %9306 = vmatpush.bf16.msra.mxu0 %v11185_v53  ;;  %vm8105_vm10 = vcmp.gt.f32.partialorder %v16142_v23, 0.0 }
 0xa23   :  { %8669 = vrot.lane.b32.xlu0 %v8656_v9, %s11539_s15  ;;  %v8397_v20 = vpack.c.bf16 %v8361_v16, %v8361_v16  ;;  %9404 = vmatpush.bf16.msra.mxu2 %v11176_v51  ;;  %v16192_v9 = vunpack.c.l.b16 %v8257_v22  ;;  %v8151_v16 = vmul.f32 1.442695, %v8121_v1  ;;  %v11175_v51 = vld [vmem:[%s16960_s3 + $0x2f0] sm:$0xff]  ;;  %v16992_v1 = vrot.slane %v16151_v49, 6 }
 0xa24   :  { %v8295_v15 = vsel %vm1180_vm9, %v17028_v39, %v8294_v55  ;;  %v8318_v50 = vsel %vm1180_vm9, %v16990_v56, %v17029_v38  ;;  %v9512_v39 = vpack.c.b16 %v16184_v8, %v16127_v47  ;;  %v16222_v38 = vunpack.c.l.b16 %v8810_v31 }
 0xa25   :  { %v8606_v63 = vpop.permute.xlu0 %8605  ;;  %v8501_v22 = vpack.c.b16 %v16181_v21, %v16192_v9  ;;  %v8331_v61 = vpack.c.bf16 %v8295_v15, %v8295_v15  ;;  %v11174_v15 = vld [vmem:[%s16960_s3 + $0x2e8] sm:$0xff]  ;;  %v8450_v47 = vsel %vm5160_vm14, %v16994_v41, %v8419_v7  ;;  %v8327_v31 = vpack.c.bf16 %v8318_v50, %v8318_v50 }
 0xa26   :  { %9059 = vrot.lane.b32.xlu2 %v9046_v24, %s11537_s0  ;;  %v16199_v12 = vsel %vm484_vm5, %v15908_v40, %v8606_v63  ;;  %v9761_v40 = vpack.c.b16 %v16179_v19, %v16092_v37  ;;  %v16220_v63 = vunpack.c.l.b16 %v8397_v20  ;;  %v11184_v37 = vld [vmem:[%s16960_s3 + $0x338] sm:$0xff]  ;;  %v17030_v20 = vrot.slane %v15840_v5, 6 }
 0xa27   :  { %9405 = vmatpush.bf16.msra.mxu2 %v11175_v51  ;;  %11444 = vpow2.f32 %v8151_v16  ;;  %v16993_v51 = vrot.slane %v16151_v49, 7  ;;  %v9003_v50 = vpack.c.b16 %v16222_v38, %v16064_v25  ;;  %9307 = vmatpush.bf16.msra.mxu0 %v11184_v37  ;;  %v17033_v41 = vrot.slane %v16058_v36, 3 }
 0xa28   :  { %v16194_v24 = vpop.permute.xlu2 %8607  ;;  %9750 = vrot.lane.b32.xlu1 %v9737_v18, %s11537_s0  ;;  %v8870_v53 = vsel %vm765_vm15, %v16992_v1, %v17030_v20  ;;  %v9488_v7 = vpack.c.b16 %v16220_v63, %v16077_v43  ;;  %v16995_v1 = vrot.slane %v16190_v30, 3  ;;  %v17032_v43 = vrot.slane %v15840_v5, 7 }
 0xa29   :  { %v8879_v56 = vpack.c.bf16 %v8870_v53, %v8870_v53  ;;  %v17001_v37 = vrot.slane %v15553_v42, 1 }
 0xa2a   :  { %v8552_v18 = vpop.permute.xlu1 %8551 }
 0xa2b   :  { %v16232_v57 = vsel %vm459_vm4, %v8501_v22, %v8552_v18  ;;  %9774 = vrot.lane.b32.xlu0 %v9761_v40, %s11538_s2  ;;  %v16247_v22 = vunpack.c.l.b16 %v8331_v61  ;;  %v8459_v18 = vpack.c.bf16 %v8450_v47, %v8450_v47  ;;  %9406 = vmatpush.bf16.msra.mxu2 %v11174_v15  ;;  %v16253_v20 = vunpack.c.l.b16 %v8879_v56  ;;  %v11173_v15 = vld [vmem:[%s16960_s3 + $0x2e0] sm:$0xff] }
 0xa2c   :  { %v17031_v40 = vrot.slane %v16190_v30, 2  ;;  %v16260_v61 = vunpack.c.l.b16 %v8327_v31  ;;  %v8936_v56 = vsel %vm161_vm3, %v16993_v51, %v17032_v43  ;;  %v9452_v31 = vpack.c.b16 %v16192_v9, %v15871_v32 }
 0xa2d   :  { %v16255_v16 = vpop.permute.xlu0 %9051  ;;  %v11445_v47 = vpop.eup %11444  ;;  %v8363_v32 = vsel %vm3293_vm13, %v17033_v41, %v16995_v1  ;;  %v8945_v9 = vpack.c.bf16 %v8936_v56, %v8936_v56  ;;  %v16997_v41 = vrot.slane %v15553_v42, 5  ;;  %v8848_v1 = vrot.slane %v16190_v30, 6 }
 0xa2e   :  { %9525 = vrot.lane.b32.xlu2 %v9512_v39, %s11539_s15  ;;  %v8297_v39 = vsel %vm1180_vm9, %v8294_v55, %v17031_v40  ;;  %v11183_v55 = vld [vmem:[%s16960_s3 + $0x330] sm:$0xff]  ;;  %v16282_v40 = vunpack.c.l.b16 %v8459_v18  ;;  %v8543_v51 = vpack.c.b16 %v16006_v33, %v16260_v61  ;;  %v11172_v18 = vld [vmem:[%s16960_s3 + $0x2d8] sm:$0xff]  ;;  %v16996_v33 = vrot.slane %v16151_v49, 3 }
 0xa2f   :  { %9308 = vmatpush.bf16.msra.mxu0 %v11183_v55  ;;  %9407 = vmatpush.bf16.msra.mxu2 %v11173_v15  ;;  %v10903_v55 = vadd.f32 -1.0, %v11445_v47 }
 0xa30   :  { %v9054_v53 = vpop.permute.xlu2 %9053  ;;  %9501 = vrot.lane.b32.xlu1 %v9488_v7, %s11538_s2  ;;  %v9464_v7 = vpack.c.b16 %v16247_v22, %v16047_v35  ;;  %v11182_v35 = vld [vmem:[%s16960_s3 + $0x328] sm:$0xff]  ;;  %v8655_v15 = vpack.c.b16 %v16083_v3, %v16282_v40  ;;  %v17034_v3 = vrot.slane %v15840_v5, 3 }
 0xa31   :  { %v9185_v25 = vsel %vm459_vm4, %v9003_v50, %v9054_v53  ;;  %v8332_v53 = vpack.c.bf16 %v8297_v39, %v8297_v39  ;;  %v9536_v39 = vsel %vm459_vm4, %v9452_v31, %v16153_v59 }
 0xa32   :  { %v9110_v50 = vpop.permute.xlu1 %9109  ;;  %v9558_v47 = vsel %vm484_vm5, %v9536_v39, %v16075_v0  ;;  %v17035_v0 = vrot.slane %v16058_v36, 4 }
 0xa33   :  { %v16285_v43 = vsel %vm484_vm5, %v9185_v25, %v9110_v50  ;;  %v16999_v25 = vrot.slane %v16190_v30, 4  ;;  %9477 = vrot.lane.b32.xlu0 %v9464_v7, %s11537_s0  ;;  %v16307_v56 = vunpack.c.l.b16 %v8332_v53  ;;  %v8398_v50 = vpack.c.bf16 %v8363_v32, %v8363_v32  ;;  %9309 = vmatpush.bf16.msra.mxu0 %v11182_v35  ;;  %v11181_v35 = vld [vmem:[%s16960_s3 + $0x320] sm:$0xff] }
 0xa34   :  { %9408 = vmatpush.bf16.msra.mxu2 %v11172_v18  ;;  %v16316_v7 = vunpack.c.l.b16 %v8945_v9  ;;  %v8384_v53 = vsel %vm3293_vm13, %v16996_v33, %v17034_v3  ;;  %v16332_v9 = vsel %vm8105_vm10, %v16142_v23, %v10903_v55  ;;  %v11171_v18 = vld [vmem:[%s16960_s3 + $0x2d0] sm:$0xff] }
 0xa35   :  { %v9518_v59 = vpop.permute.xlu0 %9517  ;;  %v8429_v32 = vsel %vm5160_vm14, %v17035_v0, %v16999_v25  ;;  %v8545_v39 = vpack.c.b16 %v16307_v56, %v16247_v22  ;;  %v16347_v55 = vunpack.c.l.b16 %v8398_v50  ;;  %v8393_v3 = vpack.c.bf16 %v8384_v53, %v8384_v53  ;;  %v11180_v22 = vld [vmem:[%s16960_s3 + $0x318] sm:$0xff] }
 0xa36   :  { %8555 = vrot.lane.b32.xlu2 %v8543_v51, %s11537_s0  ;;  %v9575_v51 = vsel %vm549_vm6, %v9558_v47, %v9518_v59  ;;  %v17037_v47 = vrot.slane %v16058_v36, 6  ;;  %v9101_v0 = vpack.c.b16 %v15946_v62, %v16316_v7  ;;  %v8464_v33 = vpack.c.bf16 %v8429_v32, %v8429_v32 }
 0xa37   :  { %9672 = vmatmul.bf16.gmra.mxu1 %v9575_v51  ;;  %9310 = vmatpush.bf16.msra.mxu0 %v11181_v35  ;;  %v8601_v53 = vpack.c.b16 %v16347_v55, %v16220_v63  ;;  %v8914_v62 = vrot.slane %v16190_v30, 7  ;;  %v16365_v35 = vunpack.c.l.b16 %v8393_v3  ;;  %v8298_v54 = vrot.slane %v16332_v9, 2 }
 0xa38   :  { %v16314_v31 = vpop.permute.xlu2 %9519  ;;  %8667 = vrot.lane.b32.xlu1 %v8655_v15, %s11539_s15  ;;  %v17036_v15 = vrot.slane %v15499_v34, 5  ;;  %v8849_v51 = vsel %vm765_vm15, %v17037_v47, %v8848_v1  ;;  %9409 = vmatpush.bf16.msra.mxu2 %v11171_v18  ;;  %v16369_v47 = vunpack.c.l.b16 %v8464_v33  ;;  %v17038_v33 = vrot.slane %v16058_v36, 7 }
 0xa3a   :  { %v8771_v59 = vsel %vm88_vm0, %v17036_v15, %v16997_v41  ;;  %v9745_v23 = vpop.permute.xlu1 %9744  ;;  %v16998_v15 = vrot.slane %v16332_v9, 7  ;;  %v8884_v41 = vpack.c.bf16 %v8849_v51, %v8849_v51  ;;  %v11179_v51 = vld [vmem:[%s16960_s3 + $0x310] sm:$0xff] }
 0xa3b   :  { %8559 = vrot.lane.b32.xlu0 %v8545_v39, %s11537_s0  ;;  %v8811_v50 = vpack.c.bf16 %v8771_v59, %v8771_v59  ;;  %9311 = vmatpush.bf16.msra.mxu0 %v11180_v22  ;;  %v8966_v22 = vpack.c.bf16 %v16190_v30, %v16190_v30 }
 0xa3c   :  { %v8917_v39 = vsel %vm161_vm3, %v8914_v62, %v16998_v15  ;;  %v16378_v59 = vunpack.c.l.b16 %v8884_v41  ;;  %v17039_v41 = vrot.slane %v15499_v34, 1 }
 0xa3d   :  { %v16363_v32 = vpop.permute.xlu0 %8663  ;;  %v16376_v63 = vunpack.c.l.b16 %v8811_v50  ;;  %v8657_v50 = vpack.c.b16 %v16369_v47, %v16184_v8  ;;  %v8951_v25 = vpack.c.bf16 %v8917_v39, %v8917_v39  ;;  %v17040_v39 = vrot.slane %v16332_v9, 6 }
 0xa3e   :  { %9113 = vrot.lane.b32.xlu2 %v9101_v0, %s11538_s2  ;;  %v8915_v0 = vsel %vm161_vm3, %v17038_v33, %v8914_v62  ;;  %v8219_v15 = vsel %vm240_vm2, %v17039_v41, %v17001_v37  ;;  %v17004_v41 = vrot.slane %v15605_v29, 1 }
 0xa3f   :  { %9312 = vmatpush.bf16.msra.mxu0 %v11179_v51  ;;  %v9726_v62 = vpack.c.b16 %v16376_v63, %v16222_v38  ;;  %v8950_v8 = vpack.c.bf16 %v8915_v0, %v8915_v0  ;;  %v8259_v33 = vpack.c.bf16 %v8219_v15, %v8219_v15  ;;  %v8851_v51 = vsel %vm765_vm15, %v8848_v1, %v17040_v39 }
 0xa40   :  { %v16367_v18 = vpop.permute.xlu2 %8659  ;;  %8615 = vrot.lane.b32.xlu1 %v8601_v53, %s11538_s2  ;;  %v8599_v53 = vpack.c.b16 %v15985_v4, %v16365_v35  ;;  %v9047_v4 = vpack.c.b16 %v16378_v59, %v16155_v60  ;;  %v16412_v34 = vunpack.c.l.b16 %v8951_v25  ;;  %v8430_v60 = vrot.slane %v16332_v9, 4 }
 0xa41   :  { %v9788_v38 = vsel %vm459_vm4, %v9726_v62, %v9745_v23  ;;  %v8965_v0 = vpack.c.bf16 %v16058_v36, %v16058_v36  ;;  %v17041_v1 = vrot.slane %v16190_v30, 2  ;;  %v16423_v23 = vunpack.c.l.b16 %v8950_v8 }
 0xa42   :  { %v9496_v3 = vpop.permute.xlu1 %9495  ;;  %v8885_v62 = vpack.c.bf16 %v8851_v51, %v8851_v51  ;;  %v16428_v25 = vsel %vm549_vm6, %v16199_v12, %v16045_v44  ;;  %v9150_v39 = vunpack.c.l.b16 %v8966_v22  ;;  %v17043_v51 = vrot.slane %v16190_v30, 4 }
 0xa43   :  { %8611 = vrot.lane.b32.xlu0 %v8599_v53, %s11538_s2  ;;  %v9762_v8 = vpack.c.b16 %v16412_v34, %v16423_v23  ;;  %v9149_v48 = vunpack.c.l.b16 %v8965_v0  ;;  %v17044_v22 = vpack.c.b16 %v15916_v28, %v16253_v20 }
 0xa45   :  { %v9769_v37 = vpop.permute.xlu0 %9768  ;;  %v9159_v11 = vpack.c.b16 %v9150_v39, %v9149_v48  ;;  %v17048_v48 = vrot.slane %v16151_v49, 2 }
 0xa46   :  { %8671 = vrot.lane.b32.xlu2 %v8657_v50, %s11539_s15  ;;  %v9809_v15 = vsel %vm484_vm5, %v9788_v38, %v9769_v37  ;;  %v8299_v50 = vsel %vm1180_vm9, %v17041_v1, %v8298_v54  ;;  %v17042_v38 = vrot.slane %v15363_v27, 1 }
 0xa47   :  { %11027 = vmatmul.msk.bf16.gmra.mxu3 %vm549_vm6, %v9809_v15  ;;  %v8431_v15 = vsel %vm5160_vm14, %v17043_v51, %v8430_v60  ;;  %v8333_v44 = vpack.c.bf16 %v8299_v50, %v8299_v50  ;;  %v17045_v50 = vpack.c.b16 %v15988_v6, %v15963_v10  ;;  %v8300_v6 = vsel %vm1180_vm9, %v8298_v54, %v17048_v48 }
 0xa48   :  { %v16410_v53 = vpop.permute.xlu2 %8665  ;;  %9061 = vrot.lane.b32.xlu1 %v9047_v4, %s11537_s0  ;;  %v16432_v4 = vunpack.c.l.b16 %v8259_v33  ;;  %v8251_v1 = vsel %vm240_vm2, %v17004_v41, %v17042_v38  ;;  %v16450_v33 = vunpack.c.l.b16 %v8885_v62  ;;  %v8465_v13 = vpack.c.bf16 %v8431_v15, %v8431_v15 }
 0xa49   :  { %v8253_v38 = vpack.c.bf16 %v8251_v1, %v8251_v1  ;;  %v9182_v0 = vsel %vm459_vm4, %v17045_v50, %v16255_v16  ;;  %v8537_v28 = vunpack.c.l.b16 %v8333_v44  ;;  %v17047_v62 = vrot.slane %v15605_v29, 5 }
 0xa4a   :  { %v16430_v37 = vpop.permute.xlu1 %9167  ;;  %v9453_v41 = vpack.c.b16 %v16432_v4, %v16181_v21  ;;  %v9738_v16 = vpack.c.b16 %v16450_v33, %v16378_v59  ;;  %v17049_v54 = vrot.slane %v16151_v49, 4 }
 0xa4b   :  { %9057 = vrot.lane.b32.xlu0 %v17044_v22, %s11537_s0  ;;  %v16474_v39 = vunpack.c.l.b16 %v8253_v38  ;;  %v8649_v22 = vunpack.c.l.b16 %v8465_v13 }
 0xa4d   :  { %v9472_v51 = vpop.permute.xlu0 %9471  ;;  %v8499_v13 = vpack.c.b16 %v16043_v58, %v16474_v39  ;;  %v17051_v58 = vrot.slane %v16151_v49, 6 }
 0xa4e   :  { %9776 = vrot.lane.b32.xlu2 %v9762_v8, %s11538_s2  ;;  %v17046_v8 = vrot.slane %v15363_v27, 5  ;;  %v9539_v21 = vsel %vm459_vm4, %v9453_v41, %v9472_v51  ;;  %v9465_v41 = vpack.c.b16 %v8537_v28, %v16307_v56  ;;  %v8334_v51 = vpack.c.bf16 %v8300_v6, %v8300_v6 }
 0xa4f   :  { %v9560_v10 = vsel %vm484_vm5, %v9539_v21, %v9496_v3  ;;  %v8432_v3 = vsel %vm5160_vm14, %v8430_v60, %v17049_v54  ;;  %v17053_v54 = vrot.slane %v16151_v49, 7 }
 0xa50   :  { %v16459_v12 = vpop.permute.xlu2 %9770  ;;  %v8803_v1 = vsel %vm88_vm0, %v17047_v62, %v17046_v8  ;;  %9173 = vrot.lane.b32.xlu1 %v9159_v11, %s11539_s15  ;;  %v9578_v15 = vsel %vm549_vm6, %v9560_v10, %v16314_v31  ;;  %v9204_v11 = vsel %vm484_vm5, %v9182_v0, %v15967_v46  ;;  %v8364_v31 = vrot.slane %v16332_v9, 3 }
 0xa51   :  { %v8805_v50 = vpack.c.bf16 %v8803_v1, %v8803_v1  ;;  %9677 = vmatmul.bf16.gmra.mxu1 %v9578_v15  ;;  %v16486_v59 = vsel %vm549_vm6, %v9204_v11, %v16125_v52  ;;  %v9513_v46 = vpack.c.b16 %v8649_v22, %v16369_v47  ;;  %v8466_v38 = vpack.c.bf16 %v8432_v3, %v8432_v3 }
 0xa52   :  { %v8604_v44 = vpop.permute.xlu1 %8603  ;;  %v16498_v8 = vunpack.c.l.b16 %v8334_v51  ;;  %v17050_v62 = vrot.slane %v16190_v30, 3  ;;  %v17052_v47 = vrot.slane %v16332_v9, 6  ;;  %v9103_v10 = vpack.c.b16 %v16423_v23, %v16179_v19 }
 0xa53   :  { %9752 = vrot.lane.b32.xlu0 %v9738_v16, %s11537_s0  ;;  %v16494_v56 = vunpack.c.l.b16 %v8805_v50  ;;  %v16517_v50 = vunpack.c.l.b16 %v8466_v38 }
 0xa54   :  { %v8365_v1 = vsel %vm3293_vm13, %v17050_v62, %v8364_v31  ;;  %v8852_v21 = vsel %vm765_vm15, %v17052_v47, %v17051_v58  ;;  %v8968_v58 = vpack.c.bf16 %v16151_v49, %v16151_v49 }
 0xa55   :  { %v8548_v60 = vpop.permute.xlu0 %8547  ;;  %v9001_v16 = vpack.c.b16 %v15979_v17, %v16494_v56  ;;  %v8399_v11 = vpack.c.bf16 %v8365_v1, %v8365_v1  ;;  %v8658_v17 = vpack.c.b16 %v16517_v50, %v8649_v22  ;;  %v16542_v22 = vsel %vm549_vm6, %v16285_v43, %v16129_v2 }
 0xa56   :  { %9479 = vrot.lane.b32.xlu2 %v9465_v41, %s11537_s0  ;;  %v8677_v52 = vsel %vm459_vm4, %v8499_v13, %v8548_v60  ;;  %v8546_v41 = vpack.c.b16 %v16498_v8, %v8537_v28  ;;  %v8967_v2 = vpack.c.bf16 %v16332_v9, %v16332_v9 }
 0xa57   :  { %v8700_v48 = vsel %vm484_vm5, %v8677_v52, %v8604_v44  ;;  %v17054_v44 = vrot.slane %v16332_v9, 7  ;;  %v8593_v13 = vunpack.c.l.b16 %v8399_v11 }
 0xa58   :  { %v16496_v0 = vpop.permute.xlu2 %9473  ;;  %9527 = vrot.lane.b32.xlu1 %v9513_v46, %s11539_s15  ;;  %v8716_v6 = vsel %vm549_vm6, %v8700_v48, %v16367_v18  ;;  %v8886_v18 = vpack.c.bf16 %v8852_v21, %v8852_v21  ;;  %v17055_v21 = vrot.slane %v15605_v29, 5 }
 0xa59   :  { %9410 = vmatmul.bf16.vlgmr.msra.gmra.mxu2 %v8716_v6  ;;  %v8918_v3 = vsel %vm161_vm3, %v17054_v44, %v17053_v54  ;;  %v9489_v1 = vpack.c.b16 %v8593_v13, %v16347_v55 }
 0xa5a   :  { %v9050_v15 = vpop.permute.xlu1 %9049  ;;  %v8952_v23 = vpack.c.bf16 %v8918_v3, %v8918_v3  ;;  %v16531_v28 = vunpack.c.l.b16 %v8886_v18  ;;  %v8776_v18 = vrot.slane %v15819_v26, 5 }
 0xa5b   :  { %9117 = vrot.lane.b32.xlu0 %v9103_v10, %s11538_s2  ;;  %v9179_v19 = vsel %vm459_vm4, %v9001_v16, %v9050_v15  ;;  %v9152_v10 = vunpack.c.l.b16 %v8968_v58  ;;  %v9151_v15 = vunpack.c.l.b16 %v8967_v2 }
 0xa5c   :  { %v9096_v62 = vunpack.c.l.b16 %v8952_v23  ;;  %v9739_v47 = vpack.c.b16 %v16253_v20, %v16531_v28  ;;  %v17057_v20 = vrot.slane %v16151_v49, 3 }
 0xa5d   :  { %v9106_v51 = vpop.permute.xlu0 %9105  ;;  %v9160_v44 = vpack.c.b16 %v9152_v10, %v9151_v15 }
 0xa5e   :  { %8561 = vrot.lane.b32.xlu2 %v8546_v41, %s11537_s0  ;;  %v9202_v38 = vsel %vm484_vm5, %v9179_v19, %v9106_v51  ;;  %v9763_v43 = vpack.c.b16 %v16316_v7, %v9096_v62  ;;  %v8366_v16 = vsel %vm3293_vm13, %v8364_v31, %v17057_v20  ;;  %v9104_v7 = vpack.c.b16 %v9096_v62, %v16412_v34 }
 0xa5f   :  { %v9218_v60 = vsel %vm549_vm6, %v9202_v38, %v15904_v45  ;;  %v17056_v45 = vrot.slane %v15553_v42, 5  ;;  %v8400_v3 = vpack.c.bf16 %v8366_v16, %v8366_v16  ;;  %v9466_v31 = vpack.c.b16 %v16260_v61, %v16498_v8 }
 0xa60   :  { %v16529_v46 = vpop.permute.xlu2 %9748  ;;  %8673 = vrot.lane.b32.xlu1 %v8658_v17, %s11539_s15  ;;  %9313 = vmatmul.bf16.vlgmr.msra.gmra.mxu0 %v9218_v60  ;;  %v8774_v17 = vrot.slane %v15827_v14, 5  ;;  %v8773_v34 = vrot.slane %v15840_v5, 5  ;;  %v17058_v60 = vrot.slane %v15605_v29, 1  ;;  %v17059_v61 = vrot.slane %v15553_v42, 1 }
 0xa61   :  { %v8772_v48 = vsel %vm88_vm0, %v17056_v45, %v17055_v21  ;;  %v8594_v51 = vunpack.c.l.b16 %v8400_v3  ;;  %v9048_v3 = vpack.c.b16 %v16531_v28, %v16450_v33 }
 0xa62   :  { %v16537_v52 = vpop.permute.xlu1 %8609  ;;  %v8812_v55 = vpack.c.bf16 %v8772_v48, %v8772_v48  ;;  %v8777_v38 = vsel %vm88_vm0, %v8774_v17, %v8776_v18  ;;  %v8220_v8 = vsel %vm240_vm2, %v17059_v61, %v17058_v60  ;;  %v9514_v60 = vpack.c.b16 %v16282_v40, %v16517_v50 }
 0xa63   :  { %9503 = vrot.lane.b32.xlu0 %v9489_v1, %s11538_s2  ;;  %v8775_v1 = vsel %vm88_vm0, %v8773_v34, %v8774_v17  ;;  %v8602_v58 = vpack.c.b16 %v8594_v51, %v8593_v13  ;;  %v9490_v21 = vpack.c.b16 %v16365_v35, %v8594_v51  ;;  %v8815_v45 = vpack.c.bf16 %v8777_v38, %v8777_v38 }
 0xa64   :  { %v8992_v41 = vunpack.c.l.b16 %v8812_v55  ;;  %v8814_v2 = vpack.c.bf16 %v8775_v1, %v8775_v1 }
 0xa65   :  { %v16559_v6 = vpop.permute.xlu0 %8553  ;;  %v16600_v10 = vunpack.c.l.b16 %v8815_v45  ;;  %v8780_v45 = vrot.slane %v16058_v36, 5 }
 0xa66   :  { %9754 = vrot.lane.b32.xlu2 %v9739_v47, %s11537_s0  ;;  %v9727_v19 = vpack.c.b16 %v16494_v56, %v8992_v41  ;;  %v9004_v48 = vpack.c.b16 %v8992_v41, %v16376_v63  ;;  %v8704_v63 = vsel %vm484_vm5, %v16232_v57, %v16194_v24  ;;  %v16611_v41 = vunpack.c.l.b16 %v8814_v2 }
 0xa68   :  { %9778 = vrot.lane.b32.xlu1 %v9763_v43, %s11538_s2  ;;  %v16565_v11 = vpop.permute.xlu2 %9499  ;;  %v8756_v43 = vrot.slane %v16151_v49, 5  ;;  %v9728_v57 = vpack.c.b16 %v16600_v10, %v16611_v41 }
 0xa69   :  { %9415 = vmatmul.bf16.gmra.mxu2 %v16428_v25 }
 0xa6a   :  { %v9056_v54 = vpop.permute.xlu1 %9055  ;;  %v8804_v35 = vsel %vm88_vm0, %v8756_v43, %v8773_v34  ;;  %v9794_v33 = vsel %vm459_vm4, %v9728_v57, %v16529_v46 }
 0xa6b   :  { %9175 = vrot.lane.b32.xlu0 %v9160_v44, %s11539_s15  ;;  %v8813_v15 = vpack.c.bf16 %v8804_v35, %v8804_v35 }
 0xa6d   :  { %v9747_v23 = vpop.permute.xlu0 %9746 }
 0xa6e   :  { %9119 = vrot.lane.b32.xlu2 %v9104_v7, %s11538_s2  ;;  %v9791_v25 = vsel %vm459_vm4, %v9727_v19, %v9747_v23  ;;  %v8224_v7 = vrot.slane %v15819_v26, 1  ;;  %v16618_v19 = vunpack.c.l.b16 %v8813_v15 }
 0xa6f   :  { %v9811_v56 = vsel %vm484_vm5, %v9791_v25, %v16459_v12  ;;  %v8260_v12 = vpack.c.bf16 %v8220_v8, %v8220_v8 }
 0xa70   :  { %9481 = vrot.lane.b32.xlu1 %v9466_v31, %s11537_s0  ;;  %11028 = vmatmul.msk.bf16.gmra.mxu3 %vm549_vm6, %v9811_v56  ;;  %v16592_v47 = vpop.permute.xlu2 %9171  ;;  %v9005_v31 = vpack.c.b16 %v16611_v41, %v16618_v19 }
 0xa71   :  { %9318 = vmatmul.bf16.gmra.mxu0 %v16486_v59  ;;  %v9188_v59 = vsel %vm459_vm4, %v9004_v48, %v9056_v54  ;;  %v8490_v20 = vunpack.c.l.b16 %v8260_v12  ;;  %v8722_v54 = vsel %vm549_vm6, %v8704_v63, %v16363_v32  ;;  %v8222_v32 = vrot.slane %v15827_v14, 1  ;;  %v17060_v12 = vld [vmem:[#allocation10_spill] sm:$0xff] }
 0xa72   :  { %v9522_v62 = vpop.permute.xlu1 %9521  ;;  %v8778_v48 = vrot.slane %v17060_v12, 5 }
 0xa73   :  { %8617 = vrot.lane.b32.xlu0 %v8602_v58, %s11538_s2  ;;  %v9454_v24 = vpack.c.b16 %v16474_v39, %v8490_v20  ;;  %v8221_v39 = vrot.slane %v15840_v5, 1  ;;  %v8225_v51 = vsel %vm240_vm2, %v8222_v32, %v8224_v7  ;;  %v8502_v46 = vpack.c.b16 %v8490_v20, %v16432_v4 }
 0xa75   :  { %v9112_v55 = vpop.permute.xlu0 %9111  ;;  %v9542_v28 = vsel %vm459_vm4, %v9454_v24, %v16496_v0  ;;  %v8223_v38 = vsel %vm240_vm2, %v8221_v39, %v8222_v32  ;;  %v8263_v0 = vpack.c.bf16 %v8225_v51, %v8225_v51  ;;  %v8686_v61 = vsel %vm459_vm4, %v8502_v46, %v16559_v6 }
 0xa76   :  { %9505 = vrot.lane.b32.xlu2 %v9490_v21, %s11538_s2  ;;  %v9208_v13 = vsel %vm484_vm5, %v9188_v59, %v9112_v55  ;;  %v8262_v8 = vpack.c.bf16 %v8223_v38, %v8223_v38  ;;  %v8706_v58 = vsel %vm484_vm5, %v8686_v61, %v16537_v52  ;;  %v8781_v55 = vsel %vm88_vm0, %v8778_v48, %v8780_v45 }
 0xa77   :  { %v9227_v16 = vsel %vm549_vm6, %v9208_v13, %v16430_v37  ;;  %v8725_v40 = vsel %vm549_vm6, %v8706_v58, %v16410_v53  ;;  %v8779_v13 = vsel %vm88_vm0, %v8776_v18, %v8778_v48  ;;  %v8817_v20 = vpack.c.bf16 %v8781_v55, %v8781_v55 }
 0xa78   :  { %v16624_v37 = vpop.permute.xlu2 %8613  ;;  %v8492_v21 = vunpack.c.l.b16 %v8262_v8  ;;  %v8816_v63 = vpack.c.bf16 %v8779_v13, %v8779_v13 }
 0xa79   :  { %9420 = vmatmul.bf16.gmra.mxu2 %v8722_v54  ;;  %v16674_v54 = vunpack.c.l.b16 %v8817_v20 }
 0xa7a   :  { %v9773_v44 = vpop.permute.xlu1 %9772 }
 0xa7b   :  { %9063 = vrot.lane.b32.xlu0 %v9048_v3, %s11537_s0  ;;  %v9813_v17 = vsel %vm484_vm5, %v9794_v33, %v9773_v44  ;;  %v8996_v44 = vunpack.c.l.b16 %v8816_v63  ;;  %v8226_v3 = vrot.slane %v17060_v12, 1  ;;  %v8784_v63 = vrot.slane %v16332_v9, 5 }
 0xa7d   :  { %v9498_v23 = vpop.permute.xlu0 %9497  ;;  %v9729_v32 = vpack.c.b16 %v16674_v54, %v8996_v44  ;;  %v9006_v8 = vpack.c.b16 %v8996_v44, %v16600_v10 }
 0xa7e   :  { %v9562_v25 = vsel %vm484_vm5, %v9542_v28, %v9498_v23 }
 0xa7f   :  { %v9581_v34 = vsel %vm549_vm6, %v9562_v25, %v9522_v62  ;;  %v16649_v62 = vunpack.c.l.b16 %v8263_v0  ;;  %v8190_v0 = vrot.slane %v16151_v49, 1 }
 0xa80   :  { %9682 = vmatmul.bf16.gmra.mxu1 %v9581_v34  ;;  %11029 = vmatmul.msk.bf16.gmra.mxu3 %vm549_vm6, %v9813_v17  ;;  %v9060_v1 = vpop.permute.xlu2 %9059 }
 0xa81   :  { %9323 = vmatmul.bf16.gmra.mxu0 %v16542_v22  ;;  %v9455_v22 = vpack.c.b16 %v16649_v62, %v8492_v21  ;;  %v8252_v58 = vsel %vm240_vm2, %v8190_v0, %v8221_v39 }
 0xa82   :  { %v9476_v56 = vpop.permute.xlu1 %9475 }
 0xa83   :  { %9529 = vrot.lane.b32.xlu0 %v9514_v60, %s11539_s15  ;;  %v9545_v6 = vsel %vm459_vm4, %v9455_v22, %v9476_v56 }
 0xa84   :  { %v9564_v59 = vsel %vm484_vm5, %v9545_v6, %v16565_v11  ;;  %v8228_v11 = vrot.slane %v16058_v36, 1  ;;  %v9194_v6 = vsel %vm459_vm4, %v9006_v8, %v9060_v1 }
 0xa85   :  { %v16651_v4 = vpop.permute.xlu0 %9169 }
 0xa86   :  { %v8229_v18 = vsel %vm240_vm2, %v8226_v3, %v8228_v11 }
 0xa87   :  { %v8265_v28 = vpack.c.bf16 %v8229_v18, %v8229_v18 }
 0xa88   :  { %v9526_v53 = vpop.permute.xlu2 %9525 }
 0xa89   :  { %9425 = vmatmul.bf16.gmra.mxu2 %v8725_v40  ;;  %v16686_v34 = vunpack.c.l.b16 %v8265_v28 }
 0xa8a   :  { %v16658_v50 = vpop.permute.xlu1 %8557 }
 0xa8d   :  { %v9524_v2 = vpop.permute.xlu0 %9523 }
 0xa8e   :  { %v9584_v52 = vsel %vm549_vm6, %v9564_v59, %v9524_v2  ;;  %v8261_v2 = vpack.c.bf16 %v8252_v58, %v8252_v58 }
 0xa90   :  { %9687 = vmatmul.bf16.gmra.mxu1 %v9584_v52  ;;  %v8556_v24 = vpop.permute.xlu2 %8555  ;;  %v16705_v55 = vunpack.c.l.b16 %v8261_v2 }
 0xa91   :  { %9328 = vmatmul.bf16.gmra.mxu0 %v9227_v16  ;;  %v8227_v16 = vsel %vm240_vm2, %v8224_v7, %v8226_v3  ;;  %v8782_v3 = vrot.slane %v16190_v30, 5 }
 0xa92   :  { %v9116_v35 = vpop.permute.xlu1 %9115  ;;  %v8264_v23 = vpack.c.bf16 %v8227_v16, %v8227_v16  ;;  %v8503_v39 = vpack.c.b16 %v8492_v21, %v16705_v55 }
 0xa93   :  { %v9212_v48 = vsel %vm484_vm5, %v9194_v6, %v9116_v35  ;;  %v8783_v21 = vsel %vm88_vm0, %v8780_v45, %v8782_v3 }
 0xa94   :  { %v8494_v38 = vunpack.c.l.b16 %v8264_v23  ;;  %v9233_v10 = vsel %vm549_vm6, %v9212_v48, %v16592_v47  ;;  %v8785_v47 = vsel %vm88_vm0, %v8782_v3, %v8784_v63  ;;  %v8818_v18 = vpack.c.bf16 %v8783_v21, %v8783_v21 }
 0xa95   :  { %v16672_v15 = vpop.permute.xlu0 %8669  ;;  %v9668_v21 = vpop.f32.mrf.mxu1 }
 0xa96   :  { %v9456_v56 = vpack.c.b16 %v16686_v34, %v8494_v38 }
 0xa98   :  { %v9114_v46 = vpop.permute.xlu2 %9113 }
 0xa9a   :  { %v9751_v57 = vpop.permute.xlu1 %9750 }
 0xa9b   :  { %v9797_v33 = vsel %vm459_vm4, %v9729_v32, %v9751_v57 }
 0xa9d   :  { %v9775_v17 = vpop.permute.xlu0 %9774 }
 0xa9e   :  { %v9815_v51 = vsel %vm484_vm5, %v9797_v33, %v9775_v17 }
 0xa9f   :  { %11030 = vmatmul.msk.bf16.gmra.mxu3 %vm549_vm6, %v9815_v51  ;;  %v8504_v51 = vpack.c.b16 %v8494_v38, %v16649_v62 }
 0xaa0   :  { %v16701_v59 = vpop.permute.xlu2 %8671 }
 0xaa1   :  { %v8692_v41 = vsel %vm459_vm4, %v8504_v51, %v16658_v50 }
 0xaa2   :  { %v9502_v25 = vpop.permute.xlu1 %9501  ;;  %v8710_v62 = vsel %vm484_vm5, %v8692_v41, %v16624_v37 }
 0xaa3   :  { %v8731_v38 = vsel %vm549_vm6, %v8710_v62, %v16672_v15 }
 0xaa5   :  { %v9478_v60 = vpop.permute.xlu0 %9477 }
 0xaa6   :  { %v9548_v7 = vsel %vm459_vm4, %v9456_v56, %v9478_v60  ;;  %v8998_v56 = vunpack.c.l.b16 %v8818_v18 }
 0xaa7   :  { %v9566_v61 = vsel %vm484_vm5, %v9548_v7, %v9502_v25  ;;  %v8230_v25 = vrot.slane %v16190_v30, 1 }
 0xaa8   :  { %v9587_v22 = vsel %vm549_vm6, %v9566_v61, %v9526_v53  ;;  %v8689_v53 = vsel %vm459_vm4, %v8503_v39, %v8556_v24  ;;  %v9777_v35 = vpop.permute.xlu2 %9776  ;;  %v8819_v24 = vpack.c.bf16 %v8785_v47, %v8785_v47  ;;  %v9007_v18 = vpack.c.b16 %v8998_v56, %v16674_v54 }
 0xaa9   :  { %9692 = vmatmul.bf16.gmra.mxu1 %v9587_v22 }
 0xaaa   :  { %v8668_v40 = vpop.permute.xlu1 %8667  ;;  %v16728_v23 = vunpack.c.l.b16 %v8819_v24  ;;  %v9893_v24 = vpop.f32.mrf.mxu3 }
 0xaad   :  { %v8560_v52 = vpop.permute.xlu0 %8559 }
 0xab0   :  { %v9480_v45 = vpop.permute.xlu2 %9479 }
 0xab2   :  { %v8616_v13 = vpop.permute.xlu1 %8615 }
 0xab5   :  { %v8612_v20 = vpop.permute.xlu0 %8611 }
 0xab6   :  { %v8708_v1 = vsel %vm484_vm5, %v8689_v53, %v8612_v20 }
 0xab7   :  { %v8728_v44 = vsel %vm549_vm6, %v8708_v1, %v8668_v40 }
 0xab8   :  { %9430 = vmatmul.bf16.gmra.mxu2 %v8728_v44  ;;  %v8562_v40 = vpop.permute.xlu2 %8561 }
 0xaba   :  { %v16713_v57 = vpop.permute.xlu1 %9061 }
 0xabd   :  { %v9058_v32 = vpop.permute.xlu0 %9057 }
 0xabe   :  { %v9191_v16 = vsel %vm459_vm4, %v9005_v31, %v9058_v32  ;;  %v8232_v31 = vrot.slane %v16332_v9, 1 }
 0xabf   :  { %v9210_v33 = vsel %vm484_vm5, %v9191_v16, %v9114_v46  ;;  %v9730_v46 = vpack.c.b16 %v16728_v23, %v8998_v56  ;;  %v9670_v56 = vpop.f32.mrf.mxu1 }
 0xac0   :  { %v9230_v28 = vsel %vm549_vm6, %v9210_v33, %v16651_v4  ;;  %v8231_v4 = vsel %vm240_vm2, %v8228_v11, %v8230_v25  ;;  %v8233_v50 = vsel %vm240_vm2, %v8230_v25, %v8232_v31  ;;  %v8786_v11 = vsel %vm88_vm0, %v8784_v63, %v8756_v43  ;;  %v9755_v3 = vpop.permute.xlu2 %9754  ;;  %v11202_v25 = vld [vmem:[%s16962_s5 + $0x8] sm:$0xff] }
 0xac1   :  { %9333 = vmatmul.bf16.gmra.mxu0 %v9230_v28  ;;  %v8266_v58 = vpack.c.bf16 %v8231_v4, %v8231_v4  ;;  %v8267_v22 = vpack.c.bf16 %v8233_v50, %v8233_v50  ;;  %v8820_v48 = vpack.c.bf16 %v8786_v11, %v8786_v11 }
 0xac2   :  { %v16726_v17 = vpop.permute.xlu1 %9173  ;;  %10137 = vmatpush.bf16.msrb.mxu0 %v11202_v25 }
 0xac3   :  { %v8496_v6 = vunpack.c.l.b16 %v8266_v58  ;;  %v8497_v2 = vunpack.c.l.b16 %v8267_v22  ;;  %v16751_v53 = vunpack.c.l.b16 %v8820_v48 }
 0xac5   :  { %v9753_v60 = vpop.permute.xlu0 %9752  ;;  %v8505_v39 = vpack.c.b16 %v8496_v6, %v16686_v34  ;;  %v9457_v1 = vpack.c.b16 %v8497_v2, %v8496_v6  ;;  %v9731_v43 = vpack.c.b16 %v16618_v19, %v16751_v53 }
 0xac6   :  { %v9800_v7 = vsel %vm459_vm4, %v9730_v46, %v9753_v60  ;;  %v9895_v46 = vpop.f32.mrf.mxu3  ;;  %v16780_v60 = vld [vmem:[%s16961_s4 + $0x7] ss:$0 sm:$0xff] }
 0xac7   :  { %v9817_v61 = vsel %vm484_vm5, %v9800_v7, %v9777_v35  ;;  %v8695_v20 = vsel %vm459_vm4, %v8505_v39, %v8560_v52  ;;  %v9551_v44 = vsel %vm459_vm4, %v9457_v1, %v9480_v45  ;;  %v8234_v52 = vsel %vm240_vm2, %v8232_v31, %v8190_v0 }
 0xac8   :  { %9435 = vmatmul.bf16.gmra.mxu2 %v8731_v38  ;;  %11031 = vmatmul.msk.bf16.gmra.mxu3 %vm549_vm6, %v9817_v61  ;;  %v8712_v35 = vsel %vm484_vm5, %v8695_v20, %v8616_v13  ;;  %v9803_v13 = vsel %vm459_vm4, %v9731_v43, %v9755_v3  ;;  %v8268_v16 = vpack.c.bf16 %v8234_v52, %v8234_v52  ;;  %v9120_v48 = vpop.permute.xlu2 %9119  ;;  %v17061_v20 = vld [vmem:[#allocation5_spill] sm:$0xff] }
 0xac9   :  { %v8734_v34 = vsel %vm549_vm6, %v8712_v35, %v16701_v59  ;;  %v9197_v59 = vsel %vm459_vm4, %v9007_v18, %v16713_v57  ;;  %v9008_v35 = vpack.c.b16 %v16751_v53, %v16728_v23 }
 0xaca   :  { %v9528_v8 = vpop.permute.xlu1 %9527  ;;  %v8498_v41 = vunpack.c.l.b16 %v8268_v16  ;;  %v17062_v16 = vld [vmem:[#allocation6_spill] sm:$0xff] }
 0xacc   :  { %v8506_v4 = vpack.c.b16 %v8498_v41, %v8497_v2 }
 0xacd   :  { %v9118_v37 = vpop.permute.xlu0 %9117 }
 0xace   :  { %v9214_v28 = vsel %vm484_vm5, %v9197_v59, %v9118_v37  ;;  %v8698_v38 = vsel %vm459_vm4, %v8506_v4, %v8562_v40  ;;  %v9673_v37 = vpop.f32.mrf.mxu1  ;;  %v9898_v39 = vpop.f32.mrf.mxu3 }
 0xacf   :  { %v9236_v54 = vsel %vm549_vm6, %v9214_v28, %v16726_v17 }
 0xad0   :  { %v9506_v18 = vpop.permute.xlu2 %9505 }
 0xad1   :  { %9338 = vmatmul.bf16.gmra.mxu0 %v9233_v10 }
 0xad2   :  { %v8674_v15 = vpop.permute.xlu1 %8673 }
 0xad5   :  { %v9504_v47 = vpop.permute.xlu0 %9503 }
 0xad6   :  { %v9568_v63 = vsel %vm484_vm5, %v9551_v44, %v9504_v47  ;;  %v9900_v25 = vpop.f32.mrf.mxu3 }
 0xad7   :  { %v9590_v10 = vsel %vm549_vm6, %v9568_v63, %v9528_v8 }
 0xad8   :  { %9440 = vmatmul.bf16.gmra.mxu2 %v8734_v34  ;;  %9697 = vmatmul.bf16.gmra.mxu1 %v9590_v10  ;;  %v9458_v34 = vpack.c.b16 %v16705_v55, %v8498_v41 }
 0xada   :  { %v9779_v32 = vpop.permute.xlu1 %9778 }
 0xadb   :  { %v9819_v19 = vsel %vm484_vm5, %v9803_v13, %v9779_v32 }
 0xadc   :  { %11032 = vmatmul.msk.bf16.gmra.mxu3 %vm549_vm6, %v9819_v19  ;;  %v9411_v33 = vpop.f32.mrf.mxu2  ;;  %v9675_v19 = vpop.f32.mrf.mxu1 }
 0xadd   :  { %v9176_v51 = vpop.permute.xlu0 %9175  ;;  %v9314_v0 = vpop.f32.mrf.mxu0 }
 0xade   :  { %v9412_v45 = vadd.f32 %v9411_v33, %v9314_v0 }
 0xae0   :  { %v9708_v31 = vadd.f32 %v9668_v21, %v9412_v45 }
 0xae1   :  { %9343 = vmatmul.bf16.gmra.mxu0 %v9236_v54 }
 0xae2   :  { %v9933_v57 = vadd.f32 %v9893_v24, %v9708_v31  ;;  %v9482_v21 = vpop.permute.xlu1 %9481 }
 0xae3   :  { %v9554_v52 = vsel %vm459_vm4, %v9458_v34, %v9482_v21 }
 0xae4   :  { %v9949_v7 = vadd.f32 %v9933_v57, %v15363_v27  ;;  %v9413_v62 = vpop.f32.mrf.mxu2  ;;  %v9570_v0 = vsel %vm484_vm5, %v9554_v52, %v9506_v18 }
 0xae5   :  { %v8618_v61 = vpop.permute.xlu0 %8617  ;;  %v9316_v50 = vpop.f32.mrf.mxu0 }
 0xae6   :  { %v9967_v17 = vadd.f32 %v16780_v60, %v9949_v7  ;;  %v8714_v8 = vsel %vm484_vm5, %v8698_v38, %v8618_v61  ;;  %v9414_v58 = vadd.f32 %v9413_v62, %v9316_v50  ;;  %v9678_v62 = vpop.f32.mrf.mxu1  ;;  %v17063_v61 = vld [vmem:[#allocation7_spill] sm:$0xff] }
 0xae7   :  { %v8737_v22 = vsel %vm549_vm6, %v8714_v8, %v8674_v15  ;;  %v11201_v15 = vld [vmem:[%s16962_s5] sm:$0xff] }
 0xae8   :  { %v9999_v11 = vmin.f32 %v9967_v17, 0.0  ;;  %v9709_v6 = vadd.f32 %v9670_v56, %v9414_v58  ;;  %9445 = vmatmul.bf16.gmra.mxu2 %v8737_v22  ;;  %10138 = vmatpush.bf16.msrb.mxu0 %v11201_v15  ;;  %vm9983_vm0 = vcmp.gt.f32.partialorder %v9967_v17, 0.0 }
 0xaea   :  { %v9934_v2 = vadd.f32 %v9895_v46, %v9709_v6  ;;  %v10015_v27 = vmul.f32 1.442695, %v9999_v11  ;;  %v9903_v11 = vpop.f32.mrf.mxu3 }
 0xaec   :  { %v9950_v1 = vadd.f32 %v9934_v2, %v17061_v20  ;;  %v9416_v40 = vpop.f32.mrf.mxu2  ;;  %11446 = vpow2.f32 %v10015_v27 }
 0xaed   :  { %v9064_v44 = vpop.permute.xlu0 %9063 }
 0xaee   :  { %v9319_v3 = vpop.f32.mrf.mxu0  ;;  %v9968_v47 = vadd.f32 %v16780_v60, %v9950_v1  ;;  %v9200_v43 = vsel %vm459_vm4, %v9008_v35, %v9064_v44  ;;  %v17064_v35 = vld [vmem:[#allocation8_spill] sm:$0xff] }
 0xaef   :  { %v9417_v63 = vadd.f32 %v9416_v40, %v9319_v3  ;;  %v9216_v10 = vsel %vm484_vm5, %v9200_v43, %v9120_v48 }
 0xaf0   :  { %v10000_v24 = vmin.f32 %v9968_v47, 0.0  ;;  %v9239_v53 = vsel %vm549_vm6, %v9216_v10, %v9176_v51  ;;  %vm9984_vm2 = vcmp.gt.f32.partialorder %v9968_v47, 0.0 }
 0xaf1   :  { %v9710_v23 = vadd.f32 %v9673_v37, %v9417_v63  ;;  %9348 = vmatmul.bf16.gmra.mxu0 %v9239_v53 }
 0xaf2   :  { %v10017_v13 = vmul.f32 1.442695, %v10000_v24  ;;  %v11447_v45 = vpop.eup %11446  ;;  %v9905_v63 = vpop.f32.mrf.mxu3 }
 0xaf3   :  { %v9935_v32 = vadd.f32 %v9898_v39, %v9710_v23  ;;  %v11033_v46 = vadd.f32 -1.0, %v11447_v45 }
 0xaf4   :  { %11448 = vpow2.f32 %v10017_v13  ;;  %v9418_v33 = vpop.f32.mrf.mxu2 }
 0xaf5   :  { %v9951_v59 = vadd.f32 %v9935_v32, %v17062_v16  ;;  %v9530_v55 = vpop.permute.xlu0 %9529  ;;  %v10063_v58 = vsel %vm9983_vm0, %v9967_v17, %v11033_v46  ;;  %v9680_v17 = vpop.f32.mrf.mxu1  ;;  %v17065_v32 = vld [vmem:[#allocation9_spill] sm:$0xff] }
 0xaf6   :  { %v9321_v28 = vpop.f32.mrf.mxu0  ;;  %v9593_v31 = vsel %vm549_vm6, %v9570_v0, %v9530_v55 }
 0xaf7   :  { %v9969_v41 = vadd.f32 %v16780_v60, %v9951_v59  ;;  %v9419_v51 = vadd.f32 %v9418_v33, %v9321_v28  ;;  %9702 = vmatmul.bf16.gmra.mxu1 %v9593_v31 }
 0xaf9   :  { %v10001_v54 = vmin.f32 %v9969_v41, 0.0  ;;  %v9711_v56 = vadd.f32 %v9675_v19, %v9419_v51  ;;  %vm9985_vm3 = vcmp.gt.f32.partialorder %v9969_v41, 0.0 }
 0xafa   :  { %v11449_v57 = vpop.eup %11448  ;;  %v9908_v45 = vpop.f32.mrf.mxu3 }
 0xafb   :  { %v9936_v4 = vadd.f32 %v9900_v25, %v9711_v56  ;;  %v11034_v7 = vadd.f32 -1.0, %v11449_v57  ;;  %v10019_v38 = vmul.f32 1.442695, %v10001_v54 }
 0xafc   :  { %v9421_v8 = vpop.f32.mrf.mxu2 }
 0xafd   :  { %v9952_v50 = vadd.f32 %v9936_v4, %v17063_v61  ;;  %v10064_v22 = vsel %vm9984_vm2, %v9968_v47, %v11034_v7  ;;  %11450 = vpow2.f32 %v10019_v38  ;;  %v9683_v59 = vpop.f32.mrf.mxu1 }
 0xafe   :  { %v10079_v6 = vpack.c.bf16 %v10064_v22, %v10063_v58  ;;  %v9324_v48 = vpop.f32.mrf.mxu0 }
 0xaff   :  { %v9970_v37 = vadd.f32 %v16780_v60, %v9952_v50  ;;  %v9422_v2 = vadd.f32 %v9421_v8, %v9324_v48 }
 0xb01   :  { %v10002_v39 = vmin.f32 %v9970_v37, 0.0  ;;  %v9712_v27 = vadd.f32 %v9678_v62, %v9422_v2  ;;  %11057 = vmatmul.msk.bf16.vlgmr.msrb.gmra.mxu0 %vm459_vm4, %v10079_v6  ;;  %vm9986_vm5 = vcmp.gt.f32.partialorder %v9970_v37, 0.0 }
 0xb02   :  { %v9910_v50 = vpop.f32.mrf.mxu3 }
 0xb03   :  { %v10021_v20 = vmul.f32 1.442695, %v10002_v39  ;;  %v9937_v1 = vadd.f32 %v9903_v11, %v9712_v27  ;;  %v11451_v3 = vpop.eup %11450 }
 0xb04   :  { %v9423_v40 = vpop.f32.mrf.mxu2  ;;  %v11035_v10 = vadd.f32 -1.0, %v11451_v3 }
 0xb05   :  { %11452 = vpow2.f32 %v10021_v20  ;;  %v9953_v44 = vadd.f32 %v9937_v1, %v17064_v35  ;;  %v9685_v62 = vpop.f32.mrf.mxu1 }
 0xb06   :  { %v9326_v15 = vpop.f32.mrf.mxu0  ;;  %v10065_v18 = vsel %vm9985_vm3, %v9969_v41, %v11035_v10 }
 0xb07   :  { %v9971_v47 = vadd.f32 %v16780_v60, %v9953_v44  ;;  %v9424_v43 = vadd.f32 %v9423_v40, %v9326_v15 }
 0xb09   :  { %v10003_v21 = vmin.f32 %v9971_v47, 0.0  ;;  %v9713_v34 = vadd.f32 %v9680_v17, %v9424_v43  ;;  %vm9987_vm6 = vcmp.gt.f32.partialorder %v9971_v47, 0.0 }
 0xb0a   :  { %v9913_v43 = vpop.f32.mrf.mxu3 }
 0xb0b   :  { %v11453_v24 = vpop.eup %11452  ;;  %v9938_v23 = vadd.f32 %v9905_v63, %v9713_v34  ;;  %v10023_v13 = vmul.f32 1.442695, %v10003_v21 }
 0xb0c   :  { %v11036_v53 = vadd.f32 -1.0, %v11453_v24  ;;  %v9426_v52 = vpop.f32.mrf.mxu2 }
 0xb0d   :  { %v9954_v19 = vadd.f32 %v9938_v23, %v17065_v32  ;;  %11454 = vpow2.f32 %v10023_v13  ;;  %v9688_v15 = vpop.f32.mrf.mxu1 }
 0xb0e   :  { %v10066_v16 = vsel %vm9986_vm5, %v9970_v37, %v11036_v53  ;;  %v9329_v33 = vpop.f32.mrf.mxu0 }
 0xb0f   :  { %v10080_v55 = vpack.c.bf16 %v10066_v16, %v10065_v18  ;;  %v9972_v28 = vadd.f32 %v16780_v60, %v9954_v19  ;;  %v9427_v0 = vadd.f32 %v9426_v52, %v9329_v33 }
 0xb11   :  { %v10004_v25 = vmin.f32 %v9972_v28, 0.0  ;;  %v9714_v51 = vadd.f32 %v9683_v59, %v9427_v0  ;;  %11058 = vmatmul.msk.bf16.gmra.mxu0 %vm459_vm4, %v10080_v55  ;;  %vm9988_vm9 = vcmp.gt.f32.partialorder %v9972_v28, 0.0 }
 0xb12   :  { %v9915_v52 = vpop.f32.mrf.mxu3 }
 0xb13   :  { %v10025_v31 = vmul.f32 1.442695, %v10004_v25  ;;  %v9939_v54 = vadd.f32 %v9908_v45, %v9714_v51  ;;  %v11455_v57 = vpop.eup %11454 }
 0xb14   :  { %v9428_v46 = vpop.f32.mrf.mxu2  ;;  %v11037_v8 = vadd.f32 -1.0, %v11455_v57 }
 0xb15   :  { %v9955_v56 = vadd.f32 %v9939_v54, %v15553_v42  ;;  %11456 = vpow2.f32 %v10025_v31  ;;  %v9690_v23 = vpop.f32.mrf.mxu1 }
 0xb16   :  { %v9331_v41 = vpop.f32.mrf.mxu0  ;;  %v10067_v42 = vsel %vm9987_vm6, %v9971_v47, %v11037_v8 }
 0xb17   :  { %v9973_v4 = vadd.f32 %v16780_v60, %v9955_v56  ;;  %v9429_v7 = vadd.f32 %v9428_v46, %v9331_v41 }
 0xb19   :  { %v10005_v38 = vmin.f32 %v9973_v4, 0.0  ;;  %v9715_v61 = vadd.f32 %v9685_v62, %v9429_v7  ;;  %vm9989_vm15 = vcmp.gt.f32.partialorder %v9973_v4, 0.0 }
 0xb1b   :  { %v11457_v58 = vpop.eup %11456  ;;  %v9940_v22 = vadd.f32 %v9910_v50, %v9715_v61  ;;  %v10027_v6 = vmul.f32 1.442695, %v10005_v38 }
 0xb1c   :  { %v11038_v11 = vadd.f32 -1.0, %v11457_v58 }
 0xb1d   :  { %v9956_v37 = vadd.f32 %v9940_v22, %v15605_v29  ;;  %11458 = vpow2.f32 %v10027_v6 }
 0xb1e   :  { %v10068_v48 = vsel %vm9988_vm9, %v9972_v28, %v11038_v11 }
 0xb1f   :  { %v9974_v2 = vadd.f32 %v16780_v60, %v9956_v37  ;;  %v10081_v39 = vpack.c.bf16 %v10068_v48, %v10067_v42 }
 0xb21   :  { %v10006_v27 = vmin.f32 %v9974_v2, 0.0  ;;  %11059 = vmatmul.msk.bf16.gmra.mxu0 %vm459_vm4, %v10081_v39  ;;  %vm9990_vm13 = vcmp.gt.f32.partialorder %v9974_v2, 0.0 }
 0xb22   :  { %v9918_v45 = vpop.f32.mrf.mxu3 }
 0xb23   :  { %v10029_v20 = vmul.f32 1.442695, %v10006_v27  ;;  %v11459_v1 = vpop.eup %11458 }
 0xb24   :  { %v11039_v40 = vadd.f32 -1.0, %v11459_v1 }
 0xb25   :  { %11460 = vpow2.f32 %v10029_v20 }
 0xb26   :  { %v10069_v29 = vsel %vm9989_vm15, %v9973_v4, %v11039_v40  ;;  %v9693_v55 = vpop.f32.mrf.mxu1 }
 0xb2a   :  { %v9920_v61 = vpop.f32.mrf.mxu3 }
 0xb2b   :  { %v11461_v35 = vpop.eup %11460 }
 0xb2c   :  { %v11040_v44 = vadd.f32 -1.0, %v11461_v35 }
 0xb2e   :  { %v10070_v3 = vsel %vm9990_vm13, %v9974_v2, %v11040_v44  ;;  %v9695_v4 = vpop.f32.mrf.mxu1 }
 0xb2f   :  { %v10082_v17 = vpack.c.bf16 %v10070_v3, %v10069_v29 }
 0xb31   :  { %11060 = vmatmul.msk.bf16.gmra.mxu0 %vm459_vm4, %v10082_v17 }
 0xb3b   :  { %v9431_v47 = vpop.f32.mrf.mxu2 }
 0xb3e   :  { %v9334_v63 = vpop.f32.mrf.mxu0 }
 0xb3f   :  { %v9432_v21 = vadd.f32 %v9431_v47, %v9334_v63 }
 0xb41   :  { %v9716_v34 = vadd.f32 %v9688_v15, %v9432_v21 }
 0xb43   :  { %v9941_v10 = vadd.f32 %v9913_v43, %v9716_v34  ;;  %v9433_v24 = vpop.f32.mrf.mxu2 }
 0xb45   :  { %v9957_v53 = vadd.f32 %v9941_v10, %v15840_v5 }
 0xb46   :  { %v9336_v13 = vpop.f32.mrf.mxu0 }
 0xb47   :  { %v9975_v32 = vadd.f32 %v16780_v60, %v9957_v53  ;;  %v9434_v19 = vadd.f32 %v9433_v24, %v9336_v13 }
 0xb49   :  { %v10007_v18 = vmin.f32 %v9975_v32, 0.0  ;;  %v9717_v16 = vadd.f32 %v9690_v23, %v9434_v19  ;;  %vm9991_vm14 = vcmp.gt.f32.partialorder %v9975_v32, 0.0 }
 0xb4b   :  { %v9942_v59 = vadd.f32 %v9915_v52, %v9717_v16  ;;  %v9436_v33 = vpop.f32.mrf.mxu2  ;;  %v10031_v28 = vmul.f32 1.442695, %v10007_v18  ;;  %v9923_v35 = vpop.f32.mrf.mxu3 }
 0xb4d   :  { %v9958_v0 = vadd.f32 %v9942_v59, %v15827_v14  ;;  %11462 = vpow2.f32 %v10031_v28 }
 0xb4e   :  { %v9339_v25 = vpop.f32.mrf.mxu0 }
 0xb4f   :  { %v9976_v51 = vadd.f32 %v16780_v60, %v9958_v0  ;;  %v9437_v31 = vadd.f32 %v9436_v33, %v9339_v25 }
 0xb51   :  { %v10008_v5 = vmin.f32 %v9976_v51, 0.0  ;;  %v9718_v54 = vadd.f32 %v9693_v55, %v9437_v31  ;;  %vm9992_vm11 = vcmp.gt.f32.partialorder %v9976_v51, 0.0 }
 0xb53   :  { %v10033_v56 = vmul.f32 1.442695, %v10008_v5  ;;  %v9943_v46 = vadd.f32 %v9918_v45, %v9718_v54  ;;  %v9438_v41 = vpop.f32.mrf.mxu2  ;;  %v11463_v62 = vpop.eup %11462 }
 0xb54   :  { %v11041_v58 = vadd.f32 -1.0, %v11463_v62  ;;  %v9925_v23 = vpop.f32.mrf.mxu3 }
 0xb55   :  { %11464 = vpow2.f32 %v10033_v56  ;;  %v9959_v57 = vadd.f32 %v9943_v46, %v15819_v26  ;;  %v9698_v26 = vpop.f32.mrf.mxu1 }
 0xb56   :  { %v9341_v7 = vpop.f32.mrf.mxu0  ;;  %v10071_v39 = vsel %vm9991_vm14, %v9975_v32, %v11041_v58 }
 0xb57   :  { %v9977_v38 = vadd.f32 %v16780_v60, %v9959_v57  ;;  %v9439_v14 = vadd.f32 %v9438_v41, %v9341_v7 }
 0xb59   :  { %v10009_v50 = vmin.f32 %v9977_v38, 0.0  ;;  %v9719_v8 = vadd.f32 %v9695_v4, %v9439_v14  ;;  %vm9993_vm12 = vcmp.gt.f32.partialorder %v9977_v38, 0.0 }
 0xb5b   :  { %v11465_v22 = vpop.eup %11464  ;;  %v9944_v11 = vadd.f32 %v9920_v61, %v9719_v8  ;;  %v9441_v6 = vpop.f32.mrf.mxu2  ;;  %v10035_v42 = vmul.f32 1.442695, %v10009_v50 }
 0xb5c   :  { %v11042_v37 = vadd.f32 -1.0, %v11465_v22 }
 0xb5d   :  { %v9960_v48 = vadd.f32 %v9944_v11, %v17060_v12  ;;  %11466 = vpow2.f32 %v10035_v42  ;;  %v9700_v34 = vpop.f32.mrf.mxu1 }
 0xb5e   :  { %v9344_v2 = vpop.f32.mrf.mxu0  ;;  %v10072_v27 = vsel %vm9992_vm11, %v9976_v51, %v11042_v37 }
 0xb5f   :  { %v9978_v20 = vadd.f32 %v16780_v60, %v9960_v48  ;;  %v9442_v1 = vadd.f32 %v9441_v6, %v9344_v2  ;;  %v10083_v40 = vpack.c.bf16 %v10072_v27, %v10071_v39  ;;  %v9928_v51 = vpop.f32.mrf.mxu3 }
 0xb61   :  { %v10010_v44 = vmin.f32 %v9978_v20, 0.0  ;;  %v9720_v29 = vadd.f32 %v9698_v26, %v9442_v1  ;;  %11061 = vmatmul.msk.bf16.gmra.mxu0 %vm459_vm4, %v10083_v40  ;;  %vm9994_vm1 = vcmp.gt.f32.partialorder %v9978_v20, 0.0 }
 0xb63   :  { %v10037_v3 = vmul.f32 1.442695, %v10010_v44  ;;  %v9945_v17 = vadd.f32 %v9923_v35, %v9720_v29  ;;  %v9443_v15 = vpop.f32.mrf.mxu2  ;;  %v11467_v43 = vpop.eup %11466 }
 0xb64   :  { %v11043_v53 = vadd.f32 -1.0, %v11467_v43 }
 0xb65   :  { %11468 = vpow2.f32 %v10037_v3  ;;  %v9961_v12 = vadd.f32 %v9945_v17, %v16058_v36 }
 0xb66   :  { %v9346_v47 = vpop.f32.mrf.mxu0  ;;  %v10073_v16 = vsel %vm9993_vm12, %v9977_v38, %v11043_v53 }
 0xb67   :  { %v9979_v63 = vadd.f32 %v16780_v60, %v9961_v12  ;;  %v9444_v21 = vadd.f32 %v9443_v15, %v9346_v47  ;;  %v9930_v8 = vpop.f32.mrf.mxu3 }
 0xb69   :  { %v10011_v10 = vmin.f32 %v9979_v63, 0.0  ;;  %v9721_v24 = vadd.f32 %v9700_v34, %v9444_v21  ;;  %vm9995_vm7 = vcmp.gt.f32.partialorder %v9979_v63, 0.0  ;;  %v16842_v21 = vld [vmem:[%s16963_s6] ss:$0 sm:$0xff] }
 0xb6b   :  { %v11469_v52 = vpop.eup %11468  ;;  %v9946_v13 = vadd.f32 %v9925_v23, %v9721_v24  ;;  %v10039_v19 = vmul.f32 1.442695, %v10011_v10  ;;  %v9446_v28 = vpop.f32.mrf.mxu2 }
 0xb6c   :  { %v11044_v32 = vadd.f32 -1.0, %v11469_v52 }
 0xb6d   :  { %v9962_v18 = vadd.f32 %v9946_v13, %v16190_v30  ;;  %11470 = vpow2.f32 %v10039_v19 }
 0xb6e   :  { %v9349_v36 = vpop.f32.mrf.mxu0  ;;  %v10074_v59 = vsel %vm9994_vm1, %v9978_v20, %v11044_v32 }
 0xb6f   :  { %v9980_v33 = vadd.f32 %v16780_v60, %v9962_v18  ;;  %v10084_v55 = vpack.c.bf16 %v10074_v59, %v10073_v16  ;;  %v9447_v25 = vadd.f32 %v9446_v28, %v9349_v36 }
 0xb71   :  { %v10012_v0 = vmin.f32 %v9980_v33, 0.0  ;;  %11062 = vmatmul.msk.bf16.gmra.mxu0 %vm459_vm4, %v10084_v55  ;;  %vm9996_vm8 = vcmp.gt.f32.partialorder %v9980_v33, 0.0 }
 0xb73   :  { %v10041_v45 = vmul.f32 1.442695, %v10012_v0  ;;  %v11471_v30 = vpop.eup %11470  ;;  %v9448_v41 = vpop.f32.mrf.mxu2 }
 0xb74   :  { %v9703_v31 = vpop.f32.mrf.mxu1  ;;  %v11045_v57 = vadd.f32 -1.0, %v11471_v30 }
 0xb75   :  { %11472 = vpow2.f32 %v10041_v45  ;;  %v9722_v5 = vadd.f32 %v9703_v31, %v9447_v25 }
 0xb76   :  { %v9351_v56 = vpop.f32.mrf.mxu0  ;;  %v10075_v58 = vsel %vm9995_vm7, %v9979_v63, %v11045_v57 }
 0xb77   :  { %v9947_v54 = vadd.f32 %v9928_v51, %v9722_v5  ;;  %v9449_v62 = vadd.f32 %v9448_v41, %v9351_v56 }
 0xb79   :  { %v9963_v46 = vadd.f32 %v9947_v54, %v16332_v9 }
 0xb7b   :  { %v11473_v4 = vpop.eup %11472  ;;  %v9981_v7 = vadd.f32 %v16780_v60, %v9963_v46 }
 0xb7c   :  { %v9705_v38 = vpop.f32.mrf.mxu1  ;;  %v11046_v14 = vadd.f32 -1.0, %v11473_v4 }
 0xb7d   :  { %v10013_v61 = vmin.f32 %v9981_v7, 0.0  ;;  %v9723_v50 = vadd.f32 %v9705_v38, %v9449_v62  ;;  %vm9997_vm10 = vcmp.gt.f32.partialorder %v9981_v7, 0.0 }
 0xb7e   :  { %v10076_v22 = vsel %vm9996_vm8, %v9980_v33, %v11046_v14  ;;  %v10140_v20 = vpop.f32.mrf.mxu0 }
 0xb7f   :  { %v9948_v11 = vadd.f32 %v9930_v8, %v9723_v50  ;;  %v10085_v6 = vpack.c.bf16 %v10076_v22, %v10075_v58  ;;  %v10043_v37 = vmul.f32 1.442695, %v10013_v61  ;;  %v10141_v34 = vadd.f32 %v16842_v21, %v10140_v20 }
 0xb81   :  { %v9964_v9 = vadd.f32 %v9948_v11, %v16151_v49  ;;  %11063 = vmatmul.msk.bf16.gmra.mxu0 %vm459_vm4, %v10085_v6  ;;  %11474 = vpow2.f32 %v10043_v37  ;;  %v10196_v23 = vmin.f32 %v10141_v34, 0.0 }
 0xb83   :  { %v9982_v42 = vadd.f32 %v16780_v60, %v9964_v9  ;;  %v10212_v52 = vmul.f32 1.442695, %v10196_v23 }
 0xb85   :  { %v10014_v48 = vmin.f32 %v9982_v42, 0.0  ;;  %vm9998_vm0 = vcmp.gt.f32.partialorder %v9982_v42, 0.0 }
 0xb86   :  { %v10142_v49 = vpop.f32.mrf.mxu0 }
 0xb87   :  { %v10045_v26 = vmul.f32 1.442695, %v10014_v48  ;;  %v11475_v2 = vpop.eup %11474  ;;  %v10143_v10 = vadd.f32 %v16842_v21, %v10142_v49 }
 0xb88   :  { %v11047_v39 = vadd.f32 -1.0, %v11475_v2 }
 0xb89   :  { %11476 = vpow2.f32 %v10045_v26  ;;  %v10197_v53 = vmin.f32 %v10143_v10, 0.0  ;;  %vm10181_vm2 = vcmp.gt.f32.partialorder %v10143_v10, 0.0 }
 0xb8a   :  { %v10077_v40 = vsel %vm9997_vm10, %v9981_v7, %v11047_v39  ;;  %11478 = vpow2.f32 %v10212_v52 }
 0xb8b   :  { %v10214_v13 = vmul.f32 1.442695, %v10197_v53 }
 0xb8d   :  { %11480 = vpow2.f32 %v10214_v13 }
 0xb8e   :  { %v10145_v29 = vpop.f32.mrf.mxu0 }
 0xb8f   :  { %v11477_v27 = vpop.eup %11476  ;;  %v16855_v36 = vadd.f32 %v16842_v21, %v10145_v29 }
 0xb90   :  { %v11048_v1 = vadd.f32 -1.0, %v11477_v27  ;;  %v11479_v59 = vpop.eup %11478 }
 0xb91   :  { %v10198_v0 = vmin.f32 %v16855_v36, 0.0  ;;  %v11065_v51 = vadd.f32 -1.0, %v11479_v59  ;;  %vm10182_vm3 = vcmp.gt.f32.partialorder %v16855_v36, 0.0 }
 0xb92   :  { %v10078_v35 = vsel %vm9998_vm0, %v9982_v42, %v11048_v1 }
 0xb93   :  { %v10086_v44 = vpack.c.bf16 %v10078_v35, %v10077_v40  ;;  %v11481_v55 = vpop.eup %11480  ;;  %v10216_v46 = vmul.f32 1.442695, %v10198_v0 }
 0xb94   :  { %v11066_v31 = vadd.f32 -1.0, %v11481_v55 }
 0xb95   :  { %11064 = vmatmul.msk.bf16.gmra.mxu0 %vm459_vm4, %v10086_v44  ;;  %vm10180_vm4 = vcmp.gt.f32.partialorder %v10141_v34, 0.0 }
 0xb96   :  { %v10147_v3 = vpop.f32.mrf.mxu0  ;;  %v16871_v4 = vsel %vm10180_vm4, %v10141_v34, %v11065_v51  ;;  %v16873_v7 = vsel %vm10181_vm2, %v10143_v10, %v11066_v31 }
 0xb97   :  { %v16858_v16 = vadd.f32 %v16842_v21, %v10147_v3  ;;  %v10277_v38 = vpack.c.bf16 %v16873_v7, %v16871_v4 }
 0xb99   :  { %v10199_v45 = vmin.f32 %v16858_v16, 0.0  ;;  %vm10183_vm9 = vcmp.gt.f32.partialorder %v16858_v16, 0.0 }
 0xb9b   :  { %v10218_v41 = vmul.f32 1.442695, %v10199_v45 }
 0xb9e   :  { %v10150_v60 = vpop.f32.mrf.mxu0 }
 0xb9f   :  { %v16879_v14 = vadd.f32 %v16842_v21, %v10150_v60 }
 0xba1   :  { %v10200_v9 = vmin.f32 %v16879_v14, 0.0  ;;  %vm10184_vm12 = vcmp.gt.f32.partialorder %v16879_v14, 0.0 }
 0xba3   :  { %v10220_v40 = vmul.f32 1.442695, %v10200_v9 }
 0xba6   :  { %v10152_v17 = vpop.f32.mrf.mxu0 }
 0xba7   :  { %v16885_v58 = vadd.f32 %v16842_v21, %v10152_v17 }
 0xba9   :  { %v10201_v2 = vmin.f32 %v16885_v58, 0.0  ;;  %vm10185_vm1 = vcmp.gt.f32.partialorder %v16885_v58, 0.0 }
 0xbab   :  { %v10222_v60 = vmul.f32 1.442695, %v10201_v2 }
 0xbae   :  { %v10155_v12 = vpop.f32.mrf.mxu0 }
 0xbaf   :  { %v16865_v5 = vadd.f32 %v16842_v21, %v10155_v12 }
 0xbb1   :  { %v10202_v57 = vmin.f32 %v16865_v5, 0.0  ;;  %vm10186_vm15 = vcmp.gt.f32.partialorder %v16865_v5, 0.0 }
 0xbb3   :  { %v10224_v50 = vmul.f32 1.442695, %v10202_v57 }
 0xbb6   :  { %v10157_v15 = vpop.f32.mrf.mxu0 }
 0xbb7   :  { %v16868_v54 = vadd.f32 %v16842_v21, %v10157_v15 }
 0xbb9   :  { %v10203_v62 = vmin.f32 %v16868_v54, 0.0  ;;  %vm10187_vm13 = vcmp.gt.f32.partialorder %v16868_v54, 0.0 }
 0xbbb   :  { %v10226_v22 = vmul.f32 1.442695, %v10203_v62 }
 0xbde   :  { %v10160_v47 = vpop.f32.mrf.mxu0 }
 0xbdf   :  { %v16849_v19 = vadd.f32 %v16842_v21, %v10160_v47 }
 0xbe1   :  { %v10204_v33 = vmin.f32 %v16849_v19, 0.0  ;;  %vm10188_vm5 = vcmp.gt.f32.partialorder %v16849_v19, 0.0 }
 0xbe3   :  { %v10228_v30 = vmul.f32 1.442695, %v10204_v33 }
 0xbe5   :  { %11482 = vpow2.f32 %v10228_v30 }
 0xbe6   :  { %v10162_v43 = vpop.f32.mrf.mxu0 }
 0xbe7   :  { %v16852_v18 = vadd.f32 %v16842_v21, %v10162_v43 }
 0xbe9   :  { %v10205_v28 = vmin.f32 %v16852_v18, 0.0  ;;  %vm10189_vm6 = vcmp.gt.f32.partialorder %v16852_v18, 0.0 }
 0xbeb   :  { %v10230_v56 = vmul.f32 1.442695, %v10205_v28  ;;  %v11483_v11 = vpop.eup %11482 }
 0xbec   :  { %v11073_v27 = vadd.f32 -1.0, %v11483_v11 }
 0xbed   :  { %11484 = vpow2.f32 %v10230_v56 }
 0xbee   :  { %v16837_v63 = vpop.f32.mrf.mxu0  ;;  %11486 = vpow2.f32 %v10216_v46  ;;  %v16903_v47 = vsel %vm10188_vm5, %v16849_v19, %v11073_v27 }
 0xbef   :  { %11488 = vpow2.f32 %v10218_v41 }
 0xbf0   :  { %11490 = vpow2.f32 %v10224_v50 }
 0xbf1   :  { %11492 = vpow2.f32 %v10226_v22 }
 0xbf3   :  { %v11485_v37 = vpop.eup %11484 }
 0xbf4   :  { %v11487_v42 = vpop.eup %11486  ;;  %v11074_v20 = vadd.f32 -1.0, %v11485_v37 }
 0xbf5   :  { %v11489_v26 = vpop.eup %11488  ;;  %v11067_v44 = vadd.f32 -1.0, %v11487_v42 }
 0xbf6   :  { %v16846_v24 = vpop.f32.mrf.mxu0  ;;  %v11068_v49 = vadd.f32 -1.0, %v11489_v26  ;;  %v11491_v12 = vpop.eup %11490  ;;  %v16906_v43 = vsel %vm10189_vm6, %v16852_v18, %v11074_v20 }
 0xbf7   :  { %v11493_v34 = vpop.eup %11492  ;;  %v10168_v10 = vadd.f32 %v16842_v21, %v16846_v24  ;;  %v10281_v23 = vpack.c.bf16 %v16906_v43, %v16903_v47  ;;  %v16916_v13 = vsel %vm10182_vm3, %v16855_v36, %v11067_v44  ;;  %v11071_v19 = vadd.f32 -1.0, %v11491_v12 }
 0xbf8   :  { %v11072_v59 = vadd.f32 -1.0, %v11493_v34  ;;  %v10166_v24 = vadd.f32 %v16842_v21, %v16837_v63 }
 0xbf9   :  { %v10207_v28 = vmin.f32 %v10168_v10, 0.0  ;;  %vm10191_vm10 = vcmp.gt.f32.partialorder %v10168_v10, 0.0 }
 0xbfa   :  { %v10206_v36 = vmin.f32 %v10166_v24, 0.0  ;;  %v10267_v45 = vsel %vm10187_vm13, %v16868_v54, %v11072_v59  ;;  %vm10190_vm0 = vcmp.gt.f32.partialorder %v10166_v24, 0.0 }
 0xbfc   :  { %v10232_v57 = vmul.f32 1.442695, %v10206_v36 }
 0xbfe   :  { %v10170_v32 = vpop.f32.mrf.mxu0 }
 0xbff   :  { %v16894_v39 = vadd.f32 %v16842_v21, %v10170_v32  ;;  %v16919_v32 = vsel %vm10183_vm9, %v16858_v16, %v11068_v49  ;;  %v10266_v16 = vsel %vm10186_vm15, %v16865_v5, %v11071_v19 }
 0xc00   :  { %v10278_v18 = vpack.c.bf16 %v16919_v32, %v16916_v13  ;;  %v10280_v31 = vpack.c.bf16 %v10267_v45, %v10266_v16 }
 0xc01   :  { %v10208_v17 = vmin.f32 %v16894_v39, 0.0  ;;  %vm10192_vm8 = vcmp.gt.f32.partialorder %v16894_v39, 0.0 }
 0xc03   :  { %v10236_v33 = vmul.f32 1.442695, %v10208_v17 }
 0xc06   :  { %v10172_v25 = vpop.f32.mrf.mxu0 }
 0xc07   :  { %v16890_v48 = vadd.f32 %v16842_v21, %v10172_v25 }
 0xc09   :  { %v10209_v29 = vmin.f32 %v16890_v48, 0.0  ;;  %vm10193_vm7 = vcmp.gt.f32.partialorder %v16890_v48, 0.0 }
 0xc0b   :  { %v10238_v53 = vmul.f32 1.442695, %v10209_v29 }
 0xc12   :  { %v10175_v61 = vpop.f32.mrf.mxu0 }
 0xc13   :  { %v16882_v8 = vadd.f32 %v16842_v21, %v10175_v61 }
 0xc15   :  { %v10210_v6 = vmin.f32 %v16882_v8, 0.0  ;;  %vm10194_vm14 = vcmp.gt.f32.partialorder %v16882_v8, 0.0 }
 0xc17   :  { %v10240_v1 = vmul.f32 1.442695, %v10210_v6 }
 0xc19   :  { %11494 = vpow2.f32 %v10240_v1 }
 0xc1a   :  { %v10177_v35 = vpop.f32.mrf.mxu0  ;;  %11496 = vpow2.f32 %v10220_v40  ;;  %v10276_v40 = vld [vmem:[%s16964_s7] sm:$0x3] }
 0xc1b   :  { %v10178_v3 = vadd.f32 %v16842_v21, %v10177_v35  ;;  %11498 = vpow2.f32 %v10222_v60  ;;  %v10234_v21 = vmul.f32 1.442695, %v10207_v28 }
 0xc1d   :  { %v10211_v15 = vmin.f32 %v10178_v3, 0.0  ;;  %vm10195_vm11 = vcmp.gt.f32.partialorder %v10178_v3, 0.0 }
 0xc1f   :  { %v10242_v52 = vmul.f32 1.442695, %v10211_v15  ;;  %v11495_v55 = vpop.eup %11494 }
 0xc20   :  { %v11497_v0 = vpop.eup %11496  ;;  %v11079_v51 = vadd.f32 -1.0, %v11495_v55 }
 0xc21   :  { %11500 = vpow2.f32 %v10242_v52  ;;  %v11499_v25 = vpop.eup %11498  ;;  %v11069_v30 = vadd.f32 -1.0, %v11497_v0 }
 0xc22   :  { %11502 = vpow2.f32 %v10238_v53  ;;  %v11070_v41 = vadd.f32 -1.0, %v11499_v25  ;;  %v10274_v62 = vsel %vm10194_vm14, %v16882_v8, %v11079_v51 }
 0xc23   :  { %11504 = vpow2.f32 %v10236_v33  ;;  %v10264_v22 = vsel %vm10184_vm12, %v16879_v14, %v11069_v30 }
 0xc24   :  { %11506 = vpow2.f32 %v10234_v21  ;;  %v10265_v11 = vsel %vm10185_vm1, %v16885_v58, %v11070_v41 }
 0xc25   :  { %11508 = vpow2.f32 %v10232_v57  ;;  %v10279_v37 = vpack.c.bf16 %v10265_v11, %v10264_v22 }
 0xc27   :  { %v11501_v63 = vpop.eup %11500 }
 0xc28   :  { %v11080_v56 = vadd.f32 -1.0, %v11501_v63  ;;  %v11503_v46 = vpop.eup %11502 }
 0xc29   :  { %v11505_v50 = vpop.eup %11504  ;;  %v11078_v54 = vadd.f32 -1.0, %v11503_v46 }
 0xc2a   :  { %v10275_v61 = vsel %vm10195_vm11, %v10178_v3, %v11080_v56  ;;  %v11077_v6 = vadd.f32 -1.0, %v11505_v50  ;;  %v11507_v9 = vpop.eup %11506 }
 0xc2b   :  { %v10284_v5 = vpack.c.bf16 %v10275_v61, %v10274_v62  ;;  %v10273_v8 = vsel %vm10193_vm7, %v16890_v48, %v11078_v54  ;;  %v11509_v26 = vpop.eup %11508  ;;  %v11076_v27 = vadd.f32 -1.0, %v11507_v9  ;;  %v10285_v48 = vld [vmem:[%s16965_s8] sm:$0xf]  ;;  %s11541_s8 = smov [#allocation2]  }
 0xc2c   :  { %v10272_v42 = vsel %vm10192_vm8, %v16894_v39, %v11077_v6  ;;  %v11075_v20 = vadd.f32 -1.0, %v11509_v26  ;;  %v11540_v39 = vmov 0   ;;  %s10310_s29 = sshll.u32 %s11541_s8, 4  ;;  %s10311_s29 = int_to_ptr.vmem [resolvable:$true] %s10310_s29 }
 0xc2d   :  { %10291 = vmatpush.bf16.xpose.msrb.mxu2 %v10284_v5  ;;  %v10283_v2 = vpack.c.bf16 %v10273_v8, %v10272_v42  ;;  %v10271_v14 = vsel %vm10191_vm10, %v10168_v10, %v11076_v27  ;;  %11210 = vset.pattern.permute.xlu1 %v11540_v39 }
 0xc2e   :  { %v10270_v58 = vsel %vm10190_vm0, %v10166_v24, %v11075_v20  ;;  %10288 = vperm.xlu1 %11210, %v10285_v48   ;;  %11211 = vset.pattern.permute.xlu0 %v11540_v39 }
 0xc2f   :  { %v10282_v1 = vpack.c.bf16 %v10271_v14, %v10270_v58 }
 0xc35   :  { %10292 = vmatpush.bf16.xpose.msrb.mxu2 %v10283_v2 }
 0xc3d   :  { %10293 = vmatpush.bf16.xpose.msrb.mxu2 %v10282_v1 }
 0xc45   :  { %10294 = vmatpush.bf16.xpose.msrb.mxu2 %v10281_v23 }
 0xc4d   :  { %10295 = vmatpush.bf16.xpose.msrb.mxu2 %v10280_v31 }
 0xc55   :  { %10296 = vmatpush.bf16.xpose.msrb.mxu2 %v10279_v37 }
 0xc5d   :  { %10297 = vmatpush.bf16.xpose.msrb.mxu2 %v10278_v18 }
 0xc65   :  { %10298 = vmatpush.bf16.xpose.msrb.mxu2 %v10277_v38 }
 0xc6c   :  { %10299 = vmatmul.bf16.vlgmr.msrb.gmra.mxu2 %v10276_v40 }
 0xca0   :  { %v10289_v35 = vpop.permute.xlu1 %10288 }
 0xcef   :  { %v10300_v44 = vpop.f32.mrf.mxu2 }
 0xcf0   :  { %v10301_v49 = vadd.f32 %v10300_v44, %v10289_v35 }
 0xcf2   :  { %10304 = vst [vmem:[#allocation2] sm:$0xf] %v10301_v49 }
 0xcf3   :  { %10315 = dma.vmem_to_hbm [thread:$0]  %s10311_s29, 64, %s10313_s11, [#allocation3]  }
 0xcf7   :  { %v10302_v4 = vpop.f32.mrf.mxu2 }
 0xcf8   :  { %11535 = dma.done.wait [#allocation3], 64  }
 0xcf9   :  { %11536 = vsyncadd [#allocation3], 4294967232 }
 0xcfa   :  { %10320 = vsyncpa [#allocation3], 1 }

</bundles_post_ra>
